<compile_context>
chip_gen: v6e
topology: v6e:2x2x1
jax: 0.10.0
libtpu: 0.0.40
codegen_flags: <defaults>
</compile_context>

<pallas_src>
import functools

import jax
import jax.numpy as jnp
from jax.experimental import pallas as pl
from jax.experimental.pallas import tpu as pltpu


def _gmm_kernel(x_ref, w_ref, const_ref, o_ref, *, K, L, precision):
    # x_ref:     (tn, D)      tile of flattened input rows (f32)
    # w_ref:     (2D, L*K)    fused weights: rows [0:D] = (mu*inv_var)^T,
    #                                        rows [D:2D] = inv_var^T  (L-major cols)
    # const_ref: (1, L*K)     C + CC - 0.5*sum(mu^2 * inv_var)        (L-major cols)
    # o_ref:     (tn, K)      per-BPE log-likelihood
    x = x_ref[...]                                              # (tn, D)
    # Fused quadratic form: one MXU matmul with doubled contraction depth.
    x2 = jnp.concatenate([x, -0.5 * x * x], axis=1)             # (tn, 2D)
    score = jnp.dot(x2, w_ref[...],
                    preferred_element_type=jnp.float32,
                    precision=precision) + const_ref[...]       # (tn, L*K)

    tn = score.shape[0]
    # L-major / K-minor ordering: L goes to sublanes, K to lanes.
    s3 = score.reshape(tn, L, K)
    # Numerically-stable logsumexp over the mixture axis L (sublane reduce).
    m = jnp.max(s3, axis=1, keepdims=True)                      # (tn, 1, K)
    o_ref[...] = m[:, 0, :] + jnp.log(jnp.sum(jnp.exp(s3 - m), axis=1))


def gmm_forward(X, mu, log_cov, log_pi, *, tn=256, precision=None):
    """Pallas implementation of compute_gmm_pdf_per_sample.

    precision: None (DEFAULT, fast MXU path) or jax.lax.Precision.* for validation.
    """
    B, T, F = X.shape
    K, L, D = mu.shape
    assert D == F
    assert tn % 8 == 0, "row tile must be a multiple of the sublane count"
    N = B * T

    inv_var = jnp.exp(-log_cov)                                        # (K, L, D)
    C = -D / 2.0 * jnp.log(2.0 * jnp.pi) - 0.5 * jnp.sum(log_cov, -1)  # (K, L)
    CC = log_pi - jax.scipy.special.logsumexp(log_pi, axis=-1, keepdims=True)
    c_quad = 0.5 * jnp.sum(mu * mu * inv_var, -1)                      # (K, L)

    # L-major / K-minor column ordering: column index = l*K + k.
    const = jnp.transpose(C + CC - c_quad).reshape(1, L * K).astype(jnp.float32)
    at = jnp.transpose(inv_var, (1, 0, 2)).reshape(L * K, D)           # inv_var, L-major rows
    bt = jnp.transpose(mu * inv_var, (1, 0, 2)).reshape(L * K, D)      # mu*inv_var, L-major rows
    # Fused weight: score = [x, -0.5*x*x] @ W + const
    W = jnp.concatenate([bt, at], axis=1).T.astype(jnp.float32)        # (2D, L*K)

    # Pad rows so the flattened row count is a multiple of the tile.
    n_pad = pl.cdiv(N, tn) * tn
    x_flat = X.reshape(N, D).astype(jnp.float32)
    if n_pad != N:
        x_flat = jnp.pad(x_flat, ((0, n_pad - N), (0, 0)))

    kernel = functools.partial(_gmm_kernel, K=K, L=L, precision=precision)

    out = pl.pallas_call(
        kernel,
        out_shape=jax.ShapeDtypeStruct((n_pad, K), jnp.float32),
        grid_spec=pltpu.PrefetchScalarGridSpec(
            num_scalar_prefetch=0,
            grid=(n_pad // tn,),
            in_specs=[
                pl.BlockSpec((tn, D), lambda i: (i, 0)),         # streamed rows
                pl.BlockSpec((2 * D, L * K), lambda i: (0, 0)),  # grid-invariant weights
                pl.BlockSpec((1, L * K), lambda i: (0, 0)),      # grid-invariant consts
            ],
            out_specs=pl.BlockSpec((tn, K), lambda i: (i, 0)),
        ),
        compiler_params=pltpu.CompilerParams(
            dimension_semantics=("parallel",)),
    )(x_flat, W, const)

    return out[:N].reshape(B, T, K)


def gmm_reference(X, mu, log_cov, log_pi):
    """Plain-JAX reference matching the PyTorch code literally."""
    B, T, F = X.shape
    K, L, D = mu.shape
    C = -jnp.ones((K, L)) * D / 2.0 * jnp.log(2.0 * jnp.pi) - 0.5 * jnp.sum(log_cov, -1)
    CC = log_pi - jax.scipy.special.logsumexp(log_pi, axis=-1, keepdims=True)
    x = X.reshape(B * T, F)
    centered = x[:, None, None, :] - mu[None]                          # (N, K, L, D)
    ULL = 0.5 * jnp.sum(centered * centered / jnp.exp(log_cov)[None], -1)
    LL = jax.scipy.special.logsumexp(C[None] - ULL + CC[None], axis=-1)
    return LL.reshape(B, T, K)


if __name__ == "__main__":
    # Small, module-consistent shapes: num_bpe=K, num_gauss=L, fea_dim=D.
    B, T = 2, 8
    K, L, D = 16, 4, 32
    init_mean = jnp.zeros((D,), jnp.float32)
    init_std = 1.0

    key = jax.random.PRNGKey(0)
    k_mu, k_x = jax.random.split(key)

    # Deterministic parameter init mirroring __init__:
    #   mu = rand(K, L, D) * init_std + init_mean;  log_cov = 0;  log_pi = log(1/L)
    mu = jax.random.uniform(k_mu, (K, L, D), jnp.float32) * init_std + init_mean[None, None, :]
    log_cov = jnp.zeros((K, L, D), jnp.float32)
    log_pi = jnp.log(jnp.full((K, L), 1.0 / L, jnp.float32))

    X = jax.random.normal(k_x, (B, T, D), jnp.float32)
    ref = gmm_reference(X, mu, log_cov, log_pi)

    # 1) Fast path: DEFAULT matmul precision (single-pass MXU). Tolerance reflects
    #    the intentional precision downgrade of the review.
    out_fast = jax.block_until_ready(gmm_forward(X, mu, log_cov, log_pi, tn=256))
    assert out_fast.shape == (B, T, K)
    assert jnp.allclose(out_fast, ref, rtol=1e-2, atol=1e-2), (
        f"fast path max abs err = {jnp.max(jnp.abs(out_fast - ref))}")

    # 2) Algebra validation: same kernel at HIGHEST precision must match tightly
    #    (guards against the expanded-quadratic-form cancellation concern).
    out_exact = jax.block_until_ready(
        gmm_forward(X, mu, log_cov, log_pi, tn=256,
                    precision=jax.lax.Precision.HIGHEST))
    assert jnp.allclose(out_exact, ref, rtol=1e-4, atol=1e-4), (
        f"exact path max abs err = {jnp.max(jnp.abs(out_exact - ref))}")

    print("KERNEL_OK")
</pallas_src>

<mosaic_0001>
module attributes {stable_mosaic.version = 11 : i64} {
  func.func @_gmm_kernel(%arg0: i32, %arg1: memref<256x32xf32, #tpu.memory_space<vmem>>, %arg2: memref<64x64xf32, #tpu.memory_space<vmem>>, %arg3: memref<1x64xf32, #tpu.memory_space<vmem>>, %arg4: memref<256x16xf32, #tpu.memory_space<vmem>>) attributes {dimension_semantics = [#tpu.dimension_semantics<parallel>], iteration_bounds = array<i64: 1>, scalar_prefetch = 0 : i64, scratch_operands = 0 : i64, tpu.core_type = #tpu.core_type<tc>, window_params = [{transform_indices = @transform_0, window_bounds = array<i64: 256, 32>}, {pipeline_mode = #tpu.pipeline_mode<synchronous>, transform_indices = @transform_1, window_bounds = array<i64: 64, 64>}, {pipeline_mode = #tpu.pipeline_mode<synchronous>, transform_indices = @transform_2, window_bounds = array<i64: 1, 64>}, {transform_indices = @transform_3, window_bounds = array<i64: 256, 16>}]} {
    %c0 = arith.constant 0 : index
    %c0_0 = arith.constant 0 : index
    %0 = vector.load %arg1[%c0, %c0_0] : memref<256x32xf32, #tpu.memory_space<vmem>>, vector<256x32xf32>
    %cst = arith.constant -5.000000e-01 : f32
    %1 = vector.broadcast %cst : f32 to vector<256x32xf32>
    %2 = arith.mulf %1, %0 : vector<256x32xf32>
    %3 = arith.mulf %2, %0 : vector<256x32xf32>
    %4 = tpu.concatenate %0, %3 in 1 : vector<256x32xf32>, vector<256x32xf32> -> vector<256x64xf32>
    %c0_1 = arith.constant 0 : index
    %c0_2 = arith.constant 0 : index
    %5 = vector.load %arg2[%c0_1, %c0_2] : memref<64x64xf32, #tpu.memory_space<vmem>>, vector<64x64xf32>
    %cst_3 = arith.constant dense<0.000000e+00> : vector<256x64xf32>
    %6 = tpu.matmul %4, %5, %cst_3 {dimension_numbers = #tpu.dot_dimension_numbers<[1], [0], [0], [1], [0, 0, 1, 1], [], []>} : vector<256x64xf32>, vector<64x64xf32>, vector<256x64xf32> -> vector<256x64xf32>
    %c0_4 = arith.constant 0 : index
    %c0_5 = arith.constant 0 : index
    %7 = vector.load %arg3[%c0_4, %c0_5] : memref<1x64xf32, #tpu.memory_space<vmem>>, vector<1x64xf32>
    %8 = vector.broadcast %7 : vector<1x64xf32> to vector<256x64xf32>
    %9 = arith.addf %6, %8 : vector<256x64xf32>
    %10 = vector.shape_cast %9 : vector<256x64xf32> to vector<256x4x16xf32>
    %cst_6 = arith.constant dense<0xFF800000> : vector<256x16xf32>
    %11 = vector.multi_reduction <maximumf>, %10, %cst_6 [1] : vector<256x4x16xf32> to vector<256x16xf32>
    %12 = vector.shape_cast %11 : vector<256x16xf32> to vector<256x1x16xf32>
    %13 = vector.shape_cast %12 : vector<256x1x16xf32> to vector<256x16xf32>
    %14 = vector.broadcast %12 : vector<256x1x16xf32> to vector<256x4x16xf32>
    %15 = arith.subf %10, %14 : vector<256x4x16xf32>
    %16 = math.exp %15 : vector<256x4x16xf32>
    %cst_7 = arith.constant dense<0.000000e+00> : vector<256x16xf32>
    %17 = vector.multi_reduction <add>, %16, %cst_7 [1] : vector<256x4x16xf32> to vector<256x16xf32>
    %18 = math.log %17 : vector<256x16xf32>
    %19 = arith.addf %13, %18 : vector<256x16xf32>
    %c0_8 = arith.constant 0 : index
    %c0_9 = arith.constant 0 : index
    %20 = vector.load %arg4[%c0_8, %c0_9] : memref<256x16xf32, #tpu.memory_space<vmem>>, vector<256x16xf32>
    tpu.vector_store %arg4[%c0_8, %c0_9], %19 {strides = array<i32>} : memref<256x16xf32, #tpu.memory_space<vmem>>, vector<256x16xf32>,
    return
  }
  func.func @transform_0(%arg0: i32) -> (i32, i32) {
    %c0_i32 = arith.constant 0 : i32
    %c0_i32_0 = arith.constant 0 : i32
    return %arg0, %c0_i32 : i32, i32
  }
  func.func @transform_1(%arg0: i32) -> (i32, i32) {
    %c0_i32 = arith.constant 0 : i32
    %c0_i32_0 = arith.constant 0 : i32
    %c0_i32_1 = arith.constant 0 : i32
    return %c0_i32, %c0_i32_0 : i32, i32
  }
  func.func @transform_2(%arg0: i32) -> (i32, i32) {
    %c0_i32 = arith.constant 0 : i32
    %c0_i32_0 = arith.constant 0 : i32
    %c0_i32_1 = arith.constant 0 : i32
    return %c0_i32, %c0_i32_0 : i32, i32
  }
  func.func @transform_3(%arg0: i32) -> (i32, i32) {
    %c0_i32 = arith.constant 0 : i32
    %c0_i32_0 = arith.constant 0 : i32
    return %arg0, %c0_i32 : i32, i32
  }
}

</mosaic_0001>

<bundles_post_ra>
// kernel: tpu_custom_call.1
= control target key start
LH: loop header
LB: loop body
LE: loop exit
PB: predicated region body
PF: predicated region fallthrough
CT: control target
= control target key end

     0   :  { %s9967_s24 = smov 32   ;;  %vm238_vm0 = vcmask 261120   ;;  %vm286_vm1 = vcmask 523264   ;;  %s9968_s12 = smov 112   ;;  %vm3104_vm2 = vcmask 125952   ;;  %vm8481_vm3 = vcmask 1041409   ;;  %s15230_s0 = inlined_call_operand.vmem [shape: f32[256,32], index: 0, kind: input, shape index: {}]   ;;  %s15231_s1 = inlined_call_operand.vmem [shape: f32[64,64], index: 1, kind: input, shape index: {}]   ;;  %s15232_s2 = inlined_call_operand.vmem [shape: f32[1,64], index: 2, kind: input, shape index: {}]   ;;  %s15233_s3 = inlined_call_operand.vmem [shape: f32[256,16], index: 3, kind: output, shape index: {}]  }
   0x1   :  { %v9997_v0 = vld [vmem:[%s15230_s0] sm:$0xff]  ;;  %v10002_v1 = vld [vmem:[%s15230_s0 + $0x8] sm:$0xff]  ;;  %v10021_v8 = vld [vmem:[%s15230_s0 + $0x10] sm:$0xff]  ;;  %s9969_s13 = smov 96   ;;  %s9970_s14 = smov 80   ;;  %vm8483_vm4 = vcmask 1042434  }
   0x2   :  { %v10007_v2 = vld [vmem:[%s15230_s0 + $0x80] sm:$0xff]  ;;  %v46_v3 = vmul.f32 -0.5, %v9997_v0  ;;  %v47_v4 = vmul.f32 -0.5, %v10002_v1  ;;  %v10015_v6 = vld [vmem:[%s15230_s0 + $0x88] sm:$0xff]  ;;  %v10026_v9 = vld [vmem:[%s15230_s0 + $0x90] sm:$0xff]  ;;  %v48_v14 = vmul.f32 -0.5, %v10021_v8 }
   0x3   :  { %v62_v5 = vmul.f32 -0.5, %v10007_v2  ;;  %v63_v7 = vmul.f32 -0.5, %v10015_v6  ;;  %v64_v15 = vmul.f32 -0.5, %v10026_v9  ;;  %v10039_v16 = vld [vmem:[%s15230_s0 + $0x18] sm:$0xff]  ;;  %v277_v19 = vld [vmem:[%s15231_s1 + $0x30] sm:$0xff]  ;;  %v10061_v24 = vld [vmem:[%s15230_s0 + $0x20] sm:$0xff] }
   0x4   :  { %v78_v10 = vmul.f32 %v46_v3, %v9997_v0  ;;  %v79_v11 = vmul.f32 %v47_v4, %v10002_v1  ;;  %v10044_v17 = vld [vmem:[%s15230_s0 + $0x98] sm:$0xff]  ;;  %v80_v20 = vmul.f32 %v48_v14, %v10021_v8  ;;  %v49_v22 = vmul.f32 -0.5, %v10039_v16  ;;  %v10066_v25 = vld [vmem:[%s15230_s0 + $0xa0] sm:$0xff]  ;;  %v276_v26 = vld [vmem:[%s15231_s1 + $0x28] sm:$0xff] }
   0x5   :  { %v94_v12 = vmul.f32 %v62_v5, %v10007_v2  ;;  %v95_v13 = vmul.f32 %v63_v7, %v10015_v6  ;;  %v278_v18 = vld [vmem:[%s15231_s1 + $0x38] sm:$0xff]  ;;  %v96_v21 = vmul.f32 %v64_v15, %v10026_v9  ;;  %v65_v23 = vmul.f32 -0.5, %v10044_v17  ;;  %v275_v31 = vld [vmem:[%s15231_s1 + $0x20] sm:$0xff]  ;;  %v10083_v32 = vld [vmem:[%s15230_s0 + $0x28] sm:$0xff] }
   0x6   :  { %142 = vrot.lane.b32.xlu0 %v78_v10, %s9967_s24  ;;  %144 = vrot.lane.b32.xlu1 %v79_v11, %s9967_s24  ;;  %v81_v27 = vmul.f32 %v49_v22, %v10039_v16  ;;  %v50_v29 = vmul.f32 -0.5, %v10061_v24  ;;  %v66_v30 = vmul.f32 -0.5, %v10066_v25  ;;  %v10088_v33 = vld [vmem:[%s15230_s0 + $0xa8] sm:$0xff]  ;;  %v274_v34 = vld [vmem:[%s15231_s1 + $0x18] sm:$0xff]  ;;  %v51_v37 = vmul.f32 -0.5, %v10083_v32 }
   0x7   :  { %8854 = vmatprep.subr.mxu0 %v278_v18  ;;  %8918 = vmatprep.subr.mxu1 %v278_v18  ;;  %v97_v28 = vmul.f32 %v65_v23, %v10044_v17  ;;  %v67_v38 = vmul.f32 -0.5, %v10088_v33  ;;  %v10102_v39 = vld [vmem:[%s15230_s0 + $0x30] sm:$0xff]  ;;  %v272_v46 = vld [vmem:[%s15231_s1 + $0x8] sm:$0xff]  ;;  %v10124_v47 = vld [vmem:[%s15230_s0 + $0x38] sm:$0xff]  ;;  %vm8485_vm5 = vcmask 1043459   ;;  %vm8487_vm6 = vcmask 1044484  }
   0x8   :  { %8855 = vmatpush3.msra.mxu0 %v278_v18  ;;  %8926 = vmatpush3.msra.mxu1 %v278_v18  ;;  %v82_v35 = vmul.f32 %v50_v29, %v10061_v24  ;;  %v98_v36 = vmul.f32 %v66_v30, %v10066_v25  ;;  %v10107_v40 = vld [vmem:[%s15230_s0 + $0xb0] sm:$0xff]  ;;  %v83_v42 = vmul.f32 %v51_v37, %v10083_v32  ;;  %v52_v44 = vmul.f32 -0.5, %v10102_v39  ;;  %v10129_v48 = vld [vmem:[%s15230_s0 + $0xb8] sm:$0xff]  ;;  %v271_v49 = vld [vmem:[%s15231_s1] sm:$0xff] }
   0x9   :  { %8856 = vmatprep.subr.mxu0 %v277_v19  ;;  %8919 = vmatprep.subr.mxu1 %v277_v19  ;;  %v273_v41 = vld [vmem:[%s15231_s1 + $0x10] sm:$0xff]  ;;  %v99_v43 = vmul.f32 %v67_v38, %v10088_v33  ;;  %v68_v45 = vmul.f32 -0.5, %v10107_v40  ;;  %v53_v52 = vmul.f32 -0.5, %v10124_v47  ;;  %v69_v53 = vmul.f32 -0.5, %v10129_v48  ;;  %v10143_v54 = vld [vmem:[%s15230_s0 + $0x40] sm:$0xff]  ;;  %v10159_v60 = vld [vmem:[%s15230_s0 + $0x48] sm:$0xff] }
   0xa   :  { %174 = vrot.lane.b32.xlu0 %v94_v12, %s9967_s24  ;;  %176 = vrot.lane.b32.xlu1 %v95_v13, %s9967_s24  ;;  %v84_v50 = vmul.f32 %v52_v44, %v10102_v39  ;;  %v10148_v55 = vld [vmem:[%s15230_s0 + $0xc0] sm:$0xff]  ;;  %v54_v58 = vmul.f32 -0.5, %v10143_v54  ;;  %v10164_v61 = vld [vmem:[%s15230_s0 + $0xc8] sm:$0xff]  ;;  %v55_v3 = vmul.f32 -0.5, %v10159_v60  ;;  %vm8489_vm7 = vcmask 1045509  }
   0xb   :  { %8857 = vmatpush3.msra.mxu0 %v277_v19  ;;  %8927 = vmatpush3.msra.mxu1 %v277_v19  ;;  %v100_v51 = vmul.f32 %v68_v45, %v10107_v40  ;;  %v85_v56 = vmul.f32 %v53_v52, %v10124_v47  ;;  %v101_v57 = vmul.f32 %v69_v53, %v10129_v48  ;;  %v70_v59 = vmul.f32 -0.5, %v10148_v55  ;;  %v10175_v5 = vld [vmem:[%s15230_s0 + $0x50] sm:$0xff]  ;;  %v10191_v14 = vld [vmem:[%s15230_s0 + $0x58] sm:$0xff]  ;;  %v10207_v22 = vld [vmem:[%s15230_s0 + $0x60] sm:$0xff] }
   0xc   :  { %8858 = vmatprep.subr.mxu0 %v276_v26  ;;  %8920 = vmatprep.subr.mxu1 %v276_v26  ;;  %v86_v62 = vmul.f32 %v54_v58, %v10143_v54  ;;  %v71_v4 = vmul.f32 -0.5, %v10164_v61  ;;  %v10180_v7 = vld [vmem:[%s15230_s0 + $0xd0] sm:$0xff]  ;;  %v87_v10 = vmul.f32 %v55_v3, %v10159_v60  ;;  %v56_v12 = vmul.f32 -0.5, %v10175_v5  ;;  %v10196_v15 = vld [vmem:[%s15230_s0 + $0xd8] sm:$0xff]  ;;  %v10212_v23 = vld [vmem:[%s15230_s0 + $0xe0] sm:$0xff] }
   0xd   :  { %8859 = vmatpush3.msra.mxu0 %v276_v26  ;;  %8928 = vmatpush3.msra.mxu1 %v276_v26  ;;  %v102_v63 = vmul.f32 %v70_v59, %v10148_v55  ;;  %v72_v13 = vmul.f32 -0.5, %v10180_v7  ;;  %v74_v29 = vmul.f32 -0.5, %v10212_v23  ;;  %v10223_v30 = vld [vmem:[%s15230_s0 + $0x68] sm:$0xff]  ;;  %v10239_v38 = vld [vmem:[%s15230_s0 + $0x70] sm:$0xff]  ;;  %vm8491_vm8 = vcmask 1046534  }
   0xe   :  { %146 = vrot.lane.b32.xlu0 %v80_v20, %s9967_s24  ;;  %178 = vrot.lane.b32.xlu1 %v96_v21, %s9967_s24  ;;  %v103_v11 = vmul.f32 %v71_v4, %v10164_v61  ;;  %v88_v18 = vmul.f32 %v56_v12, %v10175_v5  ;;  %v57_v20 = vmul.f32 -0.5, %v10191_v14  ;;  %v73_v21 = vmul.f32 -0.5, %v10196_v15 }
   0xf   :  { %8860 = vmatprep.subr.mxu0 %v275_v31  ;;  %8921 = vmatprep.subr.mxu1 %v275_v31  ;;  %v104_v19 = vmul.f32 %v72_v13, %v10180_v7  ;;  %v60_v44 = vmul.f32 -0.5, %v10239_v38  ;;  %vm8493_vm9 = vcmask 1047559   ;;  %vm8744_vm10 = vcmask 130048  }
  0x10   :  { %8861 = vmatpush3.msra.mxu0 %v275_v31  ;;  %8929 = vmatpush3.msra.mxu1 %v275_v31  ;;  %v89_v26 = vmul.f32 %v57_v20, %v10191_v14  ;;  %v10228_v31 = vld [vmem:[%s15230_s0 + $0xe8] sm:$0xff] }
  0x11   :  { %8862 = vmatprep.subr.mxu0 %v274_v34  ;;  %8922 = vmatprep.subr.mxu1 %v274_v34  ;;  %v75_v37 = vmul.f32 -0.5, %v10228_v31 }
  0x12   :  { %148 = vrot.lane.b32.xlu0 %v81_v27, %s9967_s24  ;;  %180 = vrot.lane.b32.xlu1 %v97_v28, %s9967_s24  ;;  %v105_v27 = vmul.f32 %v73_v21, %v10196_v15  ;;  %v58_v28 = vmul.f32 -0.5, %v10207_v22 }
  0x13   :  { %8863 = vmatpush3.msra.mxu0 %v274_v34  ;;  %8930 = vmatpush3.msra.mxu1 %v274_v34 }
  0x14   :  { %8864 = vmatprep.subr.mxu0 %v273_v41  ;;  %8923 = vmatprep.subr.mxu1 %v273_v41  ;;  %v90_v34 = vmul.f32 %v58_v28, %v10207_v22 }
  0x15   :  { %8865 = vmatpush3.msra.mxu0 %v273_v41  ;;  %8931 = vmatpush3.msra.mxu1 %v273_v41  ;;  %v10244_v41 = vld [vmem:[%s15230_s0 + $0xf0] sm:$0xff] }
  0x16   :  { %150 = vrot.lane.b32.xlu0 %v82_v35, %s9967_s24  ;;  %182 = vrot.lane.b32.xlu1 %v98_v36, %s9967_s24  ;;  %v106_v35 = vmul.f32 %v74_v29, %v10212_v23  ;;  %v59_v36 = vmul.f32 -0.5, %v10223_v30  ;;  %v76_v45 = vmul.f32 -0.5, %v10244_v41 }
  0x17   :  { %8866 = vmatprep.subr.mxu0 %v272_v46  ;;  %8924 = vmatprep.subr.mxu1 %v272_v46 }
  0x18   :  { %8867 = vmatpush3.msra.mxu0 %v272_v46  ;;  %8932 = vmatpush3.msra.mxu1 %v272_v46  ;;  %v10255_v46 = vld [vmem:[%s15230_s0 + $0x78] sm:$0xff] }
  0x19   :  { %8868 = vmatprep.subr.mxu0 %v271_v49  ;;  %8925 = vmatprep.subr.mxu1 %v271_v49  ;;  %v61_v52 = vmul.f32 -0.5, %v10255_v46 }
  0x1a   :  { %152 = vrot.lane.b32.xlu0 %v83_v42, %s9967_s24  ;;  %184 = vrot.lane.b32.xlu1 %v99_v43, %s9967_s24  ;;  %v91_v42 = vmul.f32 %v59_v36, %v10223_v30  ;;  %v107_v43 = vmul.f32 %v75_v37, %v10228_v31 }
  0x1b   :  { %8869 = vmatpush3.msra.mxu0 %v271_v49  ;;  %8933 = vmatpush3.msra.mxu1 %v271_v49  ;;  %v10260_v49 = vld [vmem:[%s15230_s0 + $0xf8] sm:$0xff] }
  0x1c   :  { %v77_v53 = vmul.f32 -0.5, %v10260_v49 }
  0x1e   :  { %154 = vrot.lane.b32.xlu0 %v84_v50, %s9967_s24  ;;  %186 = vrot.lane.b32.xlu1 %v100_v51, %s9967_s24  ;;  %v92_v50 = vmul.f32 %v60_v44, %v10239_v38  ;;  %v108_v51 = vmul.f32 %v76_v45, %v10244_v41 }
  0x22   :  { %156 = vrot.lane.b32.xlu0 %v85_v56, %s9967_s24  ;;  %188 = vrot.lane.b32.xlu1 %v101_v57, %s9967_s24  ;;  %v93_v56 = vmul.f32 %v61_v52, %v10255_v46  ;;  %v109_v57 = vmul.f32 %v77_v53, %v10260_v49 }
  0x26   :  { %158 = vrot.lane.b32.xlu0 %v86_v62, %s9967_s24  ;;  %190 = vrot.lane.b32.xlu1 %v102_v63, %s9967_s24 }
  0x2a   :  { %160 = vrot.lane.b32.xlu0 %v87_v10, %s9967_s24  ;;  %192 = vrot.lane.b32.xlu1 %v103_v11, %s9967_s24 }
  0x2e   :  { %162 = vrot.lane.b32.xlu0 %v88_v18, %s9967_s24  ;;  %194 = vrot.lane.b32.xlu1 %v104_v19, %s9967_s24 }
  0x32   :  { %164 = vrot.lane.b32.xlu0 %v89_v26, %s9967_s24  ;;  %196 = vrot.lane.b32.xlu1 %v105_v27, %s9967_s24 }
  0x36   :  { %166 = vrot.lane.b32.xlu0 %v90_v34, %s9967_s24  ;;  %198 = vrot.lane.b32.xlu1 %v106_v35, %s9967_s24 }
  0x3a   :  { %168 = vrot.lane.b32.xlu0 %v91_v42, %s9967_s24  ;;  %200 = vrot.lane.b32.xlu1 %v107_v43, %s9967_s24 }
  0x3e   :  { %170 = vrot.lane.b32.xlu0 %v92_v50, %s9967_s24  ;;  %202 = vrot.lane.b32.xlu1 %v108_v51, %s9967_s24 }
  0x42   :  { %172 = vrot.lane.b32.xlu0 %v93_v56, %s9967_s24  ;;  %204 = vrot.lane.b32.xlu1 %v109_v57, %s9967_s24 }
  0x78   :  { %v143_v58 = vpop.permute.xlu0 %142  ;;  %v145_v59 = vpop.permute.xlu1 %144 }
  0x79   :  { %v240_v62 = vsel %vm238_vm0, %v10002_v1, %v145_v59  ;;  %v239_v63 = vsel %vm238_vm0, %v9997_v0, %v143_v58 }
  0x7a   :  { %8870 = vmatprep.mubr.msk.f32.mxu0 %vm286_vm1, %v239_v63 }
  0x7b   :  { %8871 = vmatmul.mubr.msk.f32.vlgmr.msra.gmra.mxu0 %vm286_vm1, %v240_v62 }
  0x7c   :  { %v175_v3 = vpop.permute.xlu0 %174  ;;  %v177_v4 = vpop.permute.xlu1 %176 }
  0x7d   :  { %v256_v10 = vsel %vm238_vm0, %v10015_v6, %v177_v4  ;;  %v255_v11 = vsel %vm238_vm0, %v10007_v2, %v175_v3 }
  0x7e   :  { %8894 = vmatprep.mubr.msk.f32.mxu1 %vm286_vm1, %v255_v11 }
  0x7f   :  { %8895 = vmatmul.mubr.msk.f32.vlgmr.msra.gmra.mxu1 %vm286_vm1, %v256_v10 }
  0x80   :  { %v147_v1 = vpop.permute.xlu0 %146  ;;  %v179_v12 = vpop.permute.xlu1 %178 }
  0x81   :  { %v241_v0 = vsel %vm238_vm0, %v10021_v8, %v147_v1  ;;  %v257_v13 = vsel %vm238_vm0, %v10026_v9, %v179_v12 }
  0x82   :  { %8873 = vmatprep.mubr.msk.f32.mxu0 %vm286_vm1, %v241_v0  ;;  %8897 = vmatprep.mubr.msk.f32.mxu1 %vm286_vm1, %v257_v13 }
  0x84   :  { %v149_v6 = vpop.permute.xlu0 %148  ;;  %v181_v18 = vpop.permute.xlu1 %180 }
  0x85   :  { %v242_v2 = vsel %vm238_vm0, %v10039_v16, %v149_v6  ;;  %v258_v19 = vsel %vm238_vm0, %v10044_v17, %v181_v18 }
  0x86   :  { %8874 = vmatmul.mubr.msk.f32.gmra.mxu0 %vm286_vm1, %v242_v2  ;;  %8898 = vmatmul.mubr.msk.f32.gmra.mxu1 %vm286_vm1, %v258_v19 }
  0x88   :  { %v151_v8 = vpop.permute.xlu0 %150  ;;  %v183_v20 = vpop.permute.xlu1 %182 }
  0x89   :  { %v243_v9 = vsel %vm238_vm0, %v10061_v24, %v151_v8  ;;  %v259_v21 = vsel %vm238_vm0, %v10066_v25, %v183_v20 }
  0x8a   :  { %8876 = vmatprep.mubr.msk.f32.mxu0 %vm286_vm1, %v243_v9  ;;  %8900 = vmatprep.mubr.msk.f32.mxu1 %vm286_vm1, %v259_v21 }
  0x8c   :  { %v153_v16 = vpop.permute.xlu0 %152  ;;  %v185_v26 = vpop.permute.xlu1 %184 }
  0x8d   :  { %v244_v17 = vsel %vm238_vm0, %v10083_v32, %v153_v16  ;;  %v260_v27 = vsel %vm238_vm0, %v10088_v33, %v185_v26 }
  0x8e   :  { %8877 = vmatmul.mubr.msk.f32.gmra.mxu0 %vm286_vm1, %v244_v17  ;;  %8901 = vmatmul.mubr.msk.f32.gmra.mxu1 %vm286_vm1, %v260_v27 }
  0x90   :  { %v155_v24 = vpop.permute.xlu0 %154  ;;  %v187_v28 = vpop.permute.xlu1 %186 }
  0x91   :  { %v245_v25 = vsel %vm238_vm0, %v10102_v39, %v155_v24  ;;  %v261_v29 = vsel %vm238_vm0, %v10107_v40, %v187_v28 }
  0x92   :  { %8879 = vmatprep.mubr.msk.f32.mxu0 %vm286_vm1, %v245_v25  ;;  %8903 = vmatprep.mubr.msk.f32.mxu1 %vm286_vm1, %v261_v29 }
  0x94   :  { %v157_v32 = vpop.permute.xlu0 %156  ;;  %v189_v34 = vpop.permute.xlu1 %188 }
  0x95   :  { %v246_v33 = vsel %vm238_vm0, %v10124_v47, %v157_v32  ;;  %v262_v35 = vsel %vm238_vm0, %v10129_v48, %v189_v34 }
  0x96   :  { %8880 = vmatmul.mubr.msk.f32.gmra.mxu0 %vm286_vm1, %v246_v33  ;;  %8904 = vmatmul.mubr.msk.f32.gmra.mxu1 %vm286_vm1, %v262_v35 }
  0x98   :  { %v159_v39 = vpop.permute.xlu0 %158  ;;  %v191_v36 = vpop.permute.xlu1 %190 }
  0x99   :  { %v247_v40 = vsel %vm238_vm0, %v10143_v54, %v159_v39  ;;  %v263_v37 = vsel %vm238_vm0, %v10148_v55, %v191_v36 }
  0x9a   :  { %8882 = vmatprep.mubr.msk.f32.mxu0 %vm286_vm1, %v247_v40  ;;  %8906 = vmatprep.mubr.msk.f32.mxu1 %vm286_vm1, %v263_v37 }
  0x9c   :  { %v161_v47 = vpop.permute.xlu0 %160  ;;  %v193_v42 = vpop.permute.xlu1 %192 }
  0x9d   :  { %v248_v48 = vsel %vm238_vm0, %v10159_v60, %v161_v47  ;;  %v264_v43 = vsel %vm238_vm0, %v10164_v61, %v193_v42 }
  0x9e   :  { %8883 = vmatmul.mubr.msk.f32.gmra.mxu0 %vm286_vm1, %v248_v48  ;;  %8907 = vmatmul.mubr.msk.f32.gmra.mxu1 %vm286_vm1, %v264_v43 }
  0xa0   :  { %v163_v54 = vpop.permute.xlu0 %162  ;;  %v195_v44 = vpop.permute.xlu1 %194 }
  0xa1   :  { %v249_v55 = vsel %vm238_vm0, %v10175_v5, %v163_v54  ;;  %v265_v45 = vsel %vm238_vm0, %v10180_v7, %v195_v44 }
  0xa2   :  { %8885 = vmatprep.mubr.msk.f32.mxu0 %vm286_vm1, %v249_v55  ;;  %8909 = vmatprep.mubr.msk.f32.mxu1 %vm286_vm1, %v265_v45 }
  0xa4   :  { %v165_v60 = vpop.permute.xlu0 %164  ;;  %v197_v50 = vpop.permute.xlu1 %196 }
  0xa5   :  { %v250_v61 = vsel %vm238_vm0, %v10191_v14, %v165_v60  ;;  %v266_v51 = vsel %vm238_vm0, %v10196_v15, %v197_v50 }
  0xa6   :  { %8886 = vmatmul.mubr.msk.f32.gmra.mxu0 %vm286_vm1, %v250_v61  ;;  %8910 = vmatmul.mubr.msk.f32.gmra.mxu1 %vm286_vm1, %v266_v51 }
  0xa8   :  { %v167_v5 = vpop.permute.xlu0 %166  ;;  %v199_v52 = vpop.permute.xlu1 %198 }
  0xa9   :  { %v251_v7 = vsel %vm238_vm0, %v10207_v22, %v167_v5  ;;  %v267_v53 = vsel %vm238_vm0, %v10212_v23, %v199_v52  ;;  %v9971_v5 = vmov 1983009808  }
  0xaa   :  { %8888 = vmatprep.mubr.msk.f32.mxu0 %vm286_vm1, %v251_v7  ;;  %8912 = vmatprep.mubr.msk.f32.mxu1 %vm286_vm1, %v267_v53  ;;  %v931_v52 = vunpack.c.l.s4 %v9971_v5  ;;  %v933_v7 = vlaneseq }
  0xac   :  { %v169_v14 = vpop.permute.xlu0 %168  ;;  %v201_v56 = vpop.permute.xlu1 %200 }
  0xad   :  { %v252_v15 = vsel %vm238_vm0, %v10223_v30, %v169_v14  ;;  %v268_v57 = vsel %vm238_vm0, %v10228_v31, %v201_v56 }
  0xae   :  { %8889 = vmatmul.mubr.msk.f32.gmra.mxu0 %vm286_vm1, %v252_v15  ;;  %8913 = vmatmul.mubr.msk.f32.gmra.mxu1 %vm286_vm1, %v268_v57 }
  0xb0   :  { %v171_v22 = vpop.permute.xlu0 %170  ;;  %v203_v58 = vpop.permute.xlu1 %202 }
  0xb1   :  { %v253_v23 = vsel %vm238_vm0, %v10239_v38, %v171_v22  ;;  %v269_v59 = vsel %vm238_vm0, %v10244_v41, %v203_v58  ;;  %v10373_v38 = vld [vmem:[%s15232_s2] ss:$0 sm:$0xff]  ;;  %v932_v22 = vunpack.c.0.s8 %v931_v52  ;;  %v934_v58 = vshrl.u32 %v933_v7, 7 }
  0xb2   :  { %8891 = vmatprep.mubr.msk.f32.mxu0 %vm286_vm1, %v253_v23  ;;  %8915 = vmatprep.mubr.msk.f32.mxu1 %vm286_vm1, %v269_v59  ;;  %v9972_v23 = vmov 1934713408  }
  0xb3   :  { %v963_v59 = vunpack.c.l.s4 %v9972_v23 }
  0xb4   :  { %v173_v30 = vpop.permute.xlu0 %172  ;;  %v205_v62 = vpop.permute.xlu1 %204 }
  0xb5   :  { %v254_v31 = vsel %vm238_vm0, %v10255_v46, %v173_v30  ;;  %v270_v63 = vsel %vm238_vm0, %v10260_v49, %v205_v62 }
  0xb6   :  { %8892 = vmatmul.mubr.msk.f32.gmra.mxu0 %vm286_vm1, %v254_v31  ;;  %8916 = vmatmul.mubr.msk.f32.gmra.mxu1 %vm286_vm1, %v270_v63  ;;  %v10581_v63 = vsub.s32 %v932_v22, %v934_v58 }
 0x13b   :  { %v8872_v41 = vpop.f32.mrf.mxu0 }
 0x13c   :  { %v10376_v3 = vadd.f32 %v8872_v41, %v10373_v38  ;;  %v964_v41 = vunpack.c.0.s8 %v963_v59 }
 0x13d   :  { %v449_v4 = vpop.f32.mrf.mxu0 }
 0x13e   :  { %v10379_v10 = vadd.f32 %v10373_v38, %v449_v4  ;;  %642 = vrot.lane.b32.xlu1 %v10376_v3, %s9968_s12 }
 0x13f   :  { %v8896_v46 = vpop.f32.mrf.mxu1 }
 0x140   :  { %v10384_v49 = vadd.f32 %v8896_v46, %v10373_v38  ;;  %640 = vrot.lane.b32.xlu0 %v10379_v10, %s9968_s12 }
 0x141   :  { %v529_v11 = vpop.f32.mrf.mxu1 }
 0x142   :  { %v10389_v1 = vadd.f32 %v10373_v38, %v529_v11  ;;  %674 = vrot.lane.b32.xlu1 %v10384_v49, %s9968_s12 }
 0x144   :  { %672 = vrot.lane.b32.xlu0 %v10389_v1, %s9968_s12 }
 0x146   :  { %738 = vrot.lane.b32.xlu1 %v10376_v3, %s9969_s13  ;;  %v8875_v12 = vpop.f32.mrf.mxu0  ;;  %v8899_v6 = vpop.f32.mrf.mxu1 }
 0x147   :  { %v10408_v0 = vadd.f32 %v8875_v12, %v10373_v38  ;;  %v10418_v2 = vadd.f32 %v8899_v6, %v10373_v38 }
 0x148   :  { %736 = vrot.lane.b32.xlu0 %v10379_v10, %s9969_s13  ;;  %v459_v13 = vpop.f32.mrf.mxu0  ;;  %v539_v19 = vpop.f32.mrf.mxu1 }
 0x149   :  { %15323 = vst [vmem:[#allocation2_spill] sm:$0xff] %v10408_v0  ;;  %v10415_v18 = vadd.f32 %v10373_v38, %v459_v13  ;;  %15325 = vst [vmem:[#allocation4_spill] sm:$0xff] %v10418_v2  ;;  %v10425_v8 = vadd.f32 %v10373_v38, %v539_v19 }
 0x14a   :  { %770 = vrot.lane.b32.xlu1 %v10384_v49, %s9969_s13 }
 0x14b   :  { %15324 = vst [vmem:[#allocation3_spill] sm:$0xff] %v10415_v18  ;;  %15326 = vst [vmem:[#allocation5_spill] sm:$0xff] %v10425_v8 }
 0x14c   :  { %768 = vrot.lane.b32.xlu0 %v10389_v1, %s9969_s13 }
 0x14e   :  { %834 = vrot.lane.b32.xlu1 %v10376_v3, %s9970_s14  ;;  %v8878_v20 = vpop.f32.mrf.mxu0  ;;  %v8902_v16 = vpop.f32.mrf.mxu1 }
 0x14f   :  { %v10444_v9 = vadd.f32 %v8878_v20, %v10373_v38  ;;  %v10454_v17 = vadd.f32 %v8902_v16, %v10373_v38 }
 0x150   :  { %832 = vrot.lane.b32.xlu0 %v10379_v10, %s9970_s14  ;;  %v469_v21 = vpop.f32.mrf.mxu0  ;;  %v549_v27 = vpop.f32.mrf.mxu1 }
 0x151   :  { %15327 = vst [vmem:[#allocation6_spill] sm:$0xff] %v10444_v9  ;;  %v10451_v26 = vadd.f32 %v10373_v38, %v469_v21  ;;  %15329 = vst [vmem:[#allocation8_spill] sm:$0xff] %v10454_v17  ;;  %v10461_v24 = vadd.f32 %v10373_v38, %v549_v27 }
 0x152   :  { %866 = vrot.lane.b32.xlu1 %v10384_v49, %s9970_s14 }
 0x153   :  { %15328 = vst [vmem:[#allocation7_spill] sm:$0xff] %v10451_v26  ;;  %15330 = vst [vmem:[#allocation9_spill] sm:$0xff] %v10461_v24 }
 0x154   :  { %864 = vrot.lane.b32.xlu0 %v10389_v1, %s9970_s14 }
 0x156   :  { %646 = vrot.lane.b32.xlu1 %v10408_v0, %s9968_s12  ;;  %v8881_v28 = vpop.f32.mrf.mxu0  ;;  %v8905_v32 = vpop.f32.mrf.mxu1 }
 0x157   :  { %v10480_v25 = vadd.f32 %v8881_v28, %v10373_v38  ;;  %v10490_v33 = vadd.f32 %v8905_v32, %v10373_v38 }
 0x158   :  { %644 = vrot.lane.b32.xlu0 %v10415_v18, %s9968_s12  ;;  %v479_v29 = vpop.f32.mrf.mxu0  ;;  %v559_v35 = vpop.f32.mrf.mxu1 }
 0x159   :  { %15331 = vst [vmem:[#allocation10_spill] sm:$0xff] %v10480_v25  ;;  %v10487_v34 = vadd.f32 %v10373_v38, %v479_v29  ;;  %15333 = vst [vmem:[#allocation12_spill] sm:$0xff] %v10490_v33  ;;  %v10497_v39 = vadd.f32 %v10373_v38, %v559_v35 }
 0x15a   :  { %678 = vrot.lane.b32.xlu1 %v10418_v2, %s9968_s12 }
 0x15b   :  { %15332 = vst [vmem:[#allocation11_spill] sm:$0xff] %v10487_v34  ;;  %15334 = vst [vmem:[#allocation13_spill] sm:$0xff] %v10497_v39 }
 0x15c   :  { %676 = vrot.lane.b32.xlu0 %v10425_v8, %s9968_s12 }
 0x15e   :  { %742 = vrot.lane.b32.xlu1 %v10408_v0, %s9969_s13  ;;  %v8884_v36 = vpop.f32.mrf.mxu0  ;;  %v8908_v47 = vpop.f32.mrf.mxu1 }
 0x15f   :  { %v10516_v40 = vadd.f32 %v8884_v36, %v10373_v38  ;;  %v10526_v48 = vadd.f32 %v8908_v47, %v10373_v38 }
 0x160   :  { %740 = vrot.lane.b32.xlu0 %v10415_v18, %s9969_s13  ;;  %v489_v37 = vpop.f32.mrf.mxu0  ;;  %v569_v43 = vpop.f32.mrf.mxu1 }
 0x161   :  { %15335 = vst [vmem:[#allocation14_spill] sm:$0xff] %v10516_v40  ;;  %v10523_v42 = vadd.f32 %v10373_v38, %v489_v37  ;;  %15337 = vst [vmem:[#allocation16_spill] sm:$0xff] %v10526_v48  ;;  %v10533_v54 = vadd.f32 %v10373_v38, %v569_v43 }
 0x162   :  { %774 = vrot.lane.b32.xlu1 %v10418_v2, %s9969_s13 }
 0x163   :  { %15336 = vst [vmem:[#allocation15_spill] sm:$0xff] %v10523_v42  ;;  %15338 = vst [vmem:[#allocation17_spill] sm:$0xff] %v10533_v54 }
 0x164   :  { %772 = vrot.lane.b32.xlu0 %v10425_v8, %s9969_s13 }
 0x166   :  { %838 = vrot.lane.b32.xlu1 %v10408_v0, %s9970_s14  ;;  %v8887_v44 = vpop.f32.mrf.mxu0  ;;  %v8911_v61 = vpop.f32.mrf.mxu1 }
 0x167   :  { %v10552_v45 = vadd.f32 %v8887_v44, %v10373_v38  ;;  %v10566_v14 = vadd.f32 %v8911_v61, %v10373_v38 }
 0x168   :  { %836 = vrot.lane.b32.xlu0 %v10415_v18, %s9970_s14  ;;  %v499_v50 = vpop.f32.mrf.mxu0  ;;  %v579_v15 = vpop.f32.mrf.mxu1 }
 0x169   :  { %15339 = vst [vmem:[#allocation18_spill] sm:$0xff] %v10552_v45  ;;  %v10563_v53 = vadd.f32 %v10373_v38, %v499_v50  ;;  %15341 = vst [vmem:[#allocation20_spill] sm:$0xff] %v10566_v14  ;;  %v10575_v30 = vadd.f32 %v10373_v38, %v579_v15 }
 0x16a   :  { %870 = vrot.lane.b32.xlu1 %v10418_v2, %s9970_s14 }
 0x16b   :  { %15340 = vst [vmem:[#allocation19_spill] sm:$0xff] %v10563_v53  ;;  %15342 = vst [vmem:[#allocation21_spill] sm:$0xff] %v10575_v30 }
 0x16c   :  { %868 = vrot.lane.b32.xlu0 %v10425_v8, %s9970_s14 }
 0x16e   :  { %650 = vrot.lane.b32.xlu1 %v10444_v9, %s9968_s12 }
 0x170   :  { %648 = vrot.lane.b32.xlu0 %v10451_v26, %s9968_s12 }
 0x172   :  { %682 = vrot.lane.b32.xlu1 %v10454_v17, %s9968_s12 }
 0x174   :  { %680 = vrot.lane.b32.xlu0 %v10461_v24, %s9968_s12 }
 0x176   :  { %746 = vrot.lane.b32.xlu1 %v10444_v9, %s9969_s13 }
 0x178   :  { %744 = vrot.lane.b32.xlu0 %v10451_v26, %s9969_s13 }
 0x17a   :  { %778 = vrot.lane.b32.xlu1 %v10454_v17, %s9969_s13 }
 0x17c   :  { %776 = vrot.lane.b32.xlu0 %v10461_v24, %s9969_s13 }
 0x17e   :  { %842 = vrot.lane.b32.xlu1 %v10444_v9, %s9970_s14 }
 0x180   :  { %840 = vrot.lane.b32.xlu0 %v10451_v26, %s9970_s14 }
 0x182   :  { %874 = vrot.lane.b32.xlu1 %v10454_v17, %s9970_s14 }
 0x184   :  { %872 = vrot.lane.b32.xlu0 %v10461_v24, %s9970_s14 }
 0x186   :  { %654 = vrot.lane.b32.xlu1 %v10480_v25, %s9968_s12 }
 0x188   :  { %652 = vrot.lane.b32.xlu0 %v10487_v34, %s9968_s12 }
 0x18a   :  { %686 = vrot.lane.b32.xlu1 %v10490_v33, %s9968_s12 }
 0x18c   :  { %684 = vrot.lane.b32.xlu0 %v10497_v39, %s9968_s12 }
 0x18e   :  { %750 = vrot.lane.b32.xlu1 %v10480_v25, %s9969_s13 }
 0x190   :  { %748 = vrot.lane.b32.xlu0 %v10487_v34, %s9969_s13 }
 0x192   :  { %782 = vrot.lane.b32.xlu1 %v10490_v33, %s9969_s13 }
 0x194   :  { %780 = vrot.lane.b32.xlu0 %v10497_v39, %s9969_s13 }
 0x196   :  { %846 = vrot.lane.b32.xlu1 %v10480_v25, %s9970_s14 }
 0x198   :  { %844 = vrot.lane.b32.xlu0 %v10487_v34, %s9970_s14 }
 0x19a   :  { %878 = vrot.lane.b32.xlu1 %v10490_v33, %s9970_s14 }
 0x19c   :  { %876 = vrot.lane.b32.xlu0 %v10497_v39, %s9970_s14 }
 0x19e   :  { %658 = vrot.lane.b32.xlu1 %v10516_v40, %s9968_s12 }
 0x1a0   :  { %656 = vrot.lane.b32.xlu0 %v10523_v42, %s9968_s12 }
 0x1a2   :  { %690 = vrot.lane.b32.xlu1 %v10526_v48, %s9968_s12 }
 0x1a4   :  { %688 = vrot.lane.b32.xlu0 %v10533_v54, %s9968_s12 }
 0x1a6   :  { %754 = vrot.lane.b32.xlu1 %v10516_v40, %s9969_s13 }
 0x1a8   :  { %752 = vrot.lane.b32.xlu0 %v10523_v42, %s9969_s13 }
 0x1aa   :  { %786 = vrot.lane.b32.xlu1 %v10526_v48, %s9969_s13 }
 0x1ac   :  { %784 = vrot.lane.b32.xlu0 %v10533_v54, %s9969_s13 }
 0x1ae   :  { %850 = vrot.lane.b32.xlu1 %v10516_v40, %s9970_s14 }
 0x1b0   :  { %v643_v55 = vpop.permute.xlu1 %642  ;;  %848 = vrot.lane.b32.xlu0 %v10523_v42, %s9970_s14 }
 0x1b2   :  { %882 = vrot.lane.b32.xlu1 %v10526_v48, %s9970_s14  ;;  %v10556_v60 = vpop.permute.xlu0 %640 }
 0x1b4   :  { %v10558_v51 = vpop.permute.xlu1 %674  ;;  %880 = vrot.lane.b32.xlu0 %v10533_v54, %s9970_s14 }
 0x1b6   :  { %662 = vrot.lane.b32.xlu1 %v10552_v45, %s9968_s12  ;;  %v10570_v56 = vpop.permute.xlu0 %672 }
 0x1b8   :  { %v739_v57 = vpop.permute.xlu1 %738  ;;  %660 = vrot.lane.b32.xlu0 %v10563_v53, %s9968_s12 }
 0x1b9   :  { %v996_v4 = vcombine.low %v10376_v3, %v739_v57  ;;  %v997_v46 = vcombine.high %v10376_v3, %v739_v57  ;;  %v10595_v3 = vsub.s32 %v964_v41, %v934_v58 }
 0x1ba   :  { %694 = vrot.lane.b32.xlu1 %v10566_v14, %s9968_s12  ;;  %v737_v62 = vpop.permute.xlu0 %736 }
 0x1bb   :  { %v928_v11 = vcombine.low %v10379_v10, %v737_v62  ;;  %v929_v38 = vcombine.high %v10379_v10, %v737_v62  ;;  %15343 = vst [vmem:[#allocation22_spill] sm:$0xff] %v10595_v3  ;;  %v1004_v27 = vrot.slane %v996_v4, %v10581_v63  ;;  %v1011_v28 = vrot.slane %v997_v46, %v10581_v63 }
 0x1bc   :  { %v771_v31 = vpop.permute.xlu1 %770  ;;  %692 = vrot.lane.b32.xlu0 %v10575_v30, %s9968_s12 }
 0x1bd   :  { %v2084_v13 = vcombine.low %v10384_v49, %v771_v31  ;;  %v2085_v6 = vcombine.high %v10384_v49, %v771_v31  ;;  %v10600_v29 = vrot.slane %v928_v11, %v10581_v63  ;;  %v10603_v49 = vrot.slane %v929_v38, %v10581_v63 }
 0x1be   :  { %758 = vrot.lane.b32.xlu1 %v10552_v45, %s9969_s13  ;;  %v769_v12 = vpop.permute.xlu0 %768  ;;  %v15234_v11 = vmov 0.0  }
 0x1bf   :  { %v2016_v19 = vcombine.low %v10389_v1, %v769_v12  ;;  %v2017_v20 = vcombine.high %v10389_v1, %v769_v12  ;;  %v10612_v47 = vrot.slane %v2084_v13, %v10581_v63  ;;  %v10615_v43 = vrot.slane %v2085_v6, %v10581_v63 }
 0x1c0   :  { %v835_v21 = vpop.permute.xlu1 %834  ;;  %756 = vrot.lane.b32.xlu0 %v10563_v53, %s9969_s13 }
 0x1c1   :  { %v1012_v10 = vcombine.low %v643_v55, %v835_v21  ;;  %v1013_v16 = vcombine.high %v643_v55, %v835_v21  ;;  %v10618_v44 = vrot.slane %v2016_v19, %v10581_v63  ;;  %v10621_v55 = vrot.slane %v2017_v20, %v10581_v63 }
 0x1c2   :  { %790 = vrot.lane.b32.xlu1 %v10566_v14, %s9969_s13  ;;  %v833_v1 = vpop.permute.xlu0 %832 }
 0x1c3   :  { %v1020_v32 = vrot.slane %v1012_v10, %v10581_v63  ;;  %v1027_v35 = vrot.slane %v1013_v16, %v10581_v63  ;;  %v944_v36 = vcombine.low %v10556_v60, %v833_v1  ;;  %v945_v37 = vcombine.high %v10556_v60, %v833_v1  ;;  %15344 = vst [vmem:[#allocation23_spill] sm:$0xff] %v10618_v44 }
 0x1c4   :  { %15345 = vst [vmem:[#allocation24_spill] sm:$0xff] %v10621_v55  ;;  %v10623_v50 = vpop.permute.xlu1 %866  ;;  %788 = vrot.lane.b32.xlu0 %v10575_v30, %s9969_s13 }
 0x1c5   :  { %v1028_v61 = vcombine.low %v1004_v27, %v1020_v32  ;;  %v1029_v5 = vcombine.high %v1004_v27, %v1020_v32  ;;  %v1044_v60 = vcombine.low %v1011_v28, %v1027_v35  ;;  %v1045_v52 = vcombine.high %v1011_v28, %v1027_v35 }
 0x1c6   :  { %v10628_v7 = vrot.slane %v944_v36, %v10581_v63  ;;  %v10631_v15 = vrot.slane %v945_v37, %v10581_v63  ;;  %854 = vrot.lane.b32.xlu1 %v10552_v45, %s9970_s14 }
 0x1c7   :  { %v10640_v58 = vrot.slane %v1028_v61, %v10595_v3  ;;  %v10643_v23 = vrot.slane %v1029_v5, %v10595_v3  ;;  %v10646_v59 = vrot.slane %v1044_v60, %v10595_v3  ;;  %v10649_v62 = vrot.slane %v1045_v52, %v10595_v3 }
 0x1c8   :  { %852 = vrot.lane.b32.xlu0 %v10563_v53, %s9970_s14 }
 0x1c9   :  { %v10663_v38 = vcombine.high %v10640_v58, %v15234_v11  ;;  %v10667_v12 = vcombine.high %v10643_v23, %v15234_v11  ;;  %v10671_v13 = vcombine.high %v10646_v59, %v15234_v11  ;;  %v10675_v6 = vcombine.high %v10649_v62, %v15234_v11 }
 0x1ca   :  { %v3161_v19 = vsel %vm3104_vm2, %v10640_v58, -inf  ;;  %v3175_v20 = vsel %vm3104_vm2, %v10643_v23, -inf  ;;  %v3189_v21 = vsel %vm3104_vm2, %v10646_v59, -inf  ;;  %v3203_v10 = vsel %vm3104_vm2, %v10649_v62, -inf  ;;  %886 = vrot.lane.b32.xlu1 %v10566_v14, %s9970_s14 }
 0x1cb   :  { %v3162_v16 = vrot.slane %v3161_v19, 4  ;;  %v3168_v27 = vsel %vm3104_vm2, %v10663_v38, -inf  ;;  %v3176_v28 = vrot.slane %v3175_v20, 4  ;;  %v3182_v1 = vsel %vm3104_vm2, %v10667_v12, -inf }
 0x1cc   :  { %v3169_v32 = vrot.slane %v3168_v27, 4  ;;  %v3183_v35 = vrot.slane %v3182_v1, 4  ;;  %v3190_v36 = vrot.slane %v3189_v21, 4  ;;  %v3196_v37 = vsel %vm3104_vm2, %v10671_v13, -inf  ;;  %884 = vrot.lane.b32.xlu0 %v10575_v30, %s9970_s14 }
 0x1cd   :  { %v3163_v61 = vmax.f32 %v3161_v19, %v3162_v16  ;;  %v3177_v5 = vmax.f32 %v3175_v20, %v3176_v28  ;;  %v3197_v60 = vrot.slane %v3196_v37, 4  ;;  %v3204_v52 = vrot.slane %v3203_v10, 4 }
 0x1ce   :  { %v3170_v22 = vmax.f32 %v3168_v27, %v3169_v32  ;;  %v3184_v57 = vmax.f32 %v3182_v1, %v3183_v35  ;;  %v3191_v11 = vmax.f32 %v3189_v21, %v3190_v36  ;;  %v3210_v46 = vsel %vm3104_vm2, %v10675_v6, -inf }
 0x1cf   :  { %v3164_v4 = vrot.slane %v3163_v61, 2  ;;  %v3178_v41 = vrot.slane %v3177_v5, 2  ;;  %v3198_v31 = vmax.f32 %v3196_v37, %v3197_v60  ;;  %v3205_v14 = vmax.f32 %v3203_v10, %v3204_v52 }
 0x1d0   :  { %v3171_v53 = vrot.slane %v3170_v22, 2  ;;  %v3185_v45 = vrot.slane %v3184_v57, 2  ;;  %v3192_v54 = vrot.slane %v3191_v11, 2  ;;  %v3211_v48 = vrot.slane %v3210_v46, 4 }
 0x1d1   :  { %v3165_v42 = vmax.f32 %v3163_v61, %v3164_v4  ;;  %v3179_v30 = vmax.f32 %v3177_v5, %v3178_v41  ;;  %v3199_v19 = vrot.slane %v3198_v31, 2  ;;  %v3206_v20 = vrot.slane %v3205_v14, 2 }
 0x1d2   :  { %v3172_v16 = vmax.f32 %v3170_v22, %v3171_v53  ;;  %v3186_v28 = vmax.f32 %v3184_v57, %v3185_v45  ;;  %v3193_v27 = vmax.f32 %v3191_v11, %v3192_v54  ;;  %v3212_v1 = vmax.f32 %v3210_v46, %v3211_v48 }
 0x1d3   :  { %v3166_v21 = vrot.slane %v3165_v42, 1  ;;  %v3180_v32 = vrot.slane %v3179_v30, 1  ;;  %v3200_v35 = vmax.f32 %v3198_v31, %v3199_v19  ;;  %v3207_v36 = vmax.f32 %v3205_v14, %v3206_v20 }
 0x1d4   :  { %v3173_v40 = vrot.slane %v3172_v16, 1  ;;  %v3187_v39 = vrot.slane %v3186_v28, 1  ;;  %v3194_v37 = vrot.slane %v3193_v27, 1  ;;  %v3213_v10 = vrot.slane %v3212_v1, 2 }
 0x1d5   :  { %v10697_v60 = vmax.f32 %v3165_v42, %v3166_v21  ;;  %v10699_v52 = vmax.f32 %v3179_v30, %v3180_v32  ;;  %v3201_v4 = vrot.slane %v3200_v35, 1  ;;  %v3208_v41 = vrot.slane %v3207_v36, 1 }
 0x1d6   :  { %v10701_v61 = vmax.f32 %v3172_v16, %v3173_v40  ;;  %v10703_v53 = vmax.f32 %v3186_v28, %v3187_v39  ;;  %v10705_v54 = vmax.f32 %v3193_v27, %v3194_v37  ;;  %v3214_v48 = vmax.f32 %v3212_v1, %v3213_v10 }
 0x1d7   :  { %v10707_v45 = vmax.f32 %v3200_v35, %v3201_v4  ;;  %v10709_v14 = vmax.f32 %v3207_v36, %v3208_v41  ;;  %v4905_v57 = vsub.f32 %v10640_v58, %v10697_v60  ;;  %v4907_v42 = vsub.f32 %v10643_v23, %v10699_v52 }
 0x1d8   :  { %v3215_v30 = vrot.slane %v3214_v48, 1  ;;  %v4906_v40 = vsub.f32 %v10663_v38, %v10701_v61  ;;  %v4908_v39 = vsub.f32 %v10667_v12, %v10703_v53  ;;  %v4909_v22 = vsub.f32 %v10646_v59, %v10705_v54 }
 0x1d9   :  { %v4910_v31 = vsub.f32 %v10671_v13, %v10707_v45  ;;  %v4911_v46 = vsub.f32 %v10649_v62, %v10709_v14  ;;  %v5169_v58 = vmul.f32 1.442695, %v4905_v57  ;;  %v5173_v11 = vmul.f32 1.442695, %v4907_v42 }
 0x1da   :  { %v10725_v5 = vmax.f32 %v3214_v48, %v3215_v30  ;;  %v5171_v23 = vmul.f32 1.442695, %v4906_v40  ;;  %v5175_v19 = vmul.f32 1.442695, %v4908_v39  ;;  %v5177_v20 = vmul.f32 1.442695, %v4909_v22 }
 0x1db   :  { %8941 = vpow2.f32 %v5169_v58  ;;  %v5179_v38 = vmul.f32 1.442695, %v4910_v31  ;;  %v5181_v16 = vmul.f32 1.442695, %v4911_v46  ;;  %v15346_v59 = vcombine.low %v10600_v29, %v10628_v7 }
 0x1dc   :  { %v4912_v13 = vsub.f32 %v10675_v6, %v10725_v5  ;;  %8943 = vpow2.f32 %v5171_v23  ;;  %v15347_v62 = vcombine.high %v10600_v29, %v10628_v7  ;;  %v15348_v27 = vcombine.low %v10603_v49, %v10631_v15 }
 0x1dd   :  { %v10731_v12 = vrot.slane %v15346_v59, %v10595_v3  ;;  %8945 = vpow2.f32 %v5173_v11  ;;  %v15349_v21 = vcombine.high %v10603_v49, %v10631_v15  ;;  %v15350_v6 = vmov 0.0  }
 0x1de   :  { %v10739_v28 = vrot.slane %v15347_v62, %v10595_v3  ;;  %v10745_v1 = vrot.slane %v15348_v27, %v10595_v3  ;;  %8947 = vpow2.f32 %v5175_v19  ;;  %v5183_v7 = vmul.f32 1.442695, %v4912_v13 }
 0x1df   :  { %v10751_v32 = vrot.slane %v15349_v21, %v10595_v3  ;;  %v10755_v35 = vcombine.high %v10731_v12, %v15350_v6  ;;  %v3105_v29 = vsel %vm3104_vm2, %v10731_v12, -inf  ;;  %8949 = vpow2.f32 %v5177_v20 }
 0x1e0   :  { %v10761_v36 = vcombine.high %v10739_v28, %v15350_v6  ;;  %v10765_v37 = vcombine.high %v10745_v1, %v15350_v6  ;;  %v3106_v15 = vrot.slane %v3105_v29, 4  ;;  %8951 = vpow2.f32 %v5179_v38 }
 0x1e1   :  { %v10769_v49 = vcombine.high %v10751_v32, %v15350_v6  ;;  %v3112_v10 = vsel %vm3104_vm2, %v10755_v35, -inf  ;;  %v3119_v41 = vsel %vm3104_vm2, %v10739_v28, -inf  ;;  %8953 = vpow2.f32 %v5181_v16 }
 0x1e2   :  { %v3113_v4 = vrot.slane %v3112_v10, 4  ;;  %v3126_v48 = vsel %vm3104_vm2, %v10761_v36, -inf  ;;  %v3107_v57 = vmax.f32 %v3105_v29, %v3106_v15  ;;  %v3120_v42 = vrot.slane %v3119_v41, 4 }
 0x1e3   :  { %v3127_v30 = vrot.slane %v3126_v48, 4  ;;  %8955 = vpow2.f32 %v5183_v7  ;;  %v3133_v39 = vsel %vm3104_vm2, %v10745_v1, -inf  ;;  %v3140_v22 = vsel %vm3104_vm2, %v10765_v37, -inf }
 0x1e4   :  { %v3114_v40 = vmax.f32 %v3112_v10, %v3113_v4  ;;  %v3108_v31 = vrot.slane %v3107_v57, 2  ;;  %v3121_v46 = vmax.f32 %v3119_v41, %v3120_v42  ;;  %v3134_v11 = vrot.slane %v3133_v39, 4 }
 0x1e5   :  { %v3128_v58 = vmax.f32 %v3126_v48, %v3127_v30  ;;  %v3141_v19 = vrot.slane %v3140_v22, 4  ;;  %v3147_v20 = vsel %vm3104_vm2, %v10751_v32, -inf  ;;  %v3154_v38 = vsel %vm3104_vm2, %v10769_v49, -inf }
 0x1e6   :  { %v3115_v23 = vrot.slane %v3114_v40, 2  ;;  %v3109_v16 = vmax.f32 %v3107_v57, %v3108_v31  ;;  %v3122_v59 = vrot.slane %v3121_v46, 2  ;;  %v3135_v62 = vmax.f32 %v3133_v39, %v3134_v11 }
 0x1e7   :  { %v3129_v13 = vrot.slane %v3128_v58, 2  ;;  %v3142_v21 = vmax.f32 %v3140_v22, %v3141_v19  ;;  %v3148_v29 = vrot.slane %v3147_v20, 4  ;;  %v3155_v7 = vrot.slane %v3154_v38, 4 }
 0x1e8   :  { %v3116_v27 = vmax.f32 %v3114_v40, %v3115_v23  ;;  %v3110_v15 = vrot.slane %v3109_v16, 1  ;;  %v3123_v10 = vmax.f32 %v3121_v46, %v3122_v59  ;;  %v3136_v41 = vrot.slane %v3135_v62, 2  ;;  %v8942_v48 = vpop.eup %8941 }
 0x1e9   :  { %v3130_v4 = vmax.f32 %v3128_v58, %v3129_v13  ;;  %v3143_v30 = vrot.slane %v3142_v21, 2  ;;  %v10785_v33 = vmax.f32 %v3147_v20, %v3148_v29  ;;  %v10787_v34 = vmax.f32 %v3154_v38, %v3155_v7  ;;  %v8944_v25 = vpop.eup %8943 }
 0x1ea   :  { %v3117_v42 = vrot.slane %v3116_v27, 1  ;;  %v5721_v57 = vsel %vm3104_vm2, %v8942_v48, 0.0  ;;  %v10790_v31 = vmax.f32 %v3109_v16, %v3110_v15  ;;  %v3124_v40 = vrot.slane %v3123_v10, 1  ;;  %v8946_v22 = vpop.eup %8945 }
 0x1eb   :  { %v3131_v39 = vrot.slane %v3130_v4, 1  ;;  %v5722_v11 = vrot.slane %v5721_v57, 4  ;;  %v5728_v46 = vsel %vm3104_vm2, %v8944_v25, 0.0  ;;  %v3137_v23 = vmax.f32 %v3135_v62, %v3136_v41  ;;  %v8948_v19 = vpop.eup %8947 }
 0x1ec   :  { %v10793_v58 = vmax.f32 %v3116_v27, %v3117_v42  ;;  %v5729_v59 = vrot.slane %v5728_v46, 4  ;;  %v5735_v20 = vsel %vm3104_vm2, %v8946_v22, 0.0  ;;  %v10796_v38 = vmax.f32 %v3123_v10, %v3124_v40  ;;  %v8950_v29 = vpop.eup %8949 }
 0x1ed   :  { %v10798_v13 = vmax.f32 %v3130_v4, %v3131_v39  ;;  %v5723_v16 = vadd.f32 %v5722_v11, %v5721_v57  ;;  %v5736_v7 = vrot.slane %v5735_v20, 4  ;;  %v5742_v15 = vsel %vm3104_vm2, %v8948_v19, 0.0  ;;  %v8952_v24 = vpop.eup %8951 }
 0x1ee   :  { %v3138_v48 = vrot.slane %v3137_v23, 1  ;;  %v5730_v17 = vadd.f32 %v5729_v59, %v5728_v46  ;;  %v5743_v25 = vrot.slane %v5742_v15, 4  ;;  %v5749_v27 = vsel %vm3104_vm2, %v8950_v29, 0.0  ;;  %v8954_v41 = vpop.eup %8953 }
 0x1ef   :  { %v3144_v62 = vmax.f32 %v3142_v21, %v3143_v30  ;;  %v5724_v42 = vrot.slane %v5723_v16, 2  ;;  %v5737_v26 = vadd.f32 %v5736_v7, %v5735_v20  ;;  %v5750_v22 = vrot.slane %v5749_v27, 4 }
 0x1f0   :  { %v5756_v10 = vsel %vm3104_vm2, %v8952_v24, 0.0  ;;  %v8956_v4 = vpop.eup %8955  ;;  %v5731_v40 = vrot.slane %v5730_v17, 2  ;;  %v5744_v39 = vadd.f32 %v5743_v25, %v5742_v15  ;;  %v5763_v11 = vsel %vm3104_vm2, %v8954_v41, 0.0 }
 0x1f1   :  { %v5757_v57 = vrot.slane %v5756_v10, 4  ;;  %v5725_v19 = vadd.f32 %v5724_v42, %v5723_v16  ;;  %v5738_v9 = vrot.slane %v5737_v26, 2  ;;  %v5751_v8 = vadd.f32 %v5750_v22, %v5749_v27 }
 0x1f2   :  { %v5764_v46 = vrot.slane %v5763_v11, 4  ;;  %v5732_v59 = vadd.f32 %v5731_v40, %v5730_v17  ;;  %v5745_v2 = vrot.slane %v5744_v39, 2  ;;  %v5770_v21 = vsel %vm3104_vm2, %v8956_v4, 0.0 }
 0x1f3   :  { %v5758_v29 = vadd.f32 %v5757_v57, %v5756_v10  ;;  %v5726_v30 = vrot.slane %v5725_v19, 1  ;;  %v5739_v20 = vadd.f32 %v5738_v9, %v5737_v26  ;;  %v5752_v7 = vrot.slane %v5751_v8, 2 }
 0x1f4   :  { %v5765_v18 = vadd.f32 %v5764_v46, %v5763_v11  ;;  %v5733_v24 = vrot.slane %v5732_v59, 1  ;;  %v5746_v0 = vadd.f32 %v5745_v2, %v5744_v39  ;;  %v5771_v15 = vrot.slane %v5770_v21, 4 }
 0x1f5   :  { %v5759_v55 = vrot.slane %v5758_v29, 2  ;;  %v5727_v25 = vadd.f32 %v5726_v30, %v5725_v19  ;;  %v5740_v44 = vrot.slane %v5739_v20, 1  ;;  %v5753_v41 = vadd.f32 %v5752_v7, %v5751_v8 }
 0x1f6   :  { %v5766_v16 = vrot.slane %v5765_v18, 2  ;;  %v5734_v42 = vadd.f32 %v5733_v24, %v5732_v59  ;;  %v5747_v27 = vrot.slane %v5746_v0, 1  ;;  %v5772_v17 = vadd.f32 %v5771_v15, %v5770_v21 }
 0x1f7   :  { %v5760_v22 = vadd.f32 %v5759_v55, %v5758_v29  ;;  %v5741_v40 = vadd.f32 %v5740_v44, %v5739_v20  ;;  %v5754_v10 = vrot.slane %v5753_v41, 1  ;;  %8957 = vlog2.f32 %v5727_v25 }
 0x1f8   :  { %v5767_v57 = vadd.f32 %v5766_v16, %v5765_v18  ;;  %v5748_v4 = vadd.f32 %v5747_v27, %v5746_v0  ;;  %v5773_v26 = vrot.slane %v5772_v17, 2  ;;  %8959 = vlog2.f32 %v5734_v42 }
 0x1f9   :  { %v5761_v9 = vrot.slane %v5760_v22, 1  ;;  %v5755_v11 = vadd.f32 %v5754_v10, %v5753_v41  ;;  %8961 = vlog2.f32 %v5741_v40  ;;  %v10805_v39 = vmax.f32 %v3137_v23, %v3138_v48  ;;  %v10825_v41 = vpop.permute.xlu0 %864 }
 0x1fa   :  { %v5768_v2 = vrot.slane %v5767_v57, 1  ;;  %v5774_v8 = vadd.f32 %v5773_v26, %v5772_v17  ;;  %8963 = vlog2.f32 %v5748_v4  ;;  %v3145_v46 = vrot.slane %v3144_v62, 1 }
 0x1fb   :  { %v5762_v19 = vadd.f32 %v5761_v9, %v5760_v22  ;;  %8965 = vlog2.f32 %v5755_v11  ;;  %v3150_v44 = vrot.slane %v10785_v33, 2  ;;  %v3157_v18 = vrot.slane %v10787_v34, 2 }
 0x1fc   :  { %v5769_v59 = vadd.f32 %v5768_v2, %v5767_v57  ;;  %v5775_v55 = vrot.slane %v5774_v8, 1  ;;  %v10809_v0 = vmax.f32 %v3144_v62, %v3145_v46  ;;  %v4897_v29 = vsub.f32 %v10731_v12, %v10790_v31 }
 0x1fd   :  { %8967 = vlog2.f32 %v5762_v19  ;;  %v3151_v23 = vmax.f32 %v10785_v33, %v3150_v44  ;;  %v3158_v48 = vmax.f32 %v10787_v34, %v3157_v18  ;;  %v4898_v21 = vsub.f32 %v10755_v35, %v10793_v58 }
 0x1fe   :  { %8969 = vlog2.f32 %v5769_v59  ;;  %v5776_v30 = vadd.f32 %v5775_v55, %v5774_v8  ;;  %v4899_v20 = vsub.f32 %v10739_v28, %v10796_v38  ;;  %v4900_v7 = vsub.f32 %v10761_v36, %v10798_v13 }
 0x1ff   :  { %v4901_v62 = vsub.f32 %v10745_v1, %v10805_v39  ;;  %v3152_v12 = vrot.slane %v3151_v23, 1  ;;  %v3159_v24 = vrot.slane %v3158_v48, 1  ;;  %v4902_v33 = vsub.f32 %v10765_v37, %v10809_v0 }
 0x200   :  { %v5153_v34 = vmul.f32 1.442695, %v4897_v29  ;;  %8971 = vlog2.f32 %v5776_v30  ;;  %v5155_v35 = vmul.f32 1.442695, %v4898_v21  ;;  %v5157_v15 = vmul.f32 1.442695, %v4899_v20 }
 0x201   :  { %v5159_v25 = vmul.f32 1.442695, %v4900_v7  ;;  %v10827_v28 = vmax.f32 %v3151_v23, %v3152_v12  ;;  %v10829_v36 = vmax.f32 %v3158_v48, %v3159_v24  ;;  %v5161_v1 = vmul.f32 1.442695, %v4901_v62 }
 0x202   :  { %8973 = vpow2.f32 %v5153_v34  ;;  %v5163_v16 = vmul.f32 1.442695, %v4902_v33  ;;  %v15351_v37 = vcombine.low %v10558_v51, %v10623_v50  ;;  %v15352_v27 = vcombine.high %v10558_v51, %v10623_v50 }
 0x203   :  { %8975 = vpow2.f32 %v5155_v35  ;;  %v4903_v17 = vsub.f32 %v10751_v32, %v10827_v28  ;;  %v4904_v40 = vsub.f32 %v10769_v49, %v10829_v36  ;;  %v2032_v10 = vcombine.low %v10570_v56, %v10825_v41 }
 0x204   :  { %v2108_v42 = vrot.slane %v15351_v37, %v10581_v63  ;;  %v2115_v22 = vrot.slane %v15352_v27, %v10581_v63  ;;  %8977 = vpow2.f32 %v5157_v15  ;;  %v8958_v57 = vpop.eup %8957 }
 0x205   :  { %8979 = vpow2.f32 %v5159_v25  ;;  %v8960_v50 = vpop.eup %8959  ;;  %v7474_v26 = vmul.f32 0.6931472, %v8958_v57  ;;  %v5165_v32 = vmul.f32 1.442695, %v4903_v17  ;;  %v5167_v11 = vmul.f32 1.442695, %v4904_v40 }
 0x206   :  { %v2116_v4 = vcombine.low %v10612_v47, %v2108_v42  ;;  %v2117_v9 = vcombine.high %v10612_v47, %v2108_v42  ;;  %v2132_v51 = vcombine.low %v10615_v43, %v2115_v22  ;;  %8981 = vpow2.f32 %v5161_v1  ;;  %v8962_v2 = vpop.eup %8961 }
 0x207   :  { %v7476_v49 = vmul.f32 0.6931472, %v8960_v50  ;;  %8983 = vpow2.f32 %v5163_v16  ;;  %v8964_v46 = vpop.eup %8963  ;;  %v7478_v59 = vmul.f32 0.6931472, %v8962_v2  ;;  %v7977_v47 = vadd.f32 %v7474_v26, %v10697_v60 }
 0x208   :  { %v10849_v19 = vrot.slane %v2116_v4, %v10595_v3  ;;  %v10852_v8 = vrot.slane %v2117_v9, %v10595_v3  ;;  %8985 = vpow2.f32 %v5165_v32  ;;  %v2133_v44 = vcombine.high %v10615_v43, %v2115_v22  ;;  %v8966_v18 = vpop.eup %8965 }
 0x209   :  { %v7480_v55 = vmul.f32 0.6931472, %v8964_v46  ;;  %v7978_v29 = vadd.f32 %v7476_v49, %v10701_v61  ;;  %8987 = vpow2.f32 %v5167_v11  ;;  %v10858_v23 = vrot.slane %v2132_v51, %v10595_v3 }
 0x20a   :  { %v8968_v48 = vpop.eup %8967  ;;  %v7482_v21 = vmul.f32 0.6931472, %v8966_v18  ;;  %v7979_v30 = vadd.f32 %v7478_v59, %v10699_v52  ;;  %v10862_v20 = vrot.slane %v2133_v44, %v10595_v3  ;;  %v10866_v60 = vcombine.high %v10849_v19, %v15350_v6 }
 0x20b   :  { %v8970_v43 = vpop.eup %8969  ;;  %v7484_v7 = vmul.f32 0.6931472, %v8968_v48  ;;  %v7980_v62 = vadd.f32 %v7480_v55, %v10703_v53  ;;  %v8495_v61 = vsel %vm8481_vm3, %v7978_v29, %v7977_v47  ;;  %v10872_v12 = vcombine.high %v10852_v8, %v15350_v6 }
 0x20c   :  { %v7486_v24 = vmul.f32 0.6931472, %v8970_v43  ;;  %v7981_v52 = vadd.f32 %v7482_v21, %v10705_v54  ;;  %v8496_v33 = vsel %vm8483_vm4, %v7979_v30, %v8495_v61  ;;  %v10878_v34 = vcombine.high %v10858_v23, %v15350_v6 }
 0x20d   :  { %v7982_v35 = vadd.f32 %v7484_v7, %v10707_v45  ;;  %v8497_v15 = vsel %vm8485_vm5, %v7980_v62, %v8496_v33  ;;  %v10884_v53 = vcombine.high %v10862_v20, %v15350_v6  ;;  %v4057_v25 = vsel %vm3104_vm2, %v10849_v19, -inf  ;;  %v8972_v1 = vpop.eup %8971 }
 0x20e   :  { %v7983_v54 = vadd.f32 %v7486_v24, %v10709_v14  ;;  %v8498_v16 = vsel %vm8487_vm6, %v7981_v52, %v8497_v15  ;;  %v4058_v37 = vrot.slane %v4057_v25, 4  ;;  %v4064_v42 = vsel %vm3104_vm2, %v10866_v60, -inf }
 0x20f   :  { %v8974_v27 = vpop.eup %8973  ;;  %v7488_v45 = vmul.f32 0.6931472, %v8972_v1  ;;  %v8499_v22 = vsel %vm8489_vm7, %v7982_v35, %v8498_v16  ;;  %v4065_v17 = vrot.slane %v4064_v42, 4  ;;  %v4071_v40 = vsel %vm3104_vm2, %v10852_v8, -inf }
 0x210   :  { %v8976_v57 = vpop.eup %8975  ;;  %v8500_v4 = vsel %vm8491_vm8, %v7983_v54, %v8499_v22  ;;  %v5665_v9 = vsel %vm3104_vm2, %v8974_v27, 0.0  ;;  %v4059_v14 = vmax.f32 %v4057_v25, %v4058_v37  ;;  %v4072_v51 = vrot.slane %v4071_v40, 4 }
 0x211   :  { %v8978_v50 = vpop.eup %8977  ;;  %v7984_v26 = vadd.f32 %v7488_v45, %v10725_v5  ;;  %v5666_v32 = vrot.slane %v5665_v9, 4  ;;  %v5672_v11 = vsel %vm3104_vm2, %v8976_v57, 0.0  ;;  %v10899_v2 = vmax.f32 %v4064_v42, %v4065_v17 }
 0x212   :  { %v8980_v49 = vpop.eup %8979  ;;  %v5673_v46 = vrot.slane %v5672_v11, 4  ;;  %v5679_v59 = vsel %vm3104_vm2, %v8978_v50, 0.0  ;;  %v4060_v47 = vrot.slane %v4059_v14, 2  ;;  %v10902_v44 = vmax.f32 %v4071_v40, %v4072_v51 }
 0x213   :  { %v8982_v18 = vpop.eup %8981  ;;  %v8501_v55 = vsel %vm8493_vm9, %v7984_v26, %v8500_v4  ;;  %v5667_v29 = vadd.f32 %v5666_v32, %v5665_v9  ;;  %v5680_v48 = vrot.slane %v5679_v59, 4  ;;  %v5686_v21 = vsel %vm3104_vm2, %v8980_v49, 0.0 }
 0x214   :  { %v8984_v5 = vpop.eup %8983  ;;  %8746 = vst.msk [vmem:[%s15233_s3 + $0x8] sm:$0xff] %vm8744_vm10, %v8501_v55  ;;  %v5674_v30 = vadd.f32 %v5673_v46, %v5672_v11  ;;  %v5687_v43 = vrot.slane %v5686_v21, 4  ;;  %v5693_v7 = vsel %vm3104_vm2, %v8982_v18, 0.0  ;;  %v4061_v62 = vmax.f32 %v4059_v14, %v4060_v47 }
 0x215   :  { %v8986_v61 = vpop.eup %8985  ;;  %v5668_v24 = vrot.slane %v5667_v29, 2  ;;  %v5681_v52 = vadd.f32 %v5680_v48, %v5679_v59  ;;  %v5694_v33 = vrot.slane %v5693_v7, 4  ;;  %v5700_v35 = vsel %vm3104_vm2, %v8984_v5, 0.0 }
 0x216   :  { %v8988_v15 = vpop.eup %8987  ;;  %v5675_v25 = vrot.slane %v5674_v30, 2  ;;  %v5688_v1 = vadd.f32 %v5687_v43, %v5686_v21  ;;  %v5701_v54 = vrot.slane %v5700_v35, 4  ;;  %v5707_v16 = vsel %vm3104_vm2, %v8986_v61, 0.0 }
 0x217   :  { %v5669_v37 = vadd.f32 %v5668_v24, %v5667_v29  ;;  %v5682_v42 = vrot.slane %v5681_v52, 2  ;;  %v5695_v27 = vadd.f32 %v5694_v33, %v5693_v7  ;;  %v5708_v45 = vrot.slane %v5707_v16, 4 }
 0x218   :  { %v5676_v22 = vadd.f32 %v5675_v25, %v5674_v30  ;;  %v5689_v17 = vrot.slane %v5688_v1, 2  ;;  %v5702_v40 = vadd.f32 %v5701_v54, %v5700_v35  ;;  %v5714_v57 = vsel %vm3104_vm2, %v8988_v15, 0.0 }
 0x219   :  { %v5670_v4 = vrot.slane %v5669_v37, 1  ;;  %v5683_v9 = vadd.f32 %v5682_v42, %v5681_v52  ;;  %v5696_v14 = vrot.slane %v5695_v27, 2  ;;  %v5709_v51 = vadd.f32 %v5708_v45, %v5707_v16 }
 0x21a   :  { %v5677_v50 = vrot.slane %v5676_v22, 1  ;;  %v5690_v26 = vadd.f32 %v5689_v17, %v5688_v1  ;;  %v5703_v32 = vrot.slane %v5702_v40, 2  ;;  %v5715_v11 = vrot.slane %v5714_v57, 4 }
 0x21b   :  { %v5671_v49 = vadd.f32 %v5670_v4, %v5669_v37  ;;  %v5684_v46 = vrot.slane %v5683_v9, 1  ;;  %v5697_v59 = vadd.f32 %v5696_v14, %v5695_v27  ;;  %v5710_v47 = vrot.slane %v5709_v51, 2 }
 0x21c   :  { %v5678_v18 = vadd.f32 %v5677_v50, %v5676_v22  ;;  %v5691_v55 = vrot.slane %v5690_v26, 1  ;;  %v5704_v29 = vadd.f32 %v5703_v32, %v5702_v40  ;;  %v5716_v48 = vadd.f32 %v5715_v11, %v5714_v57 }
 0x21d   :  { %v5685_v21 = vadd.f32 %v5684_v46, %v5683_v9  ;;  %v5698_v5 = vrot.slane %v5697_v59, 1  ;;  %v5711_v30 = vadd.f32 %v5710_v47, %v5709_v51  ;;  %8989 = vlog2.f32 %v5671_v49 }
 0x21e   :  { %v5692_v43 = vadd.f32 %v5691_v55, %v5690_v26  ;;  %v5705_v7 = vrot.slane %v5704_v29, 1  ;;  %v5717_v61 = vrot.slane %v5716_v48, 2  ;;  %8991 = vlog2.f32 %v5678_v18 }
 0x21f   :  { %v5699_v24 = vadd.f32 %v5698_v5, %v5697_v59  ;;  %v5712_v52 = vrot.slane %v5711_v30, 1  ;;  %8993 = vlog2.f32 %v5685_v21  ;;  %v4062_v33 = vrot.slane %v4061_v62, 1 }
 0x220   :  { %v5706_v35 = vadd.f32 %v5705_v7, %v5704_v29  ;;  %v5718_v15 = vadd.f32 %v5717_v61, %v5716_v48  ;;  %8995 = vlog2.f32 %v5692_v43  ;;  %v4067_v25 = vrot.slane %v10899_v2, 2 }
 0x221   :  { %v5713_v1 = vadd.f32 %v5712_v52, %v5711_v30  ;;  %8997 = vlog2.f32 %v5699_v24  ;;  %v10915_v54 = vmax.f32 %v4061_v62, %v4062_v33  ;;  %v4074_v16 = vrot.slane %v10902_v44, 2 }
 0x222   :  { %v5719_v37 = vrot.slane %v5718_v15, 1  ;;  %8999 = vlog2.f32 %v5706_v35  ;;  %v4068_v42 = vmax.f32 %v10899_v2, %v4067_v25  ;;  %v4078_v27 = vsel %vm3104_vm2, %v10872_v12, -inf }
 0x223   :  { %9001 = vlog2.f32 %v5713_v1  ;;  %v4075_v45 = vmax.f32 %v10902_v44, %v4074_v16  ;;  %v4079_v22 = vrot.slane %v4078_v27, 4  ;;  %v4085_v17 = vsel %vm3104_vm2, %v10858_v23, -inf }
 0x224   :  { %v5720_v40 = vadd.f32 %v5719_v37, %v5718_v15  ;;  %v4069_v57 = vrot.slane %v4068_v42, 1  ;;  %v4086_v62 = vrot.slane %v4085_v17, 4  ;;  %v4092_v4 = vsel %vm3104_vm2, %v10878_v34, -inf }
 0x225   :  { %v4076_v9 = vrot.slane %v4075_v45, 1  ;;  %v4080_v14 = vmax.f32 %v4078_v27, %v4079_v22  ;;  %v4093_v51 = vrot.slane %v4092_v4, 4  ;;  %v4099_v2 = vsel %vm3104_vm2, %v10862_v20, -inf  ;;  %v10940_v27 = vpop.permute.xlu1 %646 }
 0x226   :  { %9003 = vlog2.f32 %v5720_v40  ;;  %v10928_v50 = vmax.f32 %v4068_v42, %v4069_v57  ;;  %v4087_v44 = vmax.f32 %v4085_v17, %v4086_v62  ;;  %v4100_v26 = vrot.slane %v4099_v2, 4 }
 0x227   :  { %v10930_v32 = vmax.f32 %v4075_v45, %v4076_v9  ;;  %v4081_v11 = vrot.slane %v4080_v14, 2  ;;  %v4094_v49 = vmax.f32 %v4092_v4, %v4093_v51  ;;  %v4106_v46 = vsel %vm3104_vm2, %v10884_v53, -inf }
 0x228   :  { %v4088_v59 = vrot.slane %v4087_v44, 2  ;;  %v4101_v47 = vmax.f32 %v4099_v2, %v4100_v26  ;;  %v4107_v18 = vrot.slane %v4106_v46, 4  ;;  %v5033_v55 = vsub.f32 %v10849_v19, %v10915_v54 }
 0x229   :  { %v4082_v29 = vmax.f32 %v4080_v14, %v4081_v11  ;;  %v4095_v48 = vrot.slane %v4094_v49, 2  ;;  %v5034_v21 = vsub.f32 %v10866_v60, %v10928_v50  ;;  %v5035_v5 = vsub.f32 %v10852_v8, %v10930_v32  ;;  %v10948_v14 = vpop.permute.xlu0 %644 }
 0x22a   :  { %v8990_v30 = vpop.eup %8989  ;;  %v4089_v43 = vmax.f32 %v4087_v44, %v4088_v59  ;;  %v4102_v7 = vrot.slane %v4101_v47, 2  ;;  %v4108_v61 = vmax.f32 %v4106_v46, %v4107_v18  ;;  %v5425_v24 = vmul.f32 1.442695, %v5033_v55 }
 0x22b   :  { %v8992_v52 = vpop.eup %8991  ;;  %v7458_v33 = vmul.f32 0.6931472, %v8990_v30  ;;  %v4083_v35 = vrot.slane %v4082_v29, 1  ;;  %v4096_v15 = vmax.f32 %v4094_v49, %v4095_v48  ;;  %v5427_v25 = vmul.f32 1.442695, %v5034_v21  ;;  %v8890_v30 = vpop.f32.mrf.mxu0 }
 0x22c   :  { %v8994_v1 = vpop.eup %8993  ;;  %v7460_v19 = vmul.f32 0.6931472, %v8992_v52  ;;  %v4090_v16 = vrot.slane %v4089_v43, 1  ;;  %v4103_v37 = vmax.f32 %v4101_v47, %v4102_v7  ;;  %v4109_v42 = vrot.slane %v4108_v61, 2 }
 0x22d   :  { %v8996_v60 = vpop.eup %8995  ;;  %v7462_v45 = vmul.f32 0.6931472, %v8994_v1  ;;  %v7969_v8 = vadd.f32 %v7458_v33, %v10790_v31  ;;  %v10943_v22 = vmax.f32 %v4082_v29, %v4083_v35  ;;  %v4097_v17 = vrot.slane %v4096_v15, 1  ;;  %v8914_v33 = vpop.f32.mrf.mxu1 }
 0x22e   :  { %v8998_v40 = vpop.eup %8997  ;;  %v7464_v57 = vmul.f32 0.6931472, %v8996_v60  ;;  %v7970_v62 = vadd.f32 %v7460_v19, %v10793_v58  ;;  %v10946_v4 = vmax.f32 %v4089_v43, %v4090_v16  ;;  %v4104_v9 = vrot.slane %v4103_v37, 1  ;;  %v10965_v43 = vpop.permute.xlu1 %678 }
 0x22f   :  { %v9000_v51 = vpop.eup %8999  ;;  %v7466_v2 = vmul.f32 0.6931472, %v8998_v40  ;;  %v7971_v44 = vadd.f32 %v7462_v45, %v10796_v38  ;;  %v10951_v26 = vmax.f32 %v4096_v15, %v4097_v17  ;;  %v4110_v11 = vmax.f32 %v4108_v61, %v4109_v42  ;;  %15353 = vst [vmem:[#allocation25_spill] sm:$0xff] %v10965_v43  ;;  %v10976_v15 = vpop.permute.xlu0 %676 }
 0x230   :  { %v9002_v31 = vpop.eup %9001  ;;  %v7468_v49 = vmul.f32 0.6931472, %v9000_v51  ;;  %v7972_v46 = vadd.f32 %v7464_v57, %v10798_v13  ;;  %v8482_v59 = vsel %vm8481_vm3, %v7970_v62, %v7969_v8  ;;  %v10955_v47 = vmax.f32 %v4103_v37, %v4104_v9  ;;  %15354 = vst [vmem:[#allocation26_spill] sm:$0xff] %v10976_v15  ;;  %v509_v60 = vpop.f32.mrf.mxu0 }
 0x231   :  { %v7470_v58 = vmul.f32 0.6931472, %v9002_v31  ;;  %v7973_v18 = vadd.f32 %v7466_v2, %v10805_v39  ;;  %v8484_v55 = vsel %vm8483_vm4, %v7971_v44, %v8482_v59  ;;  %v4111_v29 = vrot.slane %v4110_v11, 1  ;;  %v15360_v2 = vld [vmem:[#allocation24_spill] sm:$0xff]  ;;  %v15361_v31 = vld [vmem:[#allocation2_spill] sm:$0xff] }
 0x232   :  { %v7974_v48 = vadd.f32 %v7468_v49, %v10809_v0  ;;  %v8486_v38 = vsel %vm8485_vm5, %v7972_v46, %v8484_v55  ;;  %v5036_v21 = vsub.f32 %v10872_v12, %v10943_v22  ;;  %v5037_v13 = vsub.f32 %v10858_v23, %v10946_v4 }
 0x233   :  { %v9004_v7 = vpop.eup %9003  ;;  %v7975_v61 = vadd.f32 %v7470_v58, %v10827_v28  ;;  %v8488_v39 = vsel %vm8487_vm6, %v7973_v18, %v8486_v38  ;;  %v10969_v52 = vmax.f32 %v4110_v11, %v4111_v29  ;;  %v5038_v0 = vsub.f32 %v10878_v34, %v10951_v26  ;;  %v11011_v51 = vpop.permute.xlu0 %740 }
 0x234   :  { %v7472_v35 = vmul.f32 0.6931472, %v9004_v7  ;;  %v8490_v12 = vsel %vm8489_vm7, %v7974_v48, %v8488_v39  ;;  %v5039_v23 = vsub.f32 %v10862_v20, %v10955_v47  ;;  %9005 = vpow2.f32 %v5425_v24  ;;  %v589_v24 = vpop.f32.mrf.mxu1  ;;  %v15362_v48 = vld [vmem:[#allocation3_spill] sm:$0xff] }
 0x235   :  { %v8492_v1 = vsel %vm8491_vm8, %v7975_v61, %v8490_v12  ;;  %v5040_v28 = vsub.f32 %v10884_v53, %v10969_v52  ;;  %9007 = vpow2.f32 %v5427_v25  ;;  %v5429_v19 = vmul.f32 1.442695, %v5035_v5  ;;  %v10994_v25 = vpop.permute.xlu1 %742 }
 0x236   :  { %v7976_v16 = vadd.f32 %v7472_v35, %v10829_v36  ;;  %v5431_v34 = vmul.f32 1.442695, %v5036_v21  ;;  %v5433_v37 = vmul.f32 1.442695, %v5037_v13  ;;  %v5435_v42 = vmul.f32 1.442695, %v5038_v0 }
 0x237   :  { %9009 = vpow2.f32 %v5429_v19  ;;  %v5437_v45 = vmul.f32 1.442695, %v5039_v23  ;;  %v5439_v8 = vmul.f32 1.442695, %v5040_v28  ;;  %v2033_v20 = vcombine.high %v10570_v56, %v10825_v41  ;;  %v9965_v36 = vld [vmem:[%s15232_s2] ss:$0 sm:$0xff] }
 0x238   :  { %v8494_v17 = vsel %vm8493_vm9, %v7976_v16, %v8492_v1  ;;  %9011 = vpow2.f32 %v5431_v34  ;;  %v2040_v53 = vrot.slane %v2032_v10, %v10581_v63  ;;  %v10992_v5 = vadd.f32 %v9965_v36, %v8890_v30  ;;  %v15358_v41 = vld [vmem:[#allocation23_spill] sm:$0xff] }
 0x239   :  { %8745 = vst.msk [vmem:[%s15233_s3] sm:$0xff] %vm8744_vm10, %v8494_v17  ;;  %9013 = vpow2.f32 %v5433_v37  ;;  %v2047_v40 = vrot.slane %v2033_v20, %v10581_v63  ;;  %v11001_v57 = vadd.f32 %v9965_v36, %v509_v60  ;;  %v11003_v56 = vadd.f32 %v9965_v36, %v8914_v33 }
 0x23a   :  { %15355 = vst [vmem:[#allocation27_spill] sm:$0xff] %v10992_v5  ;;  %9015 = vpow2.f32 %v5435_v42  ;;  %v2048_v10 = vcombine.low %v15358_v41, %v2040_v53  ;;  %v2049_v62 = vcombine.high %v15358_v41, %v2040_v53  ;;  %666 = vrot.lane.b32.xlu1 %v10992_v5, %s9968_s12  ;;  %v11009_v9 = vadd.f32 %v9965_v36, %v589_v24 }
 0x23b   :  { %15356 = vst [vmem:[#allocation28_spill] sm:$0xff] %v11001_v57  ;;  %15357 = vst [vmem:[#allocation29_spill] sm:$0xff] %v11003_v56  ;;  %9017 = vpow2.f32 %v5437_v45  ;;  %v2064_v44 = vcombine.low %v15360_v2, %v2047_v40  ;;  %v2065_v11 = vcombine.high %v15360_v2, %v2047_v40  ;;  %v1132_v49 = vcombine.low %v15361_v31, %v10994_v25 }
 0x23c   :  { %15359 = vst [vmem:[#allocation23_spill] sm:$0xff] %v11009_v9  ;;  %664 = vrot.lane.b32.xlu0 %v11001_v57, %s9968_s12  ;;  %9019 = vpow2.f32 %v5439_v8  ;;  %v11020_v46 = vrot.slane %v2048_v10, %v10595_v3  ;;  %v11023_v59 = vrot.slane %v2049_v62, %v10595_v3 }
 0x23d   :  { %v11028_v18 = vrot.slane %v2064_v44, %v10595_v3  ;;  %v11031_v55 = vrot.slane %v2065_v11, %v10595_v3  ;;  %v11034_v29 = vrot.slane %v1132_v49, %v10581_v63 }
 0x23e   :  { %v11040_v21 = vcombine.high %v11020_v46, %v15350_v6  ;;  %v11044_v13 = vcombine.high %v11023_v59, %v15350_v6  ;;  %v4001_v30 = vsel %vm3104_vm2, %v11020_v46, -inf  ;;  %v4015_v7 = vsel %vm3104_vm2, %v11023_v59, -inf  ;;  %698 = vrot.lane.b32.xlu1 %v11003_v56, %s9968_s12 }
 0x23f   :  { %v11054_v61 = vcombine.high %v11028_v18, %v15350_v6  ;;  %v11058_v39 = vcombine.high %v11031_v55, %v15350_v6  ;;  %v4002_v0 = vrot.slane %v4001_v30, 4  ;;  %v4016_v33 = vrot.slane %v4015_v7, 4 }
 0x240   :  { %696 = vrot.lane.b32.xlu0 %v11009_v9, %s9968_s12  ;;  %v4008_v35 = vsel %vm3104_vm2, %v11040_v21, -inf  ;;  %v4022_v12 = vsel %vm3104_vm2, %v11044_v13, -inf  ;;  %v4029_v23 = vsel %vm3104_vm2, %v11028_v18, -inf  ;;  %v11070_v1 = vsel %vm3104_vm2, %v11031_v55, -inf }
 0x241   :  { %v9006_v28 = vpop.eup %9005  ;;  %v4003_v19 = vmax.f32 %v4001_v30, %v4002_v0  ;;  %v4009_v16 = vrot.slane %v4008_v35, 4  ;;  %v4017_v34 = vmax.f32 %v4015_v7, %v4016_v33  ;;  %v4023_v37 = vrot.slane %v4022_v12, 4 }
 0x242   :  { %v9008_v42 = vpop.eup %9007  ;;  %v6617_v60 = vsel %vm3104_vm2, %v9006_v28, 0.0  ;;  %v4030_v45 = vrot.slane %v4029_v23, 4  ;;  %v11075_v8 = vsel %vm3104_vm2, %v11054_v61, -inf  ;;  %762 = vrot.lane.b32.xlu1 %v10992_v5, %s9969_s13 }
 0x243   :  { %v6618_v24 = vrot.slane %v6617_v60, 4  ;;  %v6624_v17 = vsel %vm3104_vm2, %v9008_v42, 0.0  ;;  %v4004_v53 = vrot.slane %v4003_v19, 2  ;;  %v11081_v36 = vmax.f32 %v4008_v35, %v4009_v16 }
 0x244   :  { %760 = vrot.lane.b32.xlu0 %v11001_v57, %s9969_s13  ;;  %v9010_v40 = vpop.eup %9009  ;;  %v6625_v41 = vrot.slane %v6624_v17, 4  ;;  %v4018_v10 = vrot.slane %v4017_v34, 2  ;;  %v11085_v62 = vmax.f32 %v4022_v12, %v4023_v37  ;;  %v11087_v2 = vmax.f32 %v4029_v23, %v4030_v45 }
 0x245   :  { %v9012_v44 = vpop.eup %9011  ;;  %v6619_v11 = vadd.f32 %v6618_v24, %v6617_v60  ;;  %v6631_v49 = vsel %vm3104_vm2, %v9010_v40, 0.0  ;;  %v4005_v30 = vmax.f32 %v4003_v19, %v4004_v53  ;;  %v4011_v7 = vrot.slane %v11081_v36, 2 }
 0x246   :  { %v9014_v0 = vpop.eup %9013  ;;  %v6626_v33 = vadd.f32 %v6625_v41, %v6624_v17  ;;  %v6632_v35 = vrot.slane %v6631_v49, 4  ;;  %v6638_v28 = vsel %vm3104_vm2, %v9012_v44, 0.0  ;;  %v11092_v16 = vmax.f32 %v4017_v34, %v4018_v10  ;;  %794 = vrot.lane.b32.xlu1 %v11003_v56, %s9969_s13 }
 0x247   :  { %v9016_v12 = vpop.eup %9015  ;;  %v6620_v23 = vrot.slane %v6619_v11, 2  ;;  %v6639_v37 = vrot.slane %v6638_v28, 4  ;;  %v6645_v42 = vsel %vm3104_vm2, %v9014_v0, 0.0  ;;  %v4006_v60 = vrot.slane %v4005_v30, 1 }
 0x248   :  { %792 = vrot.lane.b32.xlu0 %v11009_v9, %s9969_s13  ;;  %v9018_v19 = vpop.eup %9017  ;;  %v6627_v45 = vrot.slane %v6626_v33, 2  ;;  %v6633_v24 = vadd.f32 %v6632_v35, %v6631_v49  ;;  %v6646_v17 = vrot.slane %v6645_v42, 4  ;;  %v6652_v53 = vsel %vm3104_vm2, %v9016_v12, 0.0 }
 0x249   :  { %v9020_v34 = vpop.eup %9019  ;;  %v6621_v40 = vadd.f32 %v6620_v23, %v6619_v11  ;;  %v6640_v41 = vadd.f32 %v6639_v37, %v6638_v28  ;;  %v6653_v10 = vrot.slane %v6652_v53, 4  ;;  %v6659_v44 = vsel %vm3104_vm2, %v9018_v19, 0.0 }
 0x24a   :  { %v6628_v38 = vadd.f32 %v6627_v45, %v6626_v33  ;;  %v6634_v58 = vrot.slane %v6633_v24, 2  ;;  %v6647_v20 = vadd.f32 %v6646_v17, %v6645_v42  ;;  %v6660_v0 = vrot.slane %v6659_v44, 4  ;;  %858 = vrot.lane.b32.xlu1 %v10992_v5, %s9970_s14 }
 0x24b   :  { %v6622_v15 = vrot.slane %v6621_v40, 1  ;;  %v6641_v43 = vrot.slane %v6640_v41, 2  ;;  %v6654_v6 = vadd.f32 %v6653_v10, %v6652_v53  ;;  %v6666_v49 = vsel %vm3104_vm2, %v9020_v34, 0.0 }
 0x24c   :  { %856 = vrot.lane.b32.xlu0 %v11001_v57, %s9970_s14  ;;  %v6629_v11 = vrot.slane %v6628_v38, 1  ;;  %v6635_v35 = vadd.f32 %v6634_v58, %v6633_v24  ;;  %v6648_v28 = vrot.slane %v6647_v20, 2  ;;  %v6661_v12 = vadd.f32 %v6660_v0, %v6659_v44 }
 0x24d   :  { %v6623_v23 = vadd.f32 %v6622_v15, %v6621_v40  ;;  %v6642_v33 = vadd.f32 %v6641_v43, %v6640_v41  ;;  %v6655_v37 = vrot.slane %v6654_v6, 2  ;;  %v6667_v42 = vrot.slane %v6666_v49, 4 }
 0x24e   :  { %v6630_v19 = vadd.f32 %v6629_v11, %v6628_v38  ;;  %v6636_v45 = vrot.slane %v6635_v35, 1  ;;  %v6649_v17 = vadd.f32 %v6648_v28, %v6647_v20  ;;  %v6662_v5 = vrot.slane %v6661_v12, 2  ;;  %890 = vrot.lane.b32.xlu1 %v11003_v56, %s9970_s14 }
 0x24f   :  { %v6643_v53 = vrot.slane %v6642_v33, 1  ;;  %v6656_v34 = vadd.f32 %v6655_v37, %v6654_v6  ;;  %v6668_v10 = vadd.f32 %v6667_v42, %v6666_v49  ;;  %9021 = vlog2.f32 %v6623_v23 }
 0x250   :  { %888 = vrot.lane.b32.xlu0 %v11009_v9, %s9970_s14  ;;  %v6637_v58 = vadd.f32 %v6636_v45, %v6635_v35  ;;  %v6650_v24 = vrot.slane %v6649_v17, 1  ;;  %v6663_v15 = vadd.f32 %v6662_v5, %v6661_v12  ;;  %9023 = vlog2.f32 %v6630_v19 }
 0x251   :  { %v6644_v43 = vadd.f32 %v6643_v53, %v6642_v33  ;;  %v6657_v40 = vrot.slane %v6656_v34, 1  ;;  %v6669_v38 = vrot.slane %v6668_v10, 2  ;;  %v11110_v41 = vmax.f32 %v4005_v30, %v4006_v60 }
 0x252   :  { %v6651_v20 = vadd.f32 %v6650_v24, %v6649_v17  ;;  %v6664_v44 = vrot.slane %v6663_v15, 1  ;;  %9025 = vlog2.f32 %v6637_v58  ;;  %v4012_v0 = vmax.f32 %v11081_v36, %v4011_v7 }
 0x253   :  { %v6658_v6 = vadd.f32 %v6657_v40, %v6656_v34  ;;  %v6670_v49 = vadd.f32 %v6669_v38, %v6668_v10  ;;  %9027 = vlog2.f32 %v6644_v43  ;;  %v4020_v11 = vrot.slane %v11092_v16, 1 }
 0x254   :  { %v6665_v28 = vadd.f32 %v6664_v44, %v6663_v15  ;;  %9029 = vlog2.f32 %v6651_v20  ;;  %v4013_v35 = vrot.slane %v4012_v0, 1  ;;  %v4025_v5 = vrot.slane %v11085_v62, 2 }
 0x255   :  { %v6671_v12 = vrot.slane %v6670_v49, 1  ;;  %9031 = vlog2.f32 %v6658_v6  ;;  %v11116_v30 = vmax.f32 %v11092_v16, %v4020_v11  ;;  %v4032_v60 = vrot.slane %v11087_v2, 2 }
 0x256   :  { %9033 = vlog2.f32 %v6665_v28  ;;  %v11119_v23 = vmax.f32 %v4012_v0, %v4013_v35  ;;  %v4026_v36 = vmax.f32 %v11085_v62, %v4025_v5  ;;  %v4037_v7 = vrot.slane %v11075_v8, 4 }
 0x257   :  { %v6672_v33 = vadd.f32 %v6671_v12, %v6670_v49  ;;  %v4033_v37 = vmax.f32 %v11087_v2, %v4032_v60  ;;  %v15363_v42 = vrot.slane %v11070_v1, 4  ;;  %v4050_v16 = vsel %vm3104_vm2, %v11058_v39, -inf }
 0x258   :  { %v4027_v45 = vrot.slane %v4026_v36, 1  ;;  %v4038_v17 = vmax.f32 %v11075_v8, %v4037_v7  ;;  %v4051_v53 = vrot.slane %v4050_v16, 4  ;;  %v5025_v34 = vsub.f32 %v11020_v46, %v11110_v41 }
 0x259   :  { %v4045_v19 = vmax.f32 %v11070_v1, %v15363_v42  ;;  %9035 = vlog2.f32 %v6672_v33  ;;  %v4034_v62 = vrot.slane %v4033_v37, 1  ;;  %v5026_v2 = vsub.f32 %v11040_v21, %v11119_v23 }
 0x25a   :  { %v11134_v58 = vmax.f32 %v4026_v36, %v4027_v45  ;;  %v4039_v24 = vrot.slane %v4038_v17, 2  ;;  %v4052_v1 = vmax.f32 %v4050_v16, %v4051_v53  ;;  %v5027_v15 = vsub.f32 %v11023_v59, %v11116_v30  ;;  %v775_v53 = vpop.permute.xlu1 %774 }
 0x25b   :  { %v4046_v10 = vrot.slane %v4045_v19, 2  ;;  %v11138_v43 = vmax.f32 %v4033_v37, %v4034_v62  ;;  %v5409_v40 = vmul.f32 1.442695, %v5025_v34  ;;  %v5411_v38 = vmul.f32 1.442695, %v5026_v2 }
 0x25c   :  { %v9022_v20 = vpop.eup %9021  ;;  %v4040_v46 = vmax.f32 %v4038_v17, %v4039_v24  ;;  %v4053_v44 = vrot.slane %v4052_v1, 2  ;;  %v5028_v0 = vsub.f32 %v11044_v13, %v11134_v58  ;;  %v5413_v6 = vmul.f32 1.442695, %v5027_v15 }
 0x25d   :  { %v4047_v8 = vmax.f32 %v4045_v19, %v4046_v10  ;;  %v9024_v21 = vpop.eup %9023  ;;  %v7730_v49 = vmul.f32 0.6931472, %v9022_v20  ;;  %v5029_v28 = vsub.f32 %v11028_v18, %v11138_v43  ;;  %9037 = vpow2.f32 %v5409_v40 }
 0x25e   :  { %v7732_v59 = vmul.f32 0.6931472, %v9024_v21  ;;  %v4041_v35 = vrot.slane %v4040_v46, 1  ;;  %v4054_v5 = vmax.f32 %v4052_v1, %v4053_v44  ;;  %9039 = vpow2.f32 %v5411_v38 }
 0x25f   :  { %v4048_v11 = vrot.slane %v4047_v8, 1  ;;  %v9026_v12 = vpop.eup %9025  ;;  %v8105_v60 = vadd.f32 %v7730_v49, %v10915_v54  ;;  %9041 = vpow2.f32 %v5413_v6  ;;  %v5415_v7 = vmul.f32 1.442695, %v5028_v0  ;;  %v773_v0 = vpop.permute.xlu0 %772 }
 0x260   :  { %v9028_v13 = vpop.eup %9027  ;;  %v7734_v33 = vmul.f32 0.6931472, %v9026_v12  ;;  %v8106_v37 = vadd.f32 %v7732_v59, %v10928_v50  ;;  %v11148_v42 = vmax.f32 %v4040_v46, %v4041_v35  ;;  %v4055_v19 = vrot.slane %v4054_v5, 1 }
 0x261   :  { %v11145_v36 = vmax.f32 %v4047_v8, %v4048_v11  ;;  %v9030_v18 = vpop.eup %9029  ;;  %v7736_v16 = vmul.f32 0.6931472, %v9028_v13  ;;  %9043 = vpow2.f32 %v5415_v7  ;;  %v5417_v17 = vmul.f32 1.442695, %v5029_v28  ;;  %v839_v28 = vpop.permute.xlu1 %838 }
 0x262   :  { %v9032_v54 = vpop.eup %9031  ;;  %v7738_v34 = vmul.f32 0.6931472, %v9030_v18  ;;  %v8107_v62 = vadd.f32 %v7734_v33, %v10930_v32  ;;  %v8607_v10 = vsel %vm8481_vm3, %v8106_v37, %v8105_v60  ;;  %v11154_v2 = vmax.f32 %v4054_v5, %v4055_v19  ;;  %v15367_v33 = vld [vmem:[#allocation5_spill] sm:$0xff] }
 0x263   :  { %v5031_v45 = vsub.f32 %v11031_v55, %v11145_v36  ;;  %v9034_v50 = vpop.eup %9033  ;;  %v7740_v24 = vmul.f32 0.6931472, %v9032_v54  ;;  %v8108_v1 = vadd.f32 %v7736_v16, %v10943_v22  ;;  %v5030_v15 = vsub.f32 %v11054_v61, %v11148_v42 }
 0x264   :  { %9045 = vpow2.f32 %v5417_v17  ;;  %v7742_v55 = vmul.f32 0.6931472, %v9034_v50  ;;  %v8109_v8 = vadd.f32 %v7738_v34, %v10946_v4  ;;  %v8608_v40 = vsel %vm8483_vm4, %v8107_v62, %v8607_v10  ;;  %v11201_v17 = vpop.permute.xlu0 %836 }
 0x265   :  { %v5032_v32 = vsub.f32 %v11058_v39, %v11154_v2  ;;  %v8110_v38 = vadd.f32 %v7740_v24, %v10951_v26  ;;  %v8609_v20 = vsel %vm8485_vm5, %v8108_v1, %v8608_v40  ;;  %v5419_v46 = vmul.f32 1.442695, %v5030_v15 }
 0x266   :  { %v5421_v44 = vmul.f32 1.442695, %v5031_v45  ;;  %v9036_v22 = vpop.eup %9035  ;;  %v8111_v6 = vadd.f32 %v7742_v55, %v10955_v47  ;;  %v8610_v61 = vsel %vm8487_vm6, %v8109_v8, %v8609_v20  ;;  %v15364_v4 = vcombine.high %v15361_v31, %v10994_v25  ;;  %v15366_v25 = vld [vmem:[#allocation4_spill] sm:$0xff] }
 0x267   :  { %v5423_v21 = vmul.f32 1.442695, %v5032_v32  ;;  %v7744_v39 = vmul.f32 0.6931472, %v9036_v22  ;;  %v8611_v26 = vsel %vm8489_vm7, %v8110_v38, %v8610_v61  ;;  %9047 = vpow2.f32 %v5419_v46 }
 0x268   :  { %v11171_v49 = vrot.slane %v15364_v4, %v10581_v63  ;;  %v1065_v11 = vcombine.high %v15362_v48, %v11011_v51  ;;  %v8612_v59 = vsel %vm8491_vm8, %v8111_v6, %v8611_v26  ;;  %9049 = vpow2.f32 %v5421_v44 }
 0x269   :  { %v15365_v47 = vcombine.low %v15362_v48, %v11011_v51  ;;  %v2220_v31 = vcombine.low %v15366_v25, %v775_v53  ;;  %v8112_v5 = vadd.f32 %v7744_v39, %v10969_v52  ;;  %9051 = vpow2.f32 %v5423_v21 }
 0x26a   :  { %v11186_v12 = vrot.slane %v1065_v11, %v10581_v63  ;;  %v2221_v60 = vcombine.high %v15366_v25, %v775_v53  ;;  %v9038_v7 = vpop.eup %9037  ;;  %v2152_v37 = vcombine.low %v15367_v33, %v773_v0  ;;  %v2153_v51 = vcombine.high %v15367_v33, %v773_v0 }
 0x26b   :  { %v11181_v35 = vrot.slane %v15365_v47, %v10581_v63  ;;  %v11190_v13 = vrot.slane %v2220_v31, %v10581_v63  ;;  %v1148_v48 = vcombine.low %v10940_v27, %v839_v28  ;;  %v9040_v19 = vpop.eup %9039  ;;  %v8613_v18 = vsel %vm8493_vm9, %v8112_v5, %v8612_v59 }
 0x26c   :  { %v6561_v52 = vsel %vm3104_vm2, %v9038_v7, 0.0  ;;  %v11198_v16 = vrot.slane %v2221_v60, %v10581_v63  ;;  %v1149_v45 = vcombine.high %v10940_v27, %v839_v28  ;;  %v9042_v53 = vpop.eup %9041  ;;  %8762 = vst.msk [vmem:[%s15233_s3 + $0x88] sm:$0xff] %vm8744_vm10, %v8613_v18  ;;  %v6568_v34 = vsel %vm3104_vm2, %v9040_v19, 0.0 }
 0x26d   :  { %v6562_v54 = vrot.slane %v6561_v52, 4  ;;  %v11209_v62 = vrot.slane %v2152_v37, %v10581_v63  ;;  %v11212_v10 = vrot.slane %v2153_v51, %v10581_v63  ;;  %v6569_v50 = vrot.slane %v6568_v34, 4 }
 0x26e   :  { %v6575_v27 = vsel %vm3104_vm2, %v9042_v53, 0.0  ;;  %v1156_v24 = vrot.slane %v1148_v48, %v10581_v63  ;;  %v1163_v1 = vrot.slane %v1149_v45, %v10581_v63  ;;  %v9044_v15 = vpop.eup %9043  ;;  %v1080_v40 = vcombine.low %v10948_v14, %v11201_v17 }
 0x26f   :  { %v6563_v55 = vadd.f32 %v6562_v54, %v6561_v52  ;;  %v6576_v8 = vrot.slane %v6575_v27, 4  ;;  %v1081_v32 = vcombine.high %v10948_v14, %v11201_v17  ;;  %v6570_v38 = vadd.f32 %v6569_v50, %v6568_v34 }
 0x270   :  { %v6582_v20 = vsel %vm3104_vm2, %v9044_v15, 0.0  ;;  %v1164_v46 = vcombine.low %v11034_v29, %v1156_v24  ;;  %v1165_v44 = vcombine.high %v11034_v29, %v1156_v24  ;;  %v1180_v21 = vcombine.low %v11171_v49, %v1163_v1 }
 0x271   :  { %v9046_v0 = vpop.eup %9045  ;;  %v6564_v22 = vrot.slane %v6563_v55, 2  ;;  %v6577_v6 = vadd.f32 %v6576_v8, %v6575_v27  ;;  %v6583_v61 = vrot.slane %v6582_v20, 4  ;;  %v6571_v4 = vrot.slane %v6570_v38, 2 }
 0x272   :  { %v6589_v39 = vsel %vm3104_vm2, %v9046_v0, 0.0  ;;  %v11227_v26 = vrot.slane %v1164_v46, %v10595_v3  ;;  %v11230_v11 = vrot.slane %v1165_v44, %v10595_v3  ;;  %v1181_v31 = vcombine.high %v11171_v49, %v1163_v1 }
 0x273   :  { %v6565_v28 = vadd.f32 %v6564_v22, %v6563_v55  ;;  %v6578_v59 = vrot.slane %v6577_v6, 2  ;;  %v6584_v47 = vadd.f32 %v6583_v61, %v6582_v20  ;;  %v6590_v25 = vrot.slane %v6589_v39, 4 }
 0x274   :  { %v6572_v29 = vadd.f32 %v6571_v4, %v6570_v38  ;;  %v11234_v5 = vrot.slane %v1180_v21, %v10595_v3  ;;  %v15368_v60 = vmov 0.0   ;;  %v9048_v33 = vpop.eup %9047  ;;  %v11242_v53 = vrot.slane %v1181_v31, %v10595_v3 }
 0x275   :  { %v11238_v7 = vcombine.high %v11227_v26, %v15368_v60  ;;  %v6566_v37 = vrot.slane %v6565_v28, 1  ;;  %v6579_v51 = vadd.f32 %v6578_v59, %v6577_v6  ;;  %v6585_v48 = vrot.slane %v6584_v47, 2  ;;  %v9050_v18 = vpop.eup %9049 }
 0x276   :  { %v6591_v19 = vadd.f32 %v6590_v25, %v6589_v39  ;;  %v6573_v52 = vrot.slane %v6572_v29, 1  ;;  %v6596_v45 = vsel %vm3104_vm2, %v9048_v33, 0.0  ;;  %v11246_v49 = vcombine.high %v11230_v11, %v15368_v60  ;;  %v9052_v54 = vpop.eup %9051 }
 0x277   :  { %v6567_v34 = vadd.f32 %v6566_v37, %v6565_v28  ;;  %v6580_v50 = vrot.slane %v6579_v51, 1  ;;  %v6586_v27 = vadd.f32 %v6585_v48, %v6584_v47  ;;  %v6597_v15 = vrot.slane %v6596_v45, 4 }
 0x278   :  { %v6592_v24 = vrot.slane %v6591_v19, 2  ;;  %v6574_v1 = vadd.f32 %v6573_v52, %v6572_v29  ;;  %v6603_v55 = vsel %vm3104_vm2, %v9050_v18, 0.0  ;;  %v6610_v8 = vsel %vm3104_vm2, %v9052_v54, 0.0 }
 0x279   :  { %v6581_v38 = vadd.f32 %v6580_v50, %v6579_v51  ;;  %v6587_v20 = vrot.slane %v6586_v27, 1  ;;  %v6604_v44 = vrot.slane %v6603_v55, 4  ;;  %v6598_v0 = vadd.f32 %v6597_v15, %v6596_v45 }
 0x27a   :  { %v6593_v46 = vadd.f32 %v6592_v24, %v6591_v19  ;;  %v6611_v22 = vrot.slane %v6610_v8, 4  ;;  %9053 = vlog2.f32 %v6567_v34  ;;  %v11252_v6 = vcombine.high %v11234_v5, %v15368_v60 }
 0x27b   :  { %v6588_v61 = vadd.f32 %v6587_v20, %v6586_v27  ;;  %v6605_v4 = vadd.f32 %v6604_v44, %v6603_v55  ;;  %9055 = vlog2.f32 %v6574_v1  ;;  %v6599_v39 = vrot.slane %v6598_v0, 2 }
 0x27c   :  { %v6594_v21 = vrot.slane %v6593_v46, 1  ;;  %v6612_v28 = vadd.f32 %v6611_v22, %v6610_v8  ;;  %9057 = vlog2.f32 %v6581_v38  ;;  %v11256_v59 = vcombine.high %v11242_v53, %v15368_v60 }
 0x27d   :  { %v6606_v25 = vrot.slane %v6605_v4, 2  ;;  %9059 = vlog2.f32 %v6588_v61  ;;  %v3273_v29 = vsel %vm3104_vm2, %v11227_v26, -inf  ;;  %v6600_v31 = vadd.f32 %v6599_v39, %v6598_v0 }
 0x27e   :  { %v6595_v47 = vadd.f32 %v6594_v21, %v6593_v46  ;;  %v6613_v33 = vrot.slane %v6612_v28, 2  ;;  %v3274_v37 = vrot.slane %v3273_v29, 4  ;;  %v3280_v51 = vsel %vm3104_vm2, %v11238_v7, -inf }
 0x27f   :  { %v6607_v48 = vadd.f32 %v6606_v25, %v6605_v4  ;;  %v3281_v19 = vrot.slane %v3280_v51, 4  ;;  %v3287_v18 = vsel %vm3104_vm2, %v11230_v11, -inf  ;;  %v6601_v52 = vrot.slane %v6600_v31, 1 }
 0x280   :  { %9061 = vlog2.f32 %v6595_v47  ;;  %v6614_v45 = vadd.f32 %v6613_v33, %v6612_v28  ;;  %v3275_v54 = vmax.f32 %v3273_v29, %v3274_v37  ;;  %v3288_v34 = vrot.slane %v3287_v18, 4 }
 0x281   :  { %v6608_v50 = vrot.slane %v6607_v48, 1  ;;  %v3282_v27 = vmax.f32 %v3280_v51, %v3281_v19  ;;  %v3294_v24 = vsel %vm3104_vm2, %v11246_v49, -inf  ;;  %v3301_v1 = vsel %vm3104_vm2, %v11234_v5, -inf }
 0x282   :  { %v6602_v15 = vadd.f32 %v6601_v52, %v6600_v31  ;;  %v6615_v55 = vrot.slane %v6614_v45, 1  ;;  %v3276_v8 = vrot.slane %v3275_v54, 2  ;;  %v3289_v38 = vmax.f32 %v3287_v18, %v3288_v34 }
 0x283   :  { %v6609_v20 = vadd.f32 %v6608_v50, %v6607_v48  ;;  %v3283_v46 = vrot.slane %v3282_v27, 2  ;;  %v3295_v44 = vrot.slane %v3294_v24, 4  ;;  %v3302_v0 = vrot.slane %v3301_v1, 4 }
 0x284   :  { %v6616_v22 = vadd.f32 %v6615_v55, %v6614_v45  ;;  %9063 = vlog2.f32 %v6602_v15  ;;  %v3277_v61 = vmax.f32 %v3275_v54, %v3276_v8  ;;  %v3290_v21 = vrot.slane %v3289_v38, 2 }
 0x285   :  { %9065 = vlog2.f32 %v6609_v20  ;;  %v3284_v4 = vmax.f32 %v3282_v27, %v3283_v46  ;;  %v3296_v39 = vmax.f32 %v3294_v24, %v3295_v44  ;;  %v3303_v28 = vmax.f32 %v3301_v1, %v3302_v0 }
 0x286   :  { %9067 = vlog2.f32 %v6616_v22  ;;  %v3278_v47 = vrot.slane %v3277_v61, 1  ;;  %v3291_v25 = vmax.f32 %v3289_v38, %v3290_v21  ;;  %v3308_v29 = vsel %vm3104_vm2, %v11252_v6, -inf }
 0x287   :  { %v9054_v31 = vpop.eup %9053  ;;  %v3285_v33 = vrot.slane %v3284_v4, 1  ;;  %v3297_v37 = vrot.slane %v3296_v39, 2  ;;  %v3304_v51 = vrot.slane %v3303_v28, 2  ;;  %v3309_v48 = vrot.slane %v3308_v29, 4 }
 0x288   :  { %v9056_v19 = vpop.eup %9055  ;;  %v7714_v18 = vmul.f32 0.6931472, %v9054_v31  ;;  %v11270_v52 = vmax.f32 %v3277_v61, %v3278_v47  ;;  %v3292_v45 = vrot.slane %v3291_v25, 1  ;;  %v3315_v54 = vsel %vm3104_vm2, %v11242_v53, -inf }
 0x289   :  { %v9058_v34 = vpop.eup %9057  ;;  %v7716_v50 = vmul.f32 0.6931472, %v9056_v19  ;;  %v11274_v27 = vmax.f32 %v3284_v4, %v3285_v33  ;;  %v3298_v24 = vmax.f32 %v3296_v39, %v3297_v37  ;;  %v3305_v1 = vmax.f32 %v3303_v28, %v3304_v51 }
 0x28a   :  { %v9060_v15 = vpop.eup %9059  ;;  %v7718_v55 = vmul.f32 0.6931472, %v9058_v34  ;;  %v8097_v8 = vadd.f32 %v7714_v18, %v11110_v41  ;;  %v11277_v38 = vmax.f32 %v3291_v25, %v3292_v45  ;;  %v3310_v20 = vmax.f32 %v3308_v29, %v3309_v48 }
 0x28b   :  { %v7720_v46 = vmul.f32 0.6931472, %v9060_v15  ;;  %v8098_v44 = vadd.f32 %v7716_v50, %v11119_v23  ;;  %v3299_v0 = vrot.slane %v3298_v24, 1  ;;  %v3306_v22 = vrot.slane %v3305_v1, 1 }
 0x28c   :  { %v8099_v21 = vadd.f32 %v7718_v55, %v11116_v30  ;;  %v3311_v47 = vrot.slane %v3310_v20, 2  ;;  %v3316_v4 = vrot.slane %v3315_v54, 4  ;;  %v3322_v39 = vsel %vm3104_vm2, %v11256_v59, -inf }
 0x28d   :  { %v9062_v61 = vpop.eup %9061  ;;  %v8100_v31 = vadd.f32 %v7720_v46, %v11134_v58  ;;  %v8600_v41 = vsel %vm8481_vm3, %v8098_v44, %v8097_v8  ;;  %v11285_v25 = vmax.f32 %v3298_v24, %v3299_v0  ;;  %v11288_v23 = vmax.f32 %v3305_v1, %v3306_v22 }
 0x28e   :  { %v7722_v28 = vmul.f32 0.6931472, %v9062_v61  ;;  %v8601_v29 = vsel %vm8483_vm4, %v8099_v21, %v8600_v41  ;;  %v3312_v33 = vmax.f32 %v3310_v20, %v3311_v47  ;;  %v3317_v37 = vmax.f32 %v3315_v54, %v3316_v4 }
 0x28f   :  { %v8602_v51 = vsel %vm8485_vm5, %v8100_v31, %v8601_v29  ;;  %v3323_v48 = vrot.slane %v3322_v39, 4  ;;  %v4921_v19 = vsub.f32 %v11227_v26, %v11270_v52  ;;  %v4922_v45 = vsub.f32 %v11238_v7, %v11274_v27  ;;  %v11318_v29 = vpop.permute.xlu1 %870 }
 0x290   :  { %v8101_v30 = vadd.f32 %v7722_v28, %v11138_v43  ;;  %v3313_v18 = vrot.slane %v3312_v33, 1  ;;  %v3318_v58 = vrot.slane %v3317_v37, 2  ;;  %v4923_v34 = vsub.f32 %v11230_v11, %v11277_v38 }
 0x291   :  { %v9064_v50 = vpop.eup %9063  ;;  %v3324_v54 = vmax.f32 %v3322_v39, %v3323_v48  ;;  %v4924_v43 = vsub.f32 %v11246_v49, %v11285_v25  ;;  %v4925_v1 = vsub.f32 %v11234_v5, %v11288_v23  ;;  %v5201_v20 = vmul.f32 1.442695, %v4921_v19  ;;  %v15369_v19 = vld [vmem:[#allocation25_spill] sm:$0xff] }
 0x292   :  { %v8603_v24 = vsel %vm8487_vm6, %v8101_v30, %v8602_v51  ;;  %v9066_v15 = vpop.eup %9065  ;;  %v7724_v26 = vmul.f32 0.6931472, %v9064_v50  ;;  %v11303_v55 = vmax.f32 %v3312_v33, %v3313_v18  ;;  %v3319_v8 = vmax.f32 %v3317_v37, %v3318_v58 }
 0x293   :  { %v9068_v7 = vpop.eup %9067  ;;  %v7726_v46 = vmul.f32 0.6931472, %v9066_v15  ;;  %v3325_v44 = vrot.slane %v3324_v54, 2  ;;  %v5203_v11 = vmul.f32 1.442695, %v4922_v45  ;;  %v1088_v0 = vrot.slane %v1080_v40, %v10581_v63 }
 0x294   :  { %v7728_v22 = vmul.f32 0.6931472, %v9068_v7  ;;  %v8102_v49 = vadd.f32 %v7724_v26, %v11148_v42  ;;  %v3320_v61 = vrot.slane %v3319_v8, 1  ;;  %v4926_v5 = vsub.f32 %v11252_v6, %v11303_v55 }
 0x295   :  { %v8103_v21 = vadd.f32 %v7726_v46, %v11145_v36  ;;  %v3326_v47 = vmax.f32 %v3324_v54, %v3325_v44  ;;  %9069 = vpow2.f32 %v5201_v20  ;;  %v5205_v4 = vmul.f32 1.442695, %v4923_v34 }
 0x296   :  { %v8104_v39 = vadd.f32 %v7728_v22, %v11154_v2  ;;  %v8604_v28 = vsel %vm8489_vm7, %v8102_v49, %v8603_v24  ;;  %v11315_v31 = vmax.f32 %v3319_v8, %v3320_v61  ;;  %9071 = vpow2.f32 %v5203_v11 }
 0x297   :  { %v8605_v40 = vsel %vm8491_vm8, %v8103_v21, %v8604_v28  ;;  %v3327_v41 = vrot.slane %v3326_v47, 1  ;;  %9073 = vpow2.f32 %v5205_v4  ;;  %v5207_v42 = vmul.f32 1.442695, %v4924_v43 }
 0x298   :  { %v8606_v6 = vsel %vm8493_vm9, %v8104_v39, %v8605_v40  ;;  %v4927_v36 = vsub.f32 %v11242_v53, %v11315_v31  ;;  %v5209_v33 = vmul.f32 1.442695, %v4925_v1  ;;  %v5211_v37 = vmul.f32 1.442695, %v4926_v5 }
 0x299   :  { %8761 = vst.msk [vmem:[%s15233_s3 + $0x80] sm:$0xff] %vm8744_vm10, %v8606_v6  ;;  %v11327_v2 = vmax.f32 %v3326_v47, %v3327_v41  ;;  %9075 = vpow2.f32 %v5207_v42  ;;  %v1095_v30 = vrot.slane %v1081_v32, %v10581_v63  ;;  %v1096_v51 = vcombine.low %v11181_v35, %v1088_v0 }
 0x29a   :  { %9077 = vpow2.f32 %v5209_v33  ;;  %v5213_v48 = vmul.f32 1.442695, %v4927_v36  ;;  %v1097_v53 = vcombine.high %v11181_v35, %v1088_v0 }
 0x29b   :  { %v4928_v58 = vsub.f32 %v11256_v59, %v11327_v2  ;;  %9079 = vpow2.f32 %v5211_v37  ;;  %v11340_v45 = vrot.slane %v1096_v51, %v10595_v3  ;;  %v1112_v34 = vcombine.low %v11186_v12, %v1095_v30 }
 0x29c   :  { %9081 = vpow2.f32 %v5213_v48  ;;  %v11344_v14 = vrot.slane %v1097_v53, %v10595_v3  ;;  %v1113_v17 = vcombine.high %v11186_v12, %v1095_v30 }
 0x29d   :  { %v5215_v32 = vmul.f32 1.442695, %v4928_v58  ;;  %v11350_v50 = vrot.slane %v1112_v34, %v10595_v3  ;;  %v11354_v59 = vcombine.high %v11340_v45, %v15368_v60  ;;  %v3217_v24 = vsel %vm3104_vm2, %v11340_v45, -inf }
 0x29e   :  { %v11359_v54 = vrot.slane %v1113_v17, %v10595_v3  ;;  %v11363_v12 = vcombine.high %v11344_v14, %v15368_v60  ;;  %v3218_v43 = vrot.slane %v3217_v24, 4  ;;  %v3231_v1 = vsel %vm3104_vm2, %v11344_v14, -inf }
 0x29f   :  { %9083 = vpow2.f32 %v5215_v32  ;;  %v11369_v15 = vcombine.high %v11350_v50, %v15368_v60  ;;  %v3224_v26 = vsel %vm3104_vm2, %v11354_v59, -inf  ;;  %v3232_v8 = vrot.slane %v3231_v1, 4 }
 0x2a0   :  { %v11375_v20 = vcombine.high %v11359_v54, %v15368_v60  ;;  %v3219_v7 = vmax.f32 %v3217_v24, %v3218_v43  ;;  %v3225_v46 = vrot.slane %v3224_v26, 4  ;;  %v3238_v44 = vsel %vm3104_vm2, %v11363_v12, -inf }
 0x2a1   :  { %v3233_v11 = vmax.f32 %v3231_v1, %v3232_v8  ;;  %v3239_v0 = vrot.slane %v3238_v44, 4  ;;  %v11381_v22 = vsel %vm3104_vm2, %v11350_v50, -inf  ;;  %v11385_v49 = vsel %vm3104_vm2, %v11369_v15, -inf }
 0x2a2   :  { %v9070_v61 = vpop.eup %9069  ;;  %v3220_v5 = vrot.slane %v3219_v7, 2  ;;  %v3226_v21 = vmax.f32 %v3224_v26, %v3225_v46  ;;  %v11392_v42 = vsel %vm3104_vm2, %v11359_v54, -inf }
 0x2a3   :  { %v9072_v39 = vpop.eup %9071  ;;  %v5833_v28 = vsel %vm3104_vm2, %v9070_v61, 0.0  ;;  %v3234_v40 = vrot.slane %v3233_v11, 2  ;;  %v3240_v41 = vmax.f32 %v3238_v44, %v3239_v0 }
 0x2a4   :  { %v9074_v6 = vpop.eup %9073  ;;  %v5834_v36 = vrot.slane %v5833_v28, 4  ;;  %v5840_v33 = vsel %vm3104_vm2, %v9072_v39, 0.0  ;;  %v3221_v37 = vmax.f32 %v3219_v7, %v3220_v5  ;;  %v3227_v30 = vrot.slane %v3226_v21, 2 }
 0x2a5   :  { %v5841_v51 = vrot.slane %v5840_v33, 4  ;;  %v5847_v48 = vsel %vm3104_vm2, %v9074_v6, 0.0  ;;  %v3235_v53 = vmax.f32 %v3233_v11, %v3234_v40  ;;  %v3241_v58 = vrot.slane %v3240_v41, 2 }
 0x2a6   :  { %v9076_v34 = vpop.eup %9075  ;;  %v5835_v17 = vadd.f32 %v5834_v36, %v5833_v28  ;;  %v5848_v32 = vrot.slane %v5847_v48, 4  ;;  %v3222_v24 = vrot.slane %v3221_v37, 1  ;;  %v3228_v43 = vmax.f32 %v3226_v21, %v3227_v30 }
 0x2a7   :  { %v9078_v1 = vpop.eup %9077  ;;  %v5842_v26 = vadd.f32 %v5841_v51, %v5840_v33  ;;  %v5854_v8 = vsel %vm3104_vm2, %v9076_v34, 0.0  ;;  %v3236_v46 = vrot.slane %v3235_v53, 1  ;;  %v3242_v44 = vmax.f32 %v3240_v41, %v3241_v58 }
 0x2a8   :  { %v9080_v0 = vpop.eup %9079  ;;  %v5836_v61 = vrot.slane %v5835_v17, 2  ;;  %v5849_v7 = vadd.f32 %v5848_v32, %v5847_v48  ;;  %v5855_v5 = vrot.slane %v5854_v8, 4  ;;  %v5861_v39 = vsel %vm3104_vm2, %v9078_v1, 0.0 }
 0x2a9   :  { %v9082_v6 = vpop.eup %9081  ;;  %v5843_v11 = vrot.slane %v5842_v26, 2  ;;  %v5862_v40 = vrot.slane %v5861_v39, 4  ;;  %v5868_v28 = vsel %vm3104_vm2, %v9080_v0, 0.0  ;;  %v11399_v36 = vmax.f32 %v3221_v37, %v3222_v24 }
 0x2aa   :  { %v5837_v21 = vadd.f32 %v5836_v61, %v5835_v17  ;;  %v5850_v30 = vrot.slane %v5849_v7, 2  ;;  %v5856_v33 = vadd.f32 %v5855_v5, %v5854_v8  ;;  %v5869_v51 = vrot.slane %v5868_v28, 4 }
 0x2ab   :  { %v5844_v34 = vadd.f32 %v5843_v11, %v5842_v26  ;;  %v5863_v35 = vadd.f32 %v5862_v40, %v5861_v39  ;;  %v5875_v41 = vsel %vm3104_vm2, %v9082_v6, 0.0  ;;  %v3229_v58 = vrot.slane %v3228_v43, 1 }
 0x2ac   :  { %v9084_v48 = vpop.eup %9083  ;;  %v5838_v32 = vrot.slane %v5837_v21, 1  ;;  %v5851_v18 = vadd.f32 %v5850_v30, %v5849_v7  ;;  %v5857_v1 = vrot.slane %v5856_v33, 2  ;;  %v5870_v4 = vadd.f32 %v5869_v51, %v5868_v28 }
 0x2ad   :  { %v5845_v47 = vrot.slane %v5844_v34, 1  ;;  %v5864_v9 = vrot.slane %v5863_v35, 2  ;;  %v5876_v56 = vrot.slane %v5875_v41, 4  ;;  %v5882_v37 = vsel %vm3104_vm2, %v9084_v48, 0.0 }
 0x2ae   :  { %v5839_v24 = vadd.f32 %v5838_v32, %v5837_v21  ;;  %v5852_v17 = vrot.slane %v5851_v18, 1  ;;  %v5858_v0 = vadd.f32 %v5857_v1, %v5856_v33  ;;  %v5871_v8 = vrot.slane %v5870_v4, 2 }
 0x2af   :  { %v5846_v61 = vadd.f32 %v5845_v47, %v5844_v34  ;;  %v5865_v26 = vadd.f32 %v5864_v9, %v5863_v35  ;;  %v5877_v5 = vadd.f32 %v5876_v56, %v5875_v41  ;;  %v5883_v39 = vrot.slane %v5882_v37, 4 }
 0x2b0   :  { %v5853_v6 = vadd.f32 %v5852_v17, %v5851_v18  ;;  %v5859_v11 = vrot.slane %v5858_v0, 1  ;;  %v5872_v40 = vadd.f32 %v5871_v8, %v5870_v4  ;;  %9085 = vlog2.f32 %v5839_v24 }
 0x2b1   :  { %v5866_v7 = vrot.slane %v5865_v26, 1  ;;  %v5878_v30 = vrot.slane %v5877_v5, 2  ;;  %v5884_v28 = vadd.f32 %v5883_v39, %v5882_v37  ;;  %9087 = vlog2.f32 %v5846_v61 }
 0x2b2   :  { %v5860_v51 = vadd.f32 %v5859_v11, %v5858_v0  ;;  %v5873_v57 = vrot.slane %v5872_v40, 1  ;;  %9089 = vlog2.f32 %v5853_v6  ;;  %v11403_v48 = vmax.f32 %v3228_v43, %v3229_v58 }
 0x2b3   :  { %v5867_v21 = vadd.f32 %v5866_v7, %v5865_v26  ;;  %v5879_v33 = vadd.f32 %v5878_v30, %v5877_v5  ;;  %v5885_v32 = vrot.slane %v5884_v28, 2  ;;  %v11405_v47 = vmax.f32 %v3235_v53, %v3236_v46 }
 0x2b4   :  { %v5874_v56 = vadd.f32 %v5873_v57, %v5872_v40  ;;  %9091 = vlog2.f32 %v5860_v51  ;;  %v3243_v9 = vrot.slane %v3242_v44, 1  ;;  %v15370_v18 = vrot.slane %v11381_v22, 4 }
 0x2b5   :  { %v5880_v4 = vrot.slane %v5879_v33, 1  ;;  %v5886_v34 = vadd.f32 %v5885_v32, %v5884_v28  ;;  %9093 = vlog2.f32 %v5867_v21  ;;  %v15371_v41 = vrot.slane %v11385_v49, 4 }
 0x2b6   :  { %v3247_v35 = vmax.f32 %v11381_v22, %v15370_v18  ;;  %9095 = vlog2.f32 %v5874_v56  ;;  %v11413_v58 = vmax.f32 %v3242_v44, %v3243_v9  ;;  %v3260_v53 = vrot.slane %v11392_v42, 4 }
 0x2b7   :  { %v3254_v43 = vmax.f32 %v11385_v49, %v15371_v41  ;;  %v5881_v57 = vadd.f32 %v5880_v4, %v5879_v33  ;;  %v5887_v46 = vrot.slane %v5886_v34, 1  ;;  %v3266_v24 = vsel %vm3104_vm2, %v11375_v20, -inf }
 0x2b8   :  { %v3248_v1 = vrot.slane %v3247_v35, 2  ;;  %v3261_v17 = vmax.f32 %v11392_v42, %v3260_v53  ;;  %v3267_v0 = vrot.slane %v3266_v24, 4  ;;  %v4913_v8 = vsub.f32 %v11340_v45, %v11399_v36 }
 0x2b9   :  { %v3255_v37 = vrot.slane %v3254_v43, 2  ;;  %v5888_v49 = vadd.f32 %v5887_v46, %v5886_v34  ;;  %9097 = vlog2.f32 %v5881_v57  ;;  %v4914_v61 = vsub.f32 %v11354_v59, %v11403_v48 }
 0x2ba   :  { %v3249_v22 = vmax.f32 %v3247_v35, %v3248_v1  ;;  %v3262_v5 = vrot.slane %v3261_v17, 2  ;;  %v3268_v39 = vmax.f32 %v3266_v24, %v3267_v0  ;;  %v4915_v6 = vsub.f32 %v11344_v14, %v11405_v47 }
 0x2bb   :  { %v3256_v44 = vmax.f32 %v3254_v43, %v3255_v37  ;;  %9099 = vlog2.f32 %v5888_v49  ;;  %v4916_v42 = vsub.f32 %v11363_v12, %v11413_v58  ;;  %v5185_v40 = vmul.f32 1.442695, %v4913_v8 }
 0x2bc   :  { %v3250_v26 = vrot.slane %v3249_v22, 1  ;;  %v3263_v45 = vmax.f32 %v3261_v17, %v3262_v5  ;;  %v3269_v30 = vrot.slane %v3268_v39, 2  ;;  %v5187_v28 = vmul.f32 1.442695, %v4914_v61 }
 0x2bd   :  { %v3257_v11 = vrot.slane %v3256_v44, 1  ;;  %v9086_v51 = vpop.eup %9085  ;;  %9101 = vpow2.f32 %v5185_v40  ;;  %v5189_v59 = vmul.f32 1.442695, %v4915_v6  ;;  %v5191_v33 = vmul.f32 1.442695, %v4916_v42 }
 0x2be   :  { %v11427_v7 = vmax.f32 %v3249_v22, %v3250_v26  ;;  %v9088_v32 = vpop.eup %9087  ;;  %v7506_v56 = vmul.f32 0.6931472, %v9086_v51  ;;  %v3264_v14 = vrot.slane %v3263_v45, 1  ;;  %v3270_v9 = vmax.f32 %v3268_v39, %v3269_v30 }
 0x2bf   :  { %v11429_v21 = vmax.f32 %v3256_v44, %v3257_v11  ;;  %v9090_v12 = vpop.eup %9089  ;;  %v7508_v35 = vmul.f32 0.6931472, %v9088_v32  ;;  %9103 = vpow2.f32 %v5187_v28  ;;  %v15372_v34 = vcombine.low %v15369_v19, %v11318_v29 }
 0x2c0   :  { %v4917_v18 = vsub.f32 %v11350_v50, %v11427_v7  ;;  %v7510_v43 = vmul.f32 0.6931472, %v9090_v12  ;;  %v7993_v1 = vadd.f32 %v7506_v56, %v11270_v52  ;;  %v11440_v53 = vmax.f32 %v3263_v45, %v3264_v14  ;;  %v15374_v12 = vld [vmem:[#allocation26_spill] sm:$0xff] }
 0x2c1   :  { %v4918_v4 = vsub.f32 %v11369_v15, %v11429_v21  ;;  %v2244_v41 = vrot.slane %v15372_v34, %v10581_v63  ;;  %v3271_v57 = vrot.slane %v3270_v9, 1  ;;  %v9092_v46 = vpop.eup %9091  ;;  %v7994_v50 = vadd.f32 %v7508_v35, %v11274_v27 }
 0x2c2   :  { %9105 = vpow2.f32 %v5189_v59  ;;  %v5193_v37 = vmul.f32 1.442695, %v4917_v18  ;;  %v9094_v22 = vpop.eup %9093  ;;  %v7512_v15 = vmul.f32 0.6931472, %v9092_v46  ;;  %v7995_v17 = vadd.f32 %v7510_v43, %v11277_v38 }
 0x2c3   :  { %v5195_v24 = vmul.f32 1.442695, %v4918_v4  ;;  %v11444_v0 = vmax.f32 %v3270_v9, %v3271_v57  ;;  %v4919_v8 = vsub.f32 %v11359_v54, %v11440_v53  ;;  %v9096_v49 = vpop.eup %9095  ;;  %v7514_v52 = vmul.f32 0.6931472, %v9094_v22 }
 0x2c4   :  { %v8509_v44 = vsel %vm8481_vm3, %v7994_v50, %v7993_v1  ;;  %9107 = vpow2.f32 %v5191_v33  ;;  %v15373_v27 = vcombine.high %v15369_v19, %v11318_v29  ;;  %v7516_v26 = vmul.f32 0.6931472, %v9096_v49 }
 0x2c5   :  { %v7996_v5 = vadd.f32 %v7512_v15, %v11285_v25  ;;  %v8510_v38 = vsel %vm8483_vm4, %v7995_v17, %v8509_v44  ;;  %v4920_v39 = vsub.f32 %v11375_v20, %v11444_v0  ;;  %v7997_v54 = vadd.f32 %v7514_v52, %v11288_v23  ;;  %v11463_v20 = vpop.permute.xlu0 %868 }
 0x2c6   :  { %v2251_v61 = vrot.slane %v15373_v27, %v10581_v63  ;;  %9109 = vpow2.f32 %v5193_v37  ;;  %v5197_v6 = vmul.f32 1.442695, %v4919_v8  ;;  %v2252_v11 = vcombine.low %v11190_v13, %v2244_v41  ;;  %v9098_v42 = vpop.eup %9097 }
 0x2c7   :  { %v7998_v40 = vadd.f32 %v7516_v26, %v11303_v55  ;;  %v8511_v29 = vsel %vm8485_vm5, %v7996_v5, %v8510_v38  ;;  %9111 = vpow2.f32 %v5195_v24  ;;  %v5199_v19 = vmul.f32 1.442695, %v4920_v39 }
 0x2c8   :  { %v7518_v45 = vmul.f32 0.6931472, %v9098_v42  ;;  %v8512_v25 = vsel %vm8487_vm6, %v7997_v54, %v8511_v29  ;;  %9113 = vpow2.f32 %v5197_v6  ;;  %v2253_v30 = vcombine.high %v11190_v13, %v2244_v41  ;;  %v9100_v23 = vpop.eup %9099 }
 0x2c9   :  { %v8513_v28 = vsel %vm8489_vm7, %v7998_v40, %v8512_v25  ;;  %9115 = vpow2.f32 %v5199_v19  ;;  %v11467_v51 = vrot.slane %v2252_v11, %v10595_v3  ;;  %v2268_v55 = vcombine.low %v11198_v16, %v2251_v61 }
 0x2ca   :  { %v7520_v59 = vmul.f32 0.6931472, %v9100_v23  ;;  %v7999_v33 = vadd.f32 %v7518_v45, %v11315_v31  ;;  %v11472_v32 = vrot.slane %v2253_v30, %v10595_v3  ;;  %v2269_v56 = vcombine.high %v11198_v16, %v2251_v61  ;;  %v9102_v13 = vpop.eup %9101 }
 0x2cb   :  { %v11476_v14 = vrot.slane %v2268_v55, %v10595_v3  ;;  %v11480_v9 = vcombine.high %v11467_v51, %v15368_v60  ;;  %v4169_v18 = vsel %vm3104_vm2, %v11467_v51, -inf  ;;  %v2168_v35 = vcombine.low %v15374_v12, %v11463_v20 }
 0x2cc   :  { %v8000_v31 = vadd.f32 %v7520_v59, %v11327_v2  ;;  %v8514_v4 = vsel %vm8491_vm8, %v7999_v33, %v8513_v28  ;;  %v5777_v16 = vsel %vm3104_vm2, %v9102_v13, 0.0  ;;  %v11490_v34 = vrot.slane %v2269_v56, %v10595_v3  ;;  %v9104_v41 = vpop.eup %9103 }
 0x2cd   :  { %v5778_v43 = vrot.slane %v5777_v16, 4  ;;  %v11494_v1 = vcombine.high %v11472_v32, %v15368_v60  ;;  %v11498_v57 = vcombine.high %v11476_v14, %v15368_v60  ;;  %v4170_v46 = vrot.slane %v4169_v18, 4 }
 0x2ce   :  { %v8515_v2 = vsel %vm8493_vm9, %v8000_v31, %v8514_v4  ;;  %v5784_v50 = vsel %vm3104_vm2, %v9104_v41, 0.0  ;;  %v11504_v37 = vcombine.high %v11490_v34, %v15368_v60  ;;  %v4176_v24 = vsel %vm3104_vm2, %v11480_v9, -inf }
 0x2cf   :  { %v9106_v22 = vpop.eup %9105  ;;  %8748 = vst.msk [vmem:[%s15233_s3 + $0x18] sm:$0xff] %vm8744_vm10, %v8515_v2  ;;  %v5779_v15 = vadd.f32 %v5778_v43, %v5777_v16  ;;  %v5785_v17 = vrot.slane %v5784_v50, 4  ;;  %v4171_v8 = vmax.f32 %v4169_v18, %v4170_v46  ;;  %v4177_v49 = vrot.slane %v4176_v24, 4 }
 0x2d0   :  { %v5791_v52 = vsel %vm3104_vm2, %v9106_v22, 0.0  ;;  %v4183_v44 = vsel %vm3104_vm2, %v11472_v32, -inf  ;;  %v11517_v27 = vsel %vm3104_vm2, %v11494_v1, -inf  ;;  %v11521_v61 = vsel %vm3104_vm2, %v11476_v14, -inf }
 0x2d1   :  { %v9108_v26 = vpop.eup %9107  ;;  %v5780_v5 = vrot.slane %v5779_v15, 2  ;;  %v5786_v38 = vadd.f32 %v5785_v17, %v5784_v50  ;;  %v5792_v39 = vrot.slane %v5791_v52, 4  ;;  %v4172_v54 = vrot.slane %v4171_v8, 2 }
 0x2d2   :  { %v5798_v6 = vsel %vm3104_vm2, %v9108_v26, 0.0  ;;  %v4178_v11 = vmax.f32 %v4176_v24, %v4177_v49  ;;  %v4184_v42 = vrot.slane %v4183_v44, 4  ;;  %v4191_v40 = vrot.slane %v11517_v27, 4 }
 0x2d3   :  { %v9110_v29 = vpop.eup %9109  ;;  %v5781_v19 = vadd.f32 %v5780_v5, %v5779_v15  ;;  %v5787_v45 = vrot.slane %v5786_v38, 2  ;;  %v5793_v25 = vadd.f32 %v5792_v39, %v5791_v52  ;;  %v5799_v30 = vrot.slane %v5798_v6, 4 }
 0x2d4   :  { %v9112_v23 = vpop.eup %9111  ;;  %v5805_v28 = vsel %vm3104_vm2, %v9110_v29, 0.0  ;;  %v4173_v55 = vmax.f32 %v4171_v8, %v4172_v54  ;;  %v4179_v59 = vrot.slane %v4178_v11, 2  ;;  %v4185_v33 = vmax.f32 %v4183_v44, %v4184_v42 }
 0x2d5   :  { %v9114_v56 = vpop.eup %9113  ;;  %v5782_v13 = vrot.slane %v5781_v19, 1  ;;  %v5788_v18 = vadd.f32 %v5787_v45, %v5786_v38  ;;  %v5794_v31 = vrot.slane %v5793_v25, 2  ;;  %v5800_v4 = vadd.f32 %v5799_v30, %v5798_v6 }
 0x2d6   :  { %v9116_v16 = vpop.eup %9115  ;;  %v5806_v41 = vrot.slane %v5805_v28, 4  ;;  %v5812_v43 = vsel %vm3104_vm2, %v9112_v23, 0.0  ;;  %v5819_v46 = vsel %vm3104_vm2, %v9114_v56, 0.0  ;;  %v4174_v2 = vrot.slane %v4173_v55, 1 }
 0x2d7   :  { %v5783_v50 = vadd.f32 %v5782_v13, %v5781_v19  ;;  %v5789_v24 = vrot.slane %v5788_v18, 1  ;;  %v5795_v22 = vadd.f32 %v5794_v31, %v5793_v25  ;;  %v5801_v15 = vrot.slane %v5800_v4, 2 }
 0x2d8   :  { %v5807_v17 = vadd.f32 %v5806_v41, %v5805_v28  ;;  %v5813_v8 = vrot.slane %v5812_v43, 4  ;;  %v5820_v49 = vrot.slane %v5819_v46, 4  ;;  %v5826_v52 = vsel %vm3104_vm2, %v9116_v16, 0.0 }
 0x2d9   :  { %v5790_v44 = vadd.f32 %v5789_v24, %v5788_v18  ;;  %v5796_v26 = vrot.slane %v5795_v22, 1  ;;  %v5802_v5 = vadd.f32 %v5801_v15, %v5800_v4  ;;  %v5827_v38 = vrot.slane %v5826_v52, 4 }
 0x2da   :  { %v5808_v39 = vrot.slane %v5807_v17, 2  ;;  %v5814_v54 = vadd.f32 %v5813_v8, %v5812_v43  ;;  %v5821_v6 = vadd.f32 %v5820_v49, %v5819_v46  ;;  %9117 = vlog2.f32 %v5783_v50 }
 0x2db   :  { %v5797_v42 = vadd.f32 %v5796_v26, %v5795_v22  ;;  %v5803_v29 = vrot.slane %v5802_v5, 1  ;;  %v5828_v45 = vadd.f32 %v5827_v38, %v5826_v52  ;;  %9119 = vlog2.f32 %v5790_v44 }
 0x2dc   :  { %v5809_v19 = vadd.f32 %v5808_v39, %v5807_v17  ;;  %v5815_v25 = vrot.slane %v5814_v54, 2  ;;  %v5822_v30 = vrot.slane %v5821_v6, 2  ;;  %v11529_v23 = vmax.f32 %v4173_v55, %v4174_v2 }
 0x2dd   :  { %v5804_v28 = vadd.f32 %v5803_v29, %v5802_v5  ;;  %v5829_v56 = vrot.slane %v5828_v45, 2  ;;  %9121 = vlog2.f32 %v5797_v42  ;;  %v4180_v13 = vmax.f32 %v4178_v11, %v4179_v59 }
 0x2de   :  { %v5810_v18 = vrot.slane %v5809_v19, 1  ;;  %v5816_v31 = vadd.f32 %v5815_v25, %v5814_v54  ;;  %v5823_v4 = vadd.f32 %v5822_v30, %v5821_v6  ;;  %v4186_v16 = vrot.slane %v4185_v33, 2 }
 0x2df   :  { %v5830_v41 = vadd.f32 %v5829_v56, %v5828_v45  ;;  %9123 = vlog2.f32 %v5804_v28  ;;  %v4181_v43 = vrot.slane %v4180_v13, 1  ;;  %v4192_v46 = vmax.f32 %v11517_v27, %v4191_v40 }
 0x2e0   :  { %v5811_v50 = vadd.f32 %v5810_v18, %v5809_v19  ;;  %v5817_v24 = vrot.slane %v5816_v31, 1  ;;  %v5824_v22 = vrot.slane %v5823_v4, 1  ;;  %v4187_v15 = vmax.f32 %v4185_v33, %v4186_v16 }
 0x2e1   :  { %v5831_v17 = vrot.slane %v5830_v41, 1  ;;  %v11532_v55 = vmax.f32 %v4180_v13, %v4181_v43  ;;  %v4193_v2 = vrot.slane %v4192_v46, 2  ;;  %v4198_v8 = vrot.slane %v11521_v61, 4 }
 0x2e2   :  { %v5818_v11 = vadd.f32 %v5817_v24, %v5816_v31  ;;  %v5825_v59 = vadd.f32 %v5824_v22, %v5823_v4  ;;  %9125 = vlog2.f32 %v5811_v50  ;;  %v4188_v49 = vrot.slane %v4187_v15, 1 }
 0x2e3   :  { %v5832_v52 = vadd.f32 %v5831_v17, %v5830_v41  ;;  %v4194_v44 = vmax.f32 %v4192_v46, %v4193_v2  ;;  %v4199_v26 = vmax.f32 %v11521_v61, %v4198_v8  ;;  %v4204_v27 = vsel %vm3104_vm2, %v11498_v57, -inf  ;;  %v11558_v8 = vpop.permute.xlu1 %650 }
 0x2e4   :  { %9127 = vlog2.f32 %v5818_v11  ;;  %v11538_v40 = vmax.f32 %v4187_v15, %v4188_v49  ;;  %v4205_v33 = vrot.slane %v4204_v27, 4  ;;  %v4211_v5 = vsel %vm3104_vm2, %v11490_v34, -inf }
 0x2e5   :  { %9129 = vlog2.f32 %v5825_v59  ;;  %v4195_v38 = vrot.slane %v4194_v44, 1  ;;  %v4200_v39 = vrot.slane %v4199_v26, 2  ;;  %v4212_v54 = vrot.slane %v4211_v5, 4 }
 0x2e6   :  { %9131 = vlog2.f32 %v5832_v52  ;;  %v4206_v6 = vmax.f32 %v4204_v27, %v4205_v33  ;;  %v4218_v42 = vsel %vm3104_vm2, %v11504_v37, -inf  ;;  %v5049_v61 = vsub.f32 %v11467_v51, %v11529_v23 }
 0x2e7   :  { %v9118_v29 = vpop.eup %9117  ;;  %v11546_v45 = vmax.f32 %v4194_v44, %v4195_v38  ;;  %v4201_v19 = vmax.f32 %v4199_v26, %v4200_v39  ;;  %v4213_v25 = vmax.f32 %v4211_v5, %v4212_v54  ;;  %v4219_v30 = vrot.slane %v4218_v42, 4 }
 0x2e8   :  { %v9120_v28 = vpop.eup %9119  ;;  %v7490_v56 = vmul.f32 0.6931472, %v9118_v29  ;;  %v4207_v13 = vrot.slane %v4206_v6, 2  ;;  %v5050_v18 = vsub.f32 %v11480_v9, %v11532_v55  ;;  %v5051_v31 = vsub.f32 %v11472_v32, %v11538_v40 }
 0x2e9   :  { %v7492_v4 = vmul.f32 0.6931472, %v9120_v28  ;;  %v4202_v16 = vrot.slane %v4201_v19, 1  ;;  %v4214_v41 = vrot.slane %v4213_v25, 2  ;;  %v4220_v43 = vmax.f32 %v4218_v42, %v4219_v30  ;;  %v11575_v30 = vpop.permute.xlu1 %682 }
 0x2ea   :  { %v9122_v51 = vpop.eup %9121  ;;  %v7985_v46 = vadd.f32 %v7490_v56, %v11399_v36  ;;  %v4208_v50 = vmax.f32 %v4206_v6, %v4207_v13  ;;  %v5052_v24 = vsub.f32 %v11494_v1, %v11546_v45  ;;  %v5457_v22 = vmul.f32 1.442695, %v5049_v61 }
 0x2eb   :  { %v7494_v15 = vmul.f32 0.6931472, %v9122_v51  ;;  %v7986_v17 = vadd.f32 %v7492_v4, %v11403_v48  ;;  %v11556_v2 = vmax.f32 %v4201_v19, %v4202_v16  ;;  %v4215_v9 = vmax.f32 %v4213_v25, %v4214_v41  ;;  %v8917_v41 = vpop.f32.mrf.mxu1 }
 0x2ec   :  { %v9124_v32 = vpop.eup %9123  ;;  %v4209_v11 = vrot.slane %v4208_v50, 1  ;;  %v4221_v59 = vrot.slane %v4220_v43, 2  ;;  %9133 = vpow2.f32 %v5457_v22  ;;  %v5459_v49 = vmul.f32 1.442695, %v5050_v18 }
 0x2ed   :  { %v7496_v52 = vmul.f32 0.6931472, %v9124_v32  ;;  %v7987_v36 = vadd.f32 %v7494_v15, %v11405_v47  ;;  %v8502_v44 = vsel %vm8481_vm3, %v7986_v17, %v7985_v46  ;;  %v4216_v1 = vrot.slane %v4215_v9, 1 }
 0x2ee   :  { %v11562_v26 = vmax.f32 %v4208_v50, %v4209_v11  ;;  %v4222_v27 = vmax.f32 %v4220_v43, %v4221_v59  ;;  %v5053_v48 = vsub.f32 %v11476_v14, %v11556_v2  ;;  %9135 = vpow2.f32 %v5459_v49  ;;  %v599_v11 = vpop.f32.mrf.mxu1  ;;  %v11597_v59 = vpop.permute.xlu1 %746 }
 0x2ef   :  { %v9126_v33 = vpop.eup %9125  ;;  %v7988_v5 = vadd.f32 %v7496_v52, %v11413_v58  ;;  %v8503_v38 = vsel %vm8483_vm4, %v7987_v36, %v8502_v44  ;;  %v11568_v39 = vmax.f32 %v4215_v9, %v4216_v1  ;;  %v5461_v54 = vmul.f32 1.442695, %v5051_v31  ;;  %v8893_v58 = vpop.f32.mrf.mxu0 }
 0x2f0   :  { %v7498_v6 = vmul.f32 0.6931472, %v9126_v33  ;;  %v4223_v47 = vrot.slane %v4222_v27, 1  ;;  %v5054_v42 = vsub.f32 %v11498_v57, %v11562_v26  ;;  %v5463_v61 = vmul.f32 1.442695, %v5052_v24  ;;  %v15379_v33 = vld [vmem:[#allocation6_spill] sm:$0xff] }
 0x2f1   :  { %v9128_v29 = vpop.eup %9127  ;;  %v8504_v19 = vsel %vm8485_vm5, %v7988_v5, %v8503_v38  ;;  %v5055_v14 = vsub.f32 %v11490_v34, %v11568_v39  ;;  %9137 = vpow2.f32 %v5461_v54  ;;  %v5465_v25 = vmul.f32 1.442695, %v5053_v48  ;;  %v519_v22 = vpop.f32.mrf.mxu0 }
 0x2f2   :  { %v9130_v28 = vpop.eup %9129  ;;  %v7500_v56 = vmul.f32 0.6931472, %v9128_v29  ;;  %v7989_v13 = vadd.f32 %v7498_v6, %v11427_v7  ;;  %v11578_v18 = vmax.f32 %v4222_v27, %v4223_v47  ;;  %9139 = vpow2.f32 %v5463_v61 }
 0x2f3   :  { %v9132_v57 = vpop.eup %9131  ;;  %v7502_v31 = vmul.f32 0.6931472, %v9130_v28  ;;  %9141 = vpow2.f32 %v5465_v25  ;;  %v5467_v4 = vmul.f32 1.442695, %v5054_v42  ;;  %v5469_v16 = vmul.f32 1.442695, %v5055_v14 }
 0x2f4   :  { %v7504_v43 = vmul.f32 0.6931472, %v9132_v57  ;;  %v7990_v34 = vadd.f32 %v7500_v56, %v11429_v21  ;;  %v8505_v51 = vsel %vm8487_vm6, %v7989_v13, %v8504_v19  ;;  %v5056_v46 = vsub.f32 %v11504_v37, %v11578_v18 }
 0x2f5   :  { %v7991_v50 = vadd.f32 %v7502_v31, %v11440_v53  ;;  %9143 = vpow2.f32 %v5467_v4  ;;  %v2169_v7 = vcombine.high %v15374_v12, %v11463_v20  ;;  %v2176_v24 = vrot.slane %v2168_v35, %v10581_v63 }
 0x2f6   :  { %v7992_v15 = vadd.f32 %v7504_v43, %v11444_v0  ;;  %v8506_v21 = vsel %vm8489_vm7, %v7990_v34, %v8505_v51  ;;  %9145 = vpow2.f32 %v5469_v16  ;;  %v5471_v17 = vmul.f32 1.442695, %v5056_v46  ;;  %v9966_v0 = vld [vmem:[%s15232_s2] ss:$0 sm:$0xff] }
 0x2f7   :  { %v8507_v37 = vsel %vm8491_vm8, %v7991_v50, %v8506_v21  ;;  %v2183_v53 = vrot.slane %v2169_v7, %v10581_v63  ;;  %v2184_v9 = vcombine.low %v11209_v62, %v2176_v24  ;;  %v2185_v32 = vcombine.high %v11209_v62, %v2176_v24 }
 0x2f8   :  { %v8508_v20 = vsel %vm8493_vm9, %v7992_v15, %v8507_v37  ;;  %9147 = vpow2.f32 %v5471_v17  ;;  %v11603_v12 = vadd.f32 %v9966_v0, %v8893_v58  ;;  %v11605_v35 = vadd.f32 %v9966_v0, %v519_v22 }
 0x2f9   :  { %v9134_v49 = vpop.eup %9133  ;;  %8747 = vst.msk [vmem:[%s15233_s3 + $0x10] sm:$0xff] %vm8744_vm10, %v8508_v20  ;;  %v11612_v62 = vrot.slane %v2184_v9, %v10595_v3  ;;  %v11615_v52 = vrot.slane %v2185_v32, %v10595_v3  ;;  %v2200_v36 = vcombine.low %v11212_v10, %v2183_v53  ;;  %v2201_v44 = vcombine.high %v11212_v10, %v2183_v53 }
 0x2fa   :  { %15375 = vst [vmem:[#allocation24_spill] sm:$0xff] %v11603_v12  ;;  %15376 = vst [vmem:[#allocation2_spill] sm:$0xff] %v11605_v35  ;;  %v6729_v1 = vsel %vm3104_vm2, %v9134_v49, 0.0  ;;  %v11620_v27 = vadd.f32 %v9966_v0, %v8917_v41  ;;  %670 = vrot.lane.b32.xlu1 %v11603_v12, %s9968_s12  ;;  %v11624_v48 = vadd.f32 %v9966_v0, %v599_v11  ;;  %668 = vrot.lane.b32.xlu0 %v11605_v35, %s9968_s12 }
 0x2fb   :  { %v1268_v5 = vcombine.low %v15379_v33, %v11597_v59  ;;  %v9136_v38 = vpop.eup %9135  ;;  %v6730_v54 = vrot.slane %v6729_v1, 4  ;;  %v11631_v6 = vrot.slane %v2200_v36, %v10595_v3  ;;  %v11634_v10 = vrot.slane %v2201_v44, %v10595_v3 }
 0x2fc   :  { %15377 = vst [vmem:[#allocation3_spill] sm:$0xff] %v11620_v27  ;;  %15378 = vst [vmem:[#allocation4_spill] sm:$0xff] %v11624_v48  ;;  %v11638_v47 = vcombine.high %v11612_v62, %v15368_v60  ;;  %v6736_v42 = vsel %vm3104_vm2, %v9136_v38, 0.0  ;;  %v11643_v61 = vcombine.high %v11615_v52, %v15368_v60  ;;  %v4113_v29 = vsel %vm3104_vm2, %v11612_v62, -inf }
 0x2fd   :  { %v4127_v19 = vsel %vm3104_vm2, %v11615_v52, -inf  ;;  %v6731_v14 = vadd.f32 %v6730_v54, %v6729_v1  ;;  %v6737_v25 = vrot.slane %v6736_v42, 4  ;;  %v11651_v58 = vcombine.high %v11631_v6, %v15368_v60 }
 0x2fe   :  { %v11655_v28 = vcombine.high %v11634_v10, %v15368_v60  ;;  %v9138_v56 = vpop.eup %9137  ;;  %v4114_v13 = vrot.slane %v4113_v29, 4  ;;  %v4120_v57 = vsel %vm3104_vm2, %v11638_v47, -inf  ;;  %v4128_v31 = vrot.slane %v4127_v19, 4  ;;  %702 = vrot.lane.b32.xlu1 %v11620_v27, %s9968_s12  ;;  %700 = vrot.lane.b32.xlu0 %v11624_v48, %s9968_s12 }
 0x2ff   :  { %v11661_v4 = vsel %vm3104_vm2, %v11643_v61, -inf  ;;  %v9140_v16 = vpop.eup %9139  ;;  %v6732_v41 = vrot.slane %v6731_v14, 2  ;;  %v6738_v43 = vadd.f32 %v6737_v25, %v6736_v42  ;;  %v6743_v34 = vsel %vm3104_vm2, %v9138_v56, 0.0 }
 0x300   :  { %v4121_v51 = vrot.slane %v4120_v57, 4  ;;  %v9142_v46 = vpop.eup %9141  ;;  %v6744_v50 = vrot.slane %v6743_v34, 4  ;;  %v6750_v7 = vsel %vm3104_vm2, %v9140_v16, 0.0  ;;  %v4115_v24 = vmax.f32 %v4113_v29, %v4114_v13 }
 0x301   :  { %v11669_v22 = vmax.f32 %v4127_v19, %v4128_v31  ;;  %v6733_v15 = vadd.f32 %v6732_v41, %v6731_v14  ;;  %v6739_v21 = vrot.slane %v6738_v43, 2  ;;  %v6751_v17 = vrot.slane %v6750_v7, 4 }
 0x302   :  { %v6757_v37 = vsel %vm3104_vm2, %v9142_v46, 0.0  ;;  %v9144_v53 = vpop.eup %9143  ;;  %v6745_v9 = vadd.f32 %v6744_v50, %v6743_v34  ;;  %v4116_v11 = vrot.slane %v4115_v24, 2  ;;  %v4122_v20 = vmax.f32 %v4120_v57, %v4121_v51  ;;  %766 = vrot.lane.b32.xlu1 %v11603_v12, %s9969_s13  ;;  %764 = vrot.lane.b32.xlu0 %v11605_v35, %s9969_s13 }
 0x303   :  { %v6758_v32 = vrot.slane %v6757_v37, 4  ;;  %v9146_v0 = vpop.eup %9145  ;;  %v6734_v49 = vrot.slane %v6733_v15, 1  ;;  %v6740_v36 = vadd.f32 %v6739_v21, %v6738_v43  ;;  %v6752_v44 = vadd.f32 %v6751_v17, %v6750_v7 }
 0x304   :  { %v6764_v1 = vsel %vm3104_vm2, %v9144_v53, 0.0  ;;  %v6746_v38 = vrot.slane %v6745_v9, 2  ;;  %v6771_v29 = vsel %vm3104_vm2, %v9146_v0, 0.0  ;;  %v4117_v0 = vmax.f32 %v4115_v24, %v4116_v11 }
 0x305   :  { %v6759_v54 = vadd.f32 %v6758_v32, %v6757_v37  ;;  %v6765_v42 = vrot.slane %v6764_v1, 4  ;;  %v9148_v19 = vpop.eup %9147  ;;  %v6735_v14 = vadd.f32 %v6734_v49, %v6733_v15  ;;  %v6741_v25 = vrot.slane %v6740_v36, 1 }
 0x306   :  { %v6753_v56 = vrot.slane %v6752_v44, 2  ;;  %v6772_v13 = vrot.slane %v6771_v29, 4  ;;  %v6747_v57 = vadd.f32 %v6746_v38, %v6745_v9  ;;  %v6778_v41 = vsel %vm3104_vm2, %v9148_v19, 0.0  ;;  %798 = vrot.lane.b32.xlu1 %v11620_v27, %s9969_s13  ;;  %796 = vrot.lane.b32.xlu0 %v11624_v48, %s9969_s13 }
 0x307   :  { %v6760_v31 = vrot.slane %v6759_v54, 2  ;;  %v6766_v16 = vadd.f32 %v6765_v42, %v6764_v1  ;;  %v6742_v43 = vadd.f32 %v6741_v25, %v6740_v36  ;;  %v6779_v46 = vrot.slane %v6778_v41, 4 }
 0x308   :  { %v6754_v34 = vadd.f32 %v6753_v56, %v6752_v44  ;;  %v6773_v51 = vadd.f32 %v6772_v13, %v6771_v29  ;;  %v6748_v50 = vrot.slane %v6747_v57, 1  ;;  %9149 = vlog2.f32 %v6735_v14 }
 0x309   :  { %v6761_v7 = vadd.f32 %v6760_v31, %v6759_v54  ;;  %v6767_v15 = vrot.slane %v6766_v16, 2  ;;  %v6780_v37 = vadd.f32 %v6779_v46, %v6778_v41  ;;  %9151 = vlog2.f32 %v6742_v43 }
 0x30a   :  { %v6755_v21 = vrot.slane %v6754_v34, 1  ;;  %v6774_v17 = vrot.slane %v6773_v51, 2  ;;  %v6749_v53 = vadd.f32 %v6748_v50, %v6747_v57  ;;  %862 = vrot.lane.b32.xlu1 %v11603_v12, %s9970_s14  ;;  %860 = vrot.lane.b32.xlu0 %v11605_v35, %s9970_s14  ;;  %v4123_v1 = vrot.slane %v4122_v20, 2 }
 0x30b   :  { %v6762_v9 = vrot.slane %v6761_v7, 1  ;;  %v6768_v32 = vadd.f32 %v6767_v15, %v6766_v16  ;;  %v6781_v44 = vrot.slane %v6780_v37, 2  ;;  %v4118_v42 = vrot.slane %v4117_v0, 1  ;;  %v11695_v16 = vpop.permute.xlu0 %648 }
 0x30c   :  { %v6756_v49 = vadd.f32 %v6755_v21, %v6754_v34  ;;  %v6775_v36 = vadd.f32 %v6774_v17, %v6773_v51  ;;  %9153 = vlog2.f32 %v6749_v53  ;;  %v4124_v14 = vmax.f32 %v4122_v20, %v4123_v1 }
 0x30d   :  { %v6763_v38 = vadd.f32 %v6762_v9, %v6761_v7  ;;  %v6769_v54 = vrot.slane %v6768_v32, 1  ;;  %v6782_v19 = vadd.f32 %v6781_v44, %v6780_v37  ;;  %v11687_v24 = vmax.f32 %v4117_v0, %v4118_v42 }
 0x30e   :  { %v6776_v29 = vrot.slane %v6775_v36, 1  ;;  %9155 = vlog2.f32 %v6756_v49  ;;  %v4130_v11 = vrot.slane %v11669_v22, 2  ;;  %894 = vrot.lane.b32.xlu1 %v11620_v27, %s9970_s14  ;;  %892 = vrot.lane.b32.xlu0 %v11624_v48, %s9970_s14  ;;  %v4125_v57 = vrot.slane %v4124_v14, 1 }
 0x30f   :  { %v6770_v25 = vadd.f32 %v6769_v54, %v6768_v32  ;;  %9157 = vlog2.f32 %v6763_v38  ;;  %v6783_v13 = vrot.slane %v6782_v19, 1  ;;  %v4135_v31 = vrot.slane %v11661_v4, 4  ;;  %v11715_v38 = vpop.permute.xlu0 %680 }
 0x310   :  { %v6777_v56 = vadd.f32 %v6776_v29, %v6775_v36  ;;  %v4131_v20 = vmax.f32 %v11669_v22, %v4130_v11  ;;  %v4141_v41 = vsel %vm3104_vm2, %v11631_v6, -inf  ;;  %v4148_v43 = vsel %vm3104_vm2, %v11651_v58, -inf }
 0x311   :  { %9159 = vlog2.f32 %v6770_v25  ;;  %v6784_v34 = vadd.f32 %v6783_v13, %v6782_v19  ;;  %v11702_v51 = vmax.f32 %v4124_v14, %v4125_v57  ;;  %v4136_v46 = vmax.f32 %v11661_v4, %v4135_v31 }
 0x312   :  { %9161 = vlog2.f32 %v6777_v56  ;;  %v4132_v50 = vrot.slane %v4131_v20, 1  ;;  %v4142_v7 = vrot.slane %v4141_v41, 4  ;;  %v4149_v15 = vrot.slane %v4148_v43, 4 }
 0x313   :  { %v4155_v21 = vsel %vm3104_vm2, %v11634_v10, -inf  ;;  %9163 = vlog2.f32 %v6784_v34  ;;  %v4137_v22 = vrot.slane %v4136_v46, 2  ;;  %v4162_v37 = vsel %vm3104_vm2, %v11655_v28, -inf }
 0x314   :  { %v4156_v17 = vrot.slane %v4155_v21, 4  ;;  %v11709_v53 = vmax.f32 %v4131_v20, %v4132_v50  ;;  %v4143_v9 = vmax.f32 %v4141_v41, %v4142_v7  ;;  %v4150_v32 = vmax.f32 %v4148_v43, %v4149_v15 }
 0x315   :  { %v4163_v0 = vrot.slane %v4162_v37, 4  ;;  %v9150_v49 = vpop.eup %9149  ;;  %v4138_v36 = vmax.f32 %v4136_v46, %v4137_v22  ;;  %v5041_v44 = vsub.f32 %v11612_v62, %v11687_v24  ;;  %v5042_v1 = vsub.f32 %v11638_v47, %v11702_v51 }
 0x316   :  { %v4157_v4 = vmax.f32 %v4155_v21, %v4156_v17  ;;  %v9152_v54 = vpop.eup %9151  ;;  %v7762_v42 = vmul.f32 0.6931472, %v9150_v49  ;;  %v4144_v29 = vrot.slane %v4143_v9, 2  ;;  %v4151_v19 = vrot.slane %v4150_v32, 2 }
 0x317   :  { %v4164_v14 = vmax.f32 %v4162_v37, %v4163_v0  ;;  %v7764_v25 = vmul.f32 0.6931472, %v9152_v54  ;;  %v4139_v11 = vrot.slane %v4138_v36, 1  ;;  %v5043_v13 = vsub.f32 %v11615_v52, %v11709_v53  ;;  %v779_v0 = vpop.permute.xlu1 %778 }
 0x318   :  { %v4158_v56 = vrot.slane %v4157_v4, 2  ;;  %v8121_v57 = vadd.f32 %v7762_v42, %v11529_v23  ;;  %v4145_v31 = vmax.f32 %v4143_v9, %v4144_v29  ;;  %v4152_v62 = vmax.f32 %v4150_v32, %v4151_v19  ;;  %v745_v32 = vpop.permute.xlu0 %744 }
 0x319   :  { %v4165_v20 = vrot.slane %v4164_v14, 2  ;;  %v9154_v41 = vpop.eup %9153  ;;  %v8122_v47 = vadd.f32 %v7764_v25, %v11532_v55  ;;  %v11721_v43 = vmax.f32 %v4138_v36, %v4139_v11  ;;  %v5441_v46 = vmul.f32 1.442695, %v5041_v44 }
 0x31a   :  { %v4159_v34 = vmax.f32 %v4157_v4, %v4158_v56  ;;  %v7766_v7 = vmul.f32 0.6931472, %v9154_v41  ;;  %v4146_v15 = vrot.slane %v4145_v31, 1  ;;  %v4153_v21 = vrot.slane %v4152_v62, 1 }
 0x31b   :  { %v9156_v50 = vpop.eup %9155  ;;  %v4166_v22 = vmax.f32 %v4164_v14, %v4165_v20  ;;  %v8621_v52 = vsel %vm8481_vm3, %v8122_v47, %v8121_v57  ;;  %v5044_v9 = vsub.f32 %v11643_v61, %v11721_v43  ;;  %9165 = vpow2.f32 %v5441_v46 }
 0x31c   :  { %v9158_v17 = vpop.eup %9157  ;;  %v7768_v37 = vmul.f32 0.6931472, %v9156_v50  ;;  %v4160_v23 = vrot.slane %v4159_v34, 1  ;;  %v8123_v49 = vadd.f32 %v7766_v7, %v11538_v40  ;;  %v11727_v36 = vmax.f32 %v4145_v31, %v4146_v15  ;;  %v777_v50 = vpop.permute.xlu0 %776 }
 0x31d   :  { %v7770_v55 = vmul.f32 0.6931472, %v9158_v17  ;;  %v11729_v4 = vmax.f32 %v4152_v62, %v4153_v21  ;;  %v4167_v29 = vrot.slane %v4166_v22, 1  ;;  %v5443_v41 = vmul.f32 1.442695, %v5042_v1  ;;  %v843_v7 = vpop.permute.xlu1 %842 }
 0x31e   :  { %v9160_v44 = vpop.eup %9159  ;;  %v8124_v54 = vadd.f32 %v7768_v37, %v11546_v45  ;;  %v11732_v42 = vmax.f32 %v4159_v34, %v4160_v23  ;;  %v8622_v25 = vsel %vm8483_vm4, %v8123_v49, %v8621_v52  ;;  %v5045_v40 = vsub.f32 %v11631_v6, %v11727_v36  ;;  %v15380_v37 = vld [vmem:[#allocation7_spill] sm:$0xff] }
 0x31f   :  { %v9162_v19 = vpop.eup %9161  ;;  %v7772_v14 = vmul.f32 0.6931472, %v9160_v44  ;;  %v8125_v61 = vadd.f32 %v7770_v55, %v11556_v2  ;;  %v11739_v57 = vmax.f32 %v4166_v22, %v4167_v29  ;;  %v5046_v45 = vsub.f32 %v11651_v58, %v11729_v4 }
 0x320   :  { %v7774_v11 = vmul.f32 0.6931472, %v9162_v19  ;;  %v8623_v56 = vsel %vm8485_vm5, %v8124_v54, %v8622_v25  ;;  %v9164_v31 = vpop.eup %9163  ;;  %v5047_v2 = vsub.f32 %v11634_v10, %v11732_v42  ;;  %v5445_v46 = vmul.f32 1.442695, %v5043_v13  ;;  %v841_v44 = vpop.permute.xlu0 %840 }
 0x321   :  { %v8126_v62 = vadd.f32 %v7772_v14, %v11562_v26  ;;  %v8624_v20 = vsel %vm8487_vm6, %v8125_v61, %v8623_v56  ;;  %v7776_v47 = vmul.f32 0.6931472, %v9164_v31  ;;  %v5048_v34 = vsub.f32 %v11655_v28, %v11739_v57  ;;  %v11771_v54 = vpop.permute.xlu1 %874 }
 0x322   :  { %v8127_v6 = vadd.f32 %v7774_v11, %v11568_v39  ;;  %9167 = vpow2.f32 %v5443_v41  ;;  %v5447_v15 = vmul.f32 1.442695, %v5044_v9  ;;  %v5449_v26 = vmul.f32 1.442695, %v5045_v40  ;;  %v15381_v9 = vld [vmem:[#allocation8_spill] sm:$0xff] }
 0x323   :  { %v8625_v58 = vsel %vm8489_vm7, %v8126_v62, %v8624_v20  ;;  %v8128_v21 = vadd.f32 %v7776_v47, %v11578_v18  ;;  %9169 = vpow2.f32 %v5445_v46  ;;  %v5451_v10 = vmul.f32 1.442695, %v5046_v45 }
 0x324   :  { %v8626_v22 = vsel %vm8491_vm8, %v8127_v6, %v8625_v58  ;;  %9171 = vpow2.f32 %v5447_v15  ;;  %v5453_v1 = vmul.f32 1.442695, %v5047_v2  ;;  %v5455_v39 = vmul.f32 1.442695, %v5048_v34 }
 0x325   :  { %v1269_v28 = vcombine.high %v15379_v33, %v11597_v59  ;;  %v8627_v13 = vsel %vm8493_vm9, %v8128_v21, %v8626_v22  ;;  %9173 = vpow2.f32 %v5449_v26  ;;  %v1276_v17 = vrot.slane %v1268_v5, %v10581_v63  ;;  %v15382_v33 = vld [vmem:[#allocation9_spill] sm:$0xff] }
 0x326   :  { %v1200_v18 = vcombine.low %v15380_v37, %v745_v32  ;;  %8764 = vst.msk [vmem:[%s15233_s3 + $0x98] sm:$0xff] %vm8744_vm10, %v8627_v13  ;;  %9175 = vpow2.f32 %v5451_v10  ;;  %v1201_v23 = vcombine.high %v15380_v37, %v745_v32  ;;  %v2356_v55 = vcombine.low %v15381_v9, %v779_v0 }
 0x327   :  { %v1283_v52 = vrot.slane %v1269_v28, %v10581_v63  ;;  %9177 = vpow2.f32 %v5453_v1  ;;  %v2357_v59 = vcombine.high %v15381_v9, %v779_v0  ;;  %v2288_v5 = vcombine.low %v15382_v33, %v777_v50 }
 0x328   :  { %v1208_v49 = vrot.slane %v1200_v18, %v10581_v63  ;;  %9179 = vpow2.f32 %v5455_v39  ;;  %v11774_v29 = vrot.slane %v1201_v23, %v10581_v63  ;;  %v11777_v19 = vrot.slane %v2356_v55, %v10581_v63  ;;  %v9166_v40 = vpop.eup %9165 }
 0x329   :  { %v2289_v32 = vcombine.high %v15382_v33, %v777_v50  ;;  %v11781_v14 = vrot.slane %v2357_v59, %v10581_v63  ;;  %v11784_v61 = vrot.slane %v2288_v5, %v10581_v63  ;;  %v1284_v0 = vcombine.low %v11558_v8, %v843_v7 }
 0x32a   :  { %v1285_v25 = vcombine.high %v11558_v8, %v843_v7  ;;  %v1216_v56 = vcombine.low %v11695_v16, %v841_v44  ;;  %v1217_v45 = vcombine.high %v11695_v16, %v841_v44  ;;  %v2372_v31 = vcombine.low %v11575_v30, %v11771_v54 }
 0x32b   :  { %15383 = vst [vmem:[#allocation5_spill] sm:$0xff] %v11784_v61  ;;  %v11789_v11 = vrot.slane %v2289_v32, %v10581_v63  ;;  %v6673_v62 = vsel %vm3104_vm2, %v9166_v40, 0.0  ;;  %v1292_v20 = vrot.slane %v1284_v0, %v10581_v63 }
 0x32c   :  { %v1299_v2 = vrot.slane %v1285_v25, %v10581_v63  ;;  %v6674_v41 = vrot.slane %v6673_v62, 4  ;;  %v1224_v47 = vrot.slane %v1216_v56, %v10581_v63  ;;  %v11802_v6 = vrot.slane %v1217_v45, %v10581_v63 }
 0x32d   :  { %15384 = vst [vmem:[#allocation25_spill] sm:$0xff] %v11789_v11  ;;  %v11805_v16 = vrot.slane %v2372_v31, %v10581_v63  ;;  %v1300_v34 = vcombine.low %v1276_v17, %v1292_v20  ;;  %v1301_v46 = vcombine.high %v1276_v17, %v1292_v20 }
 0x32e   :  { %v1316_v50 = vcombine.low %v1283_v52, %v1299_v2  ;;  %v1317_v7 = vcombine.high %v1283_v52, %v1299_v2  ;;  %v6675_v58 = vadd.f32 %v6674_v41, %v6673_v62  ;;  %v1232_v15 = vcombine.low %v1208_v49, %v1224_v47 }
 0x32f   :  { %v1233_v26 = vcombine.high %v1208_v49, %v1224_v47  ;;  %v9168_v22 = vpop.eup %9167  ;;  %v11810_v10 = vrot.slane %v1300_v34, %v10595_v3  ;;  %v11813_v1 = vrot.slane %v1301_v46, %v10595_v3 }
 0x330   :  { %v11816_v39 = vrot.slane %v1316_v50, %v10595_v3  ;;  %v11819_v28 = vrot.slane %v1317_v7, %v10595_v3  ;;  %v9170_v13 = vpop.eup %9169  ;;  %v6676_v17 = vrot.slane %v6675_v58, 2  ;;  %v6680_v37 = vsel %vm3104_vm2, %v9168_v22, 0.0 }
 0x331   :  { %v11823_v18 = vrot.slane %v1232_v15, %v10595_v3  ;;  %v11826_v52 = vrot.slane %v1233_v26, %v10595_v3  ;;  %v9172_v23 = vpop.eup %9171  ;;  %v6681_v9 = vrot.slane %v6680_v37, 4  ;;  %v6687_v55 = vsel %vm3104_vm2, %v9170_v13, 0.0 }
 0x332   :  { %v11831_v49 = vcombine.high %v11810_v10, %v15368_v60  ;;  %v11835_v59 = vcombine.high %v11813_v1, %v15368_v60  ;;  %v9174_v33 = vpop.eup %9173  ;;  %v6677_v5 = vadd.f32 %v6676_v17, %v6675_v58  ;;  %v6688_v44 = vrot.slane %v6687_v55, 4 }
 0x333   :  { %v6694_v32 = vsel %vm3104_vm2, %v9172_v23, 0.0  ;;  %v11840_v0 = vcombine.high %v11816_v39, %v15368_v60  ;;  %v9176_v25 = vpop.eup %9175  ;;  %v6682_v40 = vadd.f32 %v6681_v9, %v6680_v37  ;;  %v6701_v45 = vsel %vm3104_vm2, %v9174_v33, 0.0 }
 0x334   :  { %v6695_v56 = vrot.slane %v6694_v32, 4  ;;  %v11845_v31 = vcombine.high %v11819_v28, %v15368_v60  ;;  %v9178_v62 = vpop.eup %9177  ;;  %v6678_v20 = vrot.slane %v6677_v5, 1  ;;  %v6689_v2 = vadd.f32 %v6688_v44, %v6687_v55 }
 0x335   :  { %v6702_v41 = vrot.slane %v6701_v45, 4  ;;  %v6708_v47 = vsel %vm3104_vm2, %v9176_v25, 0.0  ;;  %v9180_v34 = vpop.eup %9179  ;;  %v6683_v46 = vrot.slane %v6682_v40, 2  ;;  %v6715_v58 = vsel %vm3104_vm2, %v9178_v62, 0.0 }
 0x336   :  { %v6696_v50 = vadd.f32 %v6695_v56, %v6694_v32  ;;  %v6709_v7 = vrot.slane %v6708_v47, 4  ;;  %v6679_v15 = vadd.f32 %v6678_v20, %v6677_v5  ;;  %v6690_v26 = vrot.slane %v6689_v2, 2 }
 0x337   :  { %v6703_v22 = vadd.f32 %v6702_v41, %v6701_v45  ;;  %v6716_v13 = vrot.slane %v6715_v58, 4  ;;  %v6684_v17 = vadd.f32 %v6683_v46, %v6682_v40  ;;  %v6722_v9 = vsel %vm3104_vm2, %v9180_v34, 0.0 }
 0x338   :  { %v6697_v37 = vrot.slane %v6696_v50, 2  ;;  %v6710_v23 = vadd.f32 %v6709_v7, %v6708_v47  ;;  %v6691_v33 = vadd.f32 %v6690_v26, %v6689_v2  ;;  %v6723_v8 = vrot.slane %v6722_v9, 4 }
 0x339   :  { %v6704_v55 = vrot.slane %v6703_v22, 2  ;;  %v6717_v44 = vadd.f32 %v6716_v13, %v6715_v58  ;;  %v6685_v25 = vrot.slane %v6684_v17, 1  ;;  %9181 = vlog2.f32 %v6679_v15 }
 0x33a   :  { %v6698_v21 = vadd.f32 %v6697_v37, %v6696_v50  ;;  %v6711_v48 = vrot.slane %v6710_v23, 2  ;;  %v6692_v32 = vrot.slane %v6691_v33, 1  ;;  %v6724_v5 = vadd.f32 %v6723_v8, %v6722_v9 }
 0x33b   :  { %v6705_v56 = vadd.f32 %v6704_v55, %v6703_v22  ;;  %v6718_v62 = vrot.slane %v6717_v44, 2  ;;  %v6686_v20 = vadd.f32 %v6685_v25, %v6684_v17  ;;  %v3385_v40 = vsel %vm3104_vm2, %v11810_v10, -inf }
 0x33c   :  { %v6699_v45 = vrot.slane %v6698_v21, 1  ;;  %v6712_v41 = vadd.f32 %v6711_v48, %v6710_v23  ;;  %v6693_v47 = vadd.f32 %v6692_v32, %v6691_v33  ;;  %v6725_v46 = vrot.slane %v6724_v5, 2 }
 0x33d   :  { %v6706_v34 = vrot.slane %v6705_v56, 1  ;;  %v6719_v2 = vadd.f32 %v6718_v62, %v6717_v44  ;;  %9183 = vlog2.f32 %v6686_v20  ;;  %v3386_v50 = vrot.slane %v3385_v40, 4 }
 0x33e   :  { %v6700_v7 = vadd.f32 %v6699_v45, %v6698_v21  ;;  %v6713_v58 = vrot.slane %v6712_v41, 1  ;;  %v6726_v13 = vadd.f32 %v6725_v46, %v6724_v5  ;;  %9185 = vlog2.f32 %v6693_v47 }
 0x33f   :  { %v6707_v26 = vadd.f32 %v6706_v34, %v6705_v56  ;;  %v6720_v15 = vrot.slane %v6719_v2, 1  ;;  %v3387_v8 = vmax.f32 %v3385_v40, %v3386_v50  ;;  %v3392_v48 = vsel %vm3104_vm2, %v11831_v49, -inf }
 0x340   :  { %v6714_v22 = vadd.f32 %v6713_v58, %v6712_v41  ;;  %9187 = vlog2.f32 %v6700_v7  ;;  %v6727_v37 = vrot.slane %v6726_v13, 1  ;;  %v3393_v23 = vrot.slane %v3392_v48, 4 }
 0x341   :  { %v6721_v17 = vadd.f32 %v6720_v15, %v6719_v2  ;;  %9189 = vlog2.f32 %v6707_v26  ;;  %v3388_v9 = vrot.slane %v3387_v8, 2  ;;  %v3399_v21 = vsel %vm3104_vm2, %v11813_v1, -inf }
 0x342   :  { %9191 = vlog2.f32 %v6714_v22  ;;  %v3406_v33 = vsel %vm3104_vm2, %v11835_v59, -inf  ;;  %v6728_v55 = vadd.f32 %v6727_v37, %v6726_v13  ;;  %v3394_v44 = vmax.f32 %v3392_v48, %v3393_v23 }
 0x343   :  { %9193 = vlog2.f32 %v6721_v17  ;;  %v3400_v25 = vrot.slane %v3399_v21, 4  ;;  %v3389_v32 = vmax.f32 %v3387_v8, %v3388_v9  ;;  %v3407_v56 = vrot.slane %v3406_v33, 4 }
 0x344   :  { %v3413_v62 = vsel %vm3104_vm2, %v11816_v39, -inf  ;;  %v3420_v5 = vsel %vm3104_vm2, %v11840_v0, -inf  ;;  %9195 = vlog2.f32 %v6728_v55  ;;  %v3395_v20 = vrot.slane %v3394_v44, 2 }
 0x345   :  { %v3401_v45 = vmax.f32 %v3399_v21, %v3400_v25  ;;  %v3414_v41 = vrot.slane %v3413_v62, 4  ;;  %v3390_v40 = vrot.slane %v3389_v32, 1  ;;  %v3408_v47 = vmax.f32 %v3406_v33, %v3407_v56 }
 0x346   :  { %v3421_v34 = vrot.slane %v3420_v5, 4  ;;  %v3427_v2 = vsel %vm3104_vm2, %v11819_v28, -inf  ;;  %v9182_v46 = vpop.eup %9181  ;;  %v3396_v7 = vmax.f32 %v3394_v44, %v3395_v20  ;;  %v3434_v55 = vsel %vm3104_vm2, %v11845_v31, -inf }
 0x347   :  { %v3402_v58 = vrot.slane %v3401_v45, 2  ;;  %v3415_v50 = vmax.f32 %v3413_v62, %v3414_v41  ;;  %v3428_v26 = vrot.slane %v3427_v2, 4  ;;  %v7746_v15 = vmul.f32 0.6931472, %v9182_v46 }
 0x348   :  { %v11864_v13 = vmax.f32 %v3389_v32, %v3390_v40  ;;  %v3409_v22 = vrot.slane %v3408_v47, 2  ;;  %v3422_v8 = vmax.f32 %v3420_v5, %v3421_v34  ;;  %v3397_v48 = vrot.slane %v3396_v7, 1 }
 0x349   :  { %v3403_v17 = vmax.f32 %v3401_v45, %v3402_v58  ;;  %v3416_v37 = vrot.slane %v3415_v50, 2  ;;  %v3429_v23 = vmax.f32 %v3427_v2, %v3428_v26  ;;  %v8113_v9 = vadd.f32 %v7746_v15, %v11687_v24 }
 0x34a   :  { %v3410_v21 = vmax.f32 %v3408_v47, %v3409_v22  ;;  %v3423_v33 = vrot.slane %v3422_v8, 2  ;;  %v9184_v44 = vpop.eup %9183  ;;  %v11869_v25 = vmax.f32 %v3396_v7, %v3397_v48  ;;  %v3435_v45 = vrot.slane %v3434_v55, 4 }
 0x34b   :  { %v3404_v56 = vrot.slane %v3403_v17, 1  ;;  %v3417_v62 = vmax.f32 %v3415_v50, %v3416_v37  ;;  %v3430_v32 = vrot.slane %v3429_v23, 2  ;;  %v9186_v20 = vpop.eup %9185  ;;  %v7748_v41 = vmul.f32 0.6931472, %v9184_v44 }
 0x34c   :  { %v3411_v5 = vrot.slane %v3410_v21, 1  ;;  %v3424_v40 = vmax.f32 %v3422_v8, %v3423_v33  ;;  %v7750_v2 = vmul.f32 0.6931472, %v9186_v20 }
 0x34d   :  { %v9188_v34 = vpop.eup %9187  ;;  %v11871_v46 = vmax.f32 %v3403_v17, %v3404_v56  ;;  %v3418_v24 = vrot.slane %v3417_v62, 1  ;;  %v3431_v47 = vmax.f32 %v3429_v23, %v3430_v32  ;;  %v8114_v15 = vadd.f32 %v7748_v41, %v11702_v51 }
 0x34e   :  { %v9190_v58 = vpop.eup %9189  ;;  %v7752_v26 = vmul.f32 0.6931472, %v9188_v34  ;;  %v11874_v7 = vmax.f32 %v3410_v21, %v3411_v5  ;;  %v3425_v22 = vrot.slane %v3424_v40, 1  ;;  %v8115_v37 = vadd.f32 %v7750_v2, %v11709_v53 }
 0x34f   :  { %v9192_v50 = vpop.eup %9191  ;;  %v7754_v48 = vmul.f32 0.6931472, %v9190_v58  ;;  %v11877_v44 = vmax.f32 %v3417_v62, %v3418_v24  ;;  %v3432_v8 = vrot.slane %v3431_v47, 1  ;;  %v8614_v23 = vsel %vm8481_vm3, %v8114_v15, %v8113_v9 }
 0x350   :  { %v9194_v33 = vpop.eup %9193  ;;  %v7756_v20 = vmul.f32 0.6931472, %v9192_v50  ;;  %v8116_v17 = vadd.f32 %v7752_v26, %v11721_v43  ;;  %v11881_v56 = vmax.f32 %v3424_v40, %v3425_v22  ;;  %v8615_v21 = vsel %vm8483_vm4, %v8115_v37, %v8614_v23 }
 0x351   :  { %v7758_v32 = vmul.f32 0.6931472, %v9194_v33  ;;  %v8117_v51 = vadd.f32 %v7754_v48, %v11727_v36  ;;  %v11885_v41 = vmax.f32 %v3431_v47, %v3432_v8  ;;  %v9196_v5 = vpop.eup %9195  ;;  %v3436_v34 = vmax.f32 %v3434_v55, %v3435_v45 }
 0x352   :  { %v8118_v53 = vadd.f32 %v7756_v20, %v11729_v4  ;;  %v8616_v62 = vsel %vm8485_vm5, %v8116_v17, %v8615_v21  ;;  %v4937_v43 = vsub.f32 %v11810_v10, %v11864_v13  ;;  %v7760_v2 = vmul.f32 0.6931472, %v9196_v5 }
 0x353   :  { %v8119_v9 = vadd.f32 %v7758_v32, %v11732_v42  ;;  %v8617_v40 = vsel %vm8487_vm6, %v8117_v51, %v8616_v62  ;;  %v4938_v36 = vsub.f32 %v11831_v49, %v11869_v25  ;;  %v3437_v47 = vrot.slane %v3436_v34, 2 }
 0x354   :  { %v8618_v24 = vsel %vm8489_vm7, %v8118_v53, %v8617_v40  ;;  %v4939_v4 = vsub.f32 %v11813_v1, %v11871_v46  ;;  %v4940_v55 = vsub.f32 %v11835_v59, %v11874_v7  ;;  %v8120_v45 = vadd.f32 %v7760_v2, %v11739_v57 }
 0x355   :  { %v8619_v10 = vsel %vm8491_vm8, %v8119_v9, %v8618_v24  ;;  %v4941_v42 = vsub.f32 %v11816_v39, %v11877_v44  ;;  %v4942_v58 = vsub.f32 %v11840_v0, %v11881_v56  ;;  %v3438_v49 = vmax.f32 %v3436_v34, %v3437_v47 }
 0x356   :  { %v4943_v26 = vsub.f32 %v11819_v28, %v11885_v41  ;;  %v5233_v15 = vmul.f32 1.442695, %v4937_v43  ;;  %v5235_v22 = vmul.f32 1.442695, %v4938_v36  ;;  %v8620_v1 = vsel %vm8493_vm9, %v8120_v45, %v8619_v10 }
 0x357   :  { %v5237_v50 = vmul.f32 1.442695, %v4939_v4  ;;  %v5239_v59 = vmul.f32 1.442695, %v4940_v55  ;;  %v5241_v48 = vmul.f32 1.442695, %v4941_v42  ;;  %v1249_v28 = vcombine.high %v11774_v29, %v11802_v6 }
 0x358   :  { %8763 = vst.msk [vmem:[%s15233_s3 + $0x90] sm:$0xff] %vm8744_vm10, %v8620_v1  ;;  %v3439_v57 = vrot.slane %v3438_v49, 1  ;;  %9197 = vpow2.f32 %v5233_v15  ;;  %v5243_v39 = vmul.f32 1.442695, %v4942_v58  ;;  %v5245_v0 = vmul.f32 1.442695, %v4943_v26 }
 0x359   :  { %9199 = vpow2.f32 %v5235_v22  ;;  %v15385_v37 = vcombine.low %v11774_v29, %v11802_v6  ;;  %v11923_v33 = vcombine.high %v11823_v18, %v15368_v60  ;;  %v11929_v17 = vcombine.high %v11826_v52, %v15368_v60 }
 0x35a   :  { %v11925_v20 = vmax.f32 %v3438_v49, %v3439_v57  ;;  %9201 = vpow2.f32 %v5237_v50  ;;  %v3329_v23 = vsel %vm3104_vm2, %v11823_v18, -inf  ;;  %v11934_v32 = vrot.slane %v1249_v28, %v10595_v3 }
 0x35b   :  { %v11919_v8 = vrot.slane %v15385_v37, %v10595_v3  ;;  %9203 = vpow2.f32 %v5239_v59  ;;  %v3330_v6 = vrot.slane %v3329_v23, 4  ;;  %v3336_v21 = vsel %vm3104_vm2, %v11923_v33, -inf }
 0x35c   :  { %v4944_v51 = vsub.f32 %v11845_v31, %v11925_v20  ;;  %9205 = vpow2.f32 %v5241_v48  ;;  %v3343_v5 = vsel %vm3104_vm2, %v11826_v52, -inf  ;;  %v11948_v53 = vcombine.high %v11934_v32, %v15368_v60 }
 0x35d   :  { %v11938_v29 = vcombine.high %v11919_v8, %v15368_v60  ;;  %9207 = vpow2.f32 %v5243_v39  ;;  %v3331_v62 = vmax.f32 %v3329_v23, %v3330_v6  ;;  %v3337_v34 = vrot.slane %v3336_v21, 4 }
 0x35e   :  { %9209 = vpow2.f32 %v5245_v0  ;;  %v5247_v43 = vmul.f32 1.442695, %v4944_v51  ;;  %v3344_v2 = vrot.slane %v3343_v5, 4  ;;  %v3350_v31 = vsel %vm3104_vm2, %v11929_v17, -inf }
 0x35f   :  { %v3332_v9 = vrot.slane %v3331_v62, 2  ;;  %v3338_v40 = vmax.f32 %v3336_v21, %v3337_v34  ;;  %v3351_v36 = vrot.slane %v3350_v31, 4  ;;  %v3357_v24 = vsel %vm3104_vm2, %v11919_v8, -inf }
 0x360   :  { %9211 = vpow2.f32 %v5247_v43  ;;  %v3345_v47 = vmax.f32 %v3343_v5, %v3344_v2  ;;  %v3358_v4 = vrot.slane %v3357_v24, 4  ;;  %v3364_v55 = vsel %vm3104_vm2, %v11938_v29, -inf }
 0x361   :  { %v3333_v45 = vmax.f32 %v3331_v62, %v3332_v9  ;;  %v3339_v10 = vrot.slane %v3338_v40, 2  ;;  %v3352_v42 = vmax.f32 %v3350_v31, %v3351_v36  ;;  %v3365_v58 = vrot.slane %v3364_v55, 4 }
 0x362   :  { %v3346_v49 = vrot.slane %v3345_v47, 2  ;;  %v3359_v26 = vmax.f32 %v3357_v24, %v3358_v4  ;;  %v3371_v15 = vsel %vm3104_vm2, %v11934_v32, -inf  ;;  %v11960_v22 = vsel %vm3104_vm2, %v11948_v53, -inf }
 0x363   :  { %v3334_v1 = vrot.slane %v3333_v45, 1  ;;  %v3340_v50 = vmax.f32 %v3338_v40, %v3339_v10  ;;  %v3353_v59 = vrot.slane %v3352_v42, 2  ;;  %v11962_v48 = vmax.f32 %v3364_v55, %v3365_v58 }
 0x364   :  { %v3347_v57 = vmax.f32 %v3345_v47, %v3346_v49  ;;  %v3360_v39 = vrot.slane %v3359_v26, 2  ;;  %v3372_v0 = vrot.slane %v3371_v15, 4 }
 0x365   :  { %v9198_v37 = vpop.eup %9197  ;;  %v11965_v23 = vmax.f32 %v3333_v45, %v3334_v1  ;;  %v3341_v6 = vrot.slane %v3340_v50, 1  ;;  %v3354_v51 = vmax.f32 %v3352_v42, %v3353_v59 }
 0x366   :  { %v9200_v5 = vpop.eup %9199  ;;  %v5945_v62 = vsel %vm3104_vm2, %v9198_v37, 0.0  ;;  %v3348_v34 = vrot.slane %v3347_v57, 1  ;;  %v3361_v43 = vmax.f32 %v3359_v26, %v3360_v39  ;;  %v11969_v2 = vmax.f32 %v3371_v15, %v3372_v0 }
 0x367   :  { %v9202_v31 = vpop.eup %9201  ;;  %v5946_v9 = vrot.slane %v5945_v62, 4  ;;  %v5952_v40 = vsel %vm3104_vm2, %v9200_v5, 0.0  ;;  %v11972_v36 = vmax.f32 %v3340_v50, %v3341_v6  ;;  %v3355_v24 = vrot.slane %v3354_v51, 1 }
 0x368   :  { %v9204_v47 = vpop.eup %9203  ;;  %v5953_v4 = vrot.slane %v5952_v40, 4  ;;  %v5959_v55 = vsel %vm3104_vm2, %v9202_v31, 0.0  ;;  %v11975_v45 = vmax.f32 %v3347_v57, %v3348_v34  ;;  %v3362_v10 = vrot.slane %v3361_v43, 1 }
 0x369   :  { %v9206_v42 = vpop.eup %9205  ;;  %v5947_v58 = vadd.f32 %v5946_v9, %v5945_v62  ;;  %v5960_v49 = vrot.slane %v5959_v55, 4  ;;  %v5966_v26 = vsel %vm3104_vm2, %v9204_v47, 0.0  ;;  %v11978_v15 = vmax.f32 %v3354_v51, %v3355_v24 }
 0x36a   :  { %v9208_v1 = vpop.eup %9207  ;;  %v5954_v59 = vadd.f32 %v5953_v4, %v5952_v40  ;;  %v5967_v39 = vrot.slane %v5966_v26, 4  ;;  %v5973_v50 = vsel %vm3104_vm2, %v9206_v42, 0.0  ;;  %v11981_v0 = vmax.f32 %v3361_v43, %v3362_v10 }
 0x36b   :  { %v9210_v37 = vpop.eup %9209  ;;  %v5948_v6 = vrot.slane %v5947_v58, 2  ;;  %v5961_v5 = vadd.f32 %v5960_v49, %v5959_v55  ;;  %v5974_v57 = vrot.slane %v5973_v50, 4  ;;  %v5980_v34 = vsel %vm3104_vm2, %v9208_v1, 0.0 }
 0x36c   :  { %v5955_v31 = vrot.slane %v5954_v59, 2  ;;  %v5968_v62 = vadd.f32 %v5967_v39, %v5966_v26  ;;  %v5981_v9 = vrot.slane %v5980_v34, 4  ;;  %v5987_v47 = vsel %vm3104_vm2, %v9210_v37, 0.0 }
 0x36d   :  { %v9212_v51 = vpop.eup %9211  ;;  %v5949_v24 = vadd.f32 %v5948_v6, %v5947_v58  ;;  %v5962_v28 = vrot.slane %v5961_v5, 2  ;;  %v5975_v40 = vadd.f32 %v5974_v57, %v5973_v50  ;;  %v5988_v4 = vrot.slane %v5987_v47, 4 }
 0x36e   :  { %v5956_v21 = vadd.f32 %v5955_v31, %v5954_v59  ;;  %v5969_v42 = vrot.slane %v5968_v62, 2  ;;  %v5982_v43 = vadd.f32 %v5981_v9, %v5980_v34  ;;  %v5994_v10 = vsel %vm3104_vm2, %v9212_v51, 0.0 }
 0x36f   :  { %v5950_v27 = vrot.slane %v5949_v24, 1  ;;  %v5963_v55 = vadd.f32 %v5962_v28, %v5961_v5  ;;  %v5976_v49 = vrot.slane %v5975_v40, 2  ;;  %v5989_v35 = vadd.f32 %v5988_v4, %v5987_v47 }
 0x370   :  { %v5957_v1 = vrot.slane %v5956_v21, 1  ;;  %v5970_v12 = vadd.f32 %v5969_v42, %v5968_v62  ;;  %v5983_v26 = vrot.slane %v5982_v43, 2  ;;  %v5995_v39 = vrot.slane %v5994_v10, 4 }
 0x371   :  { %v5951_v11 = vadd.f32 %v5950_v27, %v5949_v24  ;;  %v5964_v37 = vrot.slane %v5963_v55, 1  ;;  %v5977_v61 = vadd.f32 %v5976_v49, %v5975_v40  ;;  %v5990_v58 = vrot.slane %v5989_v35, 2 }
 0x372   :  { %v5958_v6 = vadd.f32 %v5957_v1, %v5956_v21  ;;  %v5971_v50 = vrot.slane %v5970_v12, 1  ;;  %v5984_v57 = vadd.f32 %v5983_v26, %v5982_v43  ;;  %v5996_v59 = vadd.f32 %v5995_v39, %v5994_v10 }
 0x373   :  { %v5965_v31 = vadd.f32 %v5964_v37, %v5963_v55  ;;  %v5978_v34 = vrot.slane %v5977_v61, 1  ;;  %v5991_v9 = vadd.f32 %v5990_v58, %v5989_v35  ;;  %9213 = vlog2.f32 %v5951_v11 }
 0x374   :  { %v5972_v51 = vadd.f32 %v5971_v50, %v5970_v12  ;;  %v5985_v28 = vrot.slane %v5984_v57, 1  ;;  %v5997_v5 = vrot.slane %v5996_v59, 2  ;;  %9215 = vlog2.f32 %v5958_v6 }
 0x375   :  { %v5979_v47 = vadd.f32 %v5978_v34, %v5977_v61  ;;  %v5992_v62 = vrot.slane %v5991_v9, 1  ;;  %9217 = vlog2.f32 %v5965_v31  ;;  %v15386_v27 = vrot.slane %v11962_v48, 2 }
 0x376   :  { %v5986_v40 = vadd.f32 %v5985_v28, %v5984_v57  ;;  %v5998_v21 = vadd.f32 %v5997_v5, %v5996_v59  ;;  %9219 = vlog2.f32 %v5972_v51  ;;  %v3374_v4 = vrot.slane %v11969_v2, 2 }
 0x377   :  { %v3368_v24 = vmax.f32 %v11962_v48, %v15386_v27  ;;  %v5993_v42 = vadd.f32 %v5992_v62, %v5991_v9  ;;  %9221 = vlog2.f32 %v5979_v47  ;;  %v15387_v12 = vrot.slane %v11960_v22, 4 }
 0x378   :  { %v5999_v43 = vrot.slane %v5998_v21, 1  ;;  %9223 = vlog2.f32 %v5986_v40  ;;  %v3375_v61 = vmax.f32 %v11969_v2, %v3374_v4  ;;  %v4929_v10 = vsub.f32 %v11823_v18, %v11965_v23 }
 0x379   :  { %v3369_v35 = vrot.slane %v3368_v24, 1  ;;  %v3380_v11 = vmax.f32 %v11960_v22, %v15387_v12  ;;  %9225 = vlog2.f32 %v5993_v42  ;;  %v4930_v49 = vsub.f32 %v11923_v33, %v11972_v36 }
 0x37a   :  { %v6000_v1 = vadd.f32 %v5999_v43, %v5998_v21  ;;  %v3376_v26 = vrot.slane %v3375_v61, 1  ;;  %v4931_v39 = vsub.f32 %v11826_v52, %v11975_v45  ;;  %v4932_v22 = vsub.f32 %v11929_v17, %v11978_v15 }
 0x37b   :  { %v11996_v48 = vmax.f32 %v3368_v24, %v3369_v35  ;;  %v3381_v55 = vrot.slane %v3380_v11, 2  ;;  %v4933_v2 = vsub.f32 %v11919_v8, %v11981_v0  ;;  %v5217_v58 = vmul.f32 1.442695, %v4929_v10 }
 0x37c   :  { %9227 = vlog2.f32 %v6000_v1  ;;  %v12008_v6 = vmax.f32 %v3375_v61, %v3376_v26  ;;  %v5219_v33 = vmul.f32 1.442695, %v4930_v49  ;;  %v5221_v50 = vmul.f32 1.442695, %v4931_v39 }
 0x37d   :  { %v3382_v37 = vmax.f32 %v3380_v11, %v3381_v55  ;;  %v4934_v18 = vsub.f32 %v11938_v29, %v11996_v48  ;;  %9229 = vpow2.f32 %v5217_v58  ;;  %v5223_v59 = vmul.f32 1.442695, %v4932_v22 }
 0x37e   :  { %v5225_v52 = vmul.f32 1.442695, %v4933_v2  ;;  %v4935_v17 = vsub.f32 %v11934_v32, %v12008_v6  ;;  %9231 = vpow2.f32 %v5219_v33  ;;  %v15388_v8 = vcombine.high %v11575_v30, %v11771_v54 }
 0x37f   :  { %v3383_v57 = vrot.slane %v3382_v37, 1  ;;  %v5227_v31 = vmul.f32 1.442695, %v4934_v18  ;;  %9233 = vpow2.f32 %v5221_v50  ;;  %v2388_v9 = vcombine.low %v11777_v19, %v11805_v16 }
 0x380   :  { %v2387_v29 = vrot.slane %v15388_v8, %v10581_v63  ;;  %v2389_v51 = vcombine.high %v11777_v19, %v11805_v16  ;;  %v9214_v28 = vpop.eup %9213  ;;  %9235 = vpow2.f32 %v5223_v59  ;;  %v5229_v5 = vmul.f32 1.442695, %v4935_v17 }
 0x381   :  { %v12016_v34 = vmax.f32 %v3382_v37, %v3383_v57  ;;  %v9216_v62 = vpop.eup %9215  ;;  %v7538_v27 = vmul.f32 0.6931472, %v9214_v28  ;;  %9237 = vpow2.f32 %v5225_v52  ;;  %v12027_v54 = vrot.slane %v2388_v9, %v10595_v3 }
 0x382   :  { %v2404_v32 = vcombine.low %v11781_v14, %v2387_v29  ;;  %v2405_v47 = vcombine.high %v11781_v14, %v2387_v29  ;;  %v9218_v24 = vpop.eup %9217  ;;  %v7540_v40 = vmul.f32 0.6931472, %v9216_v62  ;;  %9239 = vpow2.f32 %v5227_v31 }
 0x383   :  { %v4936_v30 = vsub.f32 %v11948_v53, %v12016_v34  ;;  %v12030_v19 = vrot.slane %v2389_v51, %v10595_v3  ;;  %v9220_v21 = vpop.eup %9219  ;;  %v7542_v14 = vmul.f32 0.6931472, %v9218_v24  ;;  %v8009_v4 = vadd.f32 %v7538_v27, %v11864_v13 }
 0x384   :  { %v12033_v16 = vrot.slane %v2404_v32, %v10595_v3  ;;  %9241 = vpow2.f32 %v5229_v5  ;;  %v9222_v53 = vpop.eup %9221  ;;  %v7544_v35 = vmul.f32 0.6931472, %v9220_v21  ;;  %v8010_v12 = vadd.f32 %v7540_v40, %v11869_v25 }
 0x385   :  { %v5231_v42 = vmul.f32 1.442695, %v4936_v30  ;;  %v12038_v11 = vrot.slane %v2405_v47, %v10595_v3  ;;  %v12042_v43 = vcombine.high %v12027_v54, %v15368_v60  ;;  %v9224_v61 = vpop.eup %9223  ;;  %v7546_v10 = vmul.f32 0.6931472, %v9222_v53 }
 0x386   :  { %v8011_v55 = vadd.f32 %v7542_v14, %v11871_v46  ;;  %v12047_v13 = vcombine.high %v12030_v19, %v15368_v60  ;;  %v9226_v49 = vpop.eup %9225  ;;  %v7548_v1 = vmul.f32 0.6931472, %v9224_v61  ;;  %v8012_v25 = vadd.f32 %v7544_v35, %v11874_v7 }
 0x387   :  { %9243 = vpow2.f32 %v5231_v42  ;;  %v8523_v26 = vsel %vm8481_vm3, %v8010_v12, %v8009_v4  ;;  %v12053_v39 = vcombine.high %v12033_v16, %v15368_v60  ;;  %v7550_v22 = vmul.f32 0.6931472, %v9226_v49 }
 0x388   :  { %v8013_v37 = vadd.f32 %v7546_v10, %v11877_v44  ;;  %v8524_v46 = vsel %vm8483_vm4, %v8011_v55, %v8523_v26  ;;  %v12059_v2 = vcombine.high %v12038_v11, %v15368_v60  ;;  %v8014_v18 = vadd.f32 %v7548_v1, %v11881_v56 }
 0x389   :  { %v8525_v58 = vsel %vm8485_vm5, %v8012_v25, %v8524_v46  ;;  %v4281_v7 = vsel %vm3104_vm2, %v12027_v54, -inf  ;;  %v4288_v33 = vsel %vm3104_vm2, %v12042_v43, -inf  ;;  %v9228_v50 = vpop.eup %9227  ;;  %v8015_v57 = vadd.f32 %v7550_v22, %v11885_v41 }
 0x38a   :  { %v8526_v44 = vsel %vm8487_vm6, %v8013_v37, %v8525_v58  ;;  %v4282_v59 = vrot.slane %v4281_v7, 4  ;;  %v4289_v52 = vrot.slane %v4288_v33, 4  ;;  %v9230_v17 = vpop.eup %9229  ;;  %v7552_v31 = vmul.f32 0.6931472, %v9228_v50 }
 0x38b   :  { %v8527_v8 = vsel %vm8489_vm7, %v8014_v18, %v8526_v44  ;;  %v12072_v56 = vsel %vm3104_vm2, %v12030_v19, -inf  ;;  %v12076_v29 = vsel %vm3104_vm2, %v12047_v13, -inf  ;;  %v9232_v9 = vpop.eup %9231  ;;  %v5889_v41 = vsel %vm3104_vm2, %v9230_v17, 0.0 }
 0x38c   :  { %v8528_v51 = vsel %vm8491_vm8, %v8015_v57, %v8527_v8  ;;  %v4283_v28 = vmax.f32 %v4281_v7, %v4282_v59  ;;  %v12080_v5 = vmax.f32 %v4288_v33, %v4289_v52  ;;  %v9234_v32 = vpop.eup %9233  ;;  %v8016_v47 = vadd.f32 %v7552_v31, %v11925_v20 }
 0x38d   :  { %v5890_v62 = vrot.slane %v5889_v41, 4  ;;  %v5896_v27 = vsel %vm3104_vm2, %v9232_v9, 0.0  ;;  %v4296_v30 = vrot.slane %v12072_v56, 4  ;;  %v9236_v24 = vpop.eup %9235  ;;  %v5903_v21 = vsel %vm3104_vm2, %v9234_v32, 0.0 }
 0x38e   :  { %v5897_v40 = vrot.slane %v5896_v27, 4  ;;  %v4284_v14 = vrot.slane %v4283_v28, 2  ;;  %v4291_v4 = vrot.slane %v12080_v5, 2  ;;  %v9238_v42 = vpop.eup %9237  ;;  %v8529_v53 = vsel %vm8493_vm9, %v8016_v47, %v8528_v51 }
 0x38f   :  { %v5891_v35 = vadd.f32 %v5890_v62, %v5889_v41  ;;  %v5904_v12 = vrot.slane %v5903_v21, 4  ;;  %v5910_v61 = vsel %vm3104_vm2, %v9236_v24, 0.0  ;;  %v9240_v20 = vpop.eup %9239  ;;  %8750 = vst.msk [vmem:[%s15233_s3 + $0x28] sm:$0xff] %vm8744_vm10, %v8529_v53  ;;  %v5917_v49 = vsel %vm3104_vm2, %v9238_v42, 0.0 }
 0x390   :  { %v5898_v10 = vadd.f32 %v5897_v40, %v5896_v27  ;;  %v5911_v55 = vrot.slane %v5910_v61, 4  ;;  %v4285_v1 = vmax.f32 %v4283_v28, %v4284_v14  ;;  %v5918_v37 = vrot.slane %v5917_v49, 4 }
 0x391   :  { %v9242_v25 = vpop.eup %9241  ;;  %v5892_v26 = vrot.slane %v5891_v35, 2  ;;  %v5905_v22 = vadd.f32 %v5904_v12, %v5903_v21  ;;  %v5924_v46 = vsel %vm3104_vm2, %v9240_v20, 0.0 }
 0x392   :  { %v5899_v18 = vrot.slane %v5898_v10, 2  ;;  %v5912_v58 = vadd.f32 %v5911_v55, %v5910_v61  ;;  %v5925_v7 = vrot.slane %v5924_v46, 4  ;;  %v5931_v33 = vsel %vm3104_vm2, %v9242_v25, 0.0 }
 0x393   :  { %v5893_v57 = vadd.f32 %v5892_v26, %v5891_v35  ;;  %v5906_v44 = vrot.slane %v5905_v22, 2  ;;  %v5919_v59 = vadd.f32 %v5918_v37, %v5917_v49  ;;  %v5932_v52 = vrot.slane %v5931_v33, 4 }
 0x394   :  { %v9244_v50 = vpop.eup %9243  ;;  %v5900_v17 = vadd.f32 %v5899_v18, %v5898_v10  ;;  %v5913_v31 = vrot.slane %v5912_v58, 2  ;;  %v5926_v8 = vadd.f32 %v5925_v7, %v5924_v46  ;;  %v4286_v46 = vrot.slane %v4285_v1, 1 }
 0x395   :  { %v5938_v9 = vsel %vm3104_vm2, %v9244_v50, 0.0  ;;  %v5894_v51 = vrot.slane %v5893_v57, 1  ;;  %v5907_v41 = vadd.f32 %v5906_v44, %v5905_v22  ;;  %v5920_v28 = vrot.slane %v5919_v59, 2 }
 0x396   :  { %v5933_v32 = vadd.f32 %v5932_v52, %v5931_v33  ;;  %v5901_v47 = vrot.slane %v5900_v17, 1  ;;  %v5914_v62 = vadd.f32 %v5913_v31, %v5912_v58  ;;  %v5927_v27 = vrot.slane %v5926_v8, 2 }
 0x397   :  { %v5939_v24 = vrot.slane %v5938_v9, 4  ;;  %v5895_v40 = vadd.f32 %v5894_v51, %v5893_v57  ;;  %v5908_v21 = vrot.slane %v5907_v41, 1  ;;  %v5921_v14 = vadd.f32 %v5920_v28, %v5919_v59 }
 0x398   :  { %v5934_v42 = vrot.slane %v5933_v32, 2  ;;  %v5902_v53 = vadd.f32 %v5901_v47, %v5900_v17  ;;  %v5915_v35 = vrot.slane %v5914_v62, 1  ;;  %v5928_v12 = vadd.f32 %v5927_v27, %v5926_v8 }
 0x399   :  { %v5940_v61 = vadd.f32 %v5939_v24, %v5938_v9  ;;  %v5909_v20 = vadd.f32 %v5908_v21, %v5907_v41  ;;  %v5922_v10 = vrot.slane %v5921_v14, 1  ;;  %9245 = vlog2.f32 %v5895_v40 }
 0x39a   :  { %v5935_v55 = vadd.f32 %v5934_v42, %v5933_v32  ;;  %v5916_v49 = vadd.f32 %v5915_v35, %v5914_v62  ;;  %v5929_v25 = vrot.slane %v5928_v12, 1  ;;  %9247 = vlog2.f32 %v5902_v53  ;;  %v12121_v35 = vpop.permute.xlu1 %654 }
 0x39b   :  { %v5941_v26 = vrot.slane %v5940_v61, 2  ;;  %v5923_v22 = vadd.f32 %v5922_v10, %v5921_v14  ;;  %9249 = vlog2.f32 %v5909_v20  ;;  %v4292_v7 = vmax.f32 %v12080_v5, %v4291_v4  ;;  %v12108_v4 = vpop.permute.xlu0 %872 }
 0x39c   :  { %v5936_v37 = vrot.slane %v5935_v55, 1  ;;  %v5930_v18 = vadd.f32 %v5929_v25, %v5928_v12  ;;  %9251 = vlog2.f32 %v5916_v49  ;;  %v12098_v50 = vmax.f32 %v4285_v1, %v4286_v46 }
 0x39d   :  { %v5942_v58 = vadd.f32 %v5941_v26, %v5940_v61  ;;  %9253 = vlog2.f32 %v5923_v22  ;;  %v4297_v57 = vmax.f32 %v12072_v56, %v4296_v30  ;;  %v4293_v59 = vrot.slane %v4292_v7, 1 }
 0x39e   :  { %v5937_v33 = vadd.f32 %v5936_v37, %v5935_v55  ;;  %9255 = vlog2.f32 %v5930_v18  ;;  %v4303_v52 = vrot.slane %v12076_v29, 4  ;;  %v4309_v31 = vsel %vm3104_vm2, %v12033_v16, -inf }
 0x39f   :  { %v5943_v44 = vrot.slane %v5942_v58, 1  ;;  %v4298_v17 = vrot.slane %v4297_v57, 2  ;;  %v4316_v5 = vsel %vm3104_vm2, %v12053_v39, -inf  ;;  %v12110_v8 = vmax.f32 %v4292_v7, %v4293_v59  ;;  %v12125_v55 = vpop.permute.xlu0 %652 }
 0x3a0   :  { %9257 = vlog2.f32 %v5937_v33  ;;  %v4304_v56 = vmax.f32 %v12076_v29, %v4303_v52  ;;  %v4310_v30 = vrot.slane %v4309_v31, 4  ;;  %v4317_v51 = vrot.slane %v4316_v5, 4 }
 0x3a1   :  { %v5944_v1 = vadd.f32 %v5943_v44, %v5942_v58  ;;  %v4299_v9 = vmax.f32 %v4297_v57, %v4298_v17  ;;  %v4323_v41 = vsel %vm3104_vm2, %v12038_v11, -inf  ;;  %v4330_v28 = vsel %vm3104_vm2, %v12059_v2, -inf }
 0x3a2   :  { %v4305_v32 = vrot.slane %v4304_v56, 2  ;;  %v4311_v47 = vmax.f32 %v4309_v31, %v4310_v30  ;;  %v4324_v62 = vrot.slane %v4323_v41, 4  ;;  %v4318_v24 = vmax.f32 %v4316_v5, %v4317_v51 }
 0x3a3   :  { %9259 = vlog2.f32 %v5944_v1  ;;  %v4300_v27 = vrot.slane %v4299_v9, 1  ;;  %v4331_v40 = vrot.slane %v4330_v28, 4  ;;  %v5065_v21 = vsub.f32 %v12027_v54, %v12098_v50 }
 0x3a4   :  { %v4306_v29 = vmax.f32 %v4304_v56, %v4305_v32  ;;  %v4312_v14 = vrot.slane %v4311_v47, 2  ;;  %v4325_v42 = vmax.f32 %v4323_v41, %v4324_v62  ;;  %v5066_v53 = vsub.f32 %v12042_v43, %v12110_v8 }
 0x3a5   :  { %v12123_v12 = vmax.f32 %v4299_v9, %v4300_v27  ;;  %v4319_v61 = vrot.slane %v4318_v24, 2  ;;  %v4332_v20 = vmax.f32 %v4330_v28, %v4331_v40  ;;  %v5489_v10 = vmul.f32 1.442695, %v5065_v21 }
 0x3a6   :  { %v9246_v49 = vpop.eup %9245  ;;  %v4307_v25 = vrot.slane %v4306_v29, 1  ;;  %v4313_v26 = vmax.f32 %v4311_v47, %v4312_v14  ;;  %v4326_v22 = vrot.slane %v4325_v42, 2  ;;  %v5491_v54 = vmul.f32 1.442695, %v5066_v53 }
 0x3a7   :  { %v9248_v37 = vpop.eup %9247  ;;  %v7522_v46 = vmul.f32 0.6931472, %v9246_v49  ;;  %v4320_v18 = vmax.f32 %v4318_v24, %v4319_v61  ;;  %v4333_v58 = vrot.slane %v4332_v20, 2  ;;  %v5067_v43 = vsub.f32 %v12030_v19, %v12123_v12  ;;  %v12135_v19 = vpop.permute.xlu1 %686 }
 0x3a8   :  { %v9250_v7 = vpop.eup %9249  ;;  %v7524_v33 = vmul.f32 0.6931472, %v9248_v37  ;;  %v12129_v57 = vmax.f32 %v4306_v29, %v4307_v25  ;;  %v4314_v44 = vrot.slane %v4313_v26, 1  ;;  %v4327_v59 = vmax.f32 %v4325_v42, %v4326_v22  ;;  %15389 = vst [vmem:[#allocation26_spill] sm:$0xff] %v12135_v19  ;;  %v12140_v24 = vpop.permute.xlu0 %684 }
 0x3a9   :  { %v9252_v52 = vpop.eup %9251  ;;  %v7526_v17 = vmul.f32 0.6931472, %v9250_v7  ;;  %v8001_v31 = vadd.f32 %v7522_v46, %v11965_v23  ;;  %v4321_v5 = vrot.slane %v4320_v18, 1  ;;  %v4334_v1 = vmax.f32 %v4332_v20, %v4333_v58  ;;  %15390 = vst [vmem:[#allocation6_spill] sm:$0xff] %v12140_v24 }
 0x3aa   :  { %v9254_v56 = vpop.eup %9253  ;;  %v7528_v30 = vmul.f32 0.6931472, %v9252_v52  ;;  %v8002_v9 = vadd.f32 %v7524_v33, %v11972_v36  ;;  %v12133_v51 = vmax.f32 %v4313_v26, %v4314_v44  ;;  %v4328_v41 = vrot.slane %v4327_v59, 1 }
 0x3ab   :  { %v9256_v28 = vpop.eup %9255  ;;  %v7530_v32 = vmul.f32 0.6931472, %v9254_v56  ;;  %v8003_v47 = vadd.f32 %v7526_v17, %v11975_v45  ;;  %v12138_v62 = vmax.f32 %v4320_v18, %v4321_v5  ;;  %v4335_v27 = vrot.slane %v4334_v1, 1  ;;  %v751_v18 = vpop.permute.xlu1 %750  ;;  %v15392_v5 = vld [vmem:[#allocation11_spill] sm:$0xff] }
 0x3ac   :  { %v7532_v40 = vmul.f32 0.6931472, %v9256_v28  ;;  %v8004_v21 = vadd.f32 %v7528_v30, %v11978_v15  ;;  %v8516_v36 = vsel %vm8481_vm3, %v8002_v9, %v8001_v31  ;;  %v12144_v29 = vmax.f32 %v4327_v59, %v4328_v41  ;;  %v749_v7 = vpop.permute.xlu0 %748  ;;  %v15393_v9 = vld [vmem:[#allocation5_spill] sm:$0xff] }
 0x3ad   :  { %v9258_v23 = vpop.eup %9257  ;;  %v8005_v42 = vadd.f32 %v7530_v32, %v11981_v0  ;;  %v8517_v53 = vsel %vm8483_vm4, %v8003_v47, %v8516_v36  ;;  %v12148_v61 = vmax.f32 %v4334_v1, %v4335_v27  ;;  %v5068_v49 = vsub.f32 %v12047_v13, %v12129_v57  ;;  %v15394_v32 = vld [vmem:[#allocation25_spill] sm:$0xff] }
 0x3ae   :  { %v7534_v14 = vmul.f32 0.6931472, %v9258_v23  ;;  %v8006_v45 = vadd.f32 %v7532_v40, %v11996_v48  ;;  %v8518_v20 = vsel %vm8485_vm5, %v8004_v21, %v8517_v53  ;;  %v5069_v15 = vsub.f32 %v12033_v16, %v12133_v51  ;;  %v15397_v53 = vld [vmem:[#allocation12_spill] sm:$0xff] }
 0x3af   :  { %v8519_v22 = vsel %vm8487_vm6, %v8005_v42, %v8518_v20  ;;  %v5070_v0 = vsub.f32 %v12053_v39, %v12138_v62  ;;  %v5071_v37 = vsub.f32 %v12038_v11, %v12144_v29  ;;  %v5072_v13 = vsub.f32 %v12059_v2, %v12148_v61  ;;  %v12188_v30 = vpop.permute.xlu1 %782 }
 0x3b0   :  { %v9260_v25 = vpop.eup %9259  ;;  %v8007_v26 = vadd.f32 %v7534_v14, %v12008_v6  ;;  %v8520_v46 = vsel %vm8489_vm7, %v8006_v45, %v8519_v22  ;;  %9261 = vpow2.f32 %v5489_v10  ;;  %v5493_v6 = vmul.f32 1.442695, %v5067_v43  ;;  %v12193_v27 = vpop.permute.xlu0 %780 }
 0x3b1   :  { %v7536_v48 = vmul.f32 0.6931472, %v9260_v25  ;;  %9263 = vpow2.f32 %v5491_v54  ;;  %v5495_v58 = vmul.f32 1.442695, %v5068_v49  ;;  %v5497_v39 = vmul.f32 1.442695, %v5069_v15 }
 0x3b2   :  { %v8521_v16 = vsel %vm8491_vm8, %v8007_v26, %v8520_v46  ;;  %v5499_v44 = vmul.f32 1.442695, %v5070_v0  ;;  %v5501_v59 = vmul.f32 1.442695, %v5071_v37  ;;  %9265 = vpow2.f32 %v5493_v6  ;;  %v15391_v54 = vld [vmem:[#allocation10_spill] sm:$0xff]  ;;  %v15398_v15 = vld [vmem:[#allocation13_spill] sm:$0xff] }
 0x3b3   :  { %v8008_v33 = vadd.f32 %v7536_v48, %v12016_v34  ;;  %v5503_v11 = vmul.f32 1.442695, %v5072_v13  ;;  %v2304_v52 = vcombine.low %v11715_v38, %v12108_v4  ;;  %v2305_v2 = vcombine.high %v11715_v38, %v12108_v4 }
 0x3b4   :  { %9267 = vpow2.f32 %v5495_v58  ;;  %v1404_v43 = vcombine.low %v15391_v54, %v751_v18  ;;  %v1405_v17 = vcombine.high %v15391_v54, %v751_v18  ;;  %v1336_v1 = vcombine.low %v15392_v5, %v749_v7 }
 0x3b5   :  { %v8522_v10 = vsel %vm8493_vm9, %v8008_v33, %v8521_v16  ;;  %9269 = vpow2.f32 %v5497_v39  ;;  %v2312_v34 = vrot.slane %v2304_v52, %v10581_v63  ;;  %v2319_v31 = vrot.slane %v2305_v2, %v10581_v63 }
 0x3b6   :  { %8749 = vst.msk [vmem:[%s15233_s3 + $0x20] sm:$0xff] %vm8744_vm10, %v8522_v10  ;;  %9271 = vpow2.f32 %v5499_v44  ;;  %v12182_v38 = vrot.slane %v1404_v43, %v10581_v63  ;;  %v12185_v4 = vrot.slane %v1405_v17, %v10581_v63  ;;  %v1337_v56 = vcombine.high %v15392_v5, %v749_v7 }
 0x3b7   :  { %9273 = vpow2.f32 %v5501_v59  ;;  %v2320_v41 = vcombine.low %v15393_v9, %v2312_v34  ;;  %v2321_v28 = vcombine.high %v15393_v9, %v2312_v34  ;;  %v2336_v47 = vcombine.low %v15394_v32, %v2319_v31 }
 0x3b8   :  { %9275 = vpow2.f32 %v5503_v11  ;;  %v2337_v23 = vcombine.high %v15394_v32, %v2319_v31  ;;  %v12197_v40 = vrot.slane %v1336_v1, %v10581_v63  ;;  %v12200_v21 = vrot.slane %v1337_v56, %v10581_v63 }
 0x3b9   :  { %v12203_v36 = vrot.slane %v2320_v41, %v10595_v3  ;;  %v12206_v14 = vrot.slane %v2321_v28, %v10595_v3  ;;  %v12209_v42 = vrot.slane %v2336_v47, %v10595_v3 }
 0x3ba   :  { %15395 = vst [vmem:[#allocation7_spill] sm:$0xff] %v12197_v40  ;;  %15396 = vst [vmem:[#allocation8_spill] sm:$0xff] %v12200_v21  ;;  %v12214_v20 = vrot.slane %v2337_v23, %v10595_v3 }
 0x3bb   :  { %v12224_v22 = vcombine.high %v12203_v36, %v15368_v60  ;;  %v12228_v0 = vcombine.high %v12206_v14, %v15368_v60  ;;  %v12232_v37 = vcombine.high %v12209_v42, %v15368_v60  ;;  %v4225_v48 = vsel %vm3104_vm2, %v12203_v36, -inf }
 0x3bc   :  { %v12238_v46 = vcombine.high %v12214_v20, %v15368_v60  ;;  %v4226_v13 = vrot.slane %v4225_v48, 4  ;;  %v4239_v18 = vsel %vm3104_vm2, %v12206_v14, -inf  ;;  %v4253_v16 = vsel %vm3104_vm2, %v12209_v42, -inf }
 0x3bd   :  { %v9262_v6 = vpop.eup %9261  ;;  %v4232_v58 = vsel %vm3104_vm2, %v12224_v22, -inf  ;;  %v4240_v7 = vrot.slane %v4239_v18, 4  ;;  %v4246_v33 = vsel %vm3104_vm2, %v12228_v0, -inf  ;;  %v4254_v39 = vrot.slane %v4253_v16, 4 }
 0x3be   :  { %v9264_v44 = vpop.eup %9263  ;;  %v6841_v59 = vsel %vm3104_vm2, %v9262_v6, 0.0  ;;  %v4227_v11 = vmax.f32 %v4225_v48, %v4226_v13  ;;  %v4233_v52 = vrot.slane %v4232_v58, 4  ;;  %v4247_v2 = vrot.slane %v4246_v33, 4 }
 0x3bf   :  { %v6842_v10 = vrot.slane %v6841_v59, 4  ;;  %v6848_v54 = vsel %vm3104_vm2, %v9264_v44, 0.0  ;;  %v12250_v43 = vmax.f32 %v4239_v18, %v4240_v7  ;;  %v12252_v17 = vmax.f32 %v4253_v16, %v4254_v39  ;;  %v9266_v34 = vpop.eup %9265 }
 0x3c0   :  { %v6849_v31 = vrot.slane %v6848_v54, 4  ;;  %v4228_v5 = vrot.slane %v4227_v11, 2  ;;  %v4234_v1 = vmax.f32 %v4232_v58, %v4233_v52  ;;  %v12254_v56 = vmax.f32 %v4246_v33, %v4247_v2 }
 0x3c1   :  { %v9268_v9 = vpop.eup %9267  ;;  %v6843_v41 = vadd.f32 %v6842_v10, %v6841_v59  ;;  %v6855_v28 = vsel %vm3104_vm2, %v9266_v34, 0.0 }
 0x3c2   :  { %v9270_v23 = vpop.eup %9269  ;;  %v6850_v48 = vadd.f32 %v6849_v31, %v6848_v54  ;;  %v6856_v13 = vrot.slane %v6855_v28, 4  ;;  %v6862_v18 = vsel %vm3104_vm2, %v9268_v9, 0.0  ;;  %v4229_v16 = vmax.f32 %v4227_v11, %v4228_v5 }
 0x3c3   :  { %v9272_v6 = vpop.eup %9271  ;;  %v6844_v7 = vrot.slane %v6843_v41, 2  ;;  %v6863_v39 = vrot.slane %v6862_v18, 4  ;;  %v6869_v58 = vsel %vm3104_vm2, %v9270_v23, 0.0  ;;  %v4235_v33 = vrot.slane %v4234_v1, 2 }
 0x3c4   :  { %v9274_v44 = vpop.eup %9273  ;;  %v6851_v59 = vrot.slane %v6850_v48, 2  ;;  %v6857_v52 = vadd.f32 %v6856_v13, %v6855_v28  ;;  %v6870_v2 = vrot.slane %v6869_v58, 4  ;;  %v6876_v10 = vsel %vm3104_vm2, %v9272_v6, 0.0 }
 0x3c5   :  { %v9276_v34 = vpop.eup %9275  ;;  %v6845_v26 = vadd.f32 %v6844_v7, %v6843_v41  ;;  %v6864_v25 = vadd.f32 %v6863_v39, %v6862_v18  ;;  %v6877_v54 = vrot.slane %v6876_v10, 4  ;;  %v6883_v31 = vsel %vm3104_vm2, %v9274_v44, 0.0 }
 0x3c6   :  { %v6852_v9 = vadd.f32 %v6851_v59, %v6850_v48  ;;  %v6858_v11 = vrot.slane %v6857_v52, 2  ;;  %v6871_v5 = vadd.f32 %v6870_v2, %v6869_v58  ;;  %v6884_v49 = vrot.slane %v6883_v31, 4 }
 0x3c7   :  { %v6846_v45 = vrot.slane %v6845_v26, 1  ;;  %v6865_v47 = vrot.slane %v6864_v25, 2  ;;  %v6878_v23 = vadd.f32 %v6877_v54, %v6876_v10  ;;  %v6890_v32 = vsel %vm3104_vm2, %v9276_v34, 0.0 }
 0x3c8   :  { %v6853_v24 = vrot.slane %v6852_v9, 1  ;;  %v6859_v28 = vadd.f32 %v6858_v11, %v6857_v52  ;;  %v6872_v13 = vrot.slane %v6871_v5, 2  ;;  %v6885_v19 = vadd.f32 %v6884_v49, %v6883_v31 }
 0x3c9   :  { %v6847_v6 = vadd.f32 %v6846_v45, %v6845_v26  ;;  %v6866_v21 = vadd.f32 %v6865_v47, %v6864_v25  ;;  %v6879_v41 = vrot.slane %v6878_v23, 2  ;;  %v6891_v18 = vrot.slane %v6890_v32, 4 }
 0x3ca   :  { %v6854_v7 = vadd.f32 %v6853_v24, %v6852_v9  ;;  %v6860_v39 = vrot.slane %v6859_v28, 1  ;;  %v6873_v44 = vadd.f32 %v6872_v13, %v6871_v5  ;;  %v6886_v48 = vrot.slane %v6885_v19, 2 }
 0x3cb   :  { %v6867_v59 = vrot.slane %v6866_v21, 1  ;;  %v6880_v58 = vadd.f32 %v6879_v41, %v6878_v23  ;;  %v6892_v2 = vadd.f32 %v6891_v18, %v6890_v32  ;;  %9277 = vlog2.f32 %v6847_v6 }
 0x3cc   :  { %v6861_v40 = vadd.f32 %v6860_v39, %v6859_v28  ;;  %v6874_v10 = vrot.slane %v6873_v44, 1  ;;  %v6887_v54 = vadd.f32 %v6886_v48, %v6885_v19  ;;  %9279 = vlog2.f32 %v6854_v7 }
 0x3cd   :  { %v6868_v34 = vadd.f32 %v6867_v59, %v6866_v21  ;;  %v6881_v52 = vrot.slane %v6880_v58, 1  ;;  %v6893_v11 = vrot.slane %v6892_v2, 2  ;;  %v4230_v49 = vrot.slane %v4229_v16, 1 }
 0x3ce   :  { %v6875_v45 = vadd.f32 %v6874_v10, %v6873_v44  ;;  %v6888_v25 = vrot.slane %v6887_v54, 1  ;;  %9281 = vlog2.f32 %v6861_v40  ;;  %v4236_v26 = vmax.f32 %v4234_v1, %v4235_v33 }
 0x3cf   :  { %v6882_v24 = vadd.f32 %v6881_v52, %v6880_v58  ;;  %v6894_v47 = vadd.f32 %v6893_v11, %v6892_v2  ;;  %9283 = vlog2.f32 %v6868_v34  ;;  %v12264_v31 = vmax.f32 %v4229_v16, %v4230_v49 }
 0x3d0   :  { %v6889_v9 = vadd.f32 %v6888_v25, %v6887_v54  ;;  %9285 = vlog2.f32 %v6875_v45  ;;  %v4237_v32 = vrot.slane %v4236_v26, 1  ;;  %v15399_v5 = vrot.slane %v12250_v43, 2 }
 0x3d1   :  { %v6895_v21 = vrot.slane %v6894_v47, 1  ;;  %9287 = vlog2.f32 %v6882_v24  ;;  %v4249_v23 = vrot.slane %v12254_v56, 2  ;;  %v15400_v28 = vrot.slane %v12252_v17, 2 }
 0x3d2   :  { %v4243_v19 = vmax.f32 %v12250_v43, %v15399_v5  ;;  %9289 = vlog2.f32 %v6889_v9  ;;  %v12273_v1 = vmax.f32 %v4236_v26, %v4237_v32  ;;  %v4260_v33 = vsel %vm3104_vm2, %v12232_v37, -inf }
 0x3d3   :  { %v4257_v40 = vmax.f32 %v12252_v17, %v15400_v28  ;;  %v6896_v13 = vadd.f32 %v6895_v21, %v6894_v47  ;;  %v4250_v6 = vmax.f32 %v12254_v56, %v4249_v23  ;;  %v4261_v43 = vrot.slane %v4260_v33, 4 }
 0x3d4   :  { %v4244_v16 = vrot.slane %v4243_v19, 1  ;;  %v4267_v7 = vsel %vm3104_vm2, %v12214_v20, -inf  ;;  %v4274_v17 = vsel %vm3104_vm2, %v12238_v46, -inf  ;;  %v5057_v39 = vsub.f32 %v12203_v36, %v12264_v31 }
 0x3d5   :  { %v4258_v41 = vrot.slane %v4257_v40, 1  ;;  %9291 = vlog2.f32 %v6896_v13  ;;  %v4251_v44 = vrot.slane %v4250_v6, 1  ;;  %v4262_v59 = vmax.f32 %v4260_v33, %v4261_v43 }
 0x3d6   :  { %v12278_v18 = vmax.f32 %v4243_v19, %v4244_v16  ;;  %v4268_v58 = vrot.slane %v4267_v7, 4  ;;  %v4275_v56 = vrot.slane %v4274_v17, 4  ;;  %v5058_v2 = vsub.f32 %v12224_v22, %v12273_v1 }
 0x3d7   :  { %v12286_v48 = vmax.f32 %v4257_v40, %v4258_v41  ;;  %v12292_v54 = vmax.f32 %v4250_v6, %v4251_v44  ;;  %v4263_v34 = vrot.slane %v4262_v59, 2  ;;  %v5473_v36 = vmul.f32 1.442695, %v5057_v39 }
 0x3d8   :  { %v5059_v10 = vsub.f32 %v12206_v14, %v12278_v18  ;;  %v9278_v11 = vpop.eup %9277  ;;  %v4269_v49 = vmax.f32 %v4267_v7, %v4268_v58  ;;  %v4276_v45 = vmax.f32 %v4274_v17, %v4275_v56  ;;  %v5475_v25 = vmul.f32 1.442695, %v5058_v2 }
 0x3d9   :  { %v5061_v52 = vsub.f32 %v12209_v42, %v12286_v48  ;;  %v9280_v24 = vpop.eup %9279  ;;  %v7794_v47 = vmul.f32 0.6931472, %v9278_v11  ;;  %v4264_v9 = vmax.f32 %v4262_v59, %v4263_v34  ;;  %v5060_v22 = vsub.f32 %v12228_v0, %v12292_v54 }
 0x3da   :  { %v5477_v26 = vmul.f32 1.442695, %v5059_v10  ;;  %9293 = vpow2.f32 %v5473_v36  ;;  %v7796_v14 = vmul.f32 0.6931472, %v9280_v24  ;;  %v4270_v32 = vrot.slane %v4269_v49, 2 }
 0x3db   :  { %v4277_v5 = vrot.slane %v4276_v45, 2  ;;  %9295 = vpow2.f32 %v5475_v25  ;;  %v9282_v19 = vpop.eup %9281  ;;  %v8137_v42 = vadd.f32 %v7794_v47, %v12098_v50  ;;  %v4265_v21 = vrot.slane %v4264_v9, 1 }
 0x3dc   :  { %9297 = vpow2.f32 %v5477_v26  ;;  %v5479_v23 = vmul.f32 1.442695, %v5060_v22  ;;  %v9284_v28 = vpop.eup %9283  ;;  %v7798_v40 = vmul.f32 0.6931472, %v9282_v19  ;;  %v8138_v16 = vadd.f32 %v7796_v14, %v12110_v8  ;;  %v847_v22 = vpop.permute.xlu1 %846 }
 0x3dd   :  { %v4271_v33 = vmax.f32 %v4269_v49, %v4270_v32  ;;  %v4278_v13 = vmax.f32 %v4276_v45, %v4277_v5  ;;  %v9286_v6 = vpop.eup %9285  ;;  %v7800_v41 = vmul.f32 0.6931472, %v9284_v28  ;;  %v12300_v0 = vmax.f32 %v4264_v9, %v4265_v21 }
 0x3de   :  { %9299 = vpow2.f32 %v5479_v23  ;;  %v5481_v43 = vmul.f32 1.442695, %v5061_v52  ;;  %v9288_v7 = vpop.eup %9287  ;;  %v7802_v17 = vmul.f32 0.6931472, %v9286_v6  ;;  %v8139_v39 = vadd.f32 %v7798_v40, %v12123_v12 }
 0x3df   :  { %v8635_v50 = vsel %vm8481_vm3, %v8138_v16, %v8137_v42  ;;  %v4272_v44 = vrot.slane %v4271_v33, 1  ;;  %v9290_v59 = vpop.eup %9289  ;;  %v7804_v58 = vmul.f32 0.6931472, %v9288_v7  ;;  %v8140_v56 = vadd.f32 %v7800_v41, %v12129_v57 }
 0x3e0   :  { %v4279_v8 = vrot.slane %v4278_v13, 1  ;;  %v5062_v2 = vsub.f32 %v12232_v37, %v12300_v0  ;;  %v7806_v10 = vmul.f32 0.6931472, %v9290_v59  ;;  %v8141_v34 = vadd.f32 %v7802_v17, %v12133_v51 }
 0x3e1   :  { %v8636_v52 = vsel %vm8483_vm4, %v8139_v39, %v8635_v50  ;;  %v12309_v36 = vmax.f32 %v4271_v33, %v4272_v44  ;;  %v8142_v12 = vadd.f32 %v7804_v58, %v12138_v62  ;;  %9301 = vpow2.f32 %v5481_v43 }
 0x3e2   :  { %v8637_v11 = vsel %vm8485_vm5, %v8140_v56, %v8636_v52  ;;  %v12313_v49 = vmax.f32 %v4278_v13, %v4279_v8  ;;  %v9292_v45 = vpop.eup %9291  ;;  %v8143_v57 = vadd.f32 %v7806_v10, %v12144_v29  ;;  %v5483_v51 = vmul.f32 1.442695, %v5062_v2  ;;  %v845_v29 = vpop.permute.xlu0 %844 }
 0x3e3   :  { %v8638_v25 = vsel %vm8487_vm6, %v8141_v34, %v8637_v11  ;;  %v5063_v37 = vsub.f32 %v12214_v20, %v12309_v36  ;;  %v7808_v26 = vmul.f32 0.6931472, %v9292_v45  ;;  %v15401_v47 = vcombine.low %v15397_v53, %v12188_v30 }
 0x3e4   :  { %v8639_v24 = vsel %vm8489_vm7, %v8142_v12, %v8638_v25  ;;  %v5064_v62 = vsub.f32 %v12238_v46, %v12313_v49  ;;  %9303 = vpow2.f32 %v5483_v51  ;;  %v15402_v20 = vcombine.high %v15397_v53, %v12188_v30 }
 0x3e5   :  { %v12326_v9 = vrot.slane %v15401_v47, %v10581_v63  ;;  %v8640_v14 = vsel %vm8491_vm8, %v8143_v57, %v8639_v24  ;;  %v5485_v32 = vmul.f32 1.442695, %v5063_v37  ;;  %v8144_v46 = vadd.f32 %v7808_v26, %v12148_v61 }
 0x3e6   :  { %v12333_v5 = vrot.slane %v15402_v20, %v10581_v63  ;;  %v5487_v19 = vmul.f32 1.442695, %v5064_v62  ;;  %v15403_v42 = vcombine.low %v15398_v15, %v12193_v27  ;;  %v15404_v23 = vcombine.high %v15398_v15, %v12193_v27 }
 0x3e7   :  { %v9294_v40 = vpop.eup %9293  ;;  %9305 = vpow2.f32 %v5485_v32  ;;  %v1420_v30 = vcombine.low %v12121_v35, %v847_v22  ;;  %v1421_v53 = vcombine.high %v12121_v35, %v847_v22  ;;  %v1352_v61 = vcombine.low %v12125_v55, %v845_v29 }
 0x3e8   :  { %v12340_v21 = vrot.slane %v15403_v42, %v10581_v63  ;;  %v12346_v28 = vrot.slane %v15404_v23, %v10581_v63  ;;  %v9296_v16 = vpop.eup %9295  ;;  %v8641_v33 = vsel %vm8493_vm9, %v8144_v46, %v8640_v14  ;;  %9307 = vpow2.f32 %v5487_v19 }
 0x3e9   :  { %v6785_v13 = vsel %vm3104_vm2, %v9294_v40, 0.0  ;;  %v1353_v6 = vcombine.high %v12125_v55, %v845_v29  ;;  %v9298_v41 = vpop.eup %9297  ;;  %8766 = vst.msk [vmem:[%s15233_s3 + $0xa8] sm:$0xff] %vm8744_vm10, %v8641_v33  ;;  %v6792_v15 = vsel %vm3104_vm2, %v9296_v16, 0.0  ;;  %v1428_v35 = vrot.slane %v1420_v30, %v10581_v63 }
 0x3ea   :  { %v6786_v27 = vrot.slane %v6785_v13, 4  ;;  %v1435_v43 = vrot.slane %v1421_v53, %v10581_v63  ;;  %v6793_v7 = vrot.slane %v6792_v15, 4  ;;  %v6799_v17 = vsel %vm3104_vm2, %v9298_v41, 0.0 }
 0x3eb   :  { %v12363_v39 = vrot.slane %v1352_v61, %v10581_v63  ;;  %v12366_v55 = vrot.slane %v1353_v6, %v10581_v63  ;;  %v9300_v50 = vpop.eup %9299  ;;  %v6800_v59 = vrot.slane %v6799_v17, 4  ;;  %v1436_v58 = vcombine.low %v12182_v38, %v1428_v35 }
 0x3ec   :  { %v6787_v44 = vadd.f32 %v6786_v27, %v6785_v13  ;;  %v1437_v56 = vcombine.high %v12182_v38, %v1428_v35  ;;  %v6794_v8 = vadd.f32 %v6793_v7, %v6792_v15  ;;  %v6806_v2 = vsel %vm3104_vm2, %v9300_v50, 0.0 }
 0x3ed   :  { %v1452_v10 = vcombine.low %v12185_v4, %v1435_v43  ;;  %v1453_v34 = vcombine.high %v12185_v4, %v1435_v43  ;;  %v6801_v12 = vadd.f32 %v6800_v59, %v6799_v17  ;;  %v6807_v11 = vrot.slane %v6806_v2, 4 }
 0x3ee   :  { %v6788_v52 = vrot.slane %v6787_v44, 2  ;;  %v12374_v45 = vrot.slane %v1436_v58, %v10595_v3  ;;  %v6795_v57 = vrot.slane %v6794_v8, 2  ;;  %v12377_v25 = vrot.slane %v1437_v56, %v10595_v3  ;;  %v9302_v51 = vpop.eup %9301 }
 0x3ef   :  { %v12380_v37 = vrot.slane %v1452_v10, %v10595_v3  ;;  %v12383_v38 = vrot.slane %v1453_v34, %v10595_v3  ;;  %v6802_v24 = vrot.slane %v6801_v12, 2  ;;  %v6808_v4 = vadd.f32 %v6807_v11, %v6806_v2 }
 0x3f0   :  { %v6789_v26 = vadd.f32 %v6788_v52, %v6787_v44  ;;  %v12387_v62 = vcombine.high %v12374_v45, %v15368_v60  ;;  %v6796_v47 = vadd.f32 %v6795_v57, %v6794_v8  ;;  %v6813_v22 = vsel %vm3104_vm2, %v9302_v51, 0.0 }
 0x3f1   :  { %v12392_v29 = vcombine.high %v12377_v25, %v15368_v60  ;;  %v12396_v14 = vcombine.high %v12380_v37, %v15368_v60  ;;  %v6803_v20 = vadd.f32 %v6802_v24, %v6801_v12  ;;  %v6809_v46 = vrot.slane %v6808_v4, 2  ;;  %v9304_v42 = vpop.eup %9303 }
 0x3f2   :  { %v6790_v32 = vrot.slane %v6789_v26, 1  ;;  %v6814_v19 = vrot.slane %v6813_v22, 4  ;;  %v6797_v23 = vrot.slane %v6796_v47, 1  ;;  %v12400_v40 = vcombine.high %v12383_v38, %v15368_v60 }
 0x3f3   :  { %v3497_v30 = vsel %vm3104_vm2, %v12374_v45, -inf  ;;  %v3504_v53 = vsel %vm3104_vm2, %v12387_v62, -inf  ;;  %v6804_v16 = vrot.slane %v6803_v20, 1  ;;  %v6810_v33 = vadd.f32 %v6809_v46, %v6808_v4 }
 0x3f4   :  { %v6791_v61 = vadd.f32 %v6790_v32, %v6789_v26  ;;  %v6815_v13 = vadd.f32 %v6814_v19, %v6813_v22  ;;  %v9306_v6 = vpop.eup %9305  ;;  %v6798_v41 = vadd.f32 %v6797_v23, %v6796_v47  ;;  %v6820_v27 = vsel %vm3104_vm2, %v9304_v42, 0.0 }
 0x3f5   :  { %v3498_v15 = vrot.slane %v3497_v30, 4  ;;  %v3505_v35 = vrot.slane %v3504_v53, 4  ;;  %v9308_v43 = vpop.eup %9307  ;;  %v6805_v7 = vadd.f32 %v6804_v16, %v6803_v20  ;;  %v6811_v17 = vrot.slane %v6810_v33, 1 }
 0x3f6   :  { %v6816_v50 = vrot.slane %v6815_v13, 2  ;;  %v6821_v44 = vrot.slane %v6820_v27, 4  ;;  %v6827_v59 = vsel %vm3104_vm2, %v9306_v6, 0.0  ;;  %v6834_v58 = vsel %vm3104_vm2, %v9308_v43, 0.0 }
 0x3f7   :  { %9309 = vlog2.f32 %v6791_v61  ;;  %v3499_v56 = vmax.f32 %v3497_v30, %v3498_v15  ;;  %v6812_v8 = vadd.f32 %v6811_v17, %v6810_v33  ;;  %v6828_v34 = vrot.slane %v6827_v59, 4 }
 0x3f8   :  { %v6817_v2 = vadd.f32 %v6816_v50, %v6815_v13  ;;  %v6822_v10 = vadd.f32 %v6821_v44, %v6820_v27  ;;  %v6835_v52 = vrot.slane %v6834_v58, 4  ;;  %9311 = vlog2.f32 %v6798_v41 }
 0x3f9   :  { %v3500_v12 = vrot.slane %v3499_v56, 2  ;;  %v3506_v11 = vmax.f32 %v3504_v53, %v3505_v35  ;;  %v6829_v26 = vadd.f32 %v6828_v34, %v6827_v59  ;;  %9313 = vlog2.f32 %v6805_v7 }
 0x3fa   :  { %v6818_v57 = vrot.slane %v6817_v2, 1  ;;  %v6823_v51 = vrot.slane %v6822_v10, 2  ;;  %v6836_v24 = vadd.f32 %v6835_v52, %v6834_v58  ;;  %9315 = vlog2.f32 %v6812_v8 }
 0x3fb   :  { %v3501_v4 = vmax.f32 %v3499_v56, %v3500_v12  ;;  %v3507_v47 = vrot.slane %v3506_v11, 2  ;;  %v6830_v20 = vrot.slane %v6829_v26, 2  ;;  %v3511_v46 = vsel %vm3104_vm2, %v12377_v25, -inf }
 0x3fc   :  { %v6819_v22 = vadd.f32 %v6818_v57, %v6817_v2  ;;  %v6824_v32 = vadd.f32 %v6823_v51, %v6822_v10  ;;  %v6837_v19 = vrot.slane %v6836_v24, 2  ;;  %v3512_v30 = vrot.slane %v3511_v46, 4 }
 0x3fd   :  { %v3502_v42 = vrot.slane %v3501_v4, 1  ;;  %v3508_v23 = vmax.f32 %v3506_v11, %v3507_v47  ;;  %v6831_v53 = vadd.f32 %v6830_v20, %v6829_v26  ;;  %v3518_v16 = vsel %vm3104_vm2, %v12392_v29, -inf }
 0x3fe   :  { %v6825_v61 = vrot.slane %v6824_v32, 1  ;;  %9317 = vlog2.f32 %v6819_v22  ;;  %v6838_v33 = vadd.f32 %v6837_v19, %v6836_v24  ;;  %v3513_v41 = vmax.f32 %v3511_v46, %v3512_v30 }
 0x3ff   :  { %v12413_v13 = vmax.f32 %v3501_v4, %v3502_v42  ;;  %v3509_v6 = vrot.slane %v3508_v23, 1  ;;  %v6832_v15 = vrot.slane %v6831_v53, 1  ;;  %v3519_v35 = vrot.slane %v3518_v16, 4 }
 0x400   :  { %v6826_v27 = vadd.f32 %v6825_v61, %v6824_v32  ;;  %v3525_v43 = vsel %vm3104_vm2, %v12380_v37, -inf  ;;  %v6839_v7 = vrot.slane %v6838_v33, 1  ;;  %v3514_v50 = vrot.slane %v3513_v41, 2 }
 0x401   :  { %v12417_v17 = vmax.f32 %v3508_v23, %v3509_v6  ;;  %v3526_v44 = vrot.slane %v3525_v43, 4  ;;  %v6833_v59 = vadd.f32 %v6832_v15, %v6831_v53  ;;  %v3520_v58 = vmax.f32 %v3518_v16, %v3519_v35 }
 0x402   :  { %9319 = vlog2.f32 %v6826_v27  ;;  %v3532_v56 = vsel %vm3104_vm2, %v12396_v14, -inf  ;;  %v6840_v8 = vadd.f32 %v6839_v7, %v6838_v33  ;;  %v3515_v2 = vmax.f32 %v3513_v41, %v3514_v50 }
 0x403   :  { %v3527_v10 = vmax.f32 %v3525_v43, %v3526_v44  ;;  %v3533_v34 = vrot.slane %v3532_v56, 4  ;;  %9321 = vlog2.f32 %v6833_v59  ;;  %v3521_v12 = vrot.slane %v3520_v58, 2 }
 0x404   :  { %v9310_v52 = vpop.eup %9309  ;;  %v3539_v11 = vsel %vm3104_vm2, %v12383_v38, -inf  ;;  %v3546_v57 = vsel %vm3104_vm2, %v12400_v40, -inf  ;;  %9323 = vlog2.f32 %v6840_v8  ;;  %v3516_v26 = vrot.slane %v3515_v2, 1 }
 0x405   :  { %v7778_v51 = vmul.f32 0.6931472, %v9310_v52  ;;  %v3528_v24 = vrot.slane %v3527_v10, 2  ;;  %v9312_v4 = vpop.eup %9311  ;;  %v3522_v47 = vmax.f32 %v3520_v58, %v3521_v12  ;;  %v3534_v22 = vmax.f32 %v3532_v56, %v3533_v34 }
 0x406   :  { %v3540_v32 = vrot.slane %v3539_v11, 4  ;;  %v3547_v20 = vrot.slane %v3546_v57, 4  ;;  %v9314_v46 = vpop.eup %9313  ;;  %v7780_v19 = vmul.f32 0.6931472, %v9312_v4  ;;  %v12426_v23 = vmax.f32 %v3515_v2, %v3516_v26 }
 0x407   :  { %v8129_v42 = vadd.f32 %v7778_v51, %v12264_v31  ;;  %v3529_v30 = vmax.f32 %v3527_v10, %v3528_v24  ;;  %v9316_v61 = vpop.eup %9315  ;;  %v7782_v53 = vmul.f32 0.6931472, %v9314_v46  ;;  %v3523_v16 = vrot.slane %v3522_v47, 1 }
 0x408   :  { %v3535_v33 = vrot.slane %v3534_v22, 2  ;;  %v3541_v6 = vmax.f32 %v3539_v11, %v3540_v32  ;;  %v7784_v41 = vmul.f32 0.6931472, %v9316_v61  ;;  %v8130_v27 = vadd.f32 %v7780_v19, %v12273_v1 }
 0x409   :  { %v3530_v15 = vrot.slane %v3529_v30, 1  ;;  %v3548_v35 = vmax.f32 %v3546_v57, %v3547_v20  ;;  %v8131_v43 = vadd.f32 %v7782_v53, %v12278_v18  ;;  %v12430_v7 = vmax.f32 %v3522_v47, %v3523_v16 }
 0x40a   :  { %v3536_v50 = vmax.f32 %v3534_v22, %v3535_v33  ;;  %v3542_v44 = vrot.slane %v3541_v6, 2  ;;  %v8132_v59 = vadd.f32 %v7784_v41, %v12292_v54  ;;  %v8628_v58 = vsel %vm8481_vm3, %v8130_v27, %v8129_v42 }
 0x40b   :  { %v9318_v31 = vpop.eup %9317  ;;  %v12434_v56 = vmax.f32 %v3529_v30, %v3530_v15  ;;  %v3549_v8 = vrot.slane %v3548_v35, 2  ;;  %v8629_v10 = vsel %vm8483_vm4, %v8131_v43, %v8628_v58  ;;  %v4953_v12 = vsub.f32 %v12374_v45, %v12413_v13  ;;  %v12466_v43 = vpop.permute.xlu1 %878 }
 0x40c   :  { %v7786_v2 = vmul.f32 0.6931472, %v9318_v31  ;;  %v3537_v1 = vrot.slane %v3536_v50, 1  ;;  %v3543_v34 = vmax.f32 %v3541_v6, %v3542_v44  ;;  %v8630_v52 = vsel %vm8485_vm5, %v8132_v59, %v8629_v10  ;;  %v15406_v31 = vld [vmem:[#allocation8_spill] sm:$0xff] }
 0x40d   :  { %v3550_v18 = vmax.f32 %v3548_v35, %v3549_v8  ;;  %v4954_v11 = vsub.f32 %v12387_v62, %v12417_v17  ;;  %v4955_v26 = vsub.f32 %v12377_v25, %v12426_v23  ;;  %v4956_v47 = vsub.f32 %v12392_v29, %v12430_v7  ;;  %v15407_v8 = vld [vmem:[#allocation26_spill] sm:$0xff] }
 0x40e   :  { %v8133_v54 = vadd.f32 %v7786_v2, %v12286_v48  ;;  %v12443_v57 = vmax.f32 %v3536_v50, %v3537_v1  ;;  %v3544_v51 = vrot.slane %v3543_v34, 1  ;;  %v4957_v22 = vsub.f32 %v12380_v37, %v12434_v56 }
 0x40f   :  { %v9320_v24 = vpop.eup %9319  ;;  %v3551_v4 = vrot.slane %v3550_v18, 1  ;;  %v5265_v45 = vmul.f32 1.442695, %v4953_v12  ;;  %v5267_v25 = vmul.f32 1.442695, %v4954_v11  ;;  %v1385_v59 = vcombine.high %v15406_v31, %v12366_v55 }
 0x410   :  { %v7788_v32 = vmul.f32 0.6931472, %v9320_v24  ;;  %v8631_v62 = vsel %vm8487_vm6, %v8133_v54, %v8630_v52  ;;  %v12452_v20 = vmax.f32 %v3543_v34, %v3544_v51  ;;  %v4958_v48 = vsub.f32 %v12396_v14, %v12443_v57  ;;  %v9322_v46 = vpop.eup %9321 }
 0x411   :  { %v12456_v19 = vmax.f32 %v3550_v18, %v3551_v4  ;;  %9325 = vpow2.f32 %v5265_v45  ;;  %v5269_v42 = vmul.f32 1.442695, %v4955_v26  ;;  %v9324_v30 = vpop.eup %9323  ;;  %v7790_v29 = vmul.f32 0.6931472, %v9322_v46 }
 0x412   :  { %v8134_v61 = vadd.f32 %v7788_v32, %v12300_v0  ;;  %v4959_v37 = vsub.f32 %v12383_v38, %v12452_v20  ;;  %v5271_v53 = vmul.f32 1.442695, %v4956_v47  ;;  %v7792_v16 = vmul.f32 0.6931472, %v9324_v30 }
 0x413   :  { %v4960_v33 = vsub.f32 %v12400_v40, %v12456_v19  ;;  %9327 = vpow2.f32 %v5267_v25  ;;  %v5273_v14 = vmul.f32 1.442695, %v4957_v22  ;;  %v8135_v6 = vadd.f32 %v7790_v29, %v12309_v36  ;;  %v15405_v40 = vld [vmem:[#allocation7_spill] sm:$0xff] }
 0x414   :  { %v8632_v41 = vsel %vm8489_vm7, %v8134_v61, %v8631_v62  ;;  %9329 = vpow2.f32 %v5269_v42  ;;  %v5275_v27 = vmul.f32 1.442695, %v4958_v48  ;;  %v8136_v15 = vadd.f32 %v7792_v16, %v12313_v49 }
 0x415   :  { %9331 = vpow2.f32 %v5271_v53  ;;  %v5277_v0 = vmul.f32 1.442695, %v4959_v37  ;;  %v5279_v35 = vmul.f32 1.442695, %v4960_v33  ;;  %v8633_v38 = vsel %vm8491_vm8, %v8135_v6, %v8632_v41 }
 0x416   :  { %9333 = vpow2.f32 %v5273_v14  ;;  %v1368_v50 = vcombine.low %v15405_v40, %v12363_v39  ;;  %v1369_v36 = vcombine.high %v15405_v40, %v12363_v39  ;;  %v8634_v44 = vsel %vm8493_vm9, %v8136_v15, %v8633_v38 }
 0x417   :  { %9335 = vpow2.f32 %v5275_v27  ;;  %v1384_v49 = vcombine.low %v15406_v31, %v12366_v55  ;;  %8765 = vst.msk [vmem:[%s15233_s3 + $0xa0] sm:$0xff] %vm8744_vm10, %v8634_v44  ;;  %v12494_v55 = vrot.slane %v1385_v59, %v10595_v3 }
 0x418   :  { %9337 = vpow2.f32 %v5277_v0  ;;  %v12483_v58 = vrot.slane %v1368_v50, %v10595_v3  ;;  %v12486_v39 = vrot.slane %v1369_v36, %v10595_v3 }
 0x419   :  { %9339 = vpow2.f32 %v5279_v35  ;;  %v12491_v10 = vrot.slane %v1384_v49, %v10595_v3  ;;  %v12516_v54 = vcombine.high %v12494_v55, %v15368_v60  ;;  %v12526_v22 = vsel %vm3104_vm2, %v12494_v55, -inf }
 0x41a   :  { %v12500_v34 = vcombine.high %v12483_v58, %v15368_v60  ;;  %v12504_v52 = vcombine.high %v12486_v39, %v15368_v60  ;;  %v3441_v18 = vsel %vm3104_vm2, %v12483_v58, -inf  ;;  %v3455_v12 = vsel %vm3104_vm2, %v12486_v39, -inf }
 0x41b   :  { %v12512_v11 = vcombine.high %v12491_v10, %v15368_v60  ;;  %v3442_v51 = vrot.slane %v3441_v18, 4  ;;  %v3456_v26 = vrot.slane %v3455_v12, 4  ;;  %v3469_v47 = vsel %vm3104_vm2, %v12491_v10, -inf }
 0x41c   :  { %v3448_v24 = vsel %vm3104_vm2, %v12500_v34, -inf  ;;  %v3462_v4 = vsel %vm3104_vm2, %v12504_v52, -inf  ;;  %v3470_v25 = vrot.slane %v3469_v47, 4  ;;  %v12535_v29 = vsel %vm3104_vm2, %v12516_v54, -inf }
 0x41d   :  { %v3443_v45 = vmax.f32 %v3441_v18, %v3442_v51  ;;  %v3449_v32 = vrot.slane %v3448_v24, 4  ;;  %v3457_v62 = vmax.f32 %v3455_v12, %v3456_v26  ;;  %v3463_v48 = vrot.slane %v3462_v4, 4 }
 0x41e   :  { %v9326_v46 = vpop.eup %9325  ;;  %v12530_v42 = vsel %vm3104_vm2, %v12512_v11, -inf  ;;  %v12540_v41 = vmax.f32 %v3469_v47, %v3470_v25 }
 0x41f   :  { %v6057_v61 = vsel %vm3104_vm2, %v9326_v46, 0.0  ;;  %v3444_v37 = vrot.slane %v3443_v45, 2  ;;  %v3450_v53 = vmax.f32 %v3448_v24, %v3449_v32  ;;  %v3458_v16 = vrot.slane %v3457_v62, 2 }
 0x420   :  { %v9328_v33 = vpop.eup %9327  ;;  %v6058_v14 = vrot.slane %v6057_v61, 4  ;;  %v12538_v6 = vmax.f32 %v3462_v4, %v3463_v48 }
 0x421   :  { %v9330_v15 = vpop.eup %9329  ;;  %v6064_v0 = vsel %vm3104_vm2, %v9328_v33, 0.0  ;;  %v3445_v35 = vmax.f32 %v3443_v45, %v3444_v37  ;;  %v3451_v38 = vrot.slane %v3450_v53, 2  ;;  %v12544_v40 = vmax.f32 %v3457_v62, %v3458_v16 }
 0x422   :  { %v9332_v50 = vpop.eup %9331  ;;  %v6059_v36 = vadd.f32 %v6058_v14, %v6057_v61  ;;  %v6065_v44 = vrot.slane %v6064_v0, 4  ;;  %v6071_v31 = vsel %vm3104_vm2, %v9330_v15, 0.0 }
 0x423   :  { %v9334_v59 = vpop.eup %9333  ;;  %v6072_v18 = vrot.slane %v6071_v31, 4  ;;  %v6078_v12 = vsel %vm3104_vm2, %v9332_v50, 0.0  ;;  %v3446_v51 = vrot.slane %v3445_v35, 1  ;;  %v3452_v26 = vmax.f32 %v3450_v53, %v3451_v38 }
 0x424   :  { %v9336_v24 = vpop.eup %9335  ;;  %v6060_v4 = vrot.slane %v6059_v36, 2  ;;  %v6066_v47 = vadd.f32 %v6065_v44, %v6064_v0  ;;  %v6079_v45 = vrot.slane %v6078_v12, 4  ;;  %v6085_v32 = vsel %vm3104_vm2, %v9334_v59, 0.0 }
 0x425   :  { %v9338_v62 = vpop.eup %9337  ;;  %v6073_v48 = vadd.f32 %v6072_v18, %v6071_v31  ;;  %v6086_v46 = vrot.slane %v6085_v32, 4  ;;  %v6092_v25 = vsel %vm3104_vm2, %v9336_v24, 0.0  ;;  %v12551_v61 = vmax.f32 %v3445_v35, %v3446_v51 }
 0x426   :  { %v9340_v37 = vpop.eup %9339  ;;  %v6061_v16 = vadd.f32 %v6060_v4, %v6059_v36  ;;  %v6067_v33 = vrot.slane %v6066_v47, 2  ;;  %v6080_v14 = vadd.f32 %v6079_v45, %v6078_v12  ;;  %v6093_v15 = vrot.slane %v6092_v25, 4 }
 0x427   :  { %v6074_v50 = vrot.slane %v6073_v48, 2  ;;  %v6087_v53 = vadd.f32 %v6086_v46, %v6085_v32  ;;  %v6099_v38 = vsel %vm3104_vm2, %v9338_v62, 0.0  ;;  %v6106_v0 = vsel %vm3104_vm2, %v9340_v37, 0.0 }
 0x428   :  { %v6062_v44 = vrot.slane %v6061_v16, 1  ;;  %v6068_v59 = vadd.f32 %v6067_v33, %v6066_v47  ;;  %v6081_v1 = vrot.slane %v6080_v14, 2  ;;  %v6094_v31 = vadd.f32 %v6093_v15, %v6092_v25 }
 0x429   :  { %v6075_v18 = vadd.f32 %v6074_v50, %v6073_v48  ;;  %v6088_v2 = vrot.slane %v6087_v53, 2  ;;  %v6100_v24 = vrot.slane %v6099_v38, 4  ;;  %v6107_v35 = vrot.slane %v6106_v0, 4 }
 0x42a   :  { %v6063_v51 = vadd.f32 %v6062_v44, %v6061_v16  ;;  %v6069_v30 = vrot.slane %v6068_v59, 1  ;;  %v6082_v36 = vadd.f32 %v6081_v1, %v6080_v14  ;;  %v6095_v4 = vrot.slane %v6094_v31, 2 }
 0x42b   :  { %v6076_v12 = vrot.slane %v6075_v18, 1  ;;  %v6089_v45 = vadd.f32 %v6088_v2, %v6087_v53  ;;  %v6101_v27 = vadd.f32 %v6100_v24, %v6099_v38  ;;  %v6108_v32 = vadd.f32 %v6107_v35, %v6106_v0 }
 0x42c   :  { %v6070_v46 = vadd.f32 %v6069_v30, %v6068_v59  ;;  %v6083_v62 = vrot.slane %v6082_v36, 1  ;;  %v6096_v49 = vadd.f32 %v6095_v4, %v6094_v31  ;;  %9341 = vlog2.f32 %v6063_v51 }
 0x42d   :  { %v6077_v37 = vadd.f32 %v6076_v12, %v6075_v18  ;;  %v6090_v47 = vrot.slane %v6089_v45, 1  ;;  %v6102_v33 = vrot.slane %v6101_v27, 2  ;;  %v6109_v25 = vrot.slane %v6108_v32, 2 }
 0x42e   :  { %v6084_v48 = vadd.f32 %v6083_v62, %v6082_v36  ;;  %v6097_v15 = vrot.slane %v6096_v49, 1  ;;  %9343 = vlog2.f32 %v6070_v46  ;;  %v3453_v50 = vrot.slane %v3452_v26, 1 }
 0x42f   :  { %v6091_v16 = vadd.f32 %v6090_v47, %v6089_v45  ;;  %v6103_v44 = vadd.f32 %v6102_v33, %v6101_v27  ;;  %v6110_v1 = vadd.f32 %v6109_v25, %v6108_v32  ;;  %9345 = vlog2.f32 %v6077_v37 }
 0x430   :  { %v6098_v14 = vadd.f32 %v6097_v15, %v6096_v49  ;;  %9347 = vlog2.f32 %v6084_v48  ;;  %v12555_v2 = vmax.f32 %v3452_v26, %v3453_v50  ;;  %v3460_v30 = vrot.slane %v12544_v40, 1 }
 0x431   :  { %v6104_v53 = vrot.slane %v6103_v44, 1  ;;  %v6111_v38 = vrot.slane %v6110_v1, 1  ;;  %9349 = vlog2.f32 %v6091_v16  ;;  %v15408_v0 = vrot.slane %v12538_v6, 2 }
 0x432   :  { %9351 = vlog2.f32 %v6098_v14  ;;  %v12562_v31 = vmax.f32 %v12544_v40, %v3460_v30  ;;  %v3472_v27 = vrot.slane %v12540_v41, 2  ;;  %v15409_v49 = vrot.slane %v12530_v42, 4 }
 0x433   :  { %v3466_v59 = vmax.f32 %v12538_v6, %v15408_v0  ;;  %v6105_v18 = vadd.f32 %v6104_v53, %v6103_v44  ;;  %v6112_v24 = vadd.f32 %v6111_v38, %v6110_v1  ;;  %v15410_v51 = vrot.slane %v12526_v22, 4 }
 0x434   :  { %v3478_v26 = vmax.f32 %v12530_v42, %v15409_v49  ;;  %v3473_v4 = vmax.f32 %v12540_v41, %v3472_v27  ;;  %v3491_v12 = vrot.slane %v12535_v29, 4  ;;  %v4945_v40 = vsub.f32 %v12483_v58, %v12551_v61 }
 0x435   :  { %v3467_v35 = vrot.slane %v3466_v59, 1  ;;  %v3485_v36 = vmax.f32 %v12526_v22, %v15410_v51  ;;  %9353 = vlog2.f32 %v6105_v18  ;;  %v4946_v42 = vsub.f32 %v12500_v34, %v12555_v2 }
 0x436   :  { %v3479_v6 = vrot.slane %v3478_v26, 2  ;;  %9355 = vlog2.f32 %v6112_v24  ;;  %v3474_v46 = vrot.slane %v3473_v4, 1  ;;  %v3492_v22 = vmax.f32 %v12535_v29, %v3491_v12 }
 0x437   :  { %v12575_v45 = vmax.f32 %v3466_v59, %v3467_v35  ;;  %v3486_v32 = vrot.slane %v3485_v36, 2  ;;  %v4947_v41 = vsub.f32 %v12486_v39, %v12562_v31  ;;  %v5249_v58 = vmul.f32 1.442695, %v4945_v40 }
 0x438   :  { %v3480_v62 = vmax.f32 %v3478_v26, %v3479_v6  ;;  %v12584_v33 = vmax.f32 %v3473_v4, %v3474_v46  ;;  %v3493_v48 = vrot.slane %v3492_v22, 2  ;;  %v5251_v15 = vmul.f32 1.442695, %v4946_v42 }
 0x439   :  { %v3487_v37 = vmax.f32 %v3485_v36, %v3486_v32  ;;  %v4948_v47 = vsub.f32 %v12504_v52, %v12575_v45  ;;  %v9342_v50 = vpop.eup %9341  ;;  %9357 = vpow2.f32 %v5249_v58  ;;  %v5253_v16 = vmul.f32 1.442695, %v4947_v41 }
 0x43a   :  { %v3481_v25 = vrot.slane %v3480_v62, 1  ;;  %v7570_v1 = vmul.f32 0.6931472, %v9342_v50  ;;  %v3494_v14 = vmax.f32 %v3492_v22, %v3493_v48  ;;  %v4949_v39 = vsub.f32 %v12491_v10, %v12584_v33 }
 0x43b   :  { %v3488_v34 = vrot.slane %v3487_v37, 1  ;;  %v5255_v44 = vmul.f32 1.442695, %v4948_v47  ;;  %v9344_v30 = vpop.eup %9343  ;;  %9359 = vpow2.f32 %v5251_v15  ;;  %v15411_v53 = vcombine.low %v15407_v8, %v12466_v43 }
 0x43c   :  { %v12586_v29 = vmax.f32 %v3480_v62, %v3481_v25  ;;  %v15412_v0 = vcombine.high %v15407_v8, %v12466_v43  ;;  %v9346_v27 = vpop.eup %9345  ;;  %v7572_v49 = vmul.f32 0.6931472, %v9344_v30  ;;  %v8025_v26 = vadd.f32 %v7570_v1, %v12413_v13 }
 0x43d   :  { %v12590_v52 = vmax.f32 %v3487_v37, %v3488_v34  ;;  %v2516_v38 = vrot.slane %v15411_v53, %v10581_v63  ;;  %v3495_v18 = vrot.slane %v3494_v14, 1  ;;  %v9348_v24 = vpop.eup %9347  ;;  %v7574_v35 = vmul.f32 0.6931472, %v9346_v27  ;;  %v15413_v53 = vld [vmem:[#allocation6_spill] sm:$0xff] }
 0x43e   :  { %v2523_v59 = vrot.slane %v15412_v0, %v10581_v63  ;;  %v4950_v10 = vsub.f32 %v12512_v11, %v12586_v29  ;;  %9361 = vpow2.f32 %v5253_v16  ;;  %v5257_v36 = vmul.f32 1.442695, %v4949_v39  ;;  %v9350_v4 = vpop.eup %9349 }
 0x43f   :  { %v4951_v51 = vsub.f32 %v12494_v55, %v12590_v52  ;;  %v7576_v6 = vmul.f32 0.6931472, %v9348_v24  ;;  %v8026_v43 = vadd.f32 %v7572_v49, %v12417_v17  ;;  %v12606_v8 = vmax.f32 %v3494_v14, %v3495_v18  ;;  %v9352_v12 = vpop.eup %9351 }
 0x440   :  { %9363 = vpow2.f32 %v5255_v44  ;;  %v7578_v13 = vmul.f32 0.6931472, %v9350_v4  ;;  %v8027_v40 = vadd.f32 %v7574_v35, %v12426_v23  ;;  %v5259_v11 = vmul.f32 1.442695, %v4950_v10 }
 0x441   :  { %9365 = vpow2.f32 %v5257_v36  ;;  %v7580_v32 = vmul.f32 0.6931472, %v9352_v12  ;;  %v8028_v42 = vadd.f32 %v7576_v6, %v12430_v7  ;;  %v8537_v55 = vsel %vm8481_vm3, %v8026_v43, %v8025_v26 }
 0x442   :  { %v4952_v46 = vsub.f32 %v12516_v54, %v12606_v8  ;;  %v8029_v62 = vadd.f32 %v7578_v13, %v12434_v56  ;;  %v8538_v17 = vsel %vm8483_vm4, %v8027_v40, %v8537_v55  ;;  %9367 = vpow2.f32 %v5259_v11  ;;  %v9354_v37 = vpop.eup %9353  ;;  %v12620_v56 = vpop.permute.xlu0 %876 }
 0x443   :  { %v5261_v22 = vmul.f32 1.442695, %v4951_v51  ;;  %v8030_v41 = vadd.f32 %v7580_v32, %v12443_v57  ;;  %v8539_v23 = vsel %vm8485_vm5, %v8028_v42, %v8538_v17  ;;  %v2524_v58 = vcombine.low %v12326_v9, %v2516_v38  ;;  %v9356_v7 = vpop.eup %9355 }
 0x444   :  { %v5263_v47 = vmul.f32 1.442695, %v4952_v46  ;;  %v7582_v25 = vmul.f32 0.6931472, %v9354_v37  ;;  %v8540_v48 = vsel %vm8487_vm6, %v8029_v62, %v8539_v23  ;;  %v2525_v54 = vcombine.high %v12326_v9, %v2516_v38 }
 0x445   :  { %9369 = vpow2.f32 %v5261_v22  ;;  %v7584_v15 = vmul.f32 0.6931472, %v9356_v7  ;;  %v8541_v50 = vsel %vm8489_vm7, %v8030_v41, %v8540_v48  ;;  %v12624_v57 = vrot.slane %v2524_v58, %v10595_v3 }
 0x446   :  { %9371 = vpow2.f32 %v5263_v47  ;;  %v8031_v34 = vadd.f32 %v7582_v25, %v12452_v20  ;;  %v12628_v16 = vrot.slane %v2525_v54, %v10595_v3  ;;  %v2540_v44 = vcombine.low %v12333_v5, %v2523_v59  ;;  %v9358_v14 = vpop.eup %9357 }
 0x447   :  { %v2541_v1 = vcombine.high %v12333_v5, %v2523_v59  ;;  %v8032_v9 = vadd.f32 %v7584_v15, %v12456_v19  ;;  %v12635_v39 = vcombine.high %v12624_v57, %v15368_v60  ;;  %v4393_v30 = vsel %vm3104_vm2, %v12624_v57, -inf }
 0x448   :  { %v2440_v20 = vcombine.low %v15413_v53, %v12620_v56  ;;  %v8542_v38 = vsel %vm8491_vm8, %v8031_v34, %v8541_v50  ;;  %v6001_v0 = vsel %vm3104_vm2, %v9358_v14, 0.0  ;;  %v12644_v27 = vrot.slane %v2540_v44, %v10595_v3  ;;  %v9360_v19 = vpop.eup %9359 }
 0x449   :  { %v12647_v5 = vrot.slane %v2541_v1, %v10595_v3  ;;  %v8543_v59 = vsel %vm8493_vm9, %v8032_v9, %v8542_v38  ;;  %v6002_v49 = vrot.slane %v6001_v0, 4  ;;  %v12652_v26 = vcombine.high %v12628_v16, %v15368_v60 }
 0x44a   :  { %v4394_v18 = vrot.slane %v4393_v30, 4  ;;  %8752 = vst.msk [vmem:[%s15233_s3 + $0x38] sm:$0xff] %vm8744_vm10, %v8543_v59  ;;  %v6008_v10 = vsel %vm3104_vm2, %v9360_v19, 0.0  ;;  %v12661_v24 = vcombine.high %v12644_v27, %v15368_v60  ;;  %v4400_v51 = vsel %vm3104_vm2, %v12635_v39, -inf }
 0x44b   :  { %v12665_v35 = vcombine.high %v12647_v5, %v15368_v60  ;;  %v9362_v36 = vpop.eup %9361  ;;  %v6003_v4 = vadd.f32 %v6002_v49, %v6001_v0  ;;  %v6009_v6 = vrot.slane %v6008_v10, 4  ;;  %v4401_v12 = vrot.slane %v4400_v51, 4 }
 0x44c   :  { %v4395_v43 = vmax.f32 %v4393_v30, %v4394_v18  ;;  %v6015_v40 = vsel %vm3104_vm2, %v9362_v36, 0.0  ;;  %v12672_v11 = vsel %vm3104_vm2, %v12628_v16, -inf  ;;  %v12676_v32 = vsel %vm3104_vm2, %v12652_v26, -inf }
 0x44d   :  { %v9364_v13 = vpop.eup %9363  ;;  %v12680_v42 = vsel %vm3104_vm2, %v12644_v27, -inf  ;;  %v6004_v46 = vrot.slane %v6003_v4, 2  ;;  %v6010_v62 = vadd.f32 %v6009_v6, %v6008_v10  ;;  %v6016_v17 = vrot.slane %v6015_v40, 4 }
 0x44e   :  { %v9366_v55 = vpop.eup %9365  ;;  %v6022_v22 = vsel %vm3104_vm2, %v9364_v13, 0.0  ;;  %v4396_v23 = vrot.slane %v4395_v43, 2  ;;  %v4402_v47 = vmax.f32 %v4400_v51, %v4401_v12 }
 0x44f   :  { %v6023_v37 = vrot.slane %v6022_v22, 4  ;;  %v6029_v41 = vsel %vm3104_vm2, %v9366_v55, 0.0  ;;  %v9368_v58 = vpop.eup %9367  ;;  %v6005_v7 = vadd.f32 %v6004_v46, %v6003_v4  ;;  %v6011_v25 = vrot.slane %v6010_v62, 2 }
 0x450   :  { %v6017_v48 = vadd.f32 %v6016_v17, %v6015_v40  ;;  %v6030_v54 = vrot.slane %v6029_v41, 4  ;;  %v6036_v50 = vsel %vm3104_vm2, %v9368_v58, 0.0  ;;  %v4397_v34 = vmax.f32 %v4395_v43, %v4396_v23 }
 0x451   :  { %v6024_v15 = vadd.f32 %v6023_v37, %v6022_v22  ;;  %v4403_v44 = vrot.slane %v4402_v47, 2  ;;  %v6006_v14 = vrot.slane %v6005_v7, 1  ;;  %v6012_v9 = vadd.f32 %v6011_v25, %v6010_v62 }
 0x452   :  { %v9370_v1 = vpop.eup %9369  ;;  %v6018_v30 = vrot.slane %v6017_v48, 2  ;;  %v6031_v38 = vadd.f32 %v6030_v54, %v6029_v41  ;;  %v6037_v59 = vrot.slane %v6036_v50, 4  ;;  %v4398_v18 = vrot.slane %v4397_v34, 1 }
 0x453   :  { %v9372_v0 = vpop.eup %9371  ;;  %v6025_v19 = vrot.slane %v6024_v15, 2  ;;  %v6043_v49 = vsel %vm3104_vm2, %v9370_v1, 0.0  ;;  %v6007_v10 = vadd.f32 %v6006_v14, %v6005_v7  ;;  %v6013_v51 = vrot.slane %v6012_v9, 1 }
 0x454   :  { %v6019_v36 = vadd.f32 %v6018_v30, %v6017_v48  ;;  %v6032_v4 = vrot.slane %v6031_v38, 2  ;;  %v6038_v12 = vadd.f32 %v6037_v59, %v6036_v50  ;;  %v6044_v13 = vrot.slane %v6043_v49, 4 }
 0x455   :  { %v6026_v6 = vadd.f32 %v6025_v19, %v6024_v15  ;;  %v6050_v43 = vsel %vm3104_vm2, %v9372_v0, 0.0  ;;  %v6014_v40 = vadd.f32 %v6013_v51, %v6012_v9  ;;  %9373 = vlog2.f32 %v6007_v10 }
 0x456   :  { %v6020_v55 = vrot.slane %v6019_v36, 1  ;;  %v6033_v46 = vadd.f32 %v6032_v4, %v6031_v38  ;;  %v6051_v62 = vrot.slane %v6050_v43, 4  ;;  %v6039_v22 = vrot.slane %v6038_v12, 2 }
 0x457   :  { %v6027_v17 = vrot.slane %v6026_v6, 1  ;;  %v6045_v37 = vadd.f32 %v6044_v13, %v6043_v49  ;;  %9375 = vlog2.f32 %v6014_v40  ;;  %v12687_v54 = vmax.f32 %v4397_v34, %v4398_v18 }
 0x458   :  { %v6021_v41 = vadd.f32 %v6020_v55, %v6019_v36  ;;  %v6034_v23 = vrot.slane %v6033_v46, 1  ;;  %v6052_v58 = vadd.f32 %v6051_v62, %v6050_v43  ;;  %v6040_v25 = vadd.f32 %v6039_v22, %v6038_v12 }
 0x459   :  { %v6028_v7 = vadd.f32 %v6027_v17, %v6026_v6  ;;  %v6046_v48 = vrot.slane %v6045_v37, 2  ;;  %v4404_v1 = vmax.f32 %v4402_v47, %v4403_v44  ;;  %v4408_v30 = vrot.slane %v12672_v11, 4 }
 0x45a   :  { %v6035_v15 = vadd.f32 %v6034_v23, %v6033_v46  ;;  %v6053_v50 = vrot.slane %v6052_v58, 2  ;;  %9377 = vlog2.f32 %v6021_v41  ;;  %v6041_v14 = vrot.slane %v6040_v25, 1  ;;  %v12703_v23 = vpop.permute.xlu1 %658 }
 0x45b   :  { %v6047_v9 = vadd.f32 %v6046_v48, %v6045_v37  ;;  %9379 = vlog2.f32 %v6028_v7  ;;  %v4405_v0 = vrot.slane %v4404_v1, 1  ;;  %v4415_v19 = vrot.slane %v12676_v32, 4 }
 0x45c   :  { %v6054_v38 = vadd.f32 %v6053_v50, %v6052_v58  ;;  %9381 = vlog2.f32 %v6035_v15  ;;  %v6042_v59 = vadd.f32 %v6041_v14, %v6040_v25  ;;  %v4409_v10 = vmax.f32 %v12672_v11, %v4408_v30 }
 0x45d   :  { %v6048_v49 = vrot.slane %v6047_v9, 1  ;;  %v4422_v34 = vrot.slane %v12680_v42, 4  ;;  %v12693_v51 = vmax.f32 %v4404_v1, %v4405_v0  ;;  %v4416_v47 = vmax.f32 %v12676_v32, %v4415_v19 }
 0x45e   :  { %v6055_v18 = vrot.slane %v6054_v38, 1  ;;  %v4428_v44 = vsel %vm3104_vm2, %v12661_v24, -inf  ;;  %9383 = vlog2.f32 %v6042_v59  ;;  %v4410_v4 = vrot.slane %v4409_v10, 2 }
 0x45f   :  { %v6049_v36 = vadd.f32 %v6048_v49, %v6047_v9  ;;  %v4423_v6 = vmax.f32 %v12680_v42, %v4422_v34  ;;  %v4417_v13 = vrot.slane %v4416_v47, 2  ;;  %v4429_v43 = vrot.slane %v4428_v44, 4 }
 0x460   :  { %v6056_v12 = vadd.f32 %v6055_v18, %v6054_v38  ;;  %v4435_v11 = vsel %vm3104_vm2, %v12647_v5, -inf  ;;  %v4411_v40 = vmax.f32 %v4409_v10, %v4410_v4  ;;  %v4442_v17 = vsel %vm3104_vm2, %v12665_v35, -inf }
 0x461   :  { %9385 = vlog2.f32 %v6049_v36  ;;  %v4424_v55 = vrot.slane %v4423_v6, 2  ;;  %v4436_v46 = vrot.slane %v4435_v11, 4  ;;  %v4418_v32 = vmax.f32 %v4416_v47, %v4417_v13 }
 0x462   :  { %9387 = vlog2.f32 %v6056_v12  ;;  %v4430_v62 = vmax.f32 %v4428_v44, %v4429_v43  ;;  %v4412_v22 = vrot.slane %v4411_v40, 1  ;;  %v4443_v42 = vrot.slane %v4442_v17, 4  ;;  %v9374_v58 = vpop.eup %9373 }
 0x463   :  { %v4425_v37 = vmax.f32 %v4423_v6, %v4424_v55  ;;  %v4437_v41 = vmax.f32 %v4435_v11, %v4436_v46  ;;  %v4419_v7 = vrot.slane %v4418_v32, 1  ;;  %v5081_v48 = vsub.f32 %v12624_v57, %v12687_v54  ;;  %v12719_v6 = vpop.permute.xlu0 %656 }
 0x464   :  { %v4431_v25 = vrot.slane %v4430_v62, 2  ;;  %v5082_v15 = vsub.f32 %v12635_v39, %v12693_v51  ;;  %v9376_v50 = vpop.eup %9375  ;;  %v7554_v1 = vmul.f32 0.6931472, %v9374_v58  ;;  %v12709_v14 = vmax.f32 %v4411_v40, %v4412_v22  ;;  %v12725_v40 = vpop.permute.xlu1 %690 }
 0x465   :  { %v4426_v9 = vrot.slane %v4425_v37, 1  ;;  %v4438_v30 = vrot.slane %v4437_v41, 2  ;;  %v7556_v38 = vmul.f32 0.6931472, %v9376_v50  ;;  %v12711_v0 = vmax.f32 %v4418_v32, %v4419_v7 }
 0x466   :  { %v4432_v19 = vmax.f32 %v4430_v62, %v4431_v25  ;;  %v4444_v59 = vmax.f32 %v4442_v17, %v4443_v42  ;;  %v8017_v10 = vadd.f32 %v7554_v1, %v12551_v61  ;;  %v5083_v39 = vsub.f32 %v12628_v16, %v12709_v14 }
 0x467   :  { %v9378_v49 = vpop.eup %9377  ;;  %v12714_v34 = vmax.f32 %v4425_v37, %v4426_v9  ;;  %v4439_v57 = vmax.f32 %v4437_v41, %v4438_v30  ;;  %v8018_v44 = vadd.f32 %v7556_v38, %v12555_v2  ;;  %v5084_v61 = vsub.f32 %v12652_v26, %v12711_v0 }
 0x468   :  { %v9380_v18 = vpop.eup %9379  ;;  %v7558_v47 = vmul.f32 0.6931472, %v9378_v49  ;;  %v4433_v36 = vrot.slane %v4432_v19, 1  ;;  %v4445_v4 = vrot.slane %v4444_v59, 2  ;;  %v5521_v22 = vmul.f32 1.442695, %v5081_v48  ;;  %v755_v38 = vpop.permute.xlu1 %754 }
 0x469   :  { %v9382_v12 = vpop.eup %9381  ;;  %v7560_v13 = vmul.f32 0.6931472, %v9380_v18  ;;  %v4440_v43 = vrot.slane %v4439_v57, 1  ;;  %v5085_v11 = vsub.f32 %v12644_v27, %v12714_v34  ;;  %v8530_v2 = vsel %vm8481_vm3, %v8018_v44, %v8017_v10 }
 0x46a   :  { %v7562_v16 = vmul.f32 0.6931472, %v9382_v12  ;;  %v8019_v55 = vadd.f32 %v7558_v47, %v12562_v31  ;;  %v12729_v46 = vmax.f32 %v4432_v19, %v4433_v36  ;;  %v4446_v17 = vmax.f32 %v4444_v59, %v4445_v4 }
 0x46b   :  { %v8020_v32 = vadd.f32 %v7560_v13, %v12575_v45  ;;  %v12732_v62 = vmax.f32 %v4439_v57, %v4440_v43  ;;  %v9384_v37 = vpop.eup %9383  ;;  %v5523_v42 = vmul.f32 1.442695, %v5082_v15  ;;  %9389 = vpow2.f32 %v5521_v22 }
 0x46c   :  { %v8021_v26 = vadd.f32 %v7562_v16, %v12584_v33  ;;  %v8531_v27 = vsel %vm8483_vm4, %v8019_v55, %v8530_v2  ;;  %v5086_v41 = vsub.f32 %v12661_v24, %v12729_v46  ;;  %v7564_v31 = vmul.f32 0.6931472, %v9384_v37  ;;  %v12742_v33 = vpop.permute.xlu0 %688  ;;  %v15417_v37 = vld [vmem:[#allocation16_spill] sm:$0xff] }
 0x46d   :  { %v8532_v58 = vsel %vm8485_vm5, %v8020_v32, %v8531_v27  ;;  %v4447_v7 = vrot.slane %v4446_v17, 1  ;;  %v5087_v45 = vsub.f32 %v12647_v5, %v12732_v62  ;;  %v5525_v48 = vmul.f32 1.442695, %v5083_v39  ;;  %15414 = vst [vmem:[#allocation9_spill] sm:$0xff] %v12742_v33 }
 0x46e   :  { %v9386_v25 = vpop.eup %9385  ;;  %v8533_v50 = vsel %vm8487_vm6, %v8021_v26, %v8532_v58  ;;  %v5527_v1 = vmul.f32 1.442695, %v5084_v61  ;;  %v8022_v24 = vadd.f32 %v7564_v31, %v12586_v29  ;;  %9391 = vpow2.f32 %v5523_v42 }
 0x46f   :  { %v9388_v9 = vpop.eup %9387  ;;  %v7566_v30 = vmul.f32 0.6931472, %v9386_v25  ;;  %v12745_v15 = vmax.f32 %v4446_v17, %v4447_v7  ;;  %9393 = vpow2.f32 %v5525_v48  ;;  %v5529_v59 = vmul.f32 1.442695, %v5085_v11 }
 0x470   :  { %v7568_v19 = vmul.f32 0.6931472, %v9388_v9  ;;  %v5531_v5 = vmul.f32 1.442695, %v5086_v41  ;;  %v8534_v10 = vsel %vm8489_vm7, %v8022_v24, %v8533_v50  ;;  %9395 = vpow2.f32 %v5527_v1  ;;  %v12762_v12 = vpop.permute.xlu0 %752 }
 0x471   :  { %v8023_v49 = vadd.f32 %v7566_v30, %v12590_v52  ;;  %v5088_v57 = vsub.f32 %v12665_v35, %v12745_v15  ;;  %9397 = vpow2.f32 %v5529_v59  ;;  %v5533_v29 = vmul.f32 1.442695, %v5087_v45 }
 0x472   :  { %v8024_v39 = vadd.f32 %v7568_v19, %v12606_v8  ;;  %v2441_v18 = vcombine.high %v15413_v53, %v12620_v56  ;;  %9399 = vpow2.f32 %v5531_v5  ;;  %v2448_v52 = vrot.slane %v2440_v20, %v10581_v63  ;;  %v15415_v8 = vld [vmem:[#allocation14_spill] sm:$0xff]  ;;  %v12771_v20 = vpop.permute.xlu1 %786 }
 0x473   :  { %v8535_v47 = vsel %vm8491_vm8, %v8023_v49, %v8534_v10  ;;  %v5535_v44 = vmul.f32 1.442695, %v5088_v57  ;;  %9401 = vpow2.f32 %v5533_v29  ;;  %v1540_v4 = vcombine.low %v15415_v8, %v755_v38 }
 0x474   :  { %v8536_v36 = vsel %vm8493_vm9, %v8024_v39, %v8535_v47  ;;  %v2455_v35 = vrot.slane %v2441_v18, %v10581_v63  ;;  %v2456_v13 = vcombine.low %v12340_v21, %v2448_v52  ;;  %v2457_v56 = vcombine.high %v12340_v21, %v2448_v52  ;;  %v15416_v21 = vld [vmem:[#allocation15_spill] sm:$0xff] }
 0x475   :  { %8751 = vst.msk [vmem:[%s15233_s3 + $0x30] sm:$0xff] %vm8744_vm10, %v8536_v36  ;;  %9403 = vpow2.f32 %v5535_v44  ;;  %v1541_v53 = vcombine.high %v15415_v8, %v755_v38  ;;  %v12776_v11 = vrot.slane %v1540_v4, %v10581_v63 }
 0x476   :  { %v2472_v43 = vcombine.low %v12346_v28, %v2455_v35  ;;  %v2473_v61 = vcombine.high %v12346_v28, %v2455_v35  ;;  %v12779_v16 = vrot.slane %v2456_v13, %v10595_v3  ;;  %v12782_v55 = vrot.slane %v2457_v56, %v10595_v3 }
 0x477   :  { %v12785_v2 = vrot.slane %v1541_v53, %v10581_v63 }
 0x478   :  { %v12790_v17 = vrot.slane %v2472_v43, %v10595_v3  ;;  %v12793_v28 = vrot.slane %v2473_v61, %v10595_v3  ;;  %v12801_v27 = vcombine.high %v12779_v16, %v15368_v60  ;;  %v12805_v41 = vcombine.high %v12782_v55, %v15368_v60  ;;  %v9390_v50 = vpop.eup %9389 }
 0x479   :  { %v4337_v42 = vsel %vm3104_vm2, %v12779_v16, -inf  ;;  %v4351_v31 = vsel %vm3104_vm2, %v12782_v55, -inf  ;;  %v6953_v38 = vsel %vm3104_vm2, %v9390_v50, 0.0 }
 0x47a   :  { %v12813_v58 = vcombine.high %v12790_v17, %v15368_v60  ;;  %v12817_v7 = vcombine.high %v12793_v28, %v15368_v60  ;;  %v4338_v45 = vrot.slane %v4337_v42, 4  ;;  %v4352_v25 = vrot.slane %v4351_v31, 4 }
 0x47b   :  { %v4344_v48 = vsel %vm3104_vm2, %v12801_v27, -inf  ;;  %v12823_v1 = vsel %vm3104_vm2, %v12805_v41, -inf  ;;  %v12827_v9 = vsel %vm3104_vm2, %v12790_v17, -inf  ;;  %v12831_v30 = vsel %vm3104_vm2, %v12793_v28, -inf  ;;  %v9392_v24 = vpop.eup %9391 }
 0x47c   :  { %v4339_v19 = vmax.f32 %v4337_v42, %v4338_v45  ;;  %v4345_v59 = vrot.slane %v4344_v48, 4  ;;  %v12834_v5 = vmax.f32 %v4351_v31, %v4352_v25  ;;  %v9394_v49 = vpop.eup %9393  ;;  %v6954_v10 = vrot.slane %v6953_v38, 4 }
 0x47d   :  { %v6960_v57 = vsel %vm3104_vm2, %v9392_v24, 0.0  ;;  %v9396_v18 = vpop.eup %9395  ;;  %v6967_v44 = vsel %vm3104_vm2, %v9394_v49, 0.0 }
 0x47e   :  { %v6961_v47 = vrot.slane %v6960_v57, 4  ;;  %v4340_v52 = vrot.slane %v4339_v19, 2  ;;  %v12840_v36 = vmax.f32 %v4344_v48, %v4345_v59  ;;  %v9398_v35 = vpop.eup %9397  ;;  %v6955_v8 = vadd.f32 %v6954_v10, %v6953_v38 }
 0x47f   :  { %v6968_v4 = vrot.slane %v6967_v44, 4  ;;  %v6974_v13 = vsel %vm3104_vm2, %v9396_v18, 0.0  ;;  %v4354_v56 = vrot.slane %v12834_v5, 2  ;;  %v9400_v53 = vpop.eup %9399  ;;  %v6981_v42 = vsel %vm3104_vm2, %v9398_v35, 0.0 }
 0x480   :  { %v6962_v43 = vadd.f32 %v6961_v47, %v6960_v57  ;;  %v6975_v61 = vrot.slane %v6974_v13, 4  ;;  %v4341_v31 = vmax.f32 %v4339_v19, %v4340_v52  ;;  %v9402_v45 = vpop.eup %9401  ;;  %v6956_v25 = vrot.slane %v6955_v8, 2 }
 0x481   :  { %v6969_v50 = vadd.f32 %v6968_v4, %v6967_v44  ;;  %v6982_v24 = vrot.slane %v6981_v42, 4  ;;  %v6988_v48 = vsel %vm3104_vm2, %v9400_v53, 0.0  ;;  %v6995_v18 = vsel %vm3104_vm2, %v9402_v45, 0.0 }
 0x482   :  { %v9404_v59 = vpop.eup %9403  ;;  %v6963_v49 = vrot.slane %v6962_v43, 2  ;;  %v6976_v38 = vadd.f32 %v6975_v61, %v6974_v13  ;;  %v6989_v10 = vrot.slane %v6988_v48, 4  ;;  %v6957_v26 = vadd.f32 %v6956_v25, %v6955_v8 }
 0x483   :  { %v6970_v22 = vrot.slane %v6969_v50, 2  ;;  %v6983_v32 = vadd.f32 %v6982_v24, %v6981_v42  ;;  %v6996_v57 = vrot.slane %v6995_v18, 4  ;;  %v7002_v19 = vsel %vm3104_vm2, %v9404_v59, 0.0 }
 0x484   :  { %v6964_v47 = vadd.f32 %v6963_v49, %v6962_v43  ;;  %v6977_v29 = vrot.slane %v6976_v38, 2  ;;  %v6990_v35 = vadd.f32 %v6989_v10, %v6988_v48  ;;  %v6958_v52 = vrot.slane %v6957_v26, 1 }
 0x485   :  { %v6971_v44 = vadd.f32 %v6970_v22, %v6969_v50  ;;  %v6984_v4 = vrot.slane %v6983_v32, 2  ;;  %v6997_v39 = vadd.f32 %v6996_v57, %v6995_v18  ;;  %v7003_v13 = vrot.slane %v7002_v19, 4 }
 0x486   :  { %v6965_v53 = vrot.slane %v6964_v47, 1  ;;  %v6978_v33 = vadd.f32 %v6977_v29, %v6976_v38  ;;  %v6991_v60 = vrot.slane %v6990_v35, 2  ;;  %v6959_v61 = vadd.f32 %v6958_v52, %v6957_v26 }
 0x487   :  { %v6972_v3 = vrot.slane %v6971_v44, 1  ;;  %v6985_v45 = vadd.f32 %v6984_v4, %v6983_v32  ;;  %v6998_v8 = vrot.slane %v6997_v39, 2  ;;  %v7004_v43 = vadd.f32 %v7003_v13, %v7002_v19 }
 0x488   :  { %v6966_v25 = vadd.f32 %v6965_v53, %v6964_v47  ;;  %v6979_v42 = vrot.slane %v6978_v33, 1  ;;  %v6992_v24 = vadd.f32 %v6991_v60, %v6990_v35  ;;  %9405 = vlog2.f32 %v6959_v61 }
 0x489   :  { %v6973_v49 = vadd.f32 %v6972_v3, %v6971_v44  ;;  %v6986_v48 = vrot.slane %v6985_v45, 1  ;;  %v6999_v10 = vadd.f32 %v6998_v8, %v6997_v39  ;;  %v7005_v50 = vrot.slane %v7004_v43, 2 }
 0x48a   :  { %v6980_v59 = vadd.f32 %v6979_v42, %v6978_v33  ;;  %v6993_v22 = vrot.slane %v6992_v24, 1  ;;  %9407 = vlog2.f32 %v6966_v25  ;;  %v4342_v38 = vrot.slane %v4341_v31, 1 }
 0x48b   :  { %v6987_v18 = vadd.f32 %v6986_v48, %v6985_v45  ;;  %v7000_v29 = vrot.slane %v6999_v10, 1  ;;  %9409 = vlog2.f32 %v6973_v49  ;;  %v7006_v57 = vadd.f32 %v7005_v50, %v7004_v43 }
 0x48c   :  { %v6994_v26 = vadd.f32 %v6993_v22, %v6992_v24  ;;  %9411 = vlog2.f32 %v6980_v59  ;;  %v4347_v32 = vrot.slane %v12840_v36, 2  ;;  %v12849_v60 = vmax.f32 %v4341_v31, %v4342_v38 }
 0x48d   :  { %v7001_v47 = vadd.f32 %v7000_v29, %v6999_v10  ;;  %9413 = vlog2.f32 %v6987_v18  ;;  %v4355_v3 = vmax.f32 %v12834_v5, %v4354_v56  ;;  %v7007_v39 = vrot.slane %v7006_v57, 1 }
 0x48e   :  { %9415 = vlog2.f32 %v6994_v26  ;;  %v4348_v33 = vmax.f32 %v12840_v36, %v4347_v32  ;;  %v15418_v35 = vrot.slane %v12823_v1, 4  ;;  %v15419_v44 = vrot.slane %v12827_v9, 4 }
 0x48f   :  { %9417 = vlog2.f32 %v7001_v47  ;;  %v4356_v52 = vrot.slane %v4355_v3, 1  ;;  %v4372_v31 = vsel %vm3104_vm2, %v12813_v58, -inf  ;;  %v7008_v53 = vadd.f32 %v7007_v39, %v7006_v57 }
 0x490   :  { %v4360_v19 = vmax.f32 %v12823_v1, %v15418_v35  ;;  %v4367_v4 = vmax.f32 %v12827_v9, %v15419_v44  ;;  %v4349_v13 = vrot.slane %v4348_v33, 1  ;;  %v4373_v56 = vrot.slane %v4372_v31, 4 }
 0x491   :  { %v12861_v61 = vmax.f32 %v4355_v3, %v4356_v52  ;;  %v4380_v45 = vrot.slane %v12831_v30, 4  ;;  %v4386_v1 = vsel %vm3104_vm2, %v12817_v7, -inf  ;;  %9419 = vlog2.f32 %v7008_v53 }
 0x492   :  { %v4361_v5 = vrot.slane %v4360_v19, 2  ;;  %v4368_v36 = vrot.slane %v4367_v4, 2  ;;  %v12866_v8 = vmax.f32 %v4348_v33, %v4349_v13  ;;  %v4374_v9 = vmax.f32 %v4372_v31, %v4373_v56 }
 0x493   :  { %v4381_v24 = vmax.f32 %v12831_v30, %v4380_v45  ;;  %v4387_v43 = vrot.slane %v4386_v1, 4  ;;  %v5073_v49 = vsub.f32 %v12779_v16, %v12849_v60  ;;  %v5075_v22 = vsub.f32 %v12782_v55, %v12861_v61 }
 0x494   :  { %v4362_v25 = vmax.f32 %v4360_v19, %v4361_v5  ;;  %v4369_v42 = vmax.f32 %v4367_v4, %v4368_v36  ;;  %v4375_v10 = vrot.slane %v4374_v9, 2  ;;  %v5074_v59 = vsub.f32 %v12801_v27, %v12866_v8 }
 0x495   :  { %v4382_v18 = vrot.slane %v4381_v24, 2  ;;  %v4388_v29 = vmax.f32 %v4386_v1, %v4387_v43  ;;  %v5505_v38 = vmul.f32 1.442695, %v5073_v49  ;;  %v9406_v26 = vpop.eup %9405  ;;  %v5509_v47 = vmul.f32 1.442695, %v5075_v22 }
 0x496   :  { %v4363_v48 = vrot.slane %v4362_v25, 1  ;;  %v4370_v50 = vrot.slane %v4369_v42, 1  ;;  %v4376_v30 = vmax.f32 %v4374_v9, %v4375_v10  ;;  %v5507_v32 = vmul.f32 1.442695, %v5074_v59 }
 0x497   :  { %v9408_v3 = vpop.eup %9407  ;;  %v7826_v16 = vmul.f32 0.6931472, %v9406_v26  ;;  %v4383_v33 = vmax.f32 %v4381_v24, %v4382_v18  ;;  %v4389_v35 = vrot.slane %v4388_v29, 2  ;;  %9421 = vpow2.f32 %v5505_v38 }
 0x498   :  { %v12875_v57 = vmax.f32 %v4362_v25, %v4363_v48  ;;  %v12877_v39 = vmax.f32 %v4369_v42, %v4370_v50  ;;  %v9410_v27 = vpop.eup %9409  ;;  %v7828_v19 = vmul.f32 0.6931472, %v9408_v3  ;;  %v4377_v52 = vrot.slane %v4376_v30, 1 }
 0x499   :  { %v9412_v44 = vpop.eup %9411  ;;  %v7830_v4 = vmul.f32 0.6931472, %v9410_v27  ;;  %v8153_v31 = vadd.f32 %v7826_v16, %v12687_v54  ;;  %v4384_v53 = vrot.slane %v4383_v33, 1  ;;  %v4390_v13 = vmax.f32 %v4388_v29, %v4389_v35  ;;  %v851_v29 = vpop.permute.xlu1 %850 }
 0x49a   :  { %v5076_v55 = vsub.f32 %v12805_v41, %v12875_v57  ;;  %v9414_v5 = vpop.eup %9413  ;;  %v7832_v56 = vmul.f32 0.6931472, %v9412_v44  ;;  %v8154_v36 = vadd.f32 %v7828_v19, %v12693_v51  ;;  %v12883_v45 = vmax.f32 %v4376_v30, %v4377_v52 }
 0x49b   :  { %v5077_v1 = vsub.f32 %v12790_v17, %v12877_v39  ;;  %v9416_v25 = vpop.eup %9415  ;;  %v7834_v9 = vmul.f32 0.6931472, %v9414_v5  ;;  %v8155_v41 = vadd.f32 %v7830_v4, %v12709_v14  ;;  %v12888_v42 = vmax.f32 %v4383_v33, %v4384_v53  ;;  %v12898_v14 = vpop.permute.xlu0 %784 }
 0x49c   :  { %v4391_v24 = vrot.slane %v4390_v13, 1  ;;  %v9418_v43 = vpop.eup %9417  ;;  %v7836_v54 = vmul.f32 0.6931472, %v9416_v25  ;;  %v8156_v49 = vadd.f32 %v7832_v56, %v12711_v0  ;;  %v8649_v48 = vsel %vm8481_vm3, %v8154_v36, %v8153_v31  ;;  %15420 = vst [vmem:[#allocation10_spill] sm:$0xff] %v12898_v14 }
 0x49d   :  { %v5078_v51 = vsub.f32 %v12813_v58, %v12883_v45  ;;  %v7838_v10 = vmul.f32 0.6931472, %v9418_v43  ;;  %v8157_v59 = vadd.f32 %v7834_v9, %v12714_v34  ;;  %v8650_v17 = vsel %vm8483_vm4, %v8155_v41, %v8649_v48 }
 0x49e   :  { %v12896_v22 = vmax.f32 %v4390_v13, %v4391_v24  ;;  %v8158_v50 = vadd.f32 %v7836_v54, %v12729_v46  ;;  %v8651_v18 = vsel %vm8485_vm5, %v8156_v49, %v8650_v17  ;;  %v5079_v0 = vsub.f32 %v12793_v28, %v12888_v42  ;;  %v9420_v38 = vpop.eup %9419  ;;  %v15426_v17 = vld [vmem:[#allocation22_spill] sm:$0xff] }
 0x49f   :  { %9423 = vpow2.f32 %v5507_v32  ;;  %v8159_v58 = vadd.f32 %v7838_v10, %v12732_v62  ;;  %v8652_v34 = vsel %vm8487_vm6, %v8157_v59, %v8651_v18  ;;  %v7840_v30 = vmul.f32 0.6931472, %v9420_v38  ;;  %v849_v31 = vpop.permute.xlu0 %848 }
 0x4a0   :  { %v5080_v26 = vsub.f32 %v12817_v7, %v12896_v22  ;;  %9425 = vpow2.f32 %v5509_v47  ;;  %v8653_v3 = vsel %vm8489_vm7, %v8158_v50, %v8652_v34  ;;  %v5511_v46 = vmul.f32 1.442695, %v5076_v55 }
 0x4a1   :  { %v5513_v16 = vmul.f32 1.442695, %v5077_v1  ;;  %v8654_v33 = vsel %vm8491_vm8, %v8159_v58, %v8653_v3  ;;  %v5515_v35 = vmul.f32 1.442695, %v5078_v51  ;;  %v5517_v28 = vmul.f32 1.442695, %v5079_v0 }
 0x4a2   :  { %v15421_v32 = vcombine.low %v15416_v21, %v12762_v12  ;;  %v8160_v27 = vadd.f32 %v7840_v30, %v12745_v15  ;;  %9427 = vpow2.f32 %v5511_v46  ;;  %v5519_v7 = vmul.f32 1.442695, %v5080_v26  ;;  %v15424_v15 = vld [vmem:[#allocation17_spill] sm:$0xff] }
 0x4a3   :  { %v2629_v47 = vcombine.high %v15417_v37, %v12771_v20  ;;  %9429 = vpow2.f32 %v5513_v16  ;;  %v15422_v19 = vcombine.high %v15416_v21, %v12762_v12  ;;  %v15423_v55 = vcombine.low %v15417_v37, %v12771_v20  ;;  %v12937_v21 = vpop.permute.xlu1 %882 }
 0x4a4   :  { %v12914_v62 = vrot.slane %v15421_v32, %v10581_v63  ;;  %v2560_v4 = vcombine.low %v15424_v15, %v12898_v14  ;;  %v8655_v53 = vsel %vm8493_vm9, %v8160_v27, %v8654_v33  ;;  %9431 = vpow2.f32 %v5515_v35  ;;  %v9422_v5 = vpop.eup %9421 }
 0x4a5   :  { %v12923_v52 = vrot.slane %v15422_v19, %v10581_v63  ;;  %v12929_v44 = vrot.slane %v15423_v55, %v10581_v63  ;;  %v1556_v12 = vcombine.low %v12703_v23, %v851_v29  ;;  %8768 = vst.msk [vmem:[%s15233_s3 + $0xb8] sm:$0xff] %vm8744_vm10, %v8655_v53  ;;  %9433 = vpow2.f32 %v5517_v28 }
 0x4a6   :  { %v12944_v20 = vrot.slane %v2629_v47, %v10581_v63  ;;  %v12947_v37 = vrot.slane %v2560_v4, %v10581_v63  ;;  %v1557_v56 = vcombine.high %v12703_v23, %v851_v29  ;;  %9435 = vpow2.f32 %v5519_v7 }
 0x4a7   :  { %v6897_v36 = vsel %vm3104_vm2, %v9422_v5, 0.0  ;;  %v1564_v1 = vrot.slane %v1556_v12, %v10581_v63  ;;  %v1488_v25 = vcombine.low %v12719_v6, %v849_v31  ;;  %v1489_v24 = vcombine.high %v12719_v6, %v849_v31 }
 0x4a8   :  { %15425 = vst [vmem:[#allocation11_spill] sm:$0xff] %v12947_v37  ;;  %v6898_v9 = vrot.slane %v6897_v36, 4  ;;  %v1571_v41 = vrot.slane %v1557_v56, %v10581_v63  ;;  %v15427_v3 = vmov 0.0  }
 0x4a9   :  { %v1572_v54 = vcombine.low %v12776_v11, %v1564_v1  ;;  %v1573_v49 = vcombine.high %v12776_v11, %v1564_v1  ;;  %v12960_v23 = vrot.slane %v1488_v25, %v10581_v63  ;;  %v12967_v6 = vrot.slane %v1489_v24, %v10581_v63 }
 0x4aa   :  { %v6899_v51 = vadd.f32 %v6898_v9, %v6897_v36  ;;  %v1588_v10 = vcombine.low %v12785_v2, %v1571_v41  ;;  %v1589_v59 = vcombine.high %v12785_v2, %v1571_v41 }
 0x4ab   :  { %v12970_v50 = vrot.slane %v1572_v54, %v15426_v17  ;;  %v12973_v18 = vrot.slane %v1573_v49, %v15426_v17 }
 0x4ac   :  { %v9424_v29 = vpop.eup %9423  ;;  %v6900_v38 = vrot.slane %v6899_v51, 2  ;;  %v12980_v58 = vrot.slane %v1588_v10, %v15426_v17  ;;  %v12983_v2 = vrot.slane %v1589_v59, %v15426_v17 }
 0x4ad   :  { %v9426_v26 = vpop.eup %9425  ;;  %v6904_v30 = vsel %vm3104_vm2, %v9424_v29, 0.0  ;;  %v12990_v46 = vcombine.high %v12970_v50, %v15427_v3  ;;  %v12994_v16 = vcombine.high %v12973_v18, %v15427_v3  ;;  %v3609_v33 = vsel %vm3104_vm2, %v12970_v50, -inf }
 0x4ae   :  { %v6901_v35 = vadd.f32 %v6900_v38, %v6899_v51  ;;  %v6905_v28 = vrot.slane %v6904_v30, 4  ;;  %v6911_v32 = vsel %vm3104_vm2, %v9426_v26, 0.0  ;;  %v13001_v27 = vcombine.high %v12980_v58, %v15427_v3 }
 0x4af   :  { %v6912_v7 = vrot.slane %v6911_v32, 4  ;;  %v13005_v47 = vcombine.high %v12983_v2, %v15427_v3  ;;  %v3610_v19 = vrot.slane %v3609_v33, 4  ;;  %v3616_v55 = vsel %vm3104_vm2, %v12990_v46, -inf  ;;  %v9428_v4 = vpop.eup %9427 }
 0x4b0   :  { %v6902_v31 = vrot.slane %v6901_v35, 1  ;;  %v6906_v53 = vadd.f32 %v6905_v28, %v6904_v30  ;;  %v3617_v12 = vrot.slane %v3616_v55, 4  ;;  %v3623_v5 = vsel %vm3104_vm2, %v12973_v18, -inf  ;;  %v9430_v56 = vpop.eup %9429 }
 0x4b1   :  { %v6913_v36 = vadd.f32 %v6912_v7, %v6911_v32  ;;  %v6918_v1 = vsel %vm3104_vm2, %v9428_v4, 0.0  ;;  %v3611_v25 = vmax.f32 %v3609_v33, %v3610_v19  ;;  %v3624_v9 = vrot.slane %v3623_v5, 4  ;;  %v9432_v41 = vpop.eup %9431 }
 0x4b2   :  { %v6903_v24 = vadd.f32 %v6902_v31, %v6901_v35  ;;  %v6907_v54 = vrot.slane %v6906_v53, 2  ;;  %v6919_v49 = vrot.slane %v6918_v1, 4  ;;  %v6925_v51 = vsel %vm3104_vm2, %v9430_v56, 0.0  ;;  %v9434_v10 = vpop.eup %9433 }
 0x4b3   :  { %v6914_v59 = vrot.slane %v6913_v36, 2  ;;  %v6926_v29 = vrot.slane %v6925_v51, 4  ;;  %v6932_v38 = vsel %vm3104_vm2, %v9432_v41, 0.0  ;;  %v3612_v26 = vrot.slane %v3611_v25, 2  ;;  %v9436_v30 = vpop.eup %9435 }
 0x4b4   :  { %v6908_v28 = vadd.f32 %v6907_v54, %v6906_v53  ;;  %v6920_v13 = vadd.f32 %v6919_v49, %v6918_v1  ;;  %v6933_v32 = vrot.slane %v6932_v38, 4  ;;  %v6939_v7 = vsel %vm3104_vm2, %v9434_v10, 0.0 }
 0x4b5   :  { %v6915_v33 = vadd.f32 %v6914_v59, %v6913_v36  ;;  %v6927_v19 = vadd.f32 %v6926_v29, %v6925_v51  ;;  %v6940_v4 = vrot.slane %v6939_v7, 4  ;;  %v6946_v35 = vsel %vm3104_vm2, %v9436_v30, 0.0 }
 0x4b6   :  { %v6909_v31 = vrot.slane %v6908_v28, 1  ;;  %v6921_v48 = vrot.slane %v6920_v13, 2  ;;  %v6934_v56 = vadd.f32 %v6933_v32, %v6932_v38  ;;  %v6947_v43 = vrot.slane %v6946_v35, 4 }
 0x4b7   :  { %v6916_v34 = vrot.slane %v6915_v33, 1  ;;  %v6928_v0 = vrot.slane %v6927_v19, 2  ;;  %v6941_v11 = vadd.f32 %v6940_v4, %v6939_v7  ;;  %9437 = vlog2.f32 %v6903_v24 }
 0x4b8   :  { %v6910_v41 = vadd.f32 %v6909_v31, %v6908_v28  ;;  %v6922_v37 = vadd.f32 %v6921_v48, %v6920_v13  ;;  %v6935_v53 = vrot.slane %v6934_v56, 2  ;;  %v6948_v1 = vadd.f32 %v6947_v43, %v6946_v35 }
 0x4b9   :  { %v6917_v54 = vadd.f32 %v6916_v34, %v6915_v33  ;;  %v6929_v49 = vadd.f32 %v6928_v0, %v6927_v19  ;;  %v6942_v10 = vrot.slane %v6941_v11, 2  ;;  %v3613_v36 = vmax.f32 %v3611_v25, %v3612_v26 }
 0x4ba   :  { %v6923_v51 = vrot.slane %v6922_v37, 1  ;;  %v6936_v59 = vadd.f32 %v6935_v53, %v6934_v56  ;;  %v6949_v29 = vrot.slane %v6948_v1, 2  ;;  %9439 = vlog2.f32 %v6910_v41 }
 0x4bb   :  { %v6930_v30 = vrot.slane %v6929_v49, 1  ;;  %v6943_v14 = vadd.f32 %v6942_v10, %v6941_v11  ;;  %9441 = vlog2.f32 %v6917_v54  ;;  %v3614_v38 = vrot.slane %v3613_v36, 1 }
 0x4bc   :  { %v6924_v32 = vadd.f32 %v6923_v51, %v6922_v37  ;;  %v6937_v15 = vrot.slane %v6936_v59, 1  ;;  %v6950_v7 = vadd.f32 %v6949_v29, %v6948_v1  ;;  %v3618_v24 = vmax.f32 %v3616_v55, %v3617_v12 }
 0x4bd   :  { %v6931_v28 = vadd.f32 %v6930_v30, %v6929_v49  ;;  %v6944_v13 = vrot.slane %v6943_v14, 1  ;;  %v13016_v48 = vmax.f32 %v3613_v36, %v3614_v38  ;;  %v3625_v43 = vmax.f32 %v3623_v5, %v3624_v9 }
 0x4be   :  { %v6938_v0 = vadd.f32 %v6937_v15, %v6936_v59  ;;  %v6951_v34 = vrot.slane %v6950_v7, 1  ;;  %9443 = vlog2.f32 %v6924_v32  ;;  %v3619_v25 = vrot.slane %v3618_v24, 2 }
 0x4bf   :  { %v6945_v26 = vadd.f32 %v6944_v13, %v6943_v14  ;;  %9445 = vlog2.f32 %v6931_v28  ;;  %v3626_v33 = vrot.slane %v3625_v43, 2  ;;  %v3630_v11 = vsel %vm3104_vm2, %v12994_v16, -inf }
 0x4c0   :  { %v6952_v19 = vadd.f32 %v6951_v34, %v6950_v7  ;;  %9447 = vlog2.f32 %v6938_v0  ;;  %v3620_v37 = vmax.f32 %v3618_v24, %v3619_v25  ;;  %v3631_v4 = vrot.slane %v3630_v11, 4 }
 0x4c1   :  { %9449 = vlog2.f32 %v6945_v26  ;;  %v3627_v55 = vmax.f32 %v3625_v43, %v3626_v33  ;;  %v3637_v12 = vsel %vm3104_vm2, %v12980_v58, -inf  ;;  %v3644_v15 = vsel %vm3104_vm2, %v13001_v27, -inf }
 0x4c2   :  { %9451 = vlog2.f32 %v6952_v19  ;;  %v3621_v5 = vrot.slane %v3620_v37, 1  ;;  %v3632_v14 = vmax.f32 %v3630_v11, %v3631_v4  ;;  %v3638_v9 = vrot.slane %v3637_v12, 4 }
 0x4c3   :  { %v3628_v35 = vrot.slane %v3627_v55, 1  ;;  %v3645_v31 = vrot.slane %v3644_v15, 4  ;;  %v3651_v56 = vsel %vm3104_vm2, %v12983_v2, -inf  ;;  %v3658_v41 = vsel %vm3104_vm2, %v13005_v47, -inf }
 0x4c4   :  { %v9438_v53 = vpop.eup %9437  ;;  %v13028_v1 = vmax.f32 %v3620_v37, %v3621_v5  ;;  %v3633_v54 = vrot.slane %v3632_v14, 2  ;;  %v3639_v49 = vmax.f32 %v3637_v12, %v3638_v9  ;;  %v3652_v10 = vrot.slane %v3651_v56, 4 }
 0x4c5   :  { %v7810_v36 = vmul.f32 0.6931472, %v9438_v53  ;;  %v13030_v51 = vmax.f32 %v3627_v55, %v3628_v35  ;;  %v3646_v59 = vmax.f32 %v3644_v15, %v3645_v31  ;;  %v3659_v29 = vrot.slane %v3658_v41, 4 }
 0x4c6   :  { %v3634_v30 = vmax.f32 %v3632_v14, %v3633_v54  ;;  %v3640_v38 = vrot.slane %v3639_v49, 2  ;;  %v3653_v32 = vmax.f32 %v3651_v56, %v3652_v10  ;;  %v4969_v7 = vsub.f32 %v12970_v50, %v13016_v48 }
 0x4c7   :  { %v9440_v24 = vpop.eup %9439  ;;  %v8145_v28 = vadd.f32 %v7810_v36, %v12849_v60  ;;  %v3647_v13 = vrot.slane %v3646_v59, 2  ;;  %v3660_v43 = vmax.f32 %v3658_v41, %v3659_v29  ;;  %v4970_v0 = vsub.f32 %v12990_v46, %v13028_v1 }
 0x4c8   :  { %v9442_v34 = vpop.eup %9441  ;;  %v7812_v25 = vmul.f32 0.6931472, %v9440_v24  ;;  %v3635_v26 = vrot.slane %v3634_v30, 1  ;;  %v3641_v33 = vmax.f32 %v3639_v49, %v3640_v38  ;;  %v3654_v11 = vrot.slane %v3653_v32, 2 }
 0x4c9   :  { %v7814_v19 = vmul.f32 0.6931472, %v9442_v34  ;;  %v3648_v37 = vmax.f32 %v3646_v59, %v3647_v13  ;;  %v3661_v4 = vrot.slane %v3660_v43, 2  ;;  %v4971_v55 = vsub.f32 %v12973_v18, %v13030_v51 }
 0x4ca   :  { %v8146_v50 = vadd.f32 %v7812_v25, %v12866_v8  ;;  %v13040_v12 = vmax.f32 %v3634_v30, %v3635_v26  ;;  %v3642_v60 = vrot.slane %v3641_v33, 1  ;;  %v3655_v15 = vmax.f32 %v3653_v32, %v3654_v11 }
 0x4cb   :  { %v9444_v5 = vpop.eup %9443  ;;  %v8147_v46 = vadd.f32 %v7814_v19, %v12861_v61  ;;  %v3649_v14 = vrot.slane %v3648_v37, 1  ;;  %v3662_v9 = vmax.f32 %v3660_v43, %v3661_v4  ;;  %v5297_v35 = vmul.f32 1.442695, %v4969_v7 }
 0x4cc   :  { %v9446_v31 = vpop.eup %9445  ;;  %v7816_v56 = vmul.f32 0.6931472, %v9444_v5  ;;  %v8642_v41 = vsel %vm8481_vm3, %v8146_v50, %v8145_v28  ;;  %v13044_v53 = vmax.f32 %v3641_v33, %v3642_v60  ;;  %v3656_v54 = vrot.slane %v3655_v15, 1 }
 0x4cd   :  { %v9448_v18 = vpop.eup %9447  ;;  %v7818_v49 = vmul.f32 0.6931472, %v9446_v31  ;;  %v8643_v8 = vsel %vm8483_vm4, %v8147_v46, %v8642_v41  ;;  %v13047_v10 = vmax.f32 %v3648_v37, %v3649_v14  ;;  %v3663_v36 = vrot.slane %v3662_v9, 1 }
 0x4ce   :  { %v9450_v59 = vpop.eup %9449  ;;  %v7820_v29 = vmul.f32 0.6931472, %v9448_v18  ;;  %v8148_v61 = vadd.f32 %v7816_v56, %v12875_v57  ;;  %v13050_v30 = vmax.f32 %v3655_v15, %v3656_v54  ;;  %v4972_v38 = vsub.f32 %v12994_v16, %v13040_v12 }
 0x4cf   :  { %v9452_v32 = vpop.eup %9451  ;;  %v7822_v7 = vmul.f32 0.6931472, %v9450_v59  ;;  %v8149_v24 = vadd.f32 %v7818_v49, %v12877_v39  ;;  %v13055_v28 = vmax.f32 %v3662_v9, %v3663_v36  ;;  %v4973_v13 = vsub.f32 %v12980_v58, %v13044_v53 }
 0x4d0   :  { %v7824_v43 = vmul.f32 0.6931472, %v9452_v32  ;;  %v8150_v34 = vadd.f32 %v7820_v29, %v12883_v45  ;;  %v8644_v25 = vsel %vm8485_vm5, %v8148_v61, %v8643_v8  ;;  %v4974_v57 = vsub.f32 %v13001_v27, %v13047_v10 }
 0x4d1   :  { %v8151_v26 = vadd.f32 %v7822_v7, %v12888_v42  ;;  %v8645_v16 = vsel %vm8487_vm6, %v8149_v24, %v8644_v25  ;;  %v4975_v39 = vsub.f32 %v12983_v2, %v13050_v30  ;;  %v4976_v33 = vsub.f32 %v13005_v47, %v13055_v28 }
 0x4d2   :  { %v8152_v58 = vadd.f32 %v7824_v43, %v12896_v22  ;;  %v8646_v11 = vsel %vm8489_vm7, %v8150_v34, %v8645_v16  ;;  %9453 = vpow2.f32 %v5297_v35  ;;  %v5299_v45 = vmul.f32 1.442695, %v4970_v0 }
 0x4d3   :  { %v8647_v19 = vsel %vm8491_vm8, %v8151_v26, %v8646_v11  ;;  %v5301_v37 = vmul.f32 1.442695, %v4971_v55  ;;  %v5303_v27 = vmul.f32 1.442695, %v4972_v38  ;;  %v5305_v4 = vmul.f32 1.442695, %v4973_v13 }
 0x4d4   :  { %v8648_v42 = vsel %vm8493_vm9, %v8152_v58, %v8647_v19  ;;  %9455 = vpow2.f32 %v5299_v45  ;;  %v5307_v50 = vmul.f32 1.442695, %v4974_v57  ;;  %v5309_v60 = vmul.f32 1.442695, %v4975_v39 }
 0x4d5   :  { %8767 = vst.msk [vmem:[%s15233_s3 + $0xb0] sm:$0xff] %vm8744_vm10, %v8648_v42  ;;  %9457 = vpow2.f32 %v5301_v37  ;;  %v5311_v22 = vmul.f32 1.442695, %v4976_v33  ;;  %v15428_v2 = vcombine.low %v12914_v62, %v12960_v23  ;;  %v15429_v0 = vcombine.high %v12914_v62, %v12960_v23 }
 0x4d6   :  { %9459 = vpow2.f32 %v5303_v27  ;;  %v1521_v15 = vcombine.high %v12923_v52, %v12967_v6  ;;  %v15430_v5 = vcombine.low %v12923_v52, %v12967_v6  ;;  %v15431_v14 = vcombine.low %v12725_v40, %v12937_v21 }
 0x4d7   :  { %v13081_v47 = vrot.slane %v15428_v2, %v15426_v17  ;;  %v13087_v55 = vrot.slane %v15429_v0, %v15426_v17  ;;  %9461 = vpow2.f32 %v5305_v4 }
 0x4d8   :  { %v13095_v46 = vrot.slane %v15430_v5, %v15426_v17  ;;  %v13101_v9 = vrot.slane %v15431_v14, %v10581_v63  ;;  %9463 = vpow2.f32 %v5307_v50  ;;  %v13114_v6 = vrot.slane %v1521_v15, %v15426_v17 }
 0x4d9   :  { %v13105_v62 = vcombine.high %v13081_v47, %v15427_v3  ;;  %v13109_v23 = vcombine.high %v13087_v55, %v15427_v3  ;;  %v3553_v52 = vsel %vm3104_vm2, %v13081_v47, -inf  ;;  %9465 = vpow2.f32 %v5309_v60 }
 0x4da   :  { %v13118_v35 = vcombine.high %v13095_v46, %v15427_v3  ;;  %v3554_v31 = vrot.slane %v3553_v52, 4  ;;  %v3567_v41 = vsel %vm3104_vm2, %v13087_v55, -inf  ;;  %9467 = vpow2.f32 %v5311_v22 }
 0x4db   :  { %v3560_v56 = vsel %vm3104_vm2, %v13105_v62, -inf  ;;  %v3574_v54 = vsel %vm3104_vm2, %v13109_v23, -inf  ;;  %v13128_v18 = vcombine.high %v13114_v6, %v15427_v3  ;;  %v3568_v36 = vrot.slane %v3567_v41, 4 }
 0x4dc   :  { %v3555_v49 = vmax.f32 %v3553_v52, %v3554_v31  ;;  %v3561_v8 = vrot.slane %v3560_v56, 4  ;;  %v3575_v59 = vrot.slane %v3574_v54, 4  ;;  %v3581_v29 = vsel %vm3104_vm2, %v13095_v46, -inf }
 0x4dd   :  { %v3588_v61 = vsel %vm3104_vm2, %v13118_v35, -inf  ;;  %v3582_v7 = vrot.slane %v3581_v29, 4  ;;  %v3569_v13 = vmax.f32 %v3567_v41, %v3568_v36  ;;  %v13136_v34 = vsel %vm3104_vm2, %v13114_v6, -inf }
 0x4de   :  { %v3556_v38 = vrot.slane %v3555_v49, 2  ;;  %v3562_v32 = vmax.f32 %v3560_v56, %v3561_v8  ;;  %v3589_v24 = vrot.slane %v3588_v61, 4  ;;  %v3576_v43 = vmax.f32 %v3574_v54, %v3575_v59 }
 0x4df   :  { %v13140_v25 = vsel %vm3104_vm2, %v13128_v18, -inf  ;;  %v3583_v16 = vmax.f32 %v3581_v29, %v3582_v7  ;;  %v9454_v33 = vpop.eup %9453  ;;  %v3570_v58 = vrot.slane %v3569_v13, 2 }
 0x4e0   :  { %v3557_v57 = vmax.f32 %v3555_v49, %v3556_v38  ;;  %v3563_v26 = vrot.slane %v3562_v32, 2  ;;  %v13142_v39 = vmax.f32 %v3588_v61, %v3589_v24  ;;  %v3577_v11 = vrot.slane %v3576_v43, 2 }
 0x4e1   :  { %v6169_v37 = vsel %vm3104_vm2, %v9454_v33, 0.0  ;;  %v3584_v42 = vrot.slane %v3583_v16, 2  ;;  %v9456_v50 = vpop.eup %9455  ;;  %v3571_v22 = vmax.f32 %v3569_v13, %v3570_v58 }
 0x4e2   :  { %v3558_v27 = vrot.slane %v3557_v57, 1  ;;  %v3564_v4 = vmax.f32 %v3562_v32, %v3563_v26  ;;  %v6170_v60 = vrot.slane %v6169_v37, 4  ;;  %v13147_v2 = vmax.f32 %v3576_v43, %v3577_v11  ;;  %v9458_v15 = vpop.eup %9457 }
 0x4e3   :  { %v6176_v5 = vsel %vm3104_vm2, %v9456_v50, 0.0  ;;  %v13153_v31 = vmax.f32 %v3583_v16, %v3584_v42  ;;  %v9460_v56 = vpop.eup %9459  ;;  %v6183_v49 = vsel %vm3104_vm2, %v9458_v15, 0.0  ;;  %v3572_v8 = vrot.slane %v3571_v22, 1 }
 0x4e4   :  { %v13151_v14 = vmax.f32 %v3557_v57, %v3558_v27  ;;  %v3565_v52 = vrot.slane %v3564_v4, 1  ;;  %v6171_v41 = vadd.f32 %v6170_v60, %v6169_v37  ;;  %v6177_v54 = vrot.slane %v6176_v5, 4  ;;  %v9462_v36 = vpop.eup %9461 }
 0x4e5   :  { %v6184_v59 = vrot.slane %v6183_v49, 4  ;;  %v6190_v29 = vsel %vm3104_vm2, %v9460_v56, 0.0  ;;  %v3579_v38 = vrot.slane %v13147_v2, 1  ;;  %v9464_v32 = vpop.eup %9463  ;;  %v6197_v43 = vsel %vm3104_vm2, %v9462_v36, 0.0 }
 0x4e6   :  { %v13157_v61 = vmax.f32 %v3564_v4, %v3565_v52  ;;  %v6172_v7 = vrot.slane %v6171_v41, 2  ;;  %v6178_v24 = vadd.f32 %v6177_v54, %v6176_v5  ;;  %v6191_v13 = vrot.slane %v6190_v29, 4  ;;  %v9466_v57 = vpop.eup %9465 }
 0x4e7   :  { %v6185_v26 = vadd.f32 %v6184_v59, %v6183_v49  ;;  %v6198_v16 = vrot.slane %v6197_v43, 4  ;;  %v6204_v33 = vsel %vm3104_vm2, %v9464_v32, 0.0  ;;  %v13162_v58 = vmax.f32 %v3571_v22, %v3572_v8  ;;  %v9468_v11 = vpop.eup %9467 }
 0x4e8   :  { %v6173_v37 = vadd.f32 %v6172_v7, %v6171_v41  ;;  %v6179_v27 = vrot.slane %v6178_v24, 2  ;;  %v6192_v4 = vadd.f32 %v6191_v13, %v6190_v29  ;;  %v6205_v42 = vrot.slane %v6204_v33, 4 }
 0x4e9   :  { %v6186_v50 = vrot.slane %v6185_v26, 2  ;;  %v6199_v60 = vadd.f32 %v6198_v16, %v6197_v43  ;;  %v6211_v15 = vsel %vm3104_vm2, %v9466_v57, 0.0  ;;  %v6218_v5 = vsel %vm3104_vm2, %v9468_v11, 0.0 }
 0x4ea   :  { %v6174_v52 = vrot.slane %v6173_v37, 1  ;;  %v6180_v56 = vadd.f32 %v6179_v27, %v6178_v24  ;;  %v6193_v54 = vrot.slane %v6192_v4, 2  ;;  %v6206_v49 = vadd.f32 %v6205_v42, %v6204_v33 }
 0x4eb   :  { %v6187_v36 = vadd.f32 %v6186_v50, %v6185_v26  ;;  %v6200_v59 = vrot.slane %v6199_v60, 2  ;;  %v6212_v32 = vrot.slane %v6211_v15, 4  ;;  %v6219_v22 = vrot.slane %v6218_v5, 4 }
 0x4ec   :  { %v6175_v8 = vadd.f32 %v6174_v52, %v6173_v37  ;;  %v6181_v19 = vrot.slane %v6180_v56, 1  ;;  %v6194_v41 = vadd.f32 %v6193_v54, %v6192_v4  ;;  %v6207_v7 = vrot.slane %v6206_v49, 2 }
 0x4ed   :  { %v6188_v29 = vrot.slane %v6187_v36, 1  ;;  %v6201_v13 = vadd.f32 %v6200_v59, %v6199_v60  ;;  %v6213_v45 = vadd.f32 %v6212_v32, %v6211_v15  ;;  %v6220_v43 = vadd.f32 %v6219_v22, %v6218_v5 }
 0x4ee   :  { %v6182_v16 = vadd.f32 %v6181_v19, %v6180_v56  ;;  %v6195_v57 = vrot.slane %v6194_v41, 1  ;;  %v6208_v0 = vadd.f32 %v6207_v7, %v6206_v49  ;;  %9469 = vlog2.f32 %v6175_v8 }
 0x4ef   :  { %v6189_v11 = vadd.f32 %v6188_v29, %v6187_v36  ;;  %v6202_v24 = vrot.slane %v6201_v13, 1  ;;  %v6214_v27 = vrot.slane %v6213_v45, 2  ;;  %v6221_v33 = vrot.slane %v6220_v43, 2 }
 0x4f0   :  { %v6196_v26 = vadd.f32 %v6195_v57, %v6194_v41  ;;  %v6209_v42 = vrot.slane %v6208_v0, 1  ;;  %9471 = vlog2.f32 %v6182_v16  ;;  %v13167_v37 = vmax.f32 %v13147_v2, %v3579_v38 }
 0x4f1   :  { %v6203_v4 = vadd.f32 %v6202_v24, %v6201_v13  ;;  %v6215_v50 = vadd.f32 %v6214_v27, %v6213_v45  ;;  %v6222_v52 = vadd.f32 %v6221_v33, %v6220_v43  ;;  %9473 = vlog2.f32 %v6189_v11 }
 0x4f2   :  { %v6210_v60 = vadd.f32 %v6209_v42, %v6208_v0  ;;  %9475 = vlog2.f32 %v6196_v26  ;;  %v3586_v19 = vrot.slane %v13153_v31, 1  ;;  %v15432_v15 = vrot.slane %v13142_v39, 2 }
 0x4f3   :  { %v6216_v56 = vrot.slane %v6215_v50, 1  ;;  %v6223_v54 = vrot.slane %v6222_v52, 1  ;;  %9477 = vlog2.f32 %v6203_v4  ;;  %v15433_v49 = vrot.slane %v13136_v34, 4 }
 0x4f4   :  { %v3592_v5 = vmax.f32 %v13142_v39, %v15432_v15  ;;  %9479 = vlog2.f32 %v6210_v60  ;;  %v13177_v45 = vmax.f32 %v13153_v31, %v3586_v19  ;;  %v15434_v0 = vrot.slane %v13140_v25, 4 }
 0x4f5   :  { %v3597_v2 = vmax.f32 %v13136_v34, %v15433_v49  ;;  %v6217_v59 = vadd.f32 %v6216_v56, %v6215_v50  ;;  %v6224_v32 = vadd.f32 %v6223_v54, %v6222_v52  ;;  %v4961_v39 = vsub.f32 %v13081_v47, %v13151_v14 }
 0x4f6   :  { %v3593_v38 = vrot.slane %v3592_v5, 1  ;;  %v3604_v36 = vmax.f32 %v13140_v25, %v15434_v0  ;;  %v4962_v34 = vsub.f32 %v13105_v62, %v13157_v61  ;;  %v4963_v31 = vsub.f32 %v13087_v55, %v13162_v58 }
 0x4f7   :  { %v3598_v22 = vrot.slane %v3597_v2, 2  ;;  %9481 = vlog2.f32 %v6217_v59  ;;  %v4964_v25 = vsub.f32 %v13109_v23, %v13167_v37  ;;  %v4965_v29 = vsub.f32 %v13095_v46, %v13177_v45 }
 0x4f8   :  { %v13184_v8 = vmax.f32 %v3592_v5, %v3593_v38  ;;  %v3605_v41 = vrot.slane %v3604_v36, 2  ;;  %9483 = vlog2.f32 %v6224_v32  ;;  %v5281_v43 = vmul.f32 1.442695, %v4961_v39 }
 0x4f9   :  { %v3599_v7 = vmax.f32 %v3597_v2, %v3598_v22  ;;  %v5283_v57 = vmul.f32 1.442695, %v4962_v34  ;;  %v5285_v62 = vmul.f32 1.442695, %v4963_v31  ;;  %v15435_v55 = vcombine.high %v12725_v40, %v12937_v21 }
 0x4fa   :  { %v3606_v13 = vmax.f32 %v3604_v36, %v3605_v41  ;;  %v4966_v47 = vsub.f32 %v13118_v35, %v13184_v8  ;;  %9485 = vpow2.f32 %v5281_v43  ;;  %v5287_v23 = vmul.f32 1.442695, %v4964_v25 }
 0x4fb   :  { %v3600_v16 = vrot.slane %v3599_v7, 1  ;;  %v2659_v11 = vrot.slane %v15435_v55, %v10581_v63  ;;  %v5289_v27 = vmul.f32 1.442695, %v4965_v29  ;;  %v9470_v33 = vpop.eup %9469  ;;  %9487 = vpow2.f32 %v5283_v57 }
 0x4fc   :  { %v3607_v24 = vrot.slane %v3606_v13, 1  ;;  %v5291_v26 = vmul.f32 1.442695, %v4966_v47  ;;  %v2660_v35 = vcombine.low %v12929_v44, %v13101_v9  ;;  %v7602_v42 = vmul.f32 0.6931472, %v9470_v33 }
 0x4fd   :  { %v13200_v46 = vmax.f32 %v3599_v7, %v3600_v16  ;;  %9489 = vpow2.f32 %v5285_v62  ;;  %v2661_v40 = vcombine.high %v12929_v44, %v13101_v9  ;;  %v9472_v21 = vpop.eup %9471  ;;  %v2676_v60 = vcombine.low %v12944_v20, %v2659_v11 }
 0x4fe   :  { %v13204_v4 = vmax.f32 %v3606_v13, %v3607_v24  ;;  %9491 = vpow2.f32 %v5287_v23  ;;  %v13211_v52 = vrot.slane %v2660_v35, %v15426_v17  ;;  %v9474_v19 = vpop.eup %9473  ;;  %v7604_v15 = vmul.f32 0.6931472, %v9472_v21 }
 0x4ff   :  { %v4967_v50 = vsub.f32 %v13114_v6, %v13200_v46  ;;  %v8041_v5 = vadd.f32 %v7602_v42, %v13016_v48  ;;  %9493 = vpow2.f32 %v5289_v27  ;;  %v9476_v54 = vpop.eup %9475  ;;  %v7606_v44 = vmul.f32 0.6931472, %v9474_v19 }
 0x500   :  { %v4968_v56 = vsub.f32 %v13128_v18, %v13204_v4  ;;  %9495 = vpow2.f32 %v5291_v26  ;;  %v13218_v6 = vrot.slane %v2661_v40, %v15426_v17  ;;  %v9478_v49 = vpop.eup %9477  ;;  %v7608_v2 = vmul.f32 0.6931472, %v9476_v54 }
 0x501   :  { %v5293_v9 = vmul.f32 1.442695, %v4967_v50  ;;  %v8042_v38 = vadd.f32 %v7604_v15, %v13028_v1  ;;  %v2677_v36 = vcombine.high %v12944_v20, %v2659_v11  ;;  %v9480_v59 = vpop.eup %9479  ;;  %v7610_v48 = vmul.f32 0.6931472, %v9478_v49 }
 0x502   :  { %v5295_v0 = vmul.f32 1.442695, %v4968_v56  ;;  %v8043_v32 = vadd.f32 %v7606_v44, %v13030_v51  ;;  %v13224_v18 = vrot.slane %v2676_v60, %v15426_v17  ;;  %v7612_v22 = vmul.f32 0.6931472, %v9480_v59 }
 0x503   :  { %9497 = vpow2.f32 %v5293_v9  ;;  %v8044_v39 = vadd.f32 %v7608_v2, %v13040_v12  ;;  %v8551_v41 = vsel %vm8481_vm3, %v8042_v38, %v8041_v5  ;;  %v8045_v34 = vadd.f32 %v7610_v48, %v13044_v53 }
 0x504   :  { %9499 = vpow2.f32 %v5295_v0  ;;  %v8552_v1 = vsel %vm8483_vm4, %v8043_v32, %v8551_v41  ;;  %v13231_v20 = vrot.slane %v2677_v36, %v15426_v17  ;;  %v13235_v51 = vcombine.high %v13211_v52, %v15427_v3  ;;  %v9482_v31 = vpop.eup %9481 }
 0x505   :  { %v8046_v7 = vadd.f32 %v7612_v22, %v13047_v10  ;;  %v8553_v25 = vsel %vm8485_vm5, %v8044_v39, %v8552_v1  ;;  %v13241_v12 = vcombine.high %v13218_v6, %v15427_v3  ;;  %v13245_v53 = vcombine.high %v13224_v18, %v15427_v3  ;;  %v9484_v29 = vpop.eup %9483 }
 0x506   :  { %v7614_v13 = vmul.f32 0.6931472, %v9482_v31  ;;  %v8554_v47 = vsel %vm8487_vm6, %v8045_v34, %v8553_v25  ;;  %v13250_v43 = vcombine.high %v13231_v20, %v15427_v3  ;;  %v4505_v10 = vsel %vm3104_vm2, %v13211_v52, -inf }
 0x507   :  { %v7616_v16 = vmul.f32 0.6931472, %v9484_v29  ;;  %v8555_v57 = vsel %vm8489_vm7, %v8046_v7, %v8554_v47  ;;  %v4506_v62 = vrot.slane %v4505_v10, 4  ;;  %v4512_v55 = vsel %vm3104_vm2, %v13235_v51, -inf  ;;  %v9486_v11 = vpop.eup %9485 }
 0x508   :  { %v8047_v24 = vadd.f32 %v7614_v13, %v13050_v30  ;;  %v4513_v23 = vrot.slane %v4512_v55, 4  ;;  %v13260_v27 = vsel %vm3104_vm2, %v13218_v6, -inf  ;;  %v13264_v33 = vsel %vm3104_vm2, %v13241_v12, -inf  ;;  %v9488_v26 = vpop.eup %9487 }
 0x509   :  { %v8048_v35 = vadd.f32 %v7616_v16, %v13055_v28  ;;  %v6113_v42 = vsel %vm3104_vm2, %v9486_v11, 0.0  ;;  %v4507_v40 = vmax.f32 %v4505_v10, %v4506_v62  ;;  %v4520_v21 = vrot.slane %v13260_v27, 4 }
 0x50a   :  { %v9490_v50 = vpop.eup %9489  ;;  %v8556_v30 = vsel %vm8491_vm8, %v8047_v24, %v8555_v57  ;;  %v6114_v60 = vrot.slane %v6113_v42, 4  ;;  %v6120_v19 = vsel %vm3104_vm2, %v9488_v26, 0.0  ;;  %v13271_v15 = vmax.f32 %v4512_v55, %v4513_v23 }
 0x50b   :  { %v9492_v5 = vpop.eup %9491  ;;  %v8557_v56 = vsel %vm8493_vm9, %v8048_v35, %v8556_v30  ;;  %v6121_v54 = vrot.slane %v6120_v19, 4  ;;  %v6127_v44 = vsel %vm3104_vm2, %v9490_v50, 0.0  ;;  %v4508_v28 = vrot.slane %v4507_v40, 2 }
 0x50c   :  { %v9494_v9 = vpop.eup %9493  ;;  %8754 = vst.msk [vmem:[%s15233_s3 + $0x48] sm:$0xff] %vm8744_vm10, %v8557_v56  ;;  %v6115_v49 = vadd.f32 %v6114_v60, %v6113_v42  ;;  %v6128_v2 = vrot.slane %v6127_v44, 4  ;;  %v6134_v38 = vsel %vm3104_vm2, %v9492_v5, 0.0  ;;  %v4515_v0 = vrot.slane %v13271_v15, 2 }
 0x50d   :  { %v9496_v36 = vpop.eup %9495  ;;  %v6122_v59 = vadd.f32 %v6121_v54, %v6120_v19  ;;  %v6135_v48 = vrot.slane %v6134_v38, 4  ;;  %v6141_v32 = vsel %vm3104_vm2, %v9494_v9, 0.0  ;;  %v4509_v22 = vmax.f32 %v4507_v40, %v4508_v28 }
 0x50e   :  { %v6116_v39 = vrot.slane %v6115_v49, 2  ;;  %v6129_v41 = vadd.f32 %v6128_v2, %v6127_v44  ;;  %v6142_v34 = vrot.slane %v6141_v32, 4  ;;  %v6148_v1 = vsel %vm3104_vm2, %v9496_v36, 0.0 }
 0x50f   :  { %v6123_v7 = vrot.slane %v6122_v59, 2  ;;  %v6136_v25 = vadd.f32 %v6135_v48, %v6134_v38  ;;  %v6149_v29 = vrot.slane %v6148_v1, 4  ;;  %v4510_v13 = vrot.slane %v4509_v22, 1 }
 0x510   :  { %v9498_v31 = vpop.eup %9497  ;;  %v6117_v10 = vadd.f32 %v6116_v39, %v6115_v49  ;;  %v6130_v16 = vrot.slane %v6129_v41, 2  ;;  %v6143_v57 = vadd.f32 %v6142_v34, %v6141_v32 }
 0x511   :  { %v9500_v47 = vpop.eup %9499  ;;  %v6155_v62 = vsel %vm3104_vm2, %v9498_v31, 0.0  ;;  %v6124_v55 = vadd.f32 %v6123_v7, %v6122_v59  ;;  %v6137_v11 = vrot.slane %v6136_v25, 2  ;;  %v6150_v24 = vadd.f32 %v6149_v29, %v6148_v1 }
 0x512   :  { %v6156_v23 = vrot.slane %v6155_v62, 4  ;;  %v6118_v26 = vrot.slane %v6117_v10, 1  ;;  %v6131_v35 = vadd.f32 %v6130_v16, %v6129_v41  ;;  %v6144_v42 = vrot.slane %v6143_v57, 2 }
 0x513   :  { %v6162_v40 = vsel %vm3104_vm2, %v9500_v47, 0.0  ;;  %v6125_v50 = vrot.slane %v6124_v55, 1  ;;  %v6138_v30 = vadd.f32 %v6137_v11, %v6136_v25  ;;  %v6151_v60 = vrot.slane %v6150_v24, 2 }
 0x514   :  { %v6157_v19 = vadd.f32 %v6156_v23, %v6155_v62  ;;  %v6119_v5 = vadd.f32 %v6118_v26, %v6117_v10  ;;  %v6132_v56 = vrot.slane %v6131_v35, 1  ;;  %v6145_v54 = vadd.f32 %v6144_v42, %v6143_v57 }
 0x515   :  { %v6163_v44 = vrot.slane %v6162_v40, 4  ;;  %v6126_v28 = vadd.f32 %v6125_v50, %v6124_v55  ;;  %v6139_v9 = vrot.slane %v6138_v30, 1  ;;  %v6152_v49 = vadd.f32 %v6151_v60, %v6150_v24 }
 0x516   :  { %v6158_v2 = vrot.slane %v6157_v19, 2  ;;  %v6133_v38 = vadd.f32 %v6132_v56, %v6131_v35  ;;  %v6146_v36 = vrot.slane %v6145_v54, 1  ;;  %9501 = vlog2.f32 %v6119_v5 }
 0x517   :  { %v6164_v59 = vadd.f32 %v6163_v44, %v6162_v40  ;;  %v6140_v48 = vadd.f32 %v6139_v9, %v6138_v30  ;;  %v6153_v32 = vrot.slane %v6152_v49, 1  ;;  %9503 = vlog2.f32 %v6126_v28  ;;  %v13309_v28 = vpop.permute.xlu1 %662 }
 0x518   :  { %v6159_v39 = vadd.f32 %v6158_v2, %v6157_v19  ;;  %v6147_v41 = vadd.f32 %v6146_v36, %v6145_v54  ;;  %9505 = vlog2.f32 %v6133_v38  ;;  %v13285_v1 = vmax.f32 %v4509_v22, %v4510_v13 }
 0x519   :  { %v6165_v34 = vrot.slane %v6164_v59, 2  ;;  %v6154_v31 = vadd.f32 %v6153_v32, %v6152_v49  ;;  %9507 = vlog2.f32 %v6140_v48  ;;  %v4516_v25 = vmax.f32 %v13271_v15, %v4515_v0  ;;  %v13295_v15 = vpop.permute.xlu0 %880 }
 0x51a   :  { %v6160_v7 = vrot.slane %v6159_v39, 1  ;;  %9509 = vlog2.f32 %v6147_v41  ;;  %v4521_v47 = vmax.f32 %v13260_v27, %v4520_v21  ;;  %v4527_v10 = vrot.slane %v13264_v33, 4 }
 0x51b   :  { %v6166_v29 = vadd.f32 %v6165_v34, %v6164_v59  ;;  %9511 = vlog2.f32 %v6154_v31  ;;  %v4517_v57 = vrot.slane %v4516_v25, 1  ;;  %v4533_v22 = vsel %vm3104_vm2, %v13224_v18, -inf }
 0x51c   :  { %v6161_v16 = vadd.f32 %v6160_v7, %v6159_v39  ;;  %v4522_v62 = vrot.slane %v4521_v47, 2  ;;  %v4528_v55 = vmax.f32 %v13264_v33, %v4527_v10  ;;  %v4534_v11 = vrot.slane %v4533_v22, 4 }
 0x51d   :  { %v6167_v13 = vrot.slane %v6166_v29, 1  ;;  %v13297_v0 = vmax.f32 %v4516_v25, %v4517_v57  ;;  %v4540_v27 = vsel %vm3104_vm2, %v13245_v53, -inf  ;;  %v4547_v21 = vsel %vm3104_vm2, %v13231_v20, -inf  ;;  %v13313_v36 = vpop.permute.xlu0 %660 }
 0x51e   :  { %9513 = vlog2.f32 %v6161_v16  ;;  %v4523_v23 = vmax.f32 %v4521_v47, %v4522_v62  ;;  %v4529_v26 = vrot.slane %v4528_v55, 2  ;;  %v4535_v35 = vmax.f32 %v4533_v22, %v4534_v11 }
 0x51f   :  { %v6168_v24 = vadd.f32 %v6167_v13, %v6166_v29  ;;  %v4541_v42 = vrot.slane %v4540_v27, 4  ;;  %v4548_v40 = vrot.slane %v4547_v21, 4  ;;  %v4554_v33 = vsel %vm3104_vm2, %v13250_v43, -inf }
 0x520   :  { %v5097_v50 = vsub.f32 %v13211_v52, %v13285_v1  ;;  %v4524_v30 = vrot.slane %v4523_v23, 1  ;;  %v4530_v60 = vmax.f32 %v4528_v55, %v4529_v26  ;;  %v4536_v19 = vrot.slane %v4535_v35, 2 }
 0x521   :  { %9515 = vlog2.f32 %v6168_v24  ;;  %v4542_v5 = vmax.f32 %v4540_v27, %v4541_v42  ;;  %v4549_v56 = vmax.f32 %v4547_v21, %v4548_v40  ;;  %v4555_v54 = vrot.slane %v4554_v33, 4 }
 0x522   :  { %v5098_v44 = vsub.f32 %v13235_v51, %v13297_v0  ;;  %v13311_v9 = vmax.f32 %v4523_v23, %v4524_v30  ;;  %v4531_v49 = vrot.slane %v4530_v60, 1  ;;  %v4537_v2 = vmax.f32 %v4535_v35, %v4536_v19  ;;  %v13325_v23 = vpop.permute.xlu1 %694 }
 0x523   :  { %v5553_v38 = vmul.f32 1.442695, %v5097_v50  ;;  %v9502_v52 = vpop.eup %9501  ;;  %v4543_v59 = vrot.slane %v4542_v5, 2  ;;  %v4550_v48 = vrot.slane %v4549_v56, 2  ;;  %v4556_v32 = vmax.f32 %v4554_v33, %v4555_v54  ;;  %v13330_v33 = vpop.permute.xlu0 %692 }
 0x524   :  { %v5555_v39 = vmul.f32 1.442695, %v5098_v44  ;;  %v9504_v41 = vpop.eup %9503  ;;  %v7586_v34 = vmul.f32 0.6931472, %v9502_v52  ;;  %v13315_v31 = vmax.f32 %v4530_v60, %v4531_v49  ;;  %v4538_v7 = vrot.slane %v4537_v2, 1  ;;  %15436 = vst [vmem:[#allocation5_spill] sm:$0xff] %v13330_v33 }
 0x525   :  { %v5099_v51 = vsub.f32 %v13218_v6, %v13311_v9  ;;  %v9506_v25 = vpop.eup %9505  ;;  %v7588_v29 = vmul.f32 0.6931472, %v9504_v41  ;;  %v4544_v47 = vmax.f32 %v4542_v5, %v4543_v59  ;;  %v4551_v10 = vmax.f32 %v4549_v56, %v4550_v48 }
 0x526   :  { %v4557_v16 = vrot.slane %v4556_v32, 2  ;;  %v9508_v57 = vpop.eup %9507  ;;  %v7590_v22 = vmul.f32 0.6931472, %v9506_v25  ;;  %v8033_v13 = vadd.f32 %v7586_v34, %v13151_v14  ;;  %v13320_v62 = vmax.f32 %v4537_v2, %v4538_v7 }
 0x527   :  { %v5100_v55 = vsub.f32 %v13241_v12, %v13315_v31  ;;  %v9510_v11 = vpop.eup %9509  ;;  %v7592_v27 = vmul.f32 0.6931472, %v9508_v57  ;;  %v8034_v21 = vadd.f32 %v7588_v29, %v13157_v61  ;;  %v4545_v24 = vrot.slane %v4544_v47, 1  ;;  %v757_v25 = vpop.permute.xlu0 %756 }
 0x528   :  { %v4552_v6 = vrot.slane %v4551_v10, 1  ;;  %v9512_v26 = vpop.eup %9511  ;;  %v7594_v35 = vmul.f32 0.6931472, %v9510_v11  ;;  %v8035_v42 = vadd.f32 %v7590_v22, %v13162_v58  ;;  %v4558_v40 = vmax.f32 %v4556_v32, %v4557_v16  ;;  %v759_v32 = vpop.permute.xlu1 %758  ;;  %v15440_v11 = vld [vmem:[#allocation17_spill] sm:$0xff] }
 0x529   :  { %v5101_v14 = vsub.f32 %v13224_v18, %v13320_v62  ;;  %v7596_v50 = vmul.f32 0.6931472, %v9512_v26  ;;  %v8036_v12 = vadd.f32 %v7592_v27, %v13167_v37  ;;  %v8544_v30 = vsel %vm8481_vm3, %v8034_v21, %v8033_v13  ;;  %v15441_v27 = vld [vmem:[#allocation10_spill] sm:$0xff] }
 0x52a   :  { %v13334_v61 = vmax.f32 %v4544_v47, %v4545_v24  ;;  %v8037_v19 = vadd.f32 %v7594_v35, %v13177_v45  ;;  %v8545_v5 = vsel %vm8483_vm4, %v8035_v42, %v8544_v30  ;;  %v13338_v56 = vmax.f32 %v4551_v10, %v4552_v6  ;;  %v15443_v35 = vld [vmem:[#allocation11_spill] sm:$0xff] }
 0x52b   :  { %v9514_v60 = vpop.eup %9513  ;;  %v4559_v58 = vrot.slane %v4558_v40, 1  ;;  %v8038_v18 = vadd.f32 %v7596_v50, %v13184_v8  ;;  %v8546_v44 = vsel %vm8485_vm5, %v8036_v12, %v8545_v5  ;;  %9517 = vpow2.f32 %v5553_v38  ;;  %v13381_v50 = vpop.permute.xlu0 %788 }
 0x52c   :  { %v7598_v54 = vmul.f32 0.6931472, %v9514_v60  ;;  %v5102_v37 = vsub.f32 %v13245_v53, %v13334_v61  ;;  %v8547_v49 = vsel %vm8487_vm6, %v8037_v19, %v8546_v44  ;;  %v5103_v45 = vsub.f32 %v13231_v20, %v13338_v56  ;;  %v13376_v26 = vpop.permute.xlu1 %790 }
 0x52d   :  { %v13345_v2 = vmax.f32 %v4558_v40, %v4559_v58  ;;  %v8548_v48 = vsel %vm8489_vm7, %v8038_v18, %v8547_v49  ;;  %9519 = vpow2.f32 %v5555_v39  ;;  %v5557_v8 = vmul.f32 1.442695, %v5099_v51  ;;  %v15437_v39 = vld [vmem:[#allocation9_spill] sm:$0xff]  ;;  %v15446_v18 = vld [vmem:[#allocation20_spill] sm:$0xff] }
 0x52e   :  { %v9516_v52 = vpop.eup %9515  ;;  %v8039_v59 = vadd.f32 %v7598_v54, %v13200_v46  ;;  %v5559_v34 = vmul.f32 1.442695, %v5100_v55  ;;  %v5561_v7 = vmul.f32 1.442695, %v5101_v14  ;;  %v5563_v20 = vmul.f32 1.442695, %v5102_v37 }
 0x52f   :  { %v7600_v41 = vmul.f32 0.6931472, %v9516_v52  ;;  %v5104_v53 = vsub.f32 %v13250_v43, %v13345_v2  ;;  %9521 = vpow2.f32 %v5557_v8  ;;  %v5565_v38 = vmul.f32 1.442695, %v5103_v45  ;;  %v15438_v43 = vld [vmem:[#allocation18_spill] sm:$0xff]  ;;  %v15439_v55 = vld [vmem:[#allocation19_spill] sm:$0xff] }
 0x530   :  { %v8549_v29 = vsel %vm8491_vm8, %v8039_v59, %v8548_v48  ;;  %9523 = vpow2.f32 %v5559_v34  ;;  %v2576_v51 = vcombine.low %v15437_v39, %v13295_v15  ;;  %v2577_v10 = vcombine.high %v15437_v39, %v13295_v15  ;;  %v15447_v52 = vld [vmem:[#allocation21_spill] sm:$0xff] }
 0x531   :  { %v8040_v47 = vadd.f32 %v7600_v41, %v13204_v4  ;;  %v5567_v46 = vmul.f32 1.442695, %v5104_v53  ;;  %9525 = vpow2.f32 %v5561_v7  ;;  %v1676_v16 = vcombine.low %v15438_v43, %v759_v32 }
 0x532   :  { %v1677_v57 = vcombine.high %v15438_v43, %v759_v32  ;;  %9527 = vpow2.f32 %v5563_v20  ;;  %v2584_v13 = vrot.slane %v2576_v51, %v10581_v63  ;;  %v1608_v4 = vcombine.low %v15439_v55, %v757_v25 }
 0x533   :  { %v8550_v22 = vsel %vm8493_vm9, %v8040_v47, %v8549_v29  ;;  %v15442_v21 = vcombine.high %v15440_v11, %v15441_v27  ;;  %9529 = vpow2.f32 %v5565_v38  ;;  %v2591_v15 = vrot.slane %v2577_v10, %v10581_v63 }
 0x534   :  { %8753 = vst.msk [vmem:[%s15233_s3 + $0x40] sm:$0xff] %vm8744_vm10, %v8550_v22  ;;  %v13374_v6 = vrot.slane %v1676_v16, %v10581_v63  ;;  %9531 = vpow2.f32 %v5567_v46  ;;  %v2592_v42 = vcombine.low %v15443_v35, %v2584_v13  ;;  %v2593_v40 = vcombine.high %v15443_v35, %v2584_v13 }
 0x535   :  { %v2575_v24 = vrot.slane %v15442_v21, %v10581_v63  ;;  %v1609_v14 = vcombine.high %v15439_v55, %v757_v25  ;;  %v13384_v60 = vrot.slane %v1677_v57, %v10581_v63  ;;  %v13387_v19 = vrot.slane %v1608_v4, %v10581_v63 }
 0x536   :  { %v13390_v5 = vrot.slane %v2592_v42, %v15426_v17  ;;  %v13393_v58 = vrot.slane %v2593_v40, %v15426_v17 }
 0x537   :  { %v2608_v12 = vcombine.low %v2575_v24, %v2591_v15  ;;  %v2609_v30 = vcombine.high %v2575_v24, %v2591_v15  ;;  %15444 = vst [vmem:[#allocation25_spill] sm:$0xff] %v13387_v19  ;;  %v13396_v54 = vrot.slane %v1609_v14, %v10581_v63 }
 0x538   :  { %v13412_v48 = vcombine.high %v13390_v5, %v15427_v3  ;;  %v13416_v8 = vcombine.high %v13393_v58, %v15427_v3  ;;  %v4449_v32 = vsel %vm3104_vm2, %v13390_v5, -inf  ;;  %v4463_v41 = vsel %vm3104_vm2, %v13393_v58, -inf  ;;  %v9518_v53 = vpop.eup %9517 }
 0x539   :  { %15445 = vst [vmem:[#allocation12_spill] sm:$0xff] %v13396_v54  ;;  %v13401_v37 = vrot.slane %v2608_v12, %v15426_v17  ;;  %v13404_v49 = vrot.slane %v2609_v30, %v15426_v17  ;;  %v4450_v25 = vrot.slane %v4449_v32, 4  ;;  %v4464_v29 = vrot.slane %v4463_v41, 4 }
 0x53a   :  { %v9520_v20 = vpop.eup %9519  ;;  %v7065_v38 = vsel %vm3104_vm2, %v9518_v53, 0.0  ;;  %v4456_v47 = vsel %vm3104_vm2, %v13412_v48, -inf  ;;  %v13435_v46 = vsel %vm3104_vm2, %v13416_v8, -inf }
 0x53b   :  { %v13424_v34 = vcombine.high %v13401_v37, %v15427_v3  ;;  %v13428_v7 = vcombine.high %v13404_v49, %v15427_v3  ;;  %v13439_v39 = vsel %vm3104_vm2, %v13401_v37, -inf  ;;  %v7066_v51 = vrot.slane %v7065_v38, 4 }
 0x53c   :  { %v7072_v10 = vsel %vm3104_vm2, %v9520_v20, 0.0  ;;  %v4451_v43 = vmax.f32 %v4449_v32, %v4450_v25  ;;  %v4457_v16 = vrot.slane %v4456_v47, 4  ;;  %v9522_v57 = vpop.eup %9521  ;;  %v13442_v13 = vmax.f32 %v4463_v41, %v4464_v29 }
 0x53d   :  { %v7073_v22 = vrot.slane %v7072_v10, 4  ;;  %v9524_v11 = vpop.eup %9523  ;;  %v7067_v27 = vadd.f32 %v7066_v51, %v7065_v38  ;;  %v7079_v21 = vsel %vm3104_vm2, %v9522_v57, 0.0 }
 0x53e   :  { %v4452_v24 = vrot.slane %v4451_v43, 2  ;;  %v13447_v15 = vmax.f32 %v4456_v47, %v4457_v16  ;;  %v9526_v35 = vpop.eup %9525  ;;  %v7080_v40 = vrot.slane %v7079_v21, 4  ;;  %v7086_v14 = vsel %vm3104_vm2, %v9524_v11, 0.0 }
 0x53f   :  { %v7074_v42 = vadd.f32 %v7073_v22, %v7072_v10  ;;  %v4466_v12 = vrot.slane %v13442_v13, 2  ;;  %v9528_v30 = vpop.eup %9527  ;;  %v7068_v32 = vrot.slane %v7067_v27, 2  ;;  %v7087_v41 = vrot.slane %v7086_v14, 4 }
 0x540   :  { %v7093_v53 = vsel %vm3104_vm2, %v9526_v35, 0.0  ;;  %v4453_v25 = vmax.f32 %v4451_v43, %v4452_v24  ;;  %v9530_v29 = vpop.eup %9529  ;;  %v7081_v38 = vadd.f32 %v7080_v40, %v7079_v21  ;;  %v7100_v47 = vsel %vm3104_vm2, %v9528_v30, 0.0 }
 0x541   :  { %v7075_v20 = vrot.slane %v7074_v42, 2  ;;  %v7094_v51 = vrot.slane %v7093_v53, 4  ;;  %v9532_v16 = vpop.eup %9531  ;;  %v7069_v57 = vadd.f32 %v7068_v32, %v7067_v27  ;;  %v7088_v10 = vadd.f32 %v7087_v41, %v7086_v14 }
 0x542   :  { %v7101_v22 = vrot.slane %v7100_v47, 4  ;;  %v7107_v11 = vsel %vm3104_vm2, %v9530_v29, 0.0  ;;  %v7082_v45 = vrot.slane %v7081_v38, 2  ;;  %v7114_v43 = vsel %vm3104_vm2, %v9532_v16, 0.0 }
 0x543   :  { %v7076_v59 = vadd.f32 %v7075_v20, %v7074_v42  ;;  %v7095_v44 = vadd.f32 %v7094_v51, %v7093_v53  ;;  %v7108_v4 = vrot.slane %v7107_v11, 4  ;;  %v7070_v55 = vrot.slane %v7069_v57, 1 }
 0x544   :  { %v7089_v33 = vrot.slane %v7088_v10, 2  ;;  %v7102_v35 = vadd.f32 %v7101_v22, %v7100_v47  ;;  %v7083_v21 = vadd.f32 %v7082_v45, %v7081_v38  ;;  %v7115_v14 = vrot.slane %v7114_v43, 4 }
 0x545   :  { %v7077_v24 = vrot.slane %v7076_v59, 1  ;;  %v7096_v40 = vrot.slane %v7095_v44, 2  ;;  %v7109_v54 = vadd.f32 %v7108_v4, %v7107_v11  ;;  %v7071_v30 = vadd.f32 %v7070_v55, %v7069_v57 }
 0x546   :  { %v7090_v3 = vadd.f32 %v7089_v33, %v7088_v10  ;;  %v7103_v27 = vrot.slane %v7102_v35, 2  ;;  %v7084_v41 = vrot.slane %v7083_v21, 1  ;;  %v7116_v51 = vadd.f32 %v7115_v14, %v7114_v43 }
 0x547   :  { %v7078_v32 = vadd.f32 %v7077_v24, %v7076_v59  ;;  %v7097_v29 = vadd.f32 %v7096_v40, %v7095_v44  ;;  %v7110_v42 = vrot.slane %v7109_v54, 2  ;;  %9533 = vlog2.f32 %v7071_v30 }
 0x548   :  { %v7091_v20 = vrot.slane %v7090_v3, 1  ;;  %v7104_v53 = vadd.f32 %v7103_v27, %v7102_v35  ;;  %v7085_v19 = vadd.f32 %v7084_v41, %v7083_v21  ;;  %v7117_v38 = vrot.slane %v7116_v51, 2 }
 0x549   :  { %v7098_v47 = vrot.slane %v7097_v29, 1  ;;  %v7111_v22 = vadd.f32 %v7110_v42, %v7109_v54  ;;  %9535 = vlog2.f32 %v7078_v32  ;;  %v4454_v4 = vrot.slane %v4453_v25, 1 }
 0x54a   :  { %v7092_v16 = vadd.f32 %v7091_v20, %v7090_v3  ;;  %v7105_v45 = vrot.slane %v7104_v53, 1  ;;  %9537 = vlog2.f32 %v7085_v19  ;;  %v4459_v59 = vrot.slane %v13447_v15, 2 }
 0x54b   :  { %v7099_v55 = vadd.f32 %v7098_v47, %v7097_v29  ;;  %v7112_v33 = vrot.slane %v7111_v22, 1  ;;  %v7118_v44 = vadd.f32 %v7117_v38, %v7116_v51  ;;  %v13456_v10 = vmax.f32 %v4453_v25, %v4454_v4 }
 0x54c   :  { %v7106_v57 = vadd.f32 %v7105_v45, %v7104_v53  ;;  %9539 = vlog2.f32 %v7092_v16  ;;  %v4460_v35 = vmax.f32 %v13447_v15, %v4459_v59  ;;  %v4467_v54 = vmax.f32 %v13442_v13, %v4466_v12 }
 0x54d   :  { %v7113_v11 = vadd.f32 %v7112_v33, %v7111_v22  ;;  %9541 = vlog2.f32 %v7099_v55  ;;  %v7119_v3 = vrot.slane %v7118_v44, 1  ;;  %v15448_v43 = vrot.slane %v13435_v46, 4 }
 0x54e   :  { %9543 = vlog2.f32 %v7106_v57  ;;  %v15449_v19 = vrot.slane %v13439_v39, 4  ;;  %v4461_v40 = vrot.slane %v4460_v35, 1  ;;  %v4468_v25 = vrot.slane %v4467_v54, 1 }
 0x54f   :  { %v4472_v24 = vmax.f32 %v13435_v46, %v15448_v43  ;;  %9545 = vlog2.f32 %v7113_v11  ;;  %v4484_v30 = vsel %vm3104_vm2, %v13424_v34, -inf  ;;  %v7120_v27 = vadd.f32 %v7119_v3, %v7118_v44 }
 0x550   :  { %v4479_v21 = vmax.f32 %v13439_v39, %v15449_v19  ;;  %v4485_v13 = vrot.slane %v4484_v30, 4  ;;  %v13468_v12 = vmax.f32 %v4460_v35, %v4461_v40  ;;  %v13470_v32 = vmax.f32 %v4467_v54, %v4468_v25 }
 0x551   :  { %v4473_v15 = vrot.slane %v4472_v24, 2  ;;  %v4491_v46 = vsel %vm3104_vm2, %v13404_v49, -inf  ;;  %v4498_v39 = vsel %vm3104_vm2, %v13428_v7, -inf  ;;  %9547 = vlog2.f32 %v7120_v27 }
 0x552   :  { %v4480_v14 = vrot.slane %v4479_v21, 2  ;;  %v4486_v42 = vmax.f32 %v4484_v30, %v4485_v13  ;;  %v4492_v20 = vrot.slane %v4491_v46, 4  ;;  %v4499_v53 = vrot.slane %v4498_v39, 4 }
 0x553   :  { %v4474_v41 = vmax.f32 %v4472_v24, %v4473_v15  ;;  %v5089_v51 = vsub.f32 %v13390_v5, %v13456_v10  ;;  %v5090_v47 = vsub.f32 %v13412_v48, %v13468_v12  ;;  %v5091_v38 = vsub.f32 %v13393_v58, %v13470_v32 }
 0x554   :  { %v4481_v29 = vmax.f32 %v4479_v21, %v4480_v14  ;;  %v4487_v45 = vrot.slane %v4486_v42, 2  ;;  %v9534_v4 = vpop.eup %9533  ;;  %v4493_v55 = vmax.f32 %v4491_v46, %v4492_v20  ;;  %v4500_v33 = vmax.f32 %v4498_v39, %v4499_v53 }
 0x555   :  { %v4475_v22 = vrot.slane %v4474_v41, 1  ;;  %v5537_v59 = vmul.f32 1.442695, %v5089_v51  ;;  %v5539_v57 = vmul.f32 1.442695, %v5090_v47 }
 0x556   :  { %v4482_v16 = vrot.slane %v4481_v29, 1  ;;  %v9536_v44 = vpop.eup %9535  ;;  %v7858_v11 = vmul.f32 0.6931472, %v9534_v4  ;;  %v4488_v5 = vmax.f32 %v4486_v42, %v4487_v45  ;;  %v4494_v48 = vrot.slane %v4493_v55, 2 }
 0x557   :  { %v13482_v35 = vmax.f32 %v4474_v41, %v4475_v22  ;;  %v7860_v3 = vmul.f32 0.6931472, %v9536_v44  ;;  %v4501_v43 = vrot.slane %v4500_v33, 2  ;;  %9549 = vpow2.f32 %v5537_v59  ;;  %v9538_v24 = vpop.eup %9537 }
 0x558   :  { %v13484_v54 = vmax.f32 %v4481_v29, %v4482_v16  ;;  %v8169_v19 = vadd.f32 %v7858_v11, %v13285_v1  ;;  %v4489_v58 = vrot.slane %v4488_v5, 1  ;;  %v7862_v30 = vmul.f32 0.6931472, %v9538_v24  ;;  %v853_v24 = vpop.permute.xlu0 %852 }
 0x559   :  { %v5092_v21 = vsub.f32 %v13416_v8, %v13482_v35  ;;  %v9540_v25 = vpop.eup %9539  ;;  %v8170_v27 = vadd.f32 %v7860_v3, %v13297_v0  ;;  %v4495_v15 = vmax.f32 %v4493_v55, %v4494_v48  ;;  %v4502_v14 = vmax.f32 %v4500_v33, %v4501_v43  ;;  %v855_v33 = vpop.permute.xlu1 %854 }
 0x55a   :  { %v5093_v40 = vsub.f32 %v13401_v37, %v13484_v54  ;;  %v9542_v13 = vpop.eup %9541  ;;  %v7864_v46 = vmul.f32 0.6931472, %v9540_v25  ;;  %v13492_v39 = vmax.f32 %v4488_v5, %v4489_v58  ;;  %9551 = vpow2.f32 %v5539_v57 }
 0x55b   :  { %v5541_v41 = vmul.f32 1.442695, %v5091_v38  ;;  %v9544_v1 = vpop.eup %9543  ;;  %v7866_v29 = vmul.f32 0.6931472, %v9542_v13  ;;  %v8171_v42 = vadd.f32 %v7862_v30, %v13311_v9  ;;  %v8663_v8 = vsel %vm8481_vm3, %v8170_v27, %v8169_v19 }
 0x55c   :  { %v4496_v20 = vrot.slane %v4495_v15, 1  ;;  %v9546_v37 = vpop.eup %9545  ;;  %v7868_v53 = vmul.f32 0.6931472, %v9544_v1  ;;  %v8172_v51 = vadd.f32 %v7864_v46, %v13315_v31  ;;  %v4503_v0 = vrot.slane %v4502_v14, 1 }
 0x55d   :  { %v5094_v47 = vsub.f32 %v13424_v34, %v13492_v39  ;;  %v7870_v22 = vmul.f32 0.6931472, %v9546_v37  ;;  %v8173_v16 = vadd.f32 %v7866_v29, %v13320_v62  ;;  %v8664_v45 = vsel %vm8483_vm4, %v8171_v42, %v8663_v8 }
 0x55e   :  { %v13501_v38 = vmax.f32 %v4495_v15, %v4496_v20  ;;  %v8174_v9 = vadd.f32 %v7868_v53, %v13334_v61  ;;  %v8665_v4 = vsel %vm8485_vm5, %v8172_v51, %v8664_v45  ;;  %v13505_v55 = vmax.f32 %v4502_v14, %v4503_v0  ;;  %v9548_v31 = vpop.eup %9547  ;;  %v13534_v14 = vpop.permute.xlu1 %886 }
 0x55f   :  { %9553 = vpow2.f32 %v5541_v41  ;;  %v8175_v59 = vadd.f32 %v7870_v22, %v13338_v56  ;;  %v8666_v34 = vsel %vm8487_vm6, %v8173_v16, %v8665_v4  ;;  %v5543_v57 = vmul.f32 1.442695, %v5092_v21 }
 0x560   :  { %v5095_v62 = vsub.f32 %v13404_v49, %v13501_v38  ;;  %v7872_v44 = vmul.f32 0.6931472, %v9548_v31  ;;  %v8667_v11 = vsel %vm8489_vm7, %v8174_v9, %v8666_v34  ;;  %v5096_v61 = vsub.f32 %v13428_v7, %v13505_v55  ;;  %v15453_v31 = vld [vmem:[#allocation25_spill] sm:$0xff] }
 0x561   :  { %v5545_v5 = vmul.f32 1.442695, %v5093_v40  ;;  %v8668_v3 = vsel %vm8491_vm8, %v8175_v59, %v8667_v11  ;;  %9555 = vpow2.f32 %v5543_v57  ;;  %v5547_v48 = vmul.f32 1.442695, %v5094_v47 }
 0x562   :  { %v5549_v43 = vmul.f32 1.442695, %v5095_v62  ;;  %v8176_v56 = vadd.f32 %v7872_v44, %v13345_v2  ;;  %v5551_v19 = vmul.f32 1.442695, %v5096_v61  ;;  %v15450_v49 = vcombine.low %v15446_v18, %v13376_v26 }
 0x563   :  { %9557 = vpow2.f32 %v5545_v5  ;;  %v15451_v7 = vcombine.high %v15446_v18, %v13376_v26  ;;  %v1692_v2 = vcombine.low %v13309_v28, %v855_v33  ;;  %v1693_v27 = vcombine.high %v13309_v28, %v855_v33 }
 0x564   :  { %v13520_v58 = vrot.slane %v15450_v49, %v10581_v63  ;;  %9559 = vpow2.f32 %v5547_v48  ;;  %v9550_v25 = vpop.eup %9549  ;;  %v8669_v30 = vsel %vm8493_vm9, %v8176_v56, %v8668_v3  ;;  %v1624_v15 = vcombine.low %v13313_v36, %v853_v24 }
 0x565   :  { %v13526_v21 = vrot.slane %v15451_v7, %v10581_v63  ;;  %9561 = vpow2.f32 %v5549_v43  ;;  %8770 = vst.msk [vmem:[%s15233_s3 + $0xc8] sm:$0xff] %vm8744_vm10, %v8669_v30  ;;  %v7009_v26 = vsel %vm3104_vm2, %v9550_v25, 0.0  ;;  %v15452_v18 = vcombine.low %v15447_v52, %v13381_v50 }
 0x566   :  { %9563 = vpow2.f32 %v5551_v19  ;;  %v1700_v28 = vrot.slane %v1692_v2, %v10581_v63  ;;  %v7010_v46 = vrot.slane %v7009_v26, 4  ;;  %v1707_v41 = vrot.slane %v1693_v27, %v10581_v63 }
 0x567   :  { %v13545_v13 = vrot.slane %v15452_v18, %v10581_v63  ;;  %v1625_v1 = vcombine.high %v13313_v36, %v853_v24  ;;  %v13551_v29 = vrot.slane %v1624_v15, %v10581_v63  ;;  %v9552_v42 = vpop.eup %9551  ;;  %v15454_v62 = vmov 0.0  }
 0x568   :  { %v1708_v8 = vcombine.low %v13374_v6, %v1700_v28  ;;  %v1709_v20 = vcombine.high %v13374_v6, %v1700_v28  ;;  %v7011_v51 = vadd.f32 %v7010_v46, %v7009_v26  ;;  %v7016_v0 = vsel %vm3104_vm2, %v9552_v42, 0.0 }
 0x569   :  { %v1724_v47 = vcombine.low %v13384_v60, %v1707_v41  ;;  %v1725_v36 = vcombine.high %v13384_v60, %v1707_v41  ;;  %v7017_v22 = vrot.slane %v7016_v0, 4  ;;  %v13569_v6 = vrot.slane %v1625_v1, %v10581_v63 }
 0x56a   :  { %v13563_v16 = vrot.slane %v1708_v8, %v15426_v17  ;;  %v13566_v45 = vrot.slane %v1709_v20, %v15426_v17  ;;  %v7012_v9 = vrot.slane %v7011_v51, 2  ;;  %v1640_v60 = vcombine.low %v15453_v31, %v13551_v29 }
 0x56b   :  { %v13572_v4 = vrot.slane %v1724_v47, %v15426_v17  ;;  %v13575_v33 = vrot.slane %v1725_v36, %v15426_v17  ;;  %v7018_v34 = vadd.f32 %v7017_v22, %v7016_v0 }
 0x56c   :  { %v9554_v59 = vpop.eup %9553  ;;  %v13581_v57 = vcombine.high %v13563_v16, %v15454_v62  ;;  %v13585_v44 = vcombine.high %v13566_v45, %v15454_v62  ;;  %v3721_v11 = vsel %vm3104_vm2, %v13563_v16, -inf  ;;  %v7013_v61 = vadd.f32 %v7012_v9, %v7011_v51 }
 0x56d   :  { %v7023_v5 = vsel %vm3104_vm2, %v9554_v59, 0.0  ;;  %v13592_v3 = vcombine.high %v13572_v4, %v15454_v62  ;;  %v13596_v48 = vcombine.high %v13575_v33, %v15454_v62  ;;  %v7019_v43 = vrot.slane %v7018_v34, 2 }
 0x56e   :  { %v7024_v24 = vrot.slane %v7023_v5, 4  ;;  %v3722_v56 = vrot.slane %v3721_v11, 4  ;;  %v3728_v19 = vsel %vm3104_vm2, %v13581_v57, -inf  ;;  %v9556_v49 = vpop.eup %9555  ;;  %v7014_v7 = vrot.slane %v7013_v61, 1 }
 0x56f   :  { %v3729_v2 = vrot.slane %v3728_v19, 4  ;;  %v13602_v25 = vsel %vm3104_vm2, %v13566_v45, -inf  ;;  %v13606_v30 = vsel %vm3104_vm2, %v13585_v44, -inf  ;;  %v7020_v15 = vadd.f32 %v7019_v43, %v7018_v34 }
 0x570   :  { %v9558_v27 = vpop.eup %9557  ;;  %v7025_v26 = vadd.f32 %v7024_v24, %v7023_v5  ;;  %v7030_v18 = vsel %vm3104_vm2, %v9556_v49, 0.0  ;;  %v3723_v28 = vmax.f32 %v3721_v11, %v3722_v56  ;;  %v7015_v41 = vadd.f32 %v7014_v7, %v7013_v61 }
 0x571   :  { %v9560_v46 = vpop.eup %9559  ;;  %v7031_v1 = vrot.slane %v7030_v18, 4  ;;  %v7037_v42 = vsel %vm3104_vm2, %v9558_v27, 0.0  ;;  %v3730_v8 = vmax.f32 %v3728_v19, %v3729_v2  ;;  %v7021_v51 = vrot.slane %v7020_v15, 1 }
 0x572   :  { %v9562_v20 = vpop.eup %9561  ;;  %v7026_v0 = vrot.slane %v7025_v26, 2  ;;  %v7038_v47 = vrot.slane %v7037_v42, 4  ;;  %v7044_v36 = vsel %vm3104_vm2, %v9560_v46, 0.0  ;;  %9565 = vlog2.f32 %v7015_v41 }
 0x573   :  { %v9564_v22 = vpop.eup %9563  ;;  %v7032_v9 = vadd.f32 %v7031_v1, %v7030_v18  ;;  %v7045_v59 = vrot.slane %v7044_v36, 4  ;;  %v7051_v34 = vsel %vm3104_vm2, %v9562_v20, 0.0  ;;  %v7022_v5 = vadd.f32 %v7021_v51, %v7020_v15 }
 0x574   :  { %v7027_v11 = vadd.f32 %v7026_v0, %v7025_v26  ;;  %v7039_v43 = vadd.f32 %v7038_v47, %v7037_v42  ;;  %v7052_v61 = vrot.slane %v7051_v34, 4  ;;  %v7058_v19 = vsel %vm3104_vm2, %v9564_v22, 0.0 }
 0x575   :  { %v7033_v24 = vrot.slane %v7032_v9, 2  ;;  %v7046_v56 = vadd.f32 %v7045_v59, %v7044_v36  ;;  %v3724_v49 = vrot.slane %v3723_v28, 2  ;;  %v7059_v40 = vrot.slane %v7058_v19, 4 }
 0x576   :  { %v7028_v7 = vrot.slane %v7027_v11, 1  ;;  %v7040_v2 = vrot.slane %v7039_v43, 2  ;;  %v7053_v27 = vadd.f32 %v7052_v61, %v7051_v34  ;;  %9567 = vlog2.f32 %v7022_v5 }
 0x577   :  { %v7034_v46 = vadd.f32 %v7033_v24, %v7032_v9  ;;  %v7047_v53 = vrot.slane %v7046_v56, 2  ;;  %v3725_v18 = vmax.f32 %v3723_v28, %v3724_v49  ;;  %v7060_v15 = vadd.f32 %v7059_v40, %v7058_v19 }
 0x578   :  { %v7029_v1 = vadd.f32 %v7028_v7, %v7027_v11  ;;  %v7041_v20 = vadd.f32 %v7040_v2, %v7039_v43  ;;  %v7054_v41 = vrot.slane %v7053_v27, 2  ;;  %v3731_v0 = vrot.slane %v3730_v8, 2 }
 0x579   :  { %v7035_v26 = vrot.slane %v7034_v46, 1  ;;  %v7048_v42 = vadd.f32 %v7047_v53, %v7046_v56  ;;  %v3726_v51 = vrot.slane %v3725_v18, 1  ;;  %v7061_v22 = vrot.slane %v7060_v15, 2 }
 0x57a   :  { %v7042_v47 = vrot.slane %v7041_v20, 1  ;;  %v7055_v36 = vadd.f32 %v7054_v41, %v7053_v27  ;;  %9569 = vlog2.f32 %v7029_v1  ;;  %v3732_v9 = vmax.f32 %v3730_v8, %v3731_v0 }
 0x57b   :  { %v7036_v59 = vadd.f32 %v7035_v26, %v7034_v46  ;;  %v7049_v37 = vrot.slane %v7048_v42, 1  ;;  %v13613_v34 = vmax.f32 %v3725_v18, %v3726_v51  ;;  %v7062_v28 = vadd.f32 %v7061_v22, %v7060_v15 }
 0x57c   :  { %v7043_v61 = vadd.f32 %v7042_v47, %v7041_v20  ;;  %v7056_v5 = vrot.slane %v7055_v36, 1  ;;  %v3736_v11 = vrot.slane %v13602_v25, 4  ;;  %v3733_v40 = vrot.slane %v3732_v9, 1 }
 0x57d   :  { %v7050_v43 = vadd.f32 %v7049_v37, %v7048_v42  ;;  %9571 = vlog2.f32 %v7036_v59  ;;  %v3743_v53 = vrot.slane %v13606_v30, 4  ;;  %v7063_v56 = vrot.slane %v7062_v28, 1 }
 0x57e   :  { %v7057_v24 = vadd.f32 %v7056_v5, %v7055_v36  ;;  %9573 = vlog2.f32 %v7043_v61  ;;  %v3737_v19 = vmax.f32 %v13602_v25, %v3736_v11  ;;  %v13618_v49 = vmax.f32 %v3732_v9, %v3733_v40 }
 0x57f   :  { %9575 = vlog2.f32 %v7050_v43  ;;  %v3744_v8 = vmax.f32 %v13606_v30, %v3743_v53  ;;  %v3749_v7 = vsel %vm3104_vm2, %v13572_v4, -inf  ;;  %v9566_v2 = vpop.eup %9565  ;;  %v7064_v27 = vadd.f32 %v7063_v56, %v7062_v28 }
 0x580   :  { %9577 = vlog2.f32 %v7057_v24  ;;  %v3738_v37 = vrot.slane %v3737_v19, 2  ;;  %v3750_v46 = vrot.slane %v3749_v7, 4  ;;  %v7842_v18 = vmul.f32 0.6931472, %v9566_v2 }
 0x581   :  { %v3745_v1 = vrot.slane %v3744_v8, 2  ;;  %v3756_v20 = vsel %vm3104_vm2, %v13592_v3, -inf  ;;  %v3763_v25 = vsel %vm3104_vm2, %v13575_v33, -inf  ;;  %9579 = vlog2.f32 %v7064_v27 }
 0x582   :  { %v3739_v41 = vmax.f32 %v3737_v19, %v3738_v37  ;;  %v3751_v15 = vmax.f32 %v3749_v7, %v3750_v46  ;;  %v3757_v30 = vrot.slane %v3756_v20, 4  ;;  %v8161_v26 = vadd.f32 %v7842_v18, %v13456_v10 }
 0x583   :  { %v3746_v42 = vmax.f32 %v3744_v8, %v3745_v1  ;;  %v3764_v51 = vrot.slane %v3763_v25, 4  ;;  %v3770_v0 = vsel %vm3104_vm2, %v13596_v48, -inf  ;;  %v9568_v47 = vpop.eup %9567  ;;  %v4985_v11 = vsub.f32 %v13563_v16, %v13613_v34 }
 0x584   :  { %v3740_v36 = vrot.slane %v3739_v41, 1  ;;  %v3752_v22 = vrot.slane %v3751_v15, 2  ;;  %v3758_v59 = vmax.f32 %v3756_v20, %v3757_v30  ;;  %v3771_v9 = vrot.slane %v3770_v0, 4 }
 0x585   :  { %v7844_v61 = vmul.f32 0.6931472, %v9568_v47  ;;  %v3747_v5 = vrot.slane %v3746_v42, 1  ;;  %v3765_v28 = vmax.f32 %v3763_v25, %v3764_v51  ;;  %v4986_v7 = vsub.f32 %v13581_v57, %v13618_v49 }
 0x586   :  { %v13632_v43 = vmax.f32 %v3739_v41, %v3740_v36  ;;  %v3753_v40 = vmax.f32 %v3751_v15, %v3752_v22  ;;  %v3759_v10 = vrot.slane %v3758_v59, 2  ;;  %v3772_v53 = vmax.f32 %v3770_v0, %v3771_v9 }
 0x587   :  { %v9570_v24 = vpop.eup %9569  ;;  %v8162_v56 = vadd.f32 %v7844_v61, %v13468_v12  ;;  %v13635_v19 = vmax.f32 %v3746_v42, %v3747_v5  ;;  %v3766_v8 = vrot.slane %v3765_v28, 2  ;;  %v5329_v0 = vmul.f32 1.442695, %v4985_v11 }
 0x588   :  { %v7846_v2 = vmul.f32 0.6931472, %v9570_v24  ;;  %v3754_v27 = vrot.slane %v3753_v40, 1  ;;  %v3760_v37 = vmax.f32 %v3758_v59, %v3759_v10  ;;  %v3773_v46 = vrot.slane %v3772_v53, 2 }
 0x589   :  { %v8656_v16 = vsel %vm8481_vm3, %v8162_v56, %v8161_v26  ;;  %v3767_v18 = vmax.f32 %v3765_v28, %v3766_v8  ;;  %v4987_v1 = vsub.f32 %v13566_v45, %v13632_v43  ;;  %v4988_v20 = vsub.f32 %v13585_v44, %v13635_v19 }
 0x58a   :  { %v9572_v12 = vpop.eup %9571  ;;  %v8163_v25 = vadd.f32 %v7846_v2, %v13470_v32  ;;  %v13645_v41 = vmax.f32 %v3753_v40, %v3754_v27  ;;  %v3761_v15 = vrot.slane %v3760_v37, 1  ;;  %v3774_v57 = vmax.f32 %v3772_v53, %v3773_v46 }
 0x58b   :  { %v9574_v30 = vpop.eup %9573  ;;  %v7848_v42 = vmul.f32 0.6931472, %v9572_v12  ;;  %v3768_v51 = vrot.slane %v3767_v18, 1  ;;  %v1641_v26 = vcombine.high %v15453_v31, %v13551_v29  ;;  %9581 = vpow2.f32 %v5329_v0 }
 0x58c   :  { %v9576_v47 = vpop.eup %9575  ;;  %v7850_v36 = vmul.f32 0.6931472, %v9574_v30  ;;  %v8657_v45 = vsel %vm8483_vm4, %v8163_v25, %v8656_v16  ;;  %v13650_v22 = vmax.f32 %v3760_v37, %v3761_v15  ;;  %v3775_v44 = vrot.slane %v3774_v57, 1 }
 0x58d   :  { %v9578_v59 = vpop.eup %9577  ;;  %v7852_v32 = vmul.f32 0.6931472, %v9576_v47  ;;  %v8164_v9 = vadd.f32 %v7848_v42, %v13482_v35  ;;  %v13653_v61 = vmax.f32 %v3767_v18, %v3768_v51  ;;  %v4989_v5 = vsub.f32 %v13572_v4, %v13645_v41 }
 0x58e   :  { %v7854_v28 = vmul.f32 0.6931472, %v9578_v59  ;;  %v8165_v11 = vadd.f32 %v7850_v36, %v13484_v54  ;;  %v13658_v40 = vmax.f32 %v3774_v57, %v3775_v44  ;;  %v4990_v10 = vsub.f32 %v13592_v3, %v13650_v22  ;;  %v9580_v53 = vpop.eup %9579 }
 0x58f   :  { %v8166_v24 = vadd.f32 %v7852_v32, %v13492_v39  ;;  %v8658_v56 = vsel %vm8485_vm5, %v8164_v9, %v8657_v45  ;;  %v4991_v35 = vsub.f32 %v13575_v33, %v13653_v61  ;;  %v7856_v8 = vmul.f32 0.6931472, %v9580_v53 }
 0x590   :  { %v8167_v4 = vadd.f32 %v7854_v28, %v13501_v38  ;;  %v8659_v2 = vsel %vm8487_vm6, %v8165_v11, %v8658_v56  ;;  %v4992_v54 = vsub.f32 %v13596_v48, %v13658_v40  ;;  %v5331_v3 = vmul.f32 1.442695, %v4986_v7 }
 0x591   :  { %v8660_v27 = vsel %vm8489_vm7, %v8166_v24, %v8659_v2  ;;  %v5333_v37 = vmul.f32 1.442695, %v4987_v1  ;;  %v5335_v46 = vmul.f32 1.442695, %v4988_v20  ;;  %v8168_v39 = vadd.f32 %v7856_v8, %v13505_v55  ;;  %v15455_v55 = vld [vmem:[#allocation12_spill] sm:$0xff] }
 0x592   :  { %v8661_v16 = vsel %vm8491_vm8, %v8167_v4, %v8660_v27  ;;  %v5337_v18 = vmul.f32 1.442695, %v4989_v5  ;;  %v5339_v33 = vmul.f32 1.442695, %v4990_v10  ;;  %9583 = vpow2.f32 %v5331_v3 }
 0x593   :  { %v5341_v12 = vmul.f32 1.442695, %v4991_v35  ;;  %v5343_v25 = vmul.f32 1.442695, %v4992_v54  ;;  %v13677_v38 = vrot.slane %v1640_v60, %v15426_v17  ;;  %v8662_v48 = vsel %vm8493_vm9, %v8168_v39, %v8661_v16 }
 0x594   :  { %9585 = vpow2.f32 %v5333_v37  ;;  %v13681_v7 = vrot.slane %v1641_v26, %v15426_v17  ;;  %v1656_v1 = vcombine.low %v15455_v55, %v13569_v6  ;;  %8769 = vst.msk [vmem:[%s15233_s3 + $0xc0] sm:$0xff] %vm8744_vm10, %v8662_v48  ;;  %v1657_v29 = vcombine.high %v15455_v55, %v13569_v6 }
 0x595   :  { %9587 = vpow2.f32 %v5335_v46  ;;  %v13693_v31 = vcombine.high %v13677_v38, %v15454_v62  ;;  %v3665_v60 = vsel %vm3104_vm2, %v13677_v38, -inf }
 0x596   :  { %9589 = vpow2.f32 %v5337_v18  ;;  %v13698_v20 = vrot.slane %v1656_v1, %v15426_v17  ;;  %v13702_v15 = vcombine.high %v13681_v7, %v15454_v62  ;;  %v3666_v57 = vrot.slane %v3665_v60, 4 }
 0x597   :  { %9591 = vpow2.f32 %v5339_v33  ;;  %v13705_v30 = vrot.slane %v1657_v29, %v15426_v17  ;;  %v3672_v6 = vsel %vm3104_vm2, %v13693_v31, -inf  ;;  %v3679_v42 = vsel %vm3104_vm2, %v13681_v7, -inf }
 0x598   :  { %9593 = vpow2.f32 %v5341_v12  ;;  %v13713_v51 = vcombine.high %v13698_v20, %v15454_v62  ;;  %v3667_v0 = vmax.f32 %v3665_v60, %v3666_v57  ;;  %v3673_v26 = vrot.slane %v3672_v6, 4  ;;  %v9582_v53 = vpop.eup %9581 }
 0x599   :  { %9595 = vpow2.f32 %v5343_v25  ;;  %v13717_v47 = vcombine.high %v13705_v30, %v15454_v62  ;;  %v3680_v36 = vrot.slane %v3679_v42, 4  ;;  %v3686_v45 = vsel %vm3104_vm2, %v13702_v15, -inf }
 0x59a   :  { %v3668_v44 = vrot.slane %v3667_v0, 2  ;;  %v3674_v59 = vmax.f32 %v3672_v6, %v3673_v26  ;;  %v3687_v32 = vrot.slane %v3686_v45, 4  ;;  %v3693_v9 = vsel %vm3104_vm2, %v13698_v20, -inf }
 0x59b   :  { %v3681_v5 = vmax.f32 %v3679_v42, %v3680_v36  ;;  %v3694_v28 = vrot.slane %v3693_v9, 4  ;;  %v3700_v11 = vsel %vm3104_vm2, %v13713_v51, -inf  ;;  %v3707_v10 = vsel %vm3104_vm2, %v13705_v30, -inf }
 0x59c   :  { %v3669_v24 = vmax.f32 %v3667_v0, %v3668_v44  ;;  %v3675_v56 = vrot.slane %v3674_v59, 2  ;;  %v3688_v35 = vmax.f32 %v3686_v45, %v3687_v32  ;;  %v3701_v8 = vrot.slane %v3700_v11, 4 }
 0x59d   :  { %v6281_v4 = vsel %vm3104_vm2, %v9582_v53, 0.0  ;;  %v3682_v2 = vrot.slane %v3681_v5, 2  ;;  %v3695_v54 = vmax.f32 %v3693_v9, %v3694_v28  ;;  %v3708_v27 = vrot.slane %v3707_v10, 4 }
 0x59e   :  { %v6282_v3 = vrot.slane %v6281_v4, 4  ;;  %v3670_v37 = vrot.slane %v3669_v24, 1  ;;  %v3676_v46 = vmax.f32 %v3674_v59, %v3675_v56  ;;  %v3689_v39 = vrot.slane %v3688_v35, 2 }
 0x59f   :  { %v3683_v16 = vmax.f32 %v3681_v5, %v3682_v2  ;;  %v3696_v18 = vrot.slane %v3695_v54, 2  ;;  %v13728_v33 = vmax.f32 %v3700_v11, %v3701_v8  ;;  %v13730_v12 = vmax.f32 %v3707_v10, %v3708_v27  ;;  %v9584_v25 = vpop.eup %9583 }
 0x5a0   :  { %v6283_v48 = vadd.f32 %v6282_v3, %v6281_v4  ;;  %v13732_v55 = vmax.f32 %v3669_v24, %v3670_v37  ;;  %v3677_v1 = vrot.slane %v3676_v46, 1  ;;  %v3690_v29 = vmax.f32 %v3688_v35, %v3689_v39 }
 0x5a1   :  { %v9586_v60 = vpop.eup %9585  ;;  %v6288_v57 = vsel %vm3104_vm2, %v9584_v25, 0.0  ;;  %v3684_v6 = vrot.slane %v3683_v16, 1  ;;  %v3697_v42 = vmax.f32 %v3695_v54, %v3696_v18 }
 0x5a2   :  { %v9588_v26 = vpop.eup %9587  ;;  %v6284_v36 = vrot.slane %v6283_v48, 2  ;;  %v6289_v45 = vrot.slane %v6288_v57, 4  ;;  %v6295_v44 = vsel %vm3104_vm2, %v9586_v60, 0.0  ;;  %v13737_v59 = vmax.f32 %v3676_v46, %v3677_v1 }
 0x5a3   :  { %v9590_v32 = vpop.eup %9589  ;;  %v6296_v9 = vrot.slane %v6295_v44, 4  ;;  %v6302_v5 = vsel %vm3104_vm2, %v9588_v26, 0.0  ;;  %v13740_v28 = vmax.f32 %v3683_v16, %v3684_v6  ;;  %v3691_v11 = vrot.slane %v3690_v29, 1 }
 0x5a4   :  { %v9592_v10 = vpop.eup %9591  ;;  %v6285_v53 = vadd.f32 %v6284_v36, %v6283_v48  ;;  %v6290_v24 = vadd.f32 %v6289_v45, %v6288_v57  ;;  %v6303_v56 = vrot.slane %v6302_v5, 4  ;;  %v6309_v35 = vsel %vm3104_vm2, %v9590_v32, 0.0 }
 0x5a5   :  { %v9594_v8 = vpop.eup %9593  ;;  %v6297_v4 = vadd.f32 %v6296_v9, %v6295_v44  ;;  %v6310_v2 = vrot.slane %v6309_v35, 4  ;;  %v6316_v54 = vsel %vm3104_vm2, %v9592_v10, 0.0  ;;  %v13744_v27 = vmax.f32 %v3690_v29, %v3691_v11 }
 0x5a6   :  { %v9596_v3 = vpop.eup %9595  ;;  %v6286_v37 = vrot.slane %v6285_v53, 1  ;;  %v6291_v46 = vrot.slane %v6290_v24, 2  ;;  %v6304_v39 = vadd.f32 %v6303_v56, %v6302_v5  ;;  %v6317_v16 = vrot.slane %v6316_v54, 4 }
 0x5a7   :  { %v6298_v18 = vrot.slane %v6297_v4, 2  ;;  %v6311_v25 = vadd.f32 %v6310_v2, %v6309_v35  ;;  %v6323_v48 = vsel %vm3104_vm2, %v9594_v8, 0.0  ;;  %v6330_v1 = vsel %vm3104_vm2, %v9596_v3, 0.0 }
 0x5a8   :  { %v6287_v60 = vadd.f32 %v6286_v37, %v6285_v53  ;;  %v6292_v57 = vadd.f32 %v6291_v46, %v6290_v24  ;;  %v6305_v6 = vrot.slane %v6304_v39, 2  ;;  %v6318_v26 = vadd.f32 %v6317_v16, %v6316_v54 }
 0x5a9   :  { %v6299_v36 = vadd.f32 %v6298_v18, %v6297_v4  ;;  %v6312_v45 = vrot.slane %v6311_v25, 2  ;;  %v6324_v44 = vrot.slane %v6323_v48, 4  ;;  %v6331_v29 = vrot.slane %v6330_v1, 4 }
 0x5aa   :  { %v6293_v32 = vrot.slane %v6292_v57, 1  ;;  %v6306_v9 = vadd.f32 %v6305_v6, %v6304_v39  ;;  %v6319_v11 = vrot.slane %v6318_v26, 2  ;;  %9597 = vlog2.f32 %v6287_v60 }
 0x5ab   :  { %v6300_v5 = vrot.slane %v6299_v36, 1  ;;  %v6313_v10 = vadd.f32 %v6312_v45, %v6311_v25  ;;  %v6325_v56 = vadd.f32 %v6324_v44, %v6323_v48  ;;  %v6332_v35 = vadd.f32 %v6331_v29, %v6330_v1 }
 0x5ac   :  { %v6294_v2 = vadd.f32 %v6293_v32, %v6292_v57  ;;  %v6307_v8 = vrot.slane %v6306_v9, 1  ;;  %v6320_v0 = vadd.f32 %v6319_v11, %v6318_v26  ;;  %v3698_v3 = vrot.slane %v3697_v42, 1 }
 0x5ad   :  { %v6301_v53 = vadd.f32 %v6300_v5, %v6299_v36  ;;  %v6314_v24 = vrot.slane %v6313_v10, 1  ;;  %v6326_v37 = vrot.slane %v6325_v56, 2  ;;  %v6333_v54 = vrot.slane %v6332_v35, 2 }
 0x5ae   :  { %v6308_v4 = vadd.f32 %v6307_v8, %v6306_v9  ;;  %v6321_v46 = vrot.slane %v6320_v0, 1  ;;  %9599 = vlog2.f32 %v6294_v2  ;;  %v13748_v16 = vmax.f32 %v3697_v42, %v3698_v3 }
 0x5af   :  { %v6315_v39 = vadd.f32 %v6314_v24, %v6313_v10  ;;  %v6327_v18 = vadd.f32 %v6326_v37, %v6325_v56  ;;  %v6334_v60 = vadd.f32 %v6333_v54, %v6332_v35  ;;  %9601 = vlog2.f32 %v6301_v53 }
 0x5b0   :  { %v6322_v25 = vadd.f32 %v6321_v46, %v6320_v0  ;;  %9603 = vlog2.f32 %v6308_v4  ;;  %v15456_v48 = vrot.slane %v13728_v33, 2  ;;  %v3710_v57 = vrot.slane %v13730_v12, 2 }
 0x5b1   :  { %v6328_v6 = vrot.slane %v6327_v18, 1  ;;  %v6335_v26 = vrot.slane %v6334_v60, 1  ;;  %9605 = vlog2.f32 %v6315_v39  ;;  %v3714_v36 = vsel %vm3104_vm2, %v13717_v47, -inf }
 0x5b2   :  { %v3704_v1 = vmax.f32 %v13728_v33, %v15456_v48  ;;  %9607 = vlog2.f32 %v6322_v25  ;;  %v3711_v45 = vmax.f32 %v13730_v12, %v3710_v57  ;;  %v3715_v44 = vrot.slane %v3714_v36, 4 }
 0x5b3   :  { %v6329_v29 = vadd.f32 %v6328_v6, %v6327_v18  ;;  %v6336_v0 = vadd.f32 %v6335_v26, %v6334_v60  ;;  %v4977_v32 = vsub.f32 %v13677_v38, %v13732_v55  ;;  %v4978_v33 = vsub.f32 %v13693_v31, %v13737_v59 }
 0x5b4   :  { %v3705_v42 = vrot.slane %v3704_v1, 1  ;;  %v3712_v11 = vrot.slane %v3711_v45, 1  ;;  %v3716_v5 = vmax.f32 %v3714_v36, %v3715_v44  ;;  %v4979_v10 = vsub.f32 %v13681_v7, %v13740_v28 }
 0x5b5   :  { %9609 = vlog2.f32 %v6329_v29  ;;  %v4980_v12 = vsub.f32 %v13702_v15, %v13744_v27  ;;  %v4981_v56 = vsub.f32 %v13698_v20, %v13748_v16  ;;  %v5313_v35 = vmul.f32 1.442695, %v4977_v32 }
 0x5b6   :  { %v13761_v9 = vmax.f32 %v3704_v1, %v3705_v42  ;;  %9611 = vlog2.f32 %v6336_v0  ;;  %v13769_v38 = vmax.f32 %v3711_v45, %v3712_v11  ;;  %v3717_v2 = vrot.slane %v3716_v5, 2 }
 0x5b7   :  { %v9598_v8 = vpop.eup %9597  ;;  %9613 = vpow2.f32 %v5313_v35  ;;  %v5315_v3 = vmul.f32 1.442695, %v4978_v33  ;;  %v5317_v53 = vmul.f32 1.442695, %v4979_v10  ;;  %v5319_v7 = vmul.f32 1.442695, %v4980_v12 }
 0x5b8   :  { %v4982_v31 = vsub.f32 %v13713_v51, %v13761_v9  ;;  %v7634_v24 = vmul.f32 0.6931472, %v9598_v8  ;;  %v3718_v37 = vmax.f32 %v3716_v5, %v3717_v2  ;;  %v4983_v15 = vsub.f32 %v13705_v30, %v13769_v38 }
 0x5b9   :  { %v5321_v54 = vmul.f32 1.442695, %v4981_v56  ;;  %9615 = vpow2.f32 %v5315_v3  ;;  %v15457_v4 = vcombine.low %v13325_v23, %v13534_v14  ;;  %v15458_v51 = vcombine.high %v13325_v23, %v13534_v14 }
 0x5ba   :  { %v5323_v20 = vmul.f32 1.442695, %v4982_v31  ;;  %v8057_v18 = vadd.f32 %v7634_v24, %v13613_v34  ;;  %v3719_v60 = vrot.slane %v3718_v37, 1  ;;  %9617 = vpow2.f32 %v5317_v53 }
 0x5bb   :  { %v2788_v46 = vrot.slane %v15457_v4, %v10581_v63  ;;  %v2795_v39 = vrot.slane %v15458_v51, %v10581_v63  ;;  %v5325_v25 = vmul.f32 1.442695, %v4983_v15  ;;  %v9600_v48 = vpop.eup %9599  ;;  %9619 = vpow2.f32 %v5319_v7 }
 0x5bc   :  { %v9602_v6 = vpop.eup %9601  ;;  %v7636_v26 = vmul.f32 0.6931472, %v9600_v48  ;;  %v13787_v36 = vmax.f32 %v3718_v37, %v3719_v60  ;;  %9621 = vpow2.f32 %v5321_v54 }
 0x5bd   :  { %v2796_v30 = vcombine.low %v13520_v58, %v2788_v46  ;;  %v2797_v1 = vcombine.high %v13520_v58, %v2788_v46  ;;  %v2812_v57 = vcombine.low %v13526_v21, %v2795_v39  ;;  %v2813_v23 = vcombine.high %v13526_v21, %v2795_v39  ;;  %v9604_v14 = vpop.eup %9603 }
 0x5be   :  { %v7638_v34 = vmul.f32 0.6931472, %v9602_v6  ;;  %9623 = vpow2.f32 %v5323_v20  ;;  %v9606_v44 = vpop.eup %9605  ;;  %v7640_v58 = vmul.f32 0.6931472, %v9604_v14  ;;  %v8058_v29 = vadd.f32 %v7636_v26, %v13618_v49 }
 0x5bf   :  { %v13791_v42 = vrot.slane %v2796_v30, %v15426_v17  ;;  %v13794_v45 = vrot.slane %v2797_v1, %v15426_v17  ;;  %v4984_v0 = vsub.f32 %v13717_v47, %v13787_v36  ;;  %9625 = vpow2.f32 %v5325_v25  ;;  %v9608_v32 = vpop.eup %9607 }
 0x5c0   :  { %v7642_v33 = vmul.f32 0.6931472, %v9606_v44  ;;  %v8059_v21 = vadd.f32 %v7638_v34, %v13632_v43  ;;  %v13801_v11 = vrot.slane %v2812_v57, %v15426_v17  ;;  %v13804_v5 = vrot.slane %v2813_v23, %v15426_v17 }
 0x5c1   :  { %v7644_v10 = vmul.f32 0.6931472, %v9608_v32  ;;  %v8060_v12 = vadd.f32 %v7640_v58, %v13635_v19  ;;  %v8565_v56 = vsel %vm8481_vm3, %v8058_v29, %v8057_v18  ;;  %v5327_v49 = vmul.f32 1.442695, %v4984_v0 }
 0x5c2   :  { %v8061_v35 = vadd.f32 %v7642_v33, %v13645_v41  ;;  %v8566_v47 = vsel %vm8483_vm4, %v8059_v21, %v8565_v56  ;;  %v13812_v2 = vcombine.high %v13791_v42, %v15454_v62  ;;  %v13816_v43 = vcombine.high %v13794_v45, %v15454_v62  ;;  %v9610_v31 = vpop.eup %9609 }
 0x5c3   :  { %v8062_v8 = vadd.f32 %v7644_v10, %v13650_v22  ;;  %v8567_v19 = vsel %vm8485_vm5, %v8060_v12, %v8566_v47  ;;  %9627 = vpow2.f32 %v5327_v49  ;;  %v13822_v3 = vcombine.high %v13801_v11, %v15454_v62  ;;  %v9612_v41 = vpop.eup %9611 }
 0x5c4   :  { %v7646_v53 = vmul.f32 0.6931472, %v9610_v31  ;;  %v8568_v7 = vsel %vm8487_vm6, %v8061_v35, %v8567_v19  ;;  %v13827_v24 = vcombine.high %v13804_v5, %v15454_v62  ;;  %v4617_v37 = vsel %vm3104_vm2, %v13791_v42, -inf  ;;  %v9614_v15 = vpop.eup %9613 }
 0x5c5   :  { %v7648_v22 = vmul.f32 0.6931472, %v9612_v41  ;;  %v8569_v54 = vsel %vm8489_vm7, %v8062_v8, %v8568_v7  ;;  %v4618_v20 = vrot.slane %v4617_v37, 4  ;;  %v4624_v4 = vsel %vm3104_vm2, %v13812_v2, -inf }
 0x5c6   :  { %v8063_v46 = vadd.f32 %v7646_v53, %v13653_v61  ;;  %v6225_v51 = vsel %vm3104_vm2, %v9614_v15, 0.0  ;;  %v4625_v39 = vrot.slane %v4624_v4, 4  ;;  %v13838_v18 = vsel %vm3104_vm2, %v13794_v45, -inf  ;;  %v9616_v60 = vpop.eup %9615 }
 0x5c7   :  { %v8064_v25 = vadd.f32 %v7648_v22, %v13658_v40  ;;  %v6226_v48 = vrot.slane %v6225_v51, 4  ;;  %v4619_v30 = vmax.f32 %v4617_v37, %v4618_v20  ;;  %v4632_v1 = vrot.slane %v13838_v18, 4  ;;  %v9618_v57 = vpop.eup %9617 }
 0x5c8   :  { %v8570_v6 = vsel %vm8491_vm8, %v8063_v46, %v8569_v54  ;;  %v6232_v26 = vsel %vm3104_vm2, %v9616_v60, 0.0  ;;  %v13844_v61 = vmax.f32 %v4624_v4, %v4625_v39  ;;  %v13848_v23 = vsel %vm3104_vm2, %v13816_v43, -inf  ;;  %v9620_v14 = vpop.eup %9619 }
 0x5c9   :  { %v8571_v34 = vsel %vm8493_vm9, %v8064_v25, %v8570_v6  ;;  %v6227_v44 = vadd.f32 %v6226_v48, %v6225_v51  ;;  %v6233_v40 = vrot.slane %v6232_v26, 4  ;;  %v6239_v58 = vsel %vm3104_vm2, %v9618_v57, 0.0  ;;  %v9622_v29 = vpop.eup %9621 }
 0x5ca   :  { %8756 = vst.msk [vmem:[%s15233_s3 + $0x58] sm:$0xff] %vm8744_vm10, %v8571_v34  ;;  %v6240_v0 = vrot.slane %v6239_v58, 4  ;;  %v6246_v32 = vsel %vm3104_vm2, %v9620_v14, 0.0  ;;  %v4620_v33 = vrot.slane %v4619_v30, 2  ;;  %v4627_v21 = vrot.slane %v13844_v61, 2 }
 0x5cb   :  { %v9624_v10 = vpop.eup %9623  ;;  %v6228_v12 = vrot.slane %v6227_v44, 2  ;;  %v6234_v56 = vadd.f32 %v6233_v40, %v6232_v26  ;;  %v6247_v49 = vrot.slane %v6246_v32, 4  ;;  %v6253_v35 = vsel %vm3104_vm2, %v9622_v29, 0.0 }
 0x5cc   :  { %v9626_v47 = vpop.eup %9625  ;;  %v6241_v31 = vadd.f32 %v6240_v0, %v6239_v58  ;;  %v6254_v8 = vrot.slane %v6253_v35, 4  ;;  %v6260_v19 = vsel %vm3104_vm2, %v9624_v10, 0.0  ;;  %v4621_v41 = vmax.f32 %v4619_v30, %v4620_v33 }
 0x5cd   :  { %v6229_v53 = vadd.f32 %v6228_v12, %v6227_v44  ;;  %v6235_v7 = vrot.slane %v6234_v56, 2  ;;  %v6248_v37 = vadd.f32 %v6247_v49, %v6246_v32  ;;  %v6261_v15 = vrot.slane %v6260_v19, 4 }
 0x5ce   :  { %v6242_v22 = vrot.slane %v6241_v31, 2  ;;  %v6255_v54 = vadd.f32 %v6254_v8, %v6253_v35  ;;  %v6267_v20 = vsel %vm3104_vm2, %v9626_v47, 0.0  ;;  %v4622_v4 = vrot.slane %v4621_v41, 1 }
 0x5cf   :  { %v6230_v46 = vrot.slane %v6229_v53, 1  ;;  %v6236_v51 = vadd.f32 %v6235_v7, %v6234_v56  ;;  %v6249_v39 = vrot.slane %v6248_v37, 2  ;;  %v6262_v60 = vadd.f32 %v6261_v15, %v6260_v19 }
 0x5d0   :  { %v9628_v25 = vpop.eup %9627  ;;  %v6243_v48 = vadd.f32 %v6242_v22, %v6241_v31  ;;  %v6256_v57 = vrot.slane %v6255_v54, 2  ;;  %v6268_v6 = vrot.slane %v6267_v20, 4  ;;  %v13861_v26 = vmax.f32 %v4621_v41, %v4622_v4 }
 0x5d1   :  { %v6231_v30 = vadd.f32 %v6230_v46, %v6229_v53  ;;  %v6237_v14 = vrot.slane %v6236_v51, 1  ;;  %v6250_v34 = vadd.f32 %v6249_v39, %v6248_v37  ;;  %v6263_v44 = vrot.slane %v6262_v60, 2 }
 0x5d2   :  { %v6244_v40 = vrot.slane %v6243_v48, 1  ;;  %v6257_v58 = vadd.f32 %v6256_v57, %v6255_v54  ;;  %v6269_v29 = vadd.f32 %v6268_v6, %v6267_v20  ;;  %v6274_v0 = vsel %vm3104_vm2, %v9628_v25, 0.0 }
 0x5d3   :  { %v6238_v32 = vadd.f32 %v6237_v14, %v6236_v51  ;;  %v6251_v33 = vrot.slane %v6250_v34, 1  ;;  %v6264_v10 = vadd.f32 %v6263_v44, %v6262_v60  ;;  %v6275_v12 = vrot.slane %v6274_v0, 4 }
 0x5d4   :  { %v6245_v56 = vadd.f32 %v6244_v40, %v6243_v48  ;;  %v6258_v49 = vrot.slane %v6257_v58, 1  ;;  %v6270_v35 = vrot.slane %v6269_v29, 2  ;;  %9629 = vlog2.f32 %v6231_v30 }
 0x5d5   :  { %v6252_v47 = vadd.f32 %v6251_v33, %v6250_v34  ;;  %v6265_v31 = vrot.slane %v6264_v10, 1  ;;  %v6276_v8 = vadd.f32 %v6275_v12, %v6274_v0  ;;  %9631 = vlog2.f32 %v6238_v32  ;;  %v13880_v32 = vpop.permute.xlu0 %884 }
 0x5d6   :  { %v6259_v19 = vadd.f32 %v6258_v49, %v6257_v58  ;;  %v6271_v41 = vadd.f32 %v6270_v35, %v6269_v29  ;;  %9633 = vlog2.f32 %v6245_v56  ;;  %v4628_v53 = vmax.f32 %v13844_v61, %v4627_v21 }
 0x5d7   :  { %v6266_v7 = vadd.f32 %v6265_v31, %v6264_v10  ;;  %v6277_v37 = vrot.slane %v6276_v8, 2  ;;  %9635 = vlog2.f32 %v6252_v47  ;;  %v4633_v15 = vmax.f32 %v13838_v18, %v4632_v1  ;;  %v13886_v31 = vpop.permute.xlu1 %666 }
 0x5d8   :  { %v6272_v22 = vrot.slane %v6271_v41, 1  ;;  %9637 = vlog2.f32 %v6259_v19  ;;  %v4629_v54 = vrot.slane %v4628_v53, 1  ;;  %v4639_v20 = vrot.slane %v13848_v23, 4 }
 0x5d9   :  { %v6278_v4 = vadd.f32 %v6277_v37, %v6276_v8  ;;  %9639 = vlog2.f32 %v6266_v7  ;;  %v4634_v46 = vrot.slane %v4633_v15, 2  ;;  %v4645_v51 = vsel %vm3104_vm2, %v13801_v11, -inf }
 0x5da   :  { %v6273_v39 = vadd.f32 %v6272_v22, %v6271_v41  ;;  %v13871_v61 = vmax.f32 %v4628_v53, %v4629_v54  ;;  %v4640_v21 = vmax.f32 %v13848_v23, %v4639_v20  ;;  %v4646_v60 = vrot.slane %v4645_v51, 4 }
 0x5db   :  { %v6279_v25 = vrot.slane %v6278_v4, 1  ;;  %v4635_v48 = vmax.f32 %v4633_v15, %v4634_v46  ;;  %v4652_v18 = vsel %vm3104_vm2, %v13822_v3, -inf  ;;  %v4659_v1 = vsel %vm3104_vm2, %v13804_v5, -inf }
 0x5dc   :  { %9641 = vlog2.f32 %v6273_v39  ;;  %v4641_v57 = vrot.slane %v4640_v21, 2  ;;  %v4647_v6 = vmax.f32 %v4645_v51, %v4646_v60  ;;  %v4653_v30 = vrot.slane %v4652_v18, 4 }
 0x5dd   :  { %v6280_v14 = vadd.f32 %v6279_v25, %v6278_v4  ;;  %v4636_v34 = vrot.slane %v4635_v48, 1  ;;  %v4660_v44 = vrot.slane %v4659_v1, 4  ;;  %v4666_v40 = vsel %vm3104_vm2, %v13827_v24, -inf }
 0x5de   :  { %v4642_v23 = vmax.f32 %v4640_v21, %v4641_v57  ;;  %v4648_v58 = vrot.slane %v4647_v6, 2  ;;  %v4654_v29 = vmax.f32 %v4652_v18, %v4653_v30  ;;  %v4667_v0 = vrot.slane %v4666_v40, 4 }
 0x5df   :  { %9643 = vlog2.f32 %v6280_v14  ;;  %v13882_v33 = vmax.f32 %v4635_v48, %v4636_v34  ;;  %v4661_v10 = vmax.f32 %v4659_v1, %v4660_v44  ;;  %v5113_v12 = vsub.f32 %v13791_v42, %v13861_v26 }
 0x5e0   :  { %v4643_v56 = vrot.slane %v4642_v23, 1  ;;  %v4649_v49 = vmax.f32 %v4647_v6, %v4648_v58  ;;  %v4655_v35 = vrot.slane %v4654_v29, 2  ;;  %v4668_v47 = vmax.f32 %v4666_v40, %v4667_v0  ;;  %v13905_v40 = vpop.permute.xlu1 %698 }
 0x5e1   :  { %v9630_v8 = vpop.eup %9629  ;;  %v4662_v19 = vrot.slane %v4661_v10, 2  ;;  %v5114_v41 = vsub.f32 %v13812_v2, %v13871_v61  ;;  %v5115_v53 = vsub.f32 %v13794_v45, %v13882_v33  ;;  %v5585_v7 = vmul.f32 1.442695, %v5113_v12  ;;  %v13897_v45 = vpop.permute.xlu0 %664 }
 0x5e2   :  { %v9632_v37 = vpop.eup %9631  ;;  %v7618_v15 = vmul.f32 0.6931472, %v9630_v8  ;;  %v13892_v22 = vmax.f32 %v4642_v23, %v4643_v56  ;;  %v4650_v42 = vrot.slane %v4649_v49, 1  ;;  %v4656_v54 = vmax.f32 %v4654_v29, %v4655_v35 }
 0x5e3   :  { %v9634_v20 = vpop.eup %9633  ;;  %v7620_v4 = vmul.f32 0.6931472, %v9632_v37  ;;  %v4663_v46 = vmax.f32 %v4661_v10, %v4662_v19  ;;  %v4669_v51 = vrot.slane %v4668_v47, 2  ;;  %9645 = vpow2.f32 %v5585_v7 }
 0x5e4   :  { %v9636_v39 = vpop.eup %9635  ;;  %v7622_v21 = vmul.f32 0.6931472, %v9634_v20  ;;  %v8049_v60 = vadd.f32 %v7618_v15, %v13732_v55  ;;  %v13895_v2 = vmax.f32 %v4649_v49, %v4650_v42  ;;  %v4657_v25 = vrot.slane %v4656_v54, 1  ;;  %v763_v20 = vpop.permute.xlu1 %762 }
 0x5e5   :  { %v9638_v48 = vpop.eup %9637  ;;  %v7624_v18 = vmul.f32 0.6931472, %v9636_v39  ;;  %v8050_v1 = vadd.f32 %v7620_v4, %v13737_v59  ;;  %v4664_v57 = vrot.slane %v4663_v46, 1  ;;  %v4670_v6 = vmax.f32 %v4668_v47, %v4669_v51  ;;  %v13924_v7 = vpop.permute.xlu0 %696 }
 0x5e6   :  { %v9640_v30 = vpop.eup %9639  ;;  %v7626_v14 = vmul.f32 0.6931472, %v9638_v48  ;;  %v8051_v34 = vadd.f32 %v7622_v21, %v13740_v28  ;;  %v13901_v44 = vmax.f32 %v4656_v54, %v4657_v25  ;;  %v5116_v55 = vsub.f32 %v13816_v43, %v13892_v22  ;;  %15459 = vst [vmem:[#allocation13_spill] sm:$0xff] %v13924_v7 }
 0x5e7   :  { %v7628_v23 = vmul.f32 0.6931472, %v9640_v30  ;;  %v8052_v58 = vadd.f32 %v7624_v18, %v13744_v27  ;;  %v8558_v29 = vsel %vm8481_vm3, %v8050_v1, %v8049_v60  ;;  %v13909_v0 = vmax.f32 %v4663_v46, %v4664_v57  ;;  %v15461_v60 = vld [vmem:[#allocation27_spill] sm:$0xff] }
 0x5e8   :  { %v8053_v59 = vadd.f32 %v7626_v14, %v13748_v16  ;;  %v8559_v10 = vsel %vm8483_vm4, %v8051_v34, %v8558_v29  ;;  %v4671_v12 = vrot.slane %v4670_v6, 1  ;;  %v5117_v28 = vsub.f32 %v13801_v11, %v13895_v2  ;;  %v15463_v29 = vld [vmem:[#allocation28_spill] sm:$0xff] }
 0x5e9   :  { %v9642_v56 = vpop.eup %9641  ;;  %v8054_v43 = vadd.f32 %v7628_v23, %v13761_v9  ;;  %v8560_v49 = vsel %vm8485_vm5, %v8052_v58, %v8559_v10  ;;  %v5118_v27 = vsub.f32 %v13822_v3, %v13901_v44  ;;  %v5119_v35 = vsub.f32 %v13804_v5, %v13909_v0  ;;  %v13944_v30 = vpop.permute.xlu0 %760 }
 0x5ea   :  { %v7630_v47 = vmul.f32 0.6931472, %v9642_v56  ;;  %v8561_v16 = vsel %vm8487_vm6, %v8053_v59, %v8560_v49  ;;  %v13922_v8 = vmax.f32 %v4670_v6, %v4671_v12  ;;  %v5587_v19 = vmul.f32 1.442695, %v5114_v41  ;;  %v15460_v41 = vld [vmem:[#allocation5_spill] sm:$0xff] }
 0x5eb   :  { %v8562_v11 = vsel %vm8489_vm7, %v8054_v43, %v8561_v16  ;;  %v5589_v37 = vmul.f32 1.442695, %v5115_v53  ;;  %v5591_v9 = vmul.f32 1.442695, %v5116_v55  ;;  %v5593_v15 = vmul.f32 1.442695, %v5117_v28 }
 0x5ec   :  { %v9644_v42 = vpop.eup %9643  ;;  %v8055_v54 = vadd.f32 %v7630_v47, %v13769_v38  ;;  %v5120_v3 = vsub.f32 %v13827_v24, %v13922_v8  ;;  %9647 = vpow2.f32 %v5587_v19  ;;  %v5595_v5 = vmul.f32 1.442695, %v5118_v27 }
 0x5ed   :  { %v7632_v4 = vmul.f32 0.6931472, %v9644_v42  ;;  %9649 = vpow2.f32 %v5589_v37  ;;  %v5597_v46 = vmul.f32 1.442695, %v5119_v35  ;;  %v2712_v51 = vcombine.low %v15460_v41, %v13880_v32 }
 0x5ee   :  { %v8563_v39 = vsel %vm8491_vm8, %v8055_v54, %v8562_v11  ;;  %9651 = vpow2.f32 %v5591_v9  ;;  %v5599_v53 = vmul.f32 1.442695, %v5120_v3  ;;  %v2713_v21 = vcombine.high %v15460_v41, %v13880_v32 }
 0x5ef   :  { %v8056_v38 = vadd.f32 %v7632_v4, %v13787_v36  ;;  %9653 = vpow2.f32 %v5593_v15  ;;  %v2720_v24 = vrot.slane %v2712_v51, %v10581_v63  ;;  %v1812_v25 = vcombine.low %v15461_v60, %v763_v20 }
 0x5f0   :  { %v9646_v48 = vpop.eup %9645  ;;  %v15462_v18 = vcombine.high %v15447_v52, %v13381_v50  ;;  %9655 = vpow2.f32 %v5595_v5  ;;  %v2727_v57 = vrot.slane %v2713_v21, %v10581_v63  ;;  %v1813_v6 = vcombine.high %v15461_v60, %v763_v20 }
 0x5f1   :  { %v8564_v36 = vsel %vm8493_vm9, %v8056_v38, %v8563_v39  ;;  %9657 = vpow2.f32 %v5597_v46  ;;  %v7177_v32 = vsel %vm3104_vm2, %v9646_v48, 0.0  ;;  %v2728_v14 = vcombine.low %v13545_v13, %v2720_v24 }
 0x5f2   :  { %v2711_v1 = vrot.slane %v15462_v18, %v10581_v63  ;;  %8755 = vst.msk [vmem:[%s15233_s3 + $0x50] sm:$0xff] %vm8744_vm10, %v8564_v36  ;;  %9659 = vpow2.f32 %v5599_v53  ;;  %v7178_v50 = vrot.slane %v7177_v32, 4  ;;  %v2729_v52 = vcombine.high %v13545_v13, %v2720_v24 }
 0x5f3   :  { %v13955_v55 = vrot.slane %v2728_v14, %v15426_v17  ;;  %v13958_v58 = vrot.slane %v1812_v25, %v10581_v63  ;;  %v1744_v59 = vcombine.low %v15463_v29, %v13944_v30  ;;  %v13969_v13 = vrot.slane %v1813_v6, %v10581_v63 }
 0x5f4   :  { %v2744_v34 = vcombine.low %v2711_v1, %v2727_v57  ;;  %v2745_v23 = vcombine.high %v2711_v1, %v2727_v57  ;;  %v7179_v10 = vadd.f32 %v7178_v50, %v7177_v32  ;;  %v13963_v12 = vrot.slane %v2729_v52, %v15426_v17 }
 0x5f5   :  { %v13976_v43 = vcombine.high %v13955_v55, %v15454_v62  ;;  %v4561_v49 = vsel %vm3104_vm2, %v13955_v55, -inf  ;;  %v13999_v15 = vrot.slane %v1744_v59, %v10581_v63 }
 0x5f6   :  { %v13966_v28 = vrot.slane %v2744_v34, %v15426_v17  ;;  %v13972_v56 = vrot.slane %v2745_v23, %v15426_v17  ;;  %v7180_v35 = vrot.slane %v7179_v10, 2  ;;  %v13984_v47 = vcombine.high %v13963_v12, %v15454_v62 }
 0x5f7   :  { %v4562_v19 = vrot.slane %v4561_v49, 4  ;;  %v4568_v11 = vsel %vm3104_vm2, %v13976_v43, -inf  ;;  %v4575_v37 = vsel %vm3104_vm2, %v13963_v12, -inf  ;;  %15464 = vst [vmem:[#allocation7_spill] sm:$0xff] %v13999_v15 }
 0x5f8   :  { %v13988_v16 = vcombine.high %v13966_v28, %v15454_v62  ;;  %v13996_v9 = vsel %vm3104_vm2, %v13966_v28, -inf  ;;  %v7181_v42 = vadd.f32 %v7180_v35, %v7179_v10  ;;  %v4569_v3 = vrot.slane %v4568_v11, 4 }
 0x5f9   :  { %v4563_v54 = vmax.f32 %v4561_v49, %v4562_v19  ;;  %v4576_v5 = vrot.slane %v4575_v37, 4  ;;  %v9648_v20 = vpop.eup %9647  ;;  %v14003_v4 = vcombine.high %v13972_v56, %v15454_v62  ;;  %v14007_v46 = vsel %vm3104_vm2, %v13984_v47, -inf }
 0x5fa   :  { %v14012_v51 = vsel %vm3104_vm2, %v13988_v16, -inf  ;;  %v9650_v39 = vpop.eup %9649  ;;  %v7182_v53 = vrot.slane %v7181_v42, 1  ;;  %v7184_v21 = vsel %vm3104_vm2, %v9648_v20, 0.0  ;;  %v14017_v24 = vsel %vm3104_vm2, %v13972_v56, -inf }
 0x5fb   :  { %v4564_v38 = vrot.slane %v4563_v54, 2  ;;  %v9652_v60 = vpop.eup %9651  ;;  %v7185_v25 = vrot.slane %v7184_v21, 4  ;;  %v7191_v48 = vsel %vm3104_vm2, %v9650_v39, 0.0  ;;  %v4570_v18 = vmax.f32 %v4568_v11, %v4569_v3 }
 0x5fc   :  { %v14020_v1 = vmax.f32 %v4575_v37, %v4576_v5  ;;  %v9654_v57 = vpop.eup %9653  ;;  %v7183_v6 = vadd.f32 %v7182_v53, %v7181_v42  ;;  %v7192_v36 = vrot.slane %v7191_v48, 4  ;;  %v7198_v32 = vsel %vm3104_vm2, %v9652_v60, 0.0 }
 0x5fd   :  { %v4583_v14 = vrot.slane %v14007_v46, 4  ;;  %v9656_v50 = vpop.eup %9655  ;;  %v7186_v52 = vadd.f32 %v7185_v25, %v7184_v21  ;;  %v7199_v34 = vrot.slane %v7198_v32, 4  ;;  %v7205_v23 = vsel %vm3104_vm2, %v9654_v57, 0.0 }
 0x5fe   :  { %v4565_v59 = vmax.f32 %v4563_v54, %v4564_v38  ;;  %v9658_v10 = vpop.eup %9657  ;;  %v7193_v49 = vadd.f32 %v7192_v36, %v7191_v48  ;;  %v7206_v35 = vrot.slane %v7205_v23, 4  ;;  %v7212_v19 = vsel %vm3104_vm2, %v9656_v50, 0.0 }
 0x5ff   :  { %9661 = vlog2.f32 %v7183_v6  ;;  %v9660_v11 = vpop.eup %9659  ;;  %v7187_v37 = vrot.slane %v7186_v52, 2  ;;  %v7200_v42 = vadd.f32 %v7199_v34, %v7198_v32  ;;  %v7213_v3 = vrot.slane %v7212_v19, 4 }
 0x600   :  { %v7219_v5 = vsel %vm3104_vm2, %v9658_v10, 0.0  ;;  %v7194_v20 = vrot.slane %v7193_v49, 2  ;;  %v7207_v39 = vadd.f32 %v7206_v35, %v7205_v23  ;;  %v7226_v21 = vsel %vm3104_vm2, %v9660_v11, 0.0 }
 0x601   :  { %v7220_v53 = vrot.slane %v7219_v5, 4  ;;  %v7188_v60 = vadd.f32 %v7187_v37, %v7186_v52  ;;  %v7201_v25 = vrot.slane %v7200_v42, 2  ;;  %v7214_v54 = vadd.f32 %v7213_v3, %v7212_v19 }
 0x602   :  { %v7227_v38 = vrot.slane %v7226_v21, 4  ;;  %v7195_v48 = vadd.f32 %v7194_v20, %v7193_v49  ;;  %v7208_v57 = vrot.slane %v7207_v39, 2  ;;  %v4571_v50 = vrot.slane %v4570_v18, 2 }
 0x603   :  { %v7221_v36 = vadd.f32 %v7220_v53, %v7219_v5  ;;  %v7189_v6 = vrot.slane %v7188_v60, 1  ;;  %v7202_v27 = vadd.f32 %v7201_v25, %v7200_v42  ;;  %v7215_v41 = vrot.slane %v7214_v54, 2 }
 0x604   :  { %v7228_v32 = vadd.f32 %v7227_v38, %v7226_v21  ;;  %v7196_v34 = vrot.slane %v7195_v48, 1  ;;  %v7209_v7 = vadd.f32 %v7208_v57, %v7207_v39  ;;  %v4566_v15 = vrot.slane %v4565_v59, 1 }
 0x605   :  { %v7222_v10 = vrot.slane %v7221_v36, 2  ;;  %v7190_v23 = vadd.f32 %v7189_v6, %v7188_v60  ;;  %v7203_v35 = vrot.slane %v7202_v27, 1  ;;  %v7216_v62 = vadd.f32 %v7215_v41, %v7214_v54 }
 0x606   :  { %v7229_v11 = vrot.slane %v7228_v32, 2  ;;  %v7197_v52 = vadd.f32 %v7196_v34, %v7195_v48  ;;  %v7210_v37 = vrot.slane %v7209_v7, 1  ;;  %v4572_v3 = vmax.f32 %v4570_v18, %v4571_v50 }
 0x607   :  { %v7223_v19 = vadd.f32 %v7222_v10, %v7221_v36  ;;  %v7204_v49 = vadd.f32 %v7203_v35, %v7202_v27  ;;  %v7217_v20 = vrot.slane %v7216_v62, 1  ;;  %9663 = vlog2.f32 %v7190_v23 }
 0x608   :  { %v7230_v5 = vadd.f32 %v7229_v11, %v7228_v32  ;;  %v7211_v53 = vadd.f32 %v7210_v37, %v7209_v7  ;;  %9665 = vlog2.f32 %v7197_v52  ;;  %v4573_v21 = vrot.slane %v4572_v3, 1 }
 0x609   :  { %v7224_v42 = vrot.slane %v7223_v19, 1  ;;  %v7218_v25 = vadd.f32 %v7217_v20, %v7216_v62  ;;  %9667 = vlog2.f32 %v7204_v49  ;;  %v4578_v60 = vrot.slane %v14020_v1, 2 }
 0x60a   :  { %v7231_v39 = vrot.slane %v7230_v5, 1  ;;  %9669 = vlog2.f32 %v7211_v53  ;;  %v14029_v41 = vmax.f32 %v4565_v59, %v4566_v15  ;;  %v4584_v54 = vmax.f32 %v14007_v46, %v4583_v14 }
 0x60b   :  { %v7225_v38 = vadd.f32 %v7224_v42, %v7223_v19  ;;  %9671 = vlog2.f32 %v7218_v25  ;;  %v4579_v48 = vmax.f32 %v14020_v1, %v4578_v60  ;;  %v15465_v7 = vrot.slane %v13996_v9, 4 }
 0x60c   :  { %v9662_v18 = vpop.eup %9661  ;;  %v7232_v27 = vadd.f32 %v7231_v39, %v7230_v5  ;;  %v14036_v62 = vmax.f32 %v4572_v3, %v4573_v21  ;;  %v4585_v36 = vrot.slane %v4584_v54, 2  ;;  %v4597_v50 = vrot.slane %v14012_v51, 4 }
 0x60d   :  { %v4591_v57 = vmax.f32 %v13996_v9, %v15465_v7  ;;  %9673 = vlog2.f32 %v7225_v38  ;;  %v4580_v15 = vrot.slane %v4579_v48, 1  ;;  %v4604_v46 = vrot.slane %v14017_v24, 4 }
 0x60e   :  { %9675 = vlog2.f32 %v7232_v27  ;;  %v7890_v14 = vmul.f32 0.6931472, %v9662_v18  ;;  %v4586_v6 = vmax.f32 %v4584_v54, %v4585_v36  ;;  %v4598_v32 = vmax.f32 %v14012_v51, %v4597_v50  ;;  %v14059_v54 = vpop.permute.xlu1 %794 }
 0x60f   :  { %v4592_v59 = vrot.slane %v4591_v57, 2  ;;  %v4610_v1 = vsel %vm3104_vm2, %v14003_v4, -inf  ;;  %v14043_v34 = vmax.f32 %v4579_v48, %v4580_v15  ;;  %v4605_v10 = vmax.f32 %v14017_v24, %v4604_v46 }
 0x610   :  { %v4611_v23 = vrot.slane %v4610_v1, 4  ;;  %v4587_v35 = vrot.slane %v4586_v6, 1  ;;  %v4599_v11 = vrot.slane %v4598_v32, 2  ;;  %v5105_v52 = vsub.f32 %v13955_v55, %v14029_v41 }
 0x611   :  { %v4593_v9 = vmax.f32 %v4591_v57, %v4592_v59  ;;  %v5106_v37 = vsub.f32 %v13976_v43, %v14036_v62  ;;  %v4606_v3 = vrot.slane %v4605_v10, 2  ;;  %v5107_v49 = vsub.f32 %v13963_v12, %v14043_v34 }
 0x612   :  { %v4612_v51 = vmax.f32 %v4610_v1, %v4611_v23  ;;  %v14052_v20 = vmax.f32 %v4586_v6, %v4587_v35  ;;  %v4600_v5 = vmax.f32 %v4598_v32, %v4599_v11  ;;  %v5569_v53 = vmul.f32 1.442695, %v5105_v52 }
 0x613   :  { %v4594_v19 = vrot.slane %v4593_v9, 1  ;;  %v5571_v24 = vmul.f32 1.442695, %v5106_v37  ;;  %v8185_v42 = vadd.f32 %v7890_v14, %v13861_v26  ;;  %v4607_v25 = vmax.f32 %v4605_v10, %v4606_v3  ;;  %v859_v3 = vpop.permute.xlu1 %858 }
 0x614   :  { %v4613_v55 = vrot.slane %v4612_v51, 2  ;;  %v9664_v39 = vpop.eup %9663  ;;  %v4601_v60 = vrot.slane %v4600_v5, 1  ;;  %v5108_v43 = vsub.f32 %v13984_v47, %v14052_v20  ;;  %9677 = vpow2.f32 %v5569_v53 }
 0x615   :  { %v14055_v21 = vmax.f32 %v4593_v9, %v4594_v19  ;;  %v5573_v38 = vmul.f32 1.442695, %v5107_v49  ;;  %v9666_v12 = vpop.eup %9665  ;;  %v7892_v18 = vmul.f32 0.6931472, %v9664_v39  ;;  %v4608_v27 = vrot.slane %v4607_v25, 1 }
 0x616   :  { %v4614_v48 = vmax.f32 %v4612_v51, %v4613_v55  ;;  %v9668_v7 = vpop.eup %9667  ;;  %v7894_v57 = vmul.f32 0.6931472, %v9666_v12  ;;  %v14063_v36 = vmax.f32 %v4600_v5, %v4601_v60  ;;  %9679 = vpow2.f32 %v5571_v24  ;;  %v15466_v60 = vld [vmem:[#allocation29_spill] sm:$0xff] }
 0x617   :  { %v5109_v26 = vsub.f32 %v13966_v28, %v14055_v21  ;;  %v5575_v50 = vmul.f32 1.442695, %v5108_v43  ;;  %v9670_v15 = vpop.eup %9669  ;;  %v7896_v59 = vmul.f32 0.6931472, %v9668_v7  ;;  %v8186_v47 = vadd.f32 %v7892_v18, %v13871_v61  ;;  %v14075_v61 = vpop.permute.xlu0 %792 }
 0x618   :  { %v14066_v46 = vmax.f32 %v4607_v25, %v4608_v27  ;;  %v4615_v14 = vrot.slane %v4614_v48, 1  ;;  %v9672_v6 = vpop.eup %9671  ;;  %v7898_v32 = vmul.f32 0.6931472, %v9670_v15  ;;  %v8187_v1 = vadd.f32 %v7894_v57, %v13882_v33 }
 0x619   :  { %v5110_v28 = vsub.f32 %v13988_v16, %v14063_v36  ;;  %9681 = vpow2.f32 %v5573_v38  ;;  %v7900_v10 = vmul.f32 0.6931472, %v9672_v6  ;;  %v8188_v23 = vadd.f32 %v7896_v59, %v13892_v22  ;;  %v15467_v38 = vld [vmem:[#allocation23_spill] sm:$0xff] }
 0x61a   :  { %v9674_v9 = vpop.eup %9673  ;;  %v8677_v35 = vsel %vm8481_vm3, %v8186_v47, %v8185_v42  ;;  %v14073_v11 = vmax.f32 %v4614_v48, %v4615_v14  ;;  %v8189_v19 = vadd.f32 %v7898_v32, %v13895_v2  ;;  %v5111_v16 = vsub.f32 %v13972_v56, %v14066_v46 }
 0x61b   :  { %v9676_v52 = vpop.eup %9675  ;;  %v7902_v37 = vmul.f32 0.6931472, %v9674_v9  ;;  %v8678_v33 = vsel %vm8483_vm4, %v8187_v1, %v8677_v35  ;;  %v8190_v49 = vadd.f32 %v7900_v10, %v13901_v44  ;;  %9683 = vpow2.f32 %v5575_v50  ;;  %v857_v12 = vpop.permute.xlu0 %856 }
 0x61c   :  { %v7904_v51 = vmul.f32 0.6931472, %v9676_v52  ;;  %v8679_v22 = vsel %vm8485_vm5, %v8188_v23, %v8678_v33  ;;  %v5112_v5 = vsub.f32 %v14003_v4, %v14073_v11  ;;  %v5577_v2 = vmul.f32 1.442695, %v5109_v26  ;;  %v14111_v26 = vpop.permute.xlu1 %890 }
 0x61d   :  { %v8191_v53 = vadd.f32 %v7902_v37, %v13909_v0  ;;  %v8680_v24 = vsel %vm8487_vm6, %v8189_v19, %v8679_v22  ;;  %v5579_v56 = vmul.f32 1.442695, %v5110_v28  ;;  %v5581_v55 = vmul.f32 1.442695, %v5111_v16 }
 0x61e   :  { %v8192_v42 = vadd.f32 %v7904_v51, %v13922_v8  ;;  %v8681_v25 = vsel %vm8489_vm7, %v8190_v49, %v8680_v24  ;;  %9685 = vpow2.f32 %v5577_v2  ;;  %v5583_v44 = vmul.f32 1.442695, %v5112_v5 }
 0x61f   :  { %v8682_v39 = vsel %vm8491_vm8, %v8191_v53, %v8681_v25  ;;  %v2900_v43 = vcombine.low %v15466_v60, %v14059_v54  ;;  %9687 = vpow2.f32 %v5579_v56  ;;  %v2901_v0 = vcombine.high %v15466_v60, %v14059_v54 }
 0x620   :  { %v8683_v4 = vsel %vm8493_vm9, %v8192_v42, %v8682_v39  ;;  %v2832_v8 = vcombine.low %v15467_v38, %v14075_v61  ;;  %9689 = vpow2.f32 %v5581_v55  ;;  %v15468_v18 = vcombine.high %v15463_v29, %v13944_v30 }
 0x621   :  { %8772 = vst.msk [vmem:[%s15233_s3 + $0xd8] sm:$0xff] %vm8744_vm10, %v8683_v4  ;;  %v14108_v48 = vrot.slane %v2900_v43, %v10581_v63  ;;  %v1828_v54 = vcombine.low %v13886_v31, %v859_v3  ;;  %v9678_v7 = vpop.eup %9677  ;;  %9691 = vpow2.f32 %v5583_v44  ;;  %v14114_v57 = vrot.slane %v2901_v0, %v10581_v63 }
 0x622   :  { %v14105_v27 = vrot.slane %v15468_v18, %v10581_v63  ;;  %v1829_v15 = vcombine.high %v13886_v31, %v859_v3  ;;  %v7121_v30 = vsel %vm3104_vm2, %v9678_v7, 0.0  ;;  %v14121_v29 = vrot.slane %v2832_v8, %v10581_v63 }
 0x623   :  { %v1836_v59 = vrot.slane %v1828_v54, %v10581_v63  ;;  %v1760_v47 = vcombine.low %v13897_v45, %v857_v12  ;;  %v9680_v14 = vpop.eup %9679  ;;  %v7122_v6 = vrot.slane %v7121_v30, 4  ;;  %v1761_v1 = vcombine.high %v13897_v45, %v857_v12 }
 0x624   :  { %v1843_v32 = vrot.slane %v1829_v15, %v10581_v63  ;;  %v2916_v28 = vcombine.low %v13905_v40, %v14111_v26  ;;  %v7128_v31 = vsel %vm3104_vm2, %v9680_v14, 0.0 }
 0x625   :  { %v1844_v9 = vcombine.low %v13958_v58, %v1836_v59  ;;  %v1845_v10 = vcombine.high %v13958_v58, %v1836_v59  ;;  %v14133_v23 = vrot.slane %v1760_v47, %v10581_v63  ;;  %v7123_v52 = vadd.f32 %v7122_v6, %v7121_v30 }
 0x626   :  { %v9682_v35 = vpop.eup %9681  ;;  %v7129_v37 = vrot.slane %v7128_v31, 4  ;;  %v1860_v19 = vcombine.low %v13969_v13, %v1843_v32  ;;  %v1861_v33 = vcombine.high %v13969_v13, %v1843_v32  ;;  %v14145_v58 = vrot.slane %v1761_v1, %v10581_v63 }
 0x627   :  { %v7135_v45 = vsel %vm3104_vm2, %v9682_v35, 0.0  ;;  %v14139_v16 = vrot.slane %v1844_v9, %v15426_v17  ;;  %v14142_v3 = vrot.slane %v1845_v10, %v15426_v17  ;;  %v7124_v51 = vrot.slane %v7123_v52, 2 }
 0x628   :  { %v7130_v49 = vadd.f32 %v7129_v37, %v7128_v31  ;;  %v7136_v22 = vrot.slane %v7135_v45, 4  ;;  %v14148_v5 = vrot.slane %v1860_v19, %v15426_v17  ;;  %v14151_v53 = vrot.slane %v1861_v33, %v15426_v17  ;;  %v9684_v25 = vpop.eup %9683 }
 0x629   :  { %v15469_v13 = vmov 0.0   ;;  %v3833_v42 = vsel %vm3104_vm2, %v14139_v16, -inf  ;;  %v7125_v56 = vadd.f32 %v7124_v51, %v7123_v52  ;;  %v7142_v60 = vsel %vm3104_vm2, %v9684_v25, 0.0 }
 0x62a   :  { %v14155_v24 = vcombine.high %v14139_v16, %v15469_v13  ;;  %v14159_v2 = vcombine.high %v14142_v3, %v15469_v13  ;;  %v7131_v55 = vrot.slane %v7130_v49, 2  ;;  %v7137_v39 = vadd.f32 %v7136_v22, %v7135_v45 }
 0x62b   :  { %v14165_v44 = vcombine.high %v14148_v5, %v15469_v13  ;;  %v14170_v43 = vcombine.high %v14151_v53, %v15469_v13  ;;  %v3834_v4 = vrot.slane %v3833_v42, 4  ;;  %v9686_v8 = vpop.eup %9685  ;;  %v7126_v12 = vrot.slane %v7125_v56, 1 }
 0x62c   :  { %v3840_v0 = vsel %vm3104_vm2, %v14155_v24, -inf  ;;  %v7132_v18 = vadd.f32 %v7131_v55, %v7130_v49  ;;  %v7138_v54 = vrot.slane %v7137_v39, 2  ;;  %v7143_v7 = vrot.slane %v7142_v60, 4  ;;  %v9688_v15 = vpop.eup %9687 }
 0x62d   :  { %v7149_v30 = vsel %vm3104_vm2, %v9686_v8, 0.0  ;;  %v3835_v59 = vmax.f32 %v3833_v42, %v3834_v4  ;;  %v3841_v47 = vrot.slane %v3840_v0, 4  ;;  %v3847_v14 = vsel %vm3104_vm2, %v14142_v3, -inf  ;;  %v9690_v6 = vpop.eup %9689 }
 0x62e   :  { %v7127_v32 = vadd.f32 %v7126_v12, %v7125_v56  ;;  %v7133_v1 = vrot.slane %v7132_v18, 1  ;;  %v7139_v31 = vadd.f32 %v7138_v54, %v7137_v39  ;;  %v7144_v9 = vadd.f32 %v7143_v7, %v7142_v60  ;;  %v9692_v10 = vpop.eup %9691 }
 0x62f   :  { %v7150_v35 = vrot.slane %v7149_v30, 4  ;;  %v7156_v52 = vsel %vm3104_vm2, %v9688_v15, 0.0  ;;  %v7163_v37 = vsel %vm3104_vm2, %v9690_v6, 0.0  ;;  %v3836_v19 = vrot.slane %v3835_v59, 2 }
 0x630   :  { %v7134_v33 = vadd.f32 %v7133_v1, %v7132_v18  ;;  %v7140_v45 = vrot.slane %v7139_v31, 1  ;;  %v7145_v51 = vrot.slane %v7144_v9, 2  ;;  %v7157_v49 = vrot.slane %v7156_v52, 4 }
 0x631   :  { %v7151_v22 = vadd.f32 %v7150_v35, %v7149_v30  ;;  %v7164_v42 = vrot.slane %v7163_v37, 4  ;;  %v7170_v25 = vsel %vm3104_vm2, %v9692_v10, 0.0  ;;  %9693 = vlog2.f32 %v7127_v32 }
 0x632   :  { %v7141_v56 = vadd.f32 %v7140_v45, %v7139_v31  ;;  %v7146_v55 = vadd.f32 %v7145_v51, %v7144_v9  ;;  %v7158_v39 = vadd.f32 %v7157_v49, %v7156_v52  ;;  %v7171_v60 = vrot.slane %v7170_v25, 4 }
 0x633   :  { %v7152_v4 = vrot.slane %v7151_v22, 2  ;;  %v7165_v8 = vadd.f32 %v7164_v42, %v7163_v37  ;;  %9695 = vlog2.f32 %v7134_v33  ;;  %v3837_v12 = vmax.f32 %v3835_v59, %v3836_v19 }
 0x634   :  { %v7147_v54 = vrot.slane %v7146_v55, 1  ;;  %v7159_v7 = vrot.slane %v7158_v39, 2  ;;  %v7172_v15 = vadd.f32 %v7171_v60, %v7170_v25  ;;  %9697 = vlog2.f32 %v7141_v56 }
 0x635   :  { %v7153_v18 = vadd.f32 %v7152_v4, %v7151_v22  ;;  %v7166_v6 = vrot.slane %v7165_v8, 2  ;;  %v3838_v1 = vrot.slane %v3837_v12, 1  ;;  %v3842_v30 = vmax.f32 %v3840_v0, %v3841_v47 }
 0x636   :  { %v7148_v35 = vadd.f32 %v7147_v54, %v7146_v55  ;;  %v7160_v50 = vadd.f32 %v7159_v7, %v7158_v39  ;;  %v7173_v10 = vrot.slane %v7172_v15, 2  ;;  %v3848_v32 = vrot.slane %v3847_v14, 4 }
 0x637   :  { %v7154_v31 = vrot.slane %v7153_v18, 1  ;;  %v7167_v9 = vadd.f32 %v7166_v6, %v7165_v8  ;;  %v14180_v52 = vmax.f32 %v3837_v12, %v3838_v1  ;;  %v3843_v45 = vrot.slane %v3842_v30, 2 }
 0x638   :  { %v7161_v37 = vrot.slane %v7160_v50, 1  ;;  %v7174_v33 = vadd.f32 %v7173_v10, %v7172_v15  ;;  %9699 = vlog2.f32 %v7148_v35  ;;  %v3849_v59 = vmax.f32 %v3847_v14, %v3848_v32 }
 0x639   :  { %v7155_v19 = vadd.f32 %v7154_v31, %v7153_v18  ;;  %v7168_v51 = vrot.slane %v7167_v9, 1  ;;  %v3844_v49 = vmax.f32 %v3842_v30, %v3843_v45  ;;  %v3854_v22 = vsel %vm3104_vm2, %v14159_v2, -inf }
 0x63a   :  { %v7162_v0 = vadd.f32 %v7161_v37, %v7160_v50  ;;  %v7175_v47 = vrot.slane %v7174_v33, 1  ;;  %v3850_v42 = vrot.slane %v3849_v59, 2  ;;  %v3855_v25 = vrot.slane %v3854_v22, 4 }
 0x63b   :  { %v7169_v56 = vadd.f32 %v7168_v51, %v7167_v9  ;;  %9701 = vlog2.f32 %v7155_v19  ;;  %v3845_v55 = vrot.slane %v3844_v49, 1  ;;  %v3861_v39 = vsel %vm3104_vm2, %v14148_v5, -inf }
 0x63c   :  { %v7176_v60 = vadd.f32 %v7175_v47, %v7174_v33  ;;  %9703 = vlog2.f32 %v7162_v0  ;;  %v3851_v4 = vmax.f32 %v3849_v59, %v3850_v42  ;;  %v3856_v14 = vmax.f32 %v3854_v22, %v3855_v25 }
 0x63d   :  { %9705 = vlog2.f32 %v7169_v56  ;;  %v14186_v8 = vmax.f32 %v3844_v49, %v3845_v55  ;;  %v3862_v12 = vrot.slane %v3861_v39, 4  ;;  %v3868_v50 = vsel %vm3104_vm2, %v14165_v44, -inf }
 0x63e   :  { %v9694_v54 = vpop.eup %9693  ;;  %9707 = vlog2.f32 %v7176_v60  ;;  %v3852_v7 = vrot.slane %v3851_v4, 1  ;;  %v3857_v15 = vrot.slane %v3856_v14, 2  ;;  %v3869_v18 = vrot.slane %v3868_v50, 4 }
 0x63f   :  { %v7874_v6 = vmul.f32 0.6931472, %v9694_v54  ;;  %v3863_v1 = vmax.f32 %v3861_v39, %v3862_v12  ;;  %v3875_v30 = vsel %vm3104_vm2, %v14151_v53, -inf  ;;  %v3882_v35 = vsel %vm3104_vm2, %v14170_v43, -inf }
 0x640   :  { %v9696_v10 = vpop.eup %9695  ;;  %v14194_v32 = vmax.f32 %v3851_v4, %v3852_v7  ;;  %v3858_v31 = vmax.f32 %v3856_v14, %v3857_v15  ;;  %v3870_v9 = vmax.f32 %v3868_v50, %v3869_v18  ;;  %v3876_v45 = vrot.slane %v3875_v30, 4 }
 0x641   :  { %v9698_v37 = vpop.eup %9697  ;;  %v7876_v33 = vmul.f32 0.6931472, %v9696_v10  ;;  %v8177_v59 = vadd.f32 %v7874_v6, %v14029_v41  ;;  %v3864_v19 = vrot.slane %v3863_v1, 2  ;;  %v3883_v51 = vrot.slane %v3882_v35, 4 }
 0x642   :  { %v7878_v49 = vmul.f32 0.6931472, %v9698_v37  ;;  %v3859_v22 = vrot.slane %v3858_v31, 1  ;;  %v3871_v0 = vrot.slane %v3870_v9, 2  ;;  %v3877_v47 = vmax.f32 %v3875_v30, %v3876_v45 }
 0x643   :  { %v8178_v42 = vadd.f32 %v7876_v33, %v14036_v62  ;;  %v3865_v25 = vmax.f32 %v3863_v1, %v3864_v19  ;;  %v3884_v56 = vmax.f32 %v3882_v35, %v3883_v51  ;;  %v5001_v55 = vsub.f32 %v14139_v16, %v14180_v52 }
 0x644   :  { %v8179_v39 = vadd.f32 %v7878_v49, %v14043_v34  ;;  %v14201_v60 = vmax.f32 %v3858_v31, %v3859_v22  ;;  %v3872_v4 = vmax.f32 %v3870_v9, %v3871_v0  ;;  %v3878_v14 = vrot.slane %v3877_v47, 2 }
 0x645   :  { %v9700_v41 = vpop.eup %9699  ;;  %v8670_v12 = vsel %vm8481_vm3, %v8178_v42, %v8177_v59  ;;  %v3866_v50 = vrot.slane %v3865_v25, 1  ;;  %v3885_v54 = vrot.slane %v3884_v56, 2  ;;  %v5002_v7 = vsub.f32 %v14155_v24, %v14186_v8 }
 0x646   :  { %v7880_v62 = vmul.f32 0.6931472, %v9700_v41  ;;  %v8671_v15 = vsel %vm8483_vm4, %v8179_v39, %v8670_v12  ;;  %v3873_v18 = vrot.slane %v3872_v4, 1  ;;  %v3879_v6 = vmax.f32 %v3877_v47, %v3878_v14 }
 0x647   :  { %v14207_v16 = vmax.f32 %v3865_v25, %v3866_v50  ;;  %v3886_v34 = vmax.f32 %v3884_v56, %v3885_v54  ;;  %v5003_v1 = vsub.f32 %v14142_v3, %v14194_v32  ;;  %v5004_v30 = vsub.f32 %v14159_v2, %v14201_v60 }
 0x648   :  { %v9702_v35 = vpop.eup %9701  ;;  %v8180_v10 = vadd.f32 %v7880_v62, %v14052_v20  ;;  %v14214_v31 = vmax.f32 %v3872_v4, %v3873_v18  ;;  %v3880_v24 = vrot.slane %v3879_v6, 1  ;;  %v5361_v9 = vmul.f32 1.442695, %v5001_v55 }
 0x649   :  { %v9704_v45 = vpop.eup %9703  ;;  %v7882_v37 = vmul.f32 0.6931472, %v9702_v35  ;;  %v3887_v33 = vrot.slane %v3886_v34, 1  ;;  %v5005_v59 = vsub.f32 %v14148_v5, %v14207_v16  ;;  %v5363_v19 = vmul.f32 1.442695, %v5002_v7  ;;  %v15470_v7 = vld [vmem:[#allocation7_spill] sm:$0xff] }
 0x64a   :  { %v9706_v51 = vpop.eup %9705  ;;  %v7884_v49 = vmul.f32 0.6931472, %v9704_v45  ;;  %v8672_v3 = vsel %vm8485_vm5, %v8180_v10, %v8671_v15  ;;  %v14219_v22 = vmax.f32 %v3879_v6, %v3880_v24  ;;  %v5006_v20 = vsub.f32 %v14165_v44, %v14214_v31 }
 0x64b   :  { %v9708_v2 = vpop.eup %9707  ;;  %v7886_v0 = vmul.f32 0.6931472, %v9706_v51  ;;  %v8181_v47 = vadd.f32 %v7882_v37, %v14055_v21  ;;  %v14224_v42 = vmax.f32 %v3886_v34, %v3887_v33  ;;  %9709 = vpow2.f32 %v5361_v9 }
 0x64c   :  { %v7888_v25 = vmul.f32 0.6931472, %v9708_v2  ;;  %v8182_v5 = vadd.f32 %v7884_v49, %v14063_v36  ;;  %v5007_v56 = vsub.f32 %v14151_v53, %v14219_v22  ;;  %9711 = vpow2.f32 %v5363_v19 }
 0x64d   :  { %v8183_v55 = vadd.f32 %v7886_v0, %v14066_v46  ;;  %v8673_v39 = vsel %vm8487_vm6, %v8181_v47, %v8672_v3  ;;  %v5008_v44 = vsub.f32 %v14170_v43, %v14224_v42  ;;  %v5365_v4 = vmul.f32 1.442695, %v5003_v1 }
 0x64e   :  { %v8184_v21 = vadd.f32 %v7888_v25, %v14073_v11  ;;  %v8674_v14 = vsel %vm8489_vm7, %v8182_v5, %v8673_v39  ;;  %v5367_v41 = vmul.f32 1.442695, %v5004_v30  ;;  %v5369_v12 = vmul.f32 1.442695, %v5005_v59 }
 0x64f   :  { %v8675_v36 = vsel %vm8491_vm8, %v8183_v55, %v8674_v14  ;;  %9713 = vpow2.f32 %v5365_v4  ;;  %v5371_v50 = vmul.f32 1.442695, %v5006_v20  ;;  %v5373_v53 = vmul.f32 1.442695, %v5007_v56 }
 0x650   :  { %v8676_v54 = vsel %vm8493_vm9, %v8184_v21, %v8675_v36  ;;  %9715 = vpow2.f32 %v5367_v41  ;;  %v5375_v46 = vmul.f32 1.442695, %v5008_v44  ;;  %v1776_v62 = vcombine.low %v15470_v7, %v14133_v23 }
 0x651   :  { %8771 = vst.msk [vmem:[%s15233_s3 + $0xd0] sm:$0xff] %vm8744_vm10, %v8676_v54  ;;  %9717 = vpow2.f32 %v5369_v12  ;;  %v1777_v11 = vcombine.high %v15470_v7, %v14133_v23  ;;  %v1792_v43 = vcombine.low %v14105_v27, %v14145_v58  ;;  %v1793_v15 = vcombine.high %v14105_v27, %v14145_v58 }
 0x652   :  { %9719 = vpow2.f32 %v5371_v50  ;;  %v14250_v18 = vrot.slane %v1776_v62, %v15426_v17  ;;  %v2917_v6 = vcombine.high %v13905_v40, %v14111_v26  ;;  %v14258_v34 = vrot.slane %v2916_v28, %v10581_v63 }
 0x653   :  { %9721 = vpow2.f32 %v5373_v53  ;;  %v14261_v23 = vrot.slane %v1777_v11, %v15426_v17  ;;  %v14264_v1 = vrot.slane %v1792_v43, %v15426_v17  ;;  %v14267_v27 = vrot.slane %v1793_v15, %v15426_v17 }
 0x654   :  { %9723 = vpow2.f32 %v5375_v46  ;;  %v14271_v58 = vcombine.high %v14250_v18, %v15469_v13  ;;  %v3777_v40 = vsel %vm3104_vm2, %v14250_v18, -inf  ;;  %v14276_v26 = vrot.slane %v2917_v6, %v10581_v63 }
 0x655   :  { %v14280_v28 = vcombine.high %v14261_v23, %v15469_v13  ;;  %v14284_v30 = vcombine.high %v14264_v1, %v15469_v13  ;;  %v14288_v35 = vcombine.high %v14267_v27, %v15469_v13  ;;  %v3778_v10 = vrot.slane %v3777_v40, 4 }
 0x656   :  { %v3784_v24 = vsel %vm3104_vm2, %v14271_v58, -inf  ;;  %v3791_v9 = vsel %vm3104_vm2, %v14261_v23, -inf  ;;  %v3805_v45 = vsel %vm3104_vm2, %v14264_v1, -inf  ;;  %v14298_v37 = vsel %vm3104_vm2, %v14267_v27, -inf }
 0x657   :  { %v3779_v33 = vmax.f32 %v3777_v40, %v3778_v10  ;;  %v3785_v59 = vrot.slane %v3784_v24, 4  ;;  %v3792_v19 = vrot.slane %v3791_v9, 4  ;;  %v3798_v51 = vsel %vm3104_vm2, %v14280_v28, -inf }
 0x658   :  { %v9710_v49 = vpop.eup %9709  ;;  %v3799_v3 = vrot.slane %v3798_v51, 4  ;;  %v3806_v20 = vrot.slane %v3805_v45, 4  ;;  %v14304_v2 = vsel %vm3104_vm2, %v14284_v30, -inf }
 0x659   :  { %v9712_v47 = vpop.eup %9711  ;;  %v6393_v25 = vsel %vm3104_vm2, %v9710_v49, 0.0  ;;  %v3780_v5 = vrot.slane %v3779_v33, 2  ;;  %v3786_v56 = vmax.f32 %v3784_v24, %v3785_v59  ;;  %v3793_v55 = vmax.f32 %v3791_v9, %v3792_v19 }
 0x65a   :  { %v6394_v39 = vrot.slane %v6393_v25, 4  ;;  %v6400_v44 = vsel %vm3104_vm2, %v9712_v47, 0.0  ;;  %v14309_v4 = vmax.f32 %v3798_v51, %v3799_v3  ;;  %v14311_v21 = vmax.f32 %v3805_v45, %v3806_v20 }
 0x65b   :  { %v6401_v14 = vrot.slane %v6400_v44, 4  ;;  %v3781_v41 = vmax.f32 %v3779_v33, %v3780_v5  ;;  %v3787_v12 = vrot.slane %v3786_v56, 2  ;;  %v3794_v36 = vrot.slane %v3793_v55, 2 }
 0x65c   :  { %v9714_v50 = vpop.eup %9713  ;;  %v6395_v53 = vadd.f32 %v6394_v39, %v6393_v25 }
 0x65d   :  { %v9716_v62 = vpop.eup %9715  ;;  %v6402_v11 = vadd.f32 %v6401_v14, %v6400_v44  ;;  %v6407_v43 = vsel %vm3104_vm2, %v9714_v50, 0.0  ;;  %v3782_v15 = vrot.slane %v3781_v41, 1  ;;  %v3788_v6 = vmax.f32 %v3786_v56, %v3787_v12 }
 0x65e   :  { %v9718_v40 = vpop.eup %9717  ;;  %v6396_v10 = vrot.slane %v6395_v53, 2  ;;  %v6408_v24 = vrot.slane %v6407_v43, 4  ;;  %v6414_v9 = vsel %vm3104_vm2, %v9716_v62, 0.0  ;;  %v3795_v45 = vmax.f32 %v3793_v55, %v3794_v36 }
 0x65f   :  { %v9720_v33 = vpop.eup %9719  ;;  %v6403_v59 = vrot.slane %v6402_v11, 2  ;;  %v6415_v19 = vrot.slane %v6414_v9, 4  ;;  %v6421_v51 = vsel %vm3104_vm2, %v9718_v40, 0.0  ;;  %v14319_v49 = vmax.f32 %v3781_v41, %v3782_v15 }
 0x660   :  { %v9722_v3 = vpop.eup %9721  ;;  %v6397_v20 = vadd.f32 %v6396_v10, %v6395_v53  ;;  %v6409_v47 = vadd.f32 %v6408_v24, %v6407_v43  ;;  %v6422_v25 = vrot.slane %v6421_v51, 4  ;;  %v6428_v5 = vsel %vm3104_vm2, %v9720_v33, 0.0 }
 0x661   :  { %v9724_v56 = vpop.eup %9723  ;;  %v6404_v39 = vadd.f32 %v6403_v59, %v6402_v11  ;;  %v6416_v44 = vadd.f32 %v6415_v19, %v6414_v9  ;;  %v6429_v14 = vrot.slane %v6428_v5, 4  ;;  %v6435_v12 = vsel %vm3104_vm2, %v9722_v3, 0.0 }
 0x662   :  { %v6398_v55 = vrot.slane %v6397_v20, 1  ;;  %v6410_v36 = vrot.slane %v6409_v47, 2  ;;  %v6423_v50 = vadd.f32 %v6422_v25, %v6421_v51  ;;  %v6436_v62 = vrot.slane %v6435_v12, 4 }
 0x663   :  { %v6405_v0 = vrot.slane %v6404_v39, 1  ;;  %v6417_v40 = vrot.slane %v6416_v44, 2  ;;  %v6430_v41 = vadd.f32 %v6429_v14, %v6428_v5  ;;  %v6442_v15 = vsel %vm3104_vm2, %v9724_v56, 0.0 }
 0x664   :  { %v6399_v53 = vadd.f32 %v6398_v55, %v6397_v20  ;;  %v6411_v43 = vadd.f32 %v6410_v36, %v6409_v47  ;;  %v6424_v10 = vrot.slane %v6423_v50, 2  ;;  %v6437_v24 = vadd.f32 %v6436_v62, %v6435_v12 }
 0x665   :  { %v6406_v33 = vadd.f32 %v6405_v0, %v6404_v39  ;;  %v6418_v7 = vadd.f32 %v6417_v40, %v6416_v44  ;;  %v6431_v11 = vrot.slane %v6430_v41, 2  ;;  %v6443_v9 = vrot.slane %v6442_v15, 4 }
 0x666   :  { %v6412_v59 = vrot.slane %v6411_v43, 1  ;;  %v6425_v19 = vadd.f32 %v6424_v10, %v6423_v50  ;;  %v6438_v3 = vrot.slane %v6437_v24, 2  ;;  %9725 = vlog2.f32 %v6399_v53 }
 0x667   :  { %v6419_v46 = vrot.slane %v6418_v7, 1  ;;  %v6432_v51 = vadd.f32 %v6431_v11, %v6430_v41  ;;  %v6444_v25 = vadd.f32 %v6443_v9, %v6442_v15  ;;  %9727 = vlog2.f32 %v6406_v33 }
 0x668   :  { %v6413_v54 = vadd.f32 %v6412_v59, %v6411_v43  ;;  %v6426_v5 = vrot.slane %v6425_v19, 1  ;;  %v6439_v14 = vadd.f32 %v6438_v3, %v6437_v24  ;;  %v3789_v56 = vrot.slane %v3788_v6, 1 }
 0x669   :  { %v6420_v20 = vadd.f32 %v6419_v46, %v6418_v7  ;;  %v6433_v47 = vrot.slane %v6432_v51, 1  ;;  %v6445_v55 = vrot.slane %v6444_v25, 2  ;;  %v3796_v12 = vrot.slane %v3795_v45, 1 }
 0x66a   :  { %v6427_v0 = vadd.f32 %v6426_v5, %v6425_v19  ;;  %v6440_v39 = vrot.slane %v6439_v14, 1  ;;  %9729 = vlog2.f32 %v6413_v54  ;;  %v14324_v44 = vmax.f32 %v3788_v6, %v3789_v56 }
 0x66b   :  { %v6434_v36 = vadd.f32 %v6433_v47, %v6432_v51  ;;  %v6446_v50 = vadd.f32 %v6445_v55, %v6444_v25  ;;  %9731 = vlog2.f32 %v6420_v20  ;;  %v14326_v62 = vmax.f32 %v3795_v45, %v3796_v12 }
 0x66c   :  { %v6441_v40 = vadd.f32 %v6440_v39, %v6439_v14  ;;  %9733 = vlog2.f32 %v6427_v0  ;;  %v15471_v41 = vrot.slane %v14309_v4, 2  ;;  %v15472_v46 = vrot.slane %v14311_v21, 2 }
 0x66d   :  { %v6447_v53 = vrot.slane %v6446_v50, 1  ;;  %9735 = vlog2.f32 %v6434_v36  ;;  %v15473_v54 = vrot.slane %v14304_v2, 4  ;;  %v15474_v43 = vrot.slane %v14298_v37, 4 }
 0x66e   :  { %v3802_v15 = vmax.f32 %v14309_v4, %v15471_v41  ;;  %v3809_v7 = vmax.f32 %v14311_v21, %v15472_v46  ;;  %9737 = vlog2.f32 %v6441_v40  ;;  %v3826_v4 = vsel %vm3104_vm2, %v14288_v35, -inf }
 0x66f   :  { %v3814_v6 = vmax.f32 %v14304_v2, %v15473_v54  ;;  %v3821_v45 = vmax.f32 %v14298_v37, %v15474_v43  ;;  %v6448_v33 = vadd.f32 %v6447_v53, %v6446_v50  ;;  %v3827_v21 = vrot.slane %v3826_v4, 4 }
 0x670   :  { %v3803_v10 = vrot.slane %v3802_v15, 1  ;;  %v3810_v24 = vrot.slane %v3809_v7, 1  ;;  %v4993_v2 = vsub.f32 %v14250_v18, %v14319_v49  ;;  %v4994_v37 = vsub.f32 %v14271_v58, %v14324_v44 }
 0x671   :  { %v3815_v11 = vrot.slane %v3814_v6, 2  ;;  %v3822_v9 = vrot.slane %v3821_v45, 2  ;;  %9739 = vlog2.f32 %v6448_v33  ;;  %v3828_v25 = vmax.f32 %v3826_v4, %v3827_v21 }
 0x672   :  { %v14342_v59 = vmax.f32 %v3802_v15, %v3803_v10  ;;  %v14344_v19 = vmax.f32 %v3809_v7, %v3810_v24  ;;  %v4995_v5 = vsub.f32 %v14261_v23, %v14326_v62  ;;  %v5345_v20 = vmul.f32 1.442695, %v4993_v2 }
 0x673   :  { %v3816_v3 = vmax.f32 %v3814_v6, %v3815_v11  ;;  %v3823_v51 = vmax.f32 %v3821_v45, %v3822_v9  ;;  %v9726_v47 = vpop.eup %9725  ;;  %v3829_v12 = vrot.slane %v3828_v25, 2  ;;  %v5347_v0 = vmul.f32 1.442695, %v4994_v37 }
 0x674   :  { %v4996_v14 = vsub.f32 %v14280_v28, %v14342_v59  ;;  %v4997_v56 = vsub.f32 %v14264_v1, %v14344_v19  ;;  %v9728_v58 = vpop.eup %9727  ;;  %v7666_v39 = vmul.f32 0.6931472, %v9726_v47  ;;  %9741 = vpow2.f32 %v5345_v20 }
 0x675   :  { %v3817_v55 = vrot.slane %v3816_v3, 1  ;;  %v3824_v18 = vrot.slane %v3823_v51, 1  ;;  %v5349_v36 = vmul.f32 1.442695, %v4995_v5  ;;  %v7668_v40 = vmul.f32 0.6931472, %v9728_v58 }
 0x676   :  { %v5351_v50 = vmul.f32 1.442695, %v4996_v14  ;;  %v3830_v28 = vmax.f32 %v3828_v25, %v3829_v12  ;;  %v8073_v15 = vadd.f32 %v7666_v39, %v14180_v52  ;;  %9743 = vpow2.f32 %v5347_v0 }
 0x677   :  { %v14356_v41 = vmax.f32 %v3816_v3, %v3817_v55  ;;  %v14358_v23 = vmax.f32 %v3823_v51, %v3824_v18  ;;  %v5353_v1 = vmul.f32 1.442695, %v4997_v56  ;;  %v2932_v46 = vcombine.low %v14108_v48, %v14258_v34  ;;  %v9730_v7 = vpop.eup %9729 }
 0x678   :  { %v8074_v53 = vadd.f32 %v7668_v40, %v14186_v8  ;;  %v3831_v54 = vrot.slane %v3830_v28, 1  ;;  %v9732_v45 = vpop.eup %9731  ;;  %v7670_v10 = vmul.f32 0.6931472, %v9730_v7  ;;  %9745 = vpow2.f32 %v5349_v36 }
 0x679   :  { %v4998_v6 = vsub.f32 %v14284_v30, %v14356_v41  ;;  %v4999_v43 = vsub.f32 %v14267_v27, %v14358_v23  ;;  %v2933_v52 = vcombine.high %v14108_v48, %v14258_v34  ;;  %v14371_v24 = vrot.slane %v2932_v46, %v15426_v17  ;;  %v9734_v4 = vpop.eup %9733 }
 0x67a   :  { %v7672_v33 = vmul.f32 0.6931472, %v9732_v45  ;;  %v8579_v8 = vsel %vm8481_vm3, %v8074_v53, %v8073_v15  ;;  %v14374_v11 = vmax.f32 %v3830_v28, %v3831_v54  ;;  %9747 = vpow2.f32 %v5351_v50  ;;  %v9736_v30 = vpop.eup %9735 }
 0x67b   :  { %v7674_v9 = vmul.f32 0.6931472, %v9734_v4  ;;  %v8075_v27 = vadd.f32 %v7670_v10, %v14194_v32  ;;  %9749 = vpow2.f32 %v5353_v1  ;;  %v5355_v21 = vmul.f32 1.442695, %v4998_v6  ;;  %v9738_v2 = vpop.eup %9737 }
 0x67c   :  { %v7676_v37 = vmul.f32 0.6931472, %v9736_v30  ;;  %v8076_v48 = vadd.f32 %v7672_v33, %v14201_v60  ;;  %v5000_v34 = vsub.f32 %v14288_v35, %v14374_v11  ;;  %v5357_v3 = vmul.f32 1.442695, %v4999_v43 }
 0x67d   :  { %v7678_v51 = vmul.f32 0.6931472, %v9738_v2  ;;  %v8077_v25 = vadd.f32 %v7674_v9, %v14207_v16  ;;  %v8580_v5 = vsel %vm8483_vm4, %v8075_v27, %v8579_v8  ;;  %9751 = vpow2.f32 %v5355_v21 }
 0x67e   :  { %v8078_v14 = vadd.f32 %v7676_v37, %v14214_v31  ;;  %v8581_v32 = vsel %vm8485_vm5, %v8076_v48, %v8580_v5  ;;  %9753 = vpow2.f32 %v5357_v3  ;;  %v5359_v56 = vmul.f32 1.442695, %v5000_v34  ;;  %v9740_v20 = vpop.eup %9739 }
 0x67f   :  { %v8079_v47 = vadd.f32 %v7678_v51, %v14219_v22  ;;  %v8582_v60 = vsel %vm8487_vm6, %v8077_v25, %v8581_v32  ;;  %v14387_v35 = vrot.slane %v2933_v52, %v15426_v17  ;;  %v2948_v16 = vcombine.low %v14114_v57, %v14276_v26 }
 0x680   :  { %v7680_v55 = vmul.f32 0.6931472, %v9740_v20  ;;  %v8583_v18 = vsel %vm8489_vm7, %v8078_v14, %v8582_v60  ;;  %9755 = vpow2.f32 %v5359_v56  ;;  %v2949_v31 = vcombine.high %v14114_v57, %v14276_v26 }
 0x681   :  { %v8584_v12 = vsel %vm8491_vm8, %v8079_v47, %v8583_v18  ;;  %v14396_v0 = vrot.slane %v2948_v16, %v15426_v17  ;;  %v14400_v22 = vcombine.high %v14371_v24, %v15469_v13  ;;  %v14404_v58 = vcombine.high %v14387_v35, %v15469_v13  ;;  %v9742_v39 = vpop.eup %9741 }
 0x682   :  { %v8080_v36 = vadd.f32 %v7680_v55, %v14224_v42  ;;  %v14408_v50 = vrot.slane %v2949_v31, %v15426_v17  ;;  %v4729_v57 = vsel %vm3104_vm2, %v14371_v24, -inf  ;;  %v4743_v26 = vsel %vm3104_vm2, %v14387_v35, -inf }
 0x683   :  { %v6337_v40 = vsel %vm3104_vm2, %v9742_v39, 0.0  ;;  %v14417_v28 = vcombine.high %v14396_v0, %v15469_v13  ;;  %v4730_v15 = vrot.slane %v4729_v57, 4  ;;  %v4736_v1 = vsel %vm3104_vm2, %v14400_v22, -inf  ;;  %v9744_v42 = vpop.eup %9743 }
 0x684   :  { %v8585_v46 = vsel %vm8493_vm9, %v8080_v36, %v8584_v12  ;;  %v6338_v7 = vrot.slane %v6337_v40, 4  ;;  %v14424_v53 = vcombine.high %v14408_v50, %v15469_v13  ;;  %v4737_v54 = vrot.slane %v4736_v1, 4 }
 0x685   :  { %8758 = vst.msk [vmem:[%s15233_s3 + $0x68] sm:$0xff] %vm8744_vm10, %v8585_v46  ;;  %v6344_v6 = vsel %vm3104_vm2, %v9744_v42, 0.0  ;;  %v4731_v43 = vmax.f32 %v4729_v57, %v4730_v15  ;;  %v4744_v45 = vrot.slane %v4743_v26, 4  ;;  %v14433_v10 = vsel %vm3104_vm2, %v14404_v58, -inf  ;;  %v9746_v52 = vpop.eup %9745 }
 0x686   :  { %v6339_v4 = vadd.f32 %v6338_v7, %v6337_v40  ;;  %v6345_v33 = vrot.slane %v6344_v6, 4  ;;  %v4738_v8 = vmax.f32 %v4736_v1, %v4737_v54  ;;  %v4751_v30 = vrot.slane %v14433_v10, 4 }
 0x687   :  { %v9748_v9 = vpop.eup %9747  ;;  %v6351_v27 = vsel %vm3104_vm2, %v9746_v52, 0.0  ;;  %v4732_v21 = vrot.slane %v4731_v43, 2  ;;  %v14437_v2 = vmax.f32 %v4743_v26, %v4744_v45  ;;  %v14441_v37 = vsel %vm3104_vm2, %v14396_v0, -inf }
 0x688   :  { %v9750_v48 = vpop.eup %9749  ;;  %v6340_v34 = vrot.slane %v6339_v4, 2  ;;  %v6346_v3 = vadd.f32 %v6345_v33, %v6344_v6  ;;  %v6352_v51 = vrot.slane %v6351_v27, 4  ;;  %v6358_v25 = vsel %vm3104_vm2, %v9748_v9, 0.0 }
 0x689   :  { %v6359_v5 = vrot.slane %v6358_v25, 4  ;;  %v6365_v14 = vsel %vm3104_vm2, %v9750_v48, 0.0  ;;  %v4733_v32 = vmax.f32 %v4731_v43, %v4732_v21  ;;  %v4739_v56 = vrot.slane %v4738_v8, 2 }
 0x68a   :  { %v9752_v20 = vpop.eup %9751  ;;  %v6341_v47 = vadd.f32 %v6340_v34, %v6339_v4  ;;  %v6347_v60 = vrot.slane %v6346_v3, 2  ;;  %v6353_v16 = vadd.f32 %v6352_v51, %v6351_v27  ;;  %v6366_v55 = vrot.slane %v6365_v14, 4 }
 0x68b   :  { %v9754_v18 = vpop.eup %9753  ;;  %v6360_v31 = vadd.f32 %v6359_v5, %v6358_v25  ;;  %v6372_v12 = vsel %vm3104_vm2, %v9752_v20, 0.0  ;;  %v4734_v39 = vrot.slane %v4733_v32, 1  ;;  %v4740_v36 = vmax.f32 %v4738_v8, %v4739_v56 }
 0x68c   :  { %v6342_v57 = vrot.slane %v6341_v47, 1  ;;  %v6348_v26 = vadd.f32 %v6347_v60, %v6346_v3  ;;  %v6354_v40 = vrot.slane %v6353_v16, 2  ;;  %v6367_v15 = vadd.f32 %v6366_v55, %v6365_v14 }
 0x68d   :  { %v9756_v1 = vpop.eup %9755  ;;  %v6361_v42 = vrot.slane %v6360_v31, 2  ;;  %v6373_v46 = vrot.slane %v6372_v12, 4  ;;  %v6379_v7 = vsel %vm3104_vm2, %v9754_v18, 0.0  ;;  %v14447_v54 = vmax.f32 %v4733_v32, %v4734_v39 }
 0x68e   :  { %v6343_v6 = vadd.f32 %v6342_v57, %v6341_v47  ;;  %v6349_v43 = vrot.slane %v6348_v26, 1  ;;  %v6355_v45 = vadd.f32 %v6354_v40, %v6353_v16  ;;  %v6368_v52 = vrot.slane %v6367_v15, 2 }
 0x68f   :  { %v6362_v4 = vadd.f32 %v6361_v42, %v6360_v31  ;;  %v6374_v33 = vadd.f32 %v6373_v46, %v6372_v12  ;;  %v6380_v9 = vrot.slane %v6379_v7, 4  ;;  %v6386_v8 = vsel %vm3104_vm2, %v9756_v1, 0.0 }
 0x690   :  { %v6350_v27 = vadd.f32 %v6349_v43, %v6348_v26  ;;  %v6356_v21 = vrot.slane %v6355_v45, 1  ;;  %v6369_v48 = vadd.f32 %v6368_v52, %v6367_v15  ;;  %v6387_v34 = vrot.slane %v6386_v8, 4 }
 0x691   :  { %v6363_v3 = vrot.slane %v6362_v4, 1  ;;  %v6375_v51 = vrot.slane %v6374_v33, 2  ;;  %v6381_v25 = vadd.f32 %v6380_v9, %v6379_v7  ;;  %9757 = vlog2.f32 %v6343_v6 }
 0x692   :  { %v6357_v5 = vadd.f32 %v6356_v21, %v6355_v45  ;;  %v6370_v14 = vrot.slane %v6369_v48, 1  ;;  %v6388_v32 = vadd.f32 %v6387_v34, %v6386_v8  ;;  %9759 = vlog2.f32 %v6350_v27  ;;  %v14467_v21 = vpop.permute.xlu0 %888 }
 0x693   :  { %v6364_v56 = vadd.f32 %v6363_v3, %v6362_v4  ;;  %v6376_v20 = vadd.f32 %v6375_v51, %v6374_v33  ;;  %v6382_v47 = vrot.slane %v6381_v25, 2  ;;  %v4741_v60 = vrot.slane %v4740_v36, 1 }
 0x694   :  { %v6371_v16 = vadd.f32 %v6370_v14, %v6369_v48  ;;  %v6389_v55 = vrot.slane %v6388_v32, 2  ;;  %9761 = vlog2.f32 %v6357_v5  ;;  %v4746_v18 = vrot.slane %v14437_v2, 2  ;;  %v14473_v14 = vpop.permute.xlu1 %670 }
 0x695   :  { %v6377_v31 = vrot.slane %v6376_v20, 1  ;;  %v6383_v12 = vadd.f32 %v6382_v47, %v6381_v25  ;;  %9763 = vlog2.f32 %v6364_v56  ;;  %v14451_v39 = vmax.f32 %v4740_v36, %v4741_v60 }
 0x696   :  { %v6390_v57 = vadd.f32 %v6389_v55, %v6388_v32  ;;  %9765 = vlog2.f32 %v6371_v16  ;;  %v4747_v26 = vmax.f32 %v14437_v2, %v4746_v18  ;;  %v4752_v40 = vmax.f32 %v14433_v10, %v4751_v30 }
 0x697   :  { %v6378_v15 = vadd.f32 %v6377_v31, %v6376_v20  ;;  %v6384_v1 = vrot.slane %v6383_v12, 1  ;;  %v4758_v42 = vrot.slane %v14441_v37, 4  ;;  %v4764_v46 = vsel %vm3104_vm2, %v14417_v28, -inf }
 0x698   :  { %v6391_v7 = vrot.slane %v6390_v57, 1  ;;  %v4748_v6 = vrot.slane %v4747_v26, 1  ;;  %v4753_v43 = vrot.slane %v4752_v40, 2  ;;  %v4765_v36 = vrot.slane %v4764_v46, 4 }
 0x699   :  { %v6385_v45 = vadd.f32 %v6384_v1, %v6383_v12  ;;  %9767 = vlog2.f32 %v6378_v15  ;;  %v4759_v52 = vmax.f32 %v14441_v37, %v4758_v42  ;;  %v4771_v2 = vsel %vm3104_vm2, %v14408_v50, -inf }
 0x69a   :  { %v6392_v4 = vadd.f32 %v6391_v7, %v6390_v57  ;;  %v14463_v10 = vmax.f32 %v4747_v26, %v4748_v6  ;;  %v4754_v30 = vmax.f32 %v4752_v40, %v4753_v43  ;;  %v4766_v33 = vmax.f32 %v4764_v46, %v4765_v36  ;;  %v14484_v46 = vpop.permute.xlu0 %668 }
 0x69b   :  { %9769 = vlog2.f32 %v6385_v45  ;;  %v4760_v9 = vrot.slane %v4759_v52, 2  ;;  %v4772_v8 = vrot.slane %v4771_v2, 4  ;;  %v4778_v27 = vsel %vm3104_vm2, %v14424_v53, -inf }
 0x69c   :  { %9771 = vlog2.f32 %v6392_v4  ;;  %v4755_v48 = vrot.slane %v4754_v30, 1  ;;  %v4767_v34 = vrot.slane %v4766_v33, 2  ;;  %v4779_v37 = vrot.slane %v4778_v27, 4  ;;  %v14491_v4 = vpop.permute.xlu1 %702 }
 0x69d   :  { %v4761_v3 = vmax.f32 %v4759_v52, %v4760_v9  ;;  %v4773_v51 = vmax.f32 %v4771_v2, %v4772_v8  ;;  %v5129_v25 = vsub.f32 %v14371_v24, %v14447_v54  ;;  %v5130_v5 = vsub.f32 %v14400_v22, %v14451_v39 }
 0x69e   :  { %v9758_v32 = vpop.eup %9757  ;;  %v14475_v56 = vmax.f32 %v4754_v30, %v4755_v48  ;;  %v4768_v20 = vmax.f32 %v4766_v33, %v4767_v34  ;;  %v4780_v47 = vmax.f32 %v4778_v27, %v4779_v37  ;;  %v5131_v60 = vsub.f32 %v14387_v35, %v14463_v10 }
 0x69f   :  { %v9760_v16 = vpop.eup %9759  ;;  %v7650_v55 = vmul.f32 0.6931472, %v9758_v32  ;;  %v4762_v18 = vrot.slane %v4761_v3, 1  ;;  %v4774_v31 = vrot.slane %v4773_v51, 2  ;;  %v5617_v12 = vmul.f32 1.442695, %v5129_v25  ;;  %v14507_v32 = vpop.permute.xlu0 %700 }
 0x6a0   :  { %v7652_v57 = vmul.f32 0.6931472, %v9760_v16  ;;  %v4769_v24 = vrot.slane %v4768_v20, 1  ;;  %v4781_v26 = vrot.slane %v4780_v47, 2  ;;  %v5132_v22 = vsub.f32 %v14404_v58, %v14475_v56  ;;  %15475 = vst [vmem:[#allocation8_spill] sm:$0xff] %v14507_v32 }
 0x6a1   :  { %v9762_v40 = vpop.eup %9761  ;;  %v8065_v15 = vadd.f32 %v7650_v55, %v14319_v49  ;;  %v14482_v1 = vmax.f32 %v4761_v3, %v4762_v18  ;;  %v4775_v42 = vmax.f32 %v4773_v51, %v4774_v31  ;;  %9773 = vpow2.f32 %v5617_v12  ;;  %v767_v31 = vpop.permute.xlu1 %766 }
 0x6a2   :  { %v9764_v35 = vpop.eup %9763  ;;  %v7654_v7 = vmul.f32 0.6931472, %v9762_v40  ;;  %v8066_v6 = vadd.f32 %v7652_v57, %v14324_v44  ;;  %v14487_v43 = vmax.f32 %v4768_v20, %v4769_v24  ;;  %v4782_v36 = vmax.f32 %v4780_v47, %v4781_v26 }
 0x6a3   :  { %v9766_v45 = vpop.eup %9765  ;;  %v7656_v52 = vmul.f32 0.6931472, %v9764_v35  ;;  %v4776_v2 = vrot.slane %v4775_v42, 1  ;;  %v5133_v58 = vsub.f32 %v14396_v0, %v14482_v1  ;;  %v5619_v49 = vmul.f32 1.442695, %v5130_v5 }
 0x6a4   :  { %v7658_v30 = vmul.f32 0.6931472, %v9766_v45  ;;  %v8067_v33 = vadd.f32 %v7654_v7, %v14326_v62  ;;  %v8572_v9 = vsel %vm8481_vm3, %v8066_v6, %v8065_v15  ;;  %v4783_v8 = vrot.slane %v4782_v36, 1  ;;  %v15477_v15 = vld [vmem:[#allocation24_spill] sm:$0xff]  ;;  %v14524_v6 = vpop.permute.xlu0 %764 }
 0x6a5   :  { %v8068_v44 = vadd.f32 %v7656_v52, %v14342_v59  ;;  %v14496_v27 = vmax.f32 %v4775_v42, %v4776_v2  ;;  %v5134_v48 = vsub.f32 %v14417_v28, %v14487_v43  ;;  %9775 = vpow2.f32 %v5619_v49 }
 0x6a6   :  { %v9768_v34 = vpop.eup %9767  ;;  %v8069_v0 = vadd.f32 %v7658_v30, %v14344_v19  ;;  %v8573_v37 = vsel %vm8483_vm4, %v8067_v33, %v8572_v9  ;;  %v14502_v3 = vmax.f32 %v4782_v36, %v4783_v8  ;;  %v5621_v51 = vmul.f32 1.442695, %v5131_v60  ;;  %v15479_v8 = vld [vmem:[#allocation2_spill] sm:$0xff] }
 0x6a7   :  { %v7660_v62 = vmul.f32 0.6931472, %v9768_v34  ;;  %v8574_v25 = vsel %vm8485_vm5, %v8068_v44, %v8573_v37  ;;  %v5135_v59 = vsub.f32 %v14408_v50, %v14496_v27  ;;  %v5623_v5 = vmul.f32 1.442695, %v5132_v22 }
 0x6a8   :  { %v9770_v20 = vpop.eup %9769  ;;  %v8575_v28 = vsel %vm8487_vm6, %v8069_v0, %v8574_v25  ;;  %v5136_v19 = vsub.f32 %v14424_v53, %v14502_v3  ;;  %9777 = vpow2.f32 %v5621_v51  ;;  %v5625_v47 = vmul.f32 1.442695, %v5133_v58  ;;  %v15476_v53 = vld [vmem:[#allocation13_spill] sm:$0xff] }
 0x6a9   :  { %v9772_v16 = vpop.eup %9771  ;;  %v7662_v55 = vmul.f32 0.6931472, %v9770_v20  ;;  %v8070_v60 = vadd.f32 %v7660_v62, %v14356_v41  ;;  %9779 = vpow2.f32 %v5623_v5  ;;  %v5627_v18 = vmul.f32 1.442695, %v5134_v48 }
 0x6aa   :  { %v7664_v12 = vmul.f32 0.6931472, %v9772_v16  ;;  %9781 = vpow2.f32 %v5625_v47  ;;  %v5629_v50 = vmul.f32 1.442695, %v5135_v59  ;;  %v5631_v57 = vmul.f32 1.442695, %v5136_v19 }
 0x6ab   :  { %v8071_v24 = vadd.f32 %v7662_v55, %v14358_v23  ;;  %v8576_v26 = vsel %vm8489_vm7, %v8070_v60, %v8575_v28  ;;  %9783 = vpow2.f32 %v5627_v18  ;;  %v2848_v22 = vcombine.low %v15476_v53, %v14467_v21  ;;  %v15480_v59 = vld [vmem:[#allocation3_spill] sm:$0xff] }
 0x6ac   :  { %v8072_v40 = vadd.f32 %v7664_v12, %v14374_v11  ;;  %9785 = vpow2.f32 %v5629_v50  ;;  %v2849_v41 = vcombine.high %v15476_v53, %v14467_v21  ;;  %v1948_v42 = vcombine.low %v15477_v15, %v767_v31 }
 0x6ad   :  { %v8577_v35 = vsel %vm8491_vm8, %v8071_v24, %v8576_v26  ;;  %9787 = vpow2.f32 %v5631_v57  ;;  %v2856_v7 = vrot.slane %v2848_v22, %v10581_v63  ;;  %v1949_v23 = vcombine.high %v15477_v15, %v767_v31 }
 0x6ae   :  { %v9774_v36 = vpop.eup %9773  ;;  %v15478_v11 = vcombine.high %v15467_v38, %v14075_v61  ;;  %v8578_v52 = vsel %vm8493_vm9, %v8072_v40, %v8577_v35  ;;  %v2863_v21 = vrot.slane %v2849_v41, %v10581_v63  ;;  %v14540_v30 = vrot.slane %v1948_v42, %v10581_v63  ;;  %v14542_v61 = vpop.permute.xlu1 %798 }
 0x6af   :  { %8757 = vst.msk [vmem:[%s15233_s3 + $0x60] sm:$0xff] %vm8744_vm10, %v8578_v52  ;;  %v7289_v2 = vsel %vm3104_vm2, %v9774_v36, 0.0  ;;  %v2864_v58 = vcombine.low %v14121_v29, %v2856_v7  ;;  %v2865_v49 = vcombine.high %v14121_v29, %v2856_v7  ;;  %v14553_v0 = vrot.slane %v1949_v23, %v10581_v63 }
 0x6b0   :  { %v2847_v45 = vrot.slane %v15478_v11, %v10581_v63  ;;  %v7290_v38 = vrot.slane %v7289_v2, 4 }
 0x6b1   :  { %v14547_v48 = vrot.slane %v2864_v58, %v15426_v17  ;;  %v14550_v34 = vrot.slane %v2865_v49, %v15426_v17 }
 0x6b2   :  { %v2880_v33 = vcombine.low %v2847_v45, %v2863_v21  ;;  %v2881_v9 = vcombine.high %v2847_v45, %v2863_v21  ;;  %v9776_v37 = vpop.eup %9775  ;;  %v7291_v51 = vadd.f32 %v7290_v38, %v7289_v2 }
 0x6b3   :  { %v7296_v20 = vsel %vm3104_vm2, %v9776_v37, 0.0  ;;  %v14568_v28 = vcombine.high %v14547_v48, %v15469_v13  ;;  %v14572_v19 = vcombine.high %v14550_v34, %v15469_v13  ;;  %v4673_v47 = vsel %vm3104_vm2, %v14547_v48, -inf }
 0x6b4   :  { %v14558_v62 = vrot.slane %v2880_v33, %v15426_v17  ;;  %v14561_v25 = vrot.slane %v2881_v9, %v15426_v17  ;;  %v7292_v16 = vrot.slane %v7291_v51, 2  ;;  %v7297_v55 = vrot.slane %v7296_v20, 4 }
 0x6b5   :  { %v9778_v31 = vpop.eup %9777  ;;  %v4674_v12 = vrot.slane %v4673_v47, 4  ;;  %v4680_v50 = vsel %vm3104_vm2, %v14568_v28, -inf  ;;  %v14588_v57 = vsel %vm3104_vm2, %v14550_v34, -inf  ;;  %v14592_v24 = vsel %vm3104_vm2, %v14572_v19, -inf }
 0x6b6   :  { %v14578_v60 = vcombine.high %v14558_v62, %v15469_v13  ;;  %v14582_v18 = vcombine.high %v14561_v25, %v15469_v13  ;;  %v9780_v26 = vpop.eup %9779  ;;  %v7293_v53 = vadd.f32 %v7292_v16, %v7291_v51  ;;  %v7298_v22 = vadd.f32 %v7297_v55, %v7296_v20 }
 0x6b7   :  { %v7303_v40 = vsel %vm3104_vm2, %v9778_v31, 0.0  ;;  %v4681_v41 = vrot.slane %v4680_v50, 4  ;;  %v9782_v15 = vpop.eup %9781  ;;  %v7310_v35 = vsel %vm3104_vm2, %v9780_v26, 0.0  ;;  %v4675_v7 = vmax.f32 %v4673_v47, %v4674_v12 }
 0x6b8   :  { %v7304_v42 = vrot.slane %v7303_v40, 4  ;;  %v4688_v23 = vrot.slane %v14588_v57, 4  ;;  %v9784_v36 = vpop.eup %9783  ;;  %v7294_v11 = vrot.slane %v7293_v53, 1  ;;  %v7299_v45 = vrot.slane %v7298_v22, 2 }
 0x6b9   :  { %v7311_v52 = vrot.slane %v7310_v35, 4  ;;  %v7317_v21 = vsel %vm3104_vm2, %v9782_v15, 0.0  ;;  %v9786_v2 = vpop.eup %9785  ;;  %v7324_v38 = vsel %vm3104_vm2, %v9784_v36, 0.0  ;;  %v4676_v33 = vrot.slane %v4675_v7, 2 }
 0x6ba   :  { %v7305_v58 = vadd.f32 %v7304_v42, %v7303_v40  ;;  %v7318_v49 = vrot.slane %v7317_v21, 4  ;;  %v9788_v9 = vpop.eup %9787  ;;  %v7295_v37 = vadd.f32 %v7294_v11, %v7293_v53  ;;  %v7300_v51 = vadd.f32 %v7299_v45, %v7298_v22 }
 0x6bb   :  { %v7312_v20 = vadd.f32 %v7311_v52, %v7310_v35  ;;  %v7325_v16 = vrot.slane %v7324_v38, 4  ;;  %v7331_v31 = vsel %vm3104_vm2, %v9786_v2, 0.0  ;;  %v7338_v12 = vsel %vm3104_vm2, %v9788_v9, 0.0 }
 0x6bc   :  { %v7306_v47 = vrot.slane %v7305_v58, 2  ;;  %v7319_v55 = vadd.f32 %v7318_v49, %v7317_v21  ;;  %v7301_v26 = vrot.slane %v7300_v51, 1  ;;  %v7332_v29 = vrot.slane %v7331_v31, 4 }
 0x6bd   :  { %v7313_v5 = vrot.slane %v7312_v20, 2  ;;  %v7326_v15 = vadd.f32 %v7325_v16, %v7324_v38  ;;  %v7339_v44 = vrot.slane %v7338_v12, 4  ;;  %9789 = vlog2.f32 %v7295_v37 }
 0x6be   :  { %v7307_v40 = vadd.f32 %v7306_v47, %v7305_v58  ;;  %v7320_v42 = vrot.slane %v7319_v55, 2  ;;  %v7302_v36 = vadd.f32 %v7301_v26, %v7300_v51  ;;  %v7333_v22 = vadd.f32 %v7332_v29, %v7331_v31 }
 0x6bf   :  { %v7314_v32 = vadd.f32 %v7313_v5, %v7312_v20  ;;  %v7327_v53 = vrot.slane %v7326_v15, 2  ;;  %v7340_v45 = vadd.f32 %v7339_v44, %v7338_v12  ;;  %v4677_v52 = vmax.f32 %v4675_v7, %v4676_v33 }
 0x6c0   :  { %v7308_v35 = vrot.slane %v7307_v40, 1  ;;  %v7321_v11 = vadd.f32 %v7320_v42, %v7319_v55  ;;  %v7334_v49 = vrot.slane %v7333_v22, 2  ;;  %9791 = vlog2.f32 %v7302_v36 }
 0x6c1   :  { %v7315_v21 = vrot.slane %v7314_v32, 1  ;;  %v7328_v2 = vadd.f32 %v7327_v53, %v7326_v15  ;;  %v7341_v38 = vrot.slane %v7340_v45, 2  ;;  %v4678_v16 = vrot.slane %v4677_v52, 1 }
 0x6c2   :  { %v7309_v9 = vadd.f32 %v7308_v35, %v7307_v40  ;;  %v7322_v13 = vrot.slane %v7321_v11, 1  ;;  %v7335_v17 = vadd.f32 %v7334_v49, %v7333_v22  ;;  %v4682_v37 = vmax.f32 %v4680_v50, %v4681_v41 }
 0x6c3   :  { %v7316_v58 = vadd.f32 %v7315_v21, %v7314_v32  ;;  %v7329_v47 = vrot.slane %v7328_v2, 1  ;;  %v7342_v5 = vadd.f32 %v7341_v38, %v7340_v45  ;;  %v14601_v29 = vmax.f32 %v4677_v52, %v4678_v16 }
 0x6c4   :  { %v7323_v51 = vadd.f32 %v7322_v13, %v7321_v11  ;;  %9793 = vlog2.f32 %v7309_v9  ;;  %v7336_v44 = vrot.slane %v7335_v17, 1  ;;  %v4683_v7 = vrot.slane %v4682_v37, 2 }
 0x6c5   :  { %v7330_v20 = vadd.f32 %v7329_v47, %v7328_v2  ;;  %9795 = vlog2.f32 %v7316_v58  ;;  %v7343_v33 = vrot.slane %v7342_v5, 1  ;;  %v4689_v55 = vmax.f32 %v14588_v57, %v4688_v23 }
 0x6c6   :  { %9797 = vlog2.f32 %v7323_v51  ;;  %v4695_v31 = vrot.slane %v14592_v24, 4  ;;  %v7337_v12 = vadd.f32 %v7336_v44, %v7335_v17  ;;  %v4684_v32 = vmax.f32 %v4682_v37, %v4683_v7 }
 0x6c7   :  { %9799 = vlog2.f32 %v7330_v20  ;;  %v4701_v13 = vsel %vm3104_vm2, %v14558_v62, -inf  ;;  %v7344_v50 = vadd.f32 %v7343_v33, %v7342_v5  ;;  %v4690_v41 = vrot.slane %v4689_v55, 2 }
 0x6c8   :  { %v4696_v26 = vmax.f32 %v14592_v24, %v4695_v31  ;;  %v4702_v15 = vrot.slane %v4701_v13, 4  ;;  %9801 = vlog2.f32 %v7337_v12  ;;  %v4685_v40 = vrot.slane %v4684_v32, 1 }
 0x6c9   :  { %v4708_v42 = vsel %vm3104_vm2, %v14578_v60, -inf  ;;  %v4715_v57 = vsel %vm3104_vm2, %v14561_v25, -inf  ;;  %9803 = vlog2.f32 %v7344_v50  ;;  %v4691_v17 = vmax.f32 %v4689_v55, %v4690_v41 }
 0x6ca   :  { %v4697_v23 = vrot.slane %v4696_v26, 2  ;;  %v4703_v36 = vmax.f32 %v4701_v13, %v4702_v15  ;;  %v9790_v53 = vpop.eup %9789  ;;  %v14612_v22 = vmax.f32 %v4684_v32, %v4685_v40  ;;  %v4709_v35 = vrot.slane %v4708_v42, 4 }
 0x6cb   :  { %v4716_v11 = vrot.slane %v4715_v57, 4  ;;  %v4722_v24 = vsel %vm3104_vm2, %v14582_v18, -inf  ;;  %v7922_v45 = vmul.f32 0.6931472, %v9790_v53  ;;  %v4692_v52 = vrot.slane %v4691_v17, 1 }
 0x6cc   :  { %v4698_v21 = vmax.f32 %v4696_v26, %v4697_v23  ;;  %v4704_v2 = vrot.slane %v4703_v36, 2  ;;  %v4710_v49 = vmax.f32 %v4708_v42, %v4709_v35  ;;  %v4723_v38 = vrot.slane %v4722_v24, 4 }
 0x6cd   :  { %v4717_v9 = vmax.f32 %v4715_v57, %v4716_v11  ;;  %v5121_v16 = vsub.f32 %v14547_v48, %v14601_v29  ;;  %v9792_v58 = vpop.eup %9791  ;;  %v8201_v47 = vadd.f32 %v7922_v45, %v14447_v54  ;;  %v14619_v37 = vmax.f32 %v4691_v17, %v4692_v52 }
 0x6ce   :  { %v4699_v51 = vrot.slane %v4698_v21, 1  ;;  %v4705_v5 = vmax.f32 %v4703_v36, %v4704_v2  ;;  %v7924_v20 = vmul.f32 0.6931472, %v9792_v58  ;;  %v4711_v44 = vrot.slane %v4710_v49, 2 }
 0x6cf   :  { %v4718_v7 = vrot.slane %v4717_v9, 2  ;;  %v4724_v33 = vmax.f32 %v4722_v24, %v4723_v38  ;;  %v5122_v12 = vsub.f32 %v14568_v28, %v14612_v22  ;;  %v5123_v48 = vsub.f32 %v14550_v34, %v14619_v37 }
 0x6d0   :  { %v14621_v55 = vmax.f32 %v4698_v21, %v4699_v51  ;;  %v4706_v31 = vrot.slane %v4705_v5, 1  ;;  %v8202_v54 = vadd.f32 %v7924_v20, %v14451_v39  ;;  %v4712_v13 = vmax.f32 %v4710_v49, %v4711_v44  ;;  %v863_v44 = vpop.permute.xlu1 %862 }
 0x6d1   :  { %v9794_v32 = vpop.eup %9793  ;;  %v4719_v50 = vmax.f32 %v4717_v9, %v4718_v7  ;;  %v4725_v41 = vrot.slane %v4724_v33, 2  ;;  %v5601_v57 = vmul.f32 1.442695, %v5121_v16  ;;  %v14643_v16 = vpop.permute.xlu0 %796 }
 0x6d2   :  { %v9796_v26 = vpop.eup %9795  ;;  %v7926_v15 = vmul.f32 0.6931472, %v9794_v32  ;;  %v14628_v40 = vmax.f32 %v4705_v5, %v4706_v31  ;;  %v5124_v42 = vsub.f32 %v14572_v19, %v14621_v55  ;;  %v8691_v28 = vsel %vm8481_vm3, %v8202_v54, %v8201_v47  ;;  %15481 = vst [vmem:[#allocation26_spill] sm:$0xff] %v14643_v16 }
 0x6d3   :  { %v9798_v17 = vpop.eup %9797  ;;  %v7928_v23 = vmul.f32 0.6931472, %v9796_v26  ;;  %v4713_v36 = vrot.slane %v4712_v13, 1  ;;  %v4720_v34 = vrot.slane %v4719_v50, 1  ;;  %v4726_v11 = vmax.f32 %v4724_v33, %v4725_v41 }
 0x6d4   :  { %v9800_v53 = vpop.eup %9799  ;;  %v7930_v35 = vmul.f32 0.6931472, %v9798_v17  ;;  %v8203_v39 = vadd.f32 %v7926_v15, %v14463_v10  ;;  %v5125_v24 = vsub.f32 %v14558_v62, %v14628_v40  ;;  %9805 = vpow2.f32 %v5601_v57 }
 0x6d5   :  { %v7932_v45 = vmul.f32 0.6931472, %v9800_v53  ;;  %v8204_v52 = vadd.f32 %v7928_v23, %v14475_v56  ;;  %v14637_v21 = vmax.f32 %v4712_v13, %v4713_v36  ;;  %v14639_v19 = vmax.f32 %v4719_v50, %v4720_v34  ;;  %v9802_v2 = vpop.eup %9801  ;;  %v14687_v53 = vpop.permute.xlu1 %894 }
 0x6d6   :  { %v8205_v49 = vadd.f32 %v7930_v35, %v14482_v1  ;;  %v8692_v9 = vsel %vm8483_vm4, %v8203_v39, %v8691_v28  ;;  %v4727_v38 = vrot.slane %v4726_v11, 1  ;;  %v9804_v10 = vpop.eup %9803  ;;  %v7934_v58 = vmul.f32 0.6931472, %v9802_v2 }
 0x6d7   :  { %v8206_v62 = vadd.f32 %v7932_v45, %v14487_v43  ;;  %v8693_v47 = vsel %vm8485_vm5, %v8204_v52, %v8692_v9  ;;  %v5126_v56 = vsub.f32 %v14578_v60, %v14637_v21  ;;  %v7936_v51 = vmul.f32 0.6931472, %v9804_v10 }
 0x6d8   :  { %v8694_v5 = vsel %vm8487_vm6, %v8205_v49, %v8693_v47  ;;  %v14650_v20 = vmax.f32 %v4726_v11, %v4727_v38  ;;  %v5127_v1 = vsub.f32 %v14561_v25, %v14639_v19  ;;  %v8207_v7 = vadd.f32 %v7934_v58, %v14496_v27  ;;  %v15486_v47 = vld [vmem:[#allocation22_spill] sm:$0xff] }
 0x6d9   :  { %v8695_v33 = vsel %vm8489_vm7, %v8206_v62, %v8694_v5  ;;  %v5603_v31 = vmul.f32 1.442695, %v5122_v12  ;;  %v5605_v43 = vmul.f32 1.442695, %v5123_v48  ;;  %v8208_v32 = vadd.f32 %v7936_v51, %v14502_v3  ;;  %v861_v48 = vpop.permute.xlu0 %860 }
 0x6da   :  { %v5128_v60 = vsub.f32 %v14582_v18, %v14650_v20  ;;  %v5607_v54 = vmul.f32 1.442695, %v5124_v42  ;;  %v5609_v13 = vmul.f32 1.442695, %v5125_v24  ;;  %v8696_v50 = vsel %vm8491_vm8, %v8207_v7, %v8695_v33 }
 0x6db   :  { %9807 = vpow2.f32 %v5603_v31  ;;  %v5611_v41 = vmul.f32 1.442695, %v5126_v56  ;;  %v15482_v25 = vcombine.low %v15479_v8, %v14524_v6  ;;  %v8697_v26 = vsel %vm8493_vm9, %v8208_v32, %v8696_v50 }
 0x6dc   :  { %9809 = vpow2.f32 %v5605_v43  ;;  %v5613_v12 = vmul.f32 1.442695, %v5127_v1  ;;  %v3037_v3 = vcombine.high %v15480_v59, %v14542_v61  ;;  %8774 = vst.msk [vmem:[%s15233_s3 + $0xe8] sm:$0xff] %vm8744_vm10, %v8697_v26  ;;  %v5615_v18 = vmul.f32 1.442695, %v5128_v60 }
 0x6dd   :  { %v1888_v27 = vrot.slane %v15482_v25, %v10581_v63  ;;  %9811 = vpow2.f32 %v5607_v54  ;;  %v15483_v15 = vcombine.high %v15479_v8, %v14524_v6  ;;  %v15484_v57 = vcombine.low %v15480_v59, %v14542_v61 }
 0x6de   :  { %9813 = vpow2.f32 %v5609_v13  ;;  %v1964_v36 = vcombine.low %v14473_v14, %v863_v44  ;;  %v1965_v34 = vcombine.high %v14473_v14, %v863_v44  ;;  %v14690_v6 = vrot.slane %v3037_v3, %v10581_v63 }
 0x6df   :  { %v14675_v42 = vrot.slane %v15483_v15, %v10581_v63  ;;  %v14681_v17 = vrot.slane %v15484_v57, %v10581_v63  ;;  %9815 = vpow2.f32 %v5611_v41  ;;  %v1896_v61 = vcombine.low %v14484_v46, %v861_v48 }
 0x6e0   :  { %9817 = vpow2.f32 %v5613_v12  ;;  %v1972_v59 = vrot.slane %v1964_v36, %v10581_v63  ;;  %v1979_v35 = vrot.slane %v1965_v34, %v10581_v63  ;;  %v1897_v39 = vcombine.high %v14484_v46, %v861_v48 }
 0x6e1   :  { %9819 = vpow2.f32 %v5615_v18  ;;  %v1904_v14 = vrot.slane %v1896_v61, %v10581_v63  ;;  %v3052_v11 = vcombine.low %v14491_v4, %v14687_v53  ;;  %v9806_v9 = vpop.eup %9805  ;;  %v15487_v7 = vmov 0.0  }
 0x6e2   :  { %v1980_v45 = vcombine.low %v14540_v30, %v1972_v59  ;;  %v1981_v52 = vcombine.high %v14540_v30, %v1972_v59  ;;  %v1996_v2 = vcombine.low %v14553_v0, %v1979_v35  ;;  %v1997_v49 = vcombine.high %v14553_v0, %v1979_v35 }
 0x6e3   :  { %v14708_v46 = vrot.slane %v1897_v39, %v10581_v63  ;;  %v1912_v38 = vcombine.low %v1888_v27, %v1904_v14  ;;  %v1913_v10 = vcombine.high %v1888_v27, %v1904_v14  ;;  %v14711_v58 = vrot.slane %v3052_v11, %v10581_v63 }
 0x6e4   :  { %v7233_v62 = vsel %vm3104_vm2, %v9806_v9, 0.0  ;;  %v14715_v56 = vrot.slane %v1980_v45, %v15486_v47  ;;  %v14718_v30 = vrot.slane %v1981_v52, %v15486_v47  ;;  %v14721_v51 = vrot.slane %v1996_v2, %v15486_v47 }
 0x6e5   :  { %v7234_v0 = vrot.slane %v7233_v62, 4  ;;  %v14724_v5 = vrot.slane %v1997_v49, %v15486_v47  ;;  %v14727_v1 = vrot.slane %v1912_v38, %v15486_v47  ;;  %v14730_v44 = vrot.slane %v1913_v10, %v15486_v47 }
 0x6e6   :  { %v14734_v33 = vcombine.high %v14715_v56, %v15487_v7  ;;  %v14738_v31 = vcombine.high %v14718_v30, %v15487_v7  ;;  %v14742_v43 = vcombine.high %v14721_v51, %v15487_v7  ;;  %v3945_v32 = vsel %vm3104_vm2, %v14715_v56, -inf }
 0x6e7   :  { %v7235_v60 = vadd.f32 %v7234_v0, %v7233_v62  ;;  %v14748_v54 = vcombine.high %v14724_v5, %v15487_v7  ;;  %v3946_v13 = vrot.slane %v3945_v32, 4  ;;  %v3959_v50 = vsel %vm3104_vm2, %v14718_v30, -inf }
 0x6e8   :  { %v9808_v41 = vpop.eup %9807  ;;  %v3952_v25 = vsel %vm3104_vm2, %v14734_v33, -inf  ;;  %v3960_v27 = vrot.slane %v3959_v50, 4  ;;  %v14756_v26 = vsel %vm3104_vm2, %v14738_v31, -inf  ;;  %v14760_v12 = vsel %vm3104_vm2, %v14721_v51, -inf }
 0x6e9   :  { %v9810_v3 = vpop.eup %9809  ;;  %v7236_v48 = vrot.slane %v7235_v60, 2  ;;  %v7240_v18 = vsel %vm3104_vm2, %v9808_v41, 0.0  ;;  %v3947_v15 = vmax.f32 %v3945_v32, %v3946_v13  ;;  %v3953_v57 = vrot.slane %v3952_v25, 4 }
 0x6ea   :  { %v9812_v36 = vpop.eup %9811  ;;  %v7241_v34 = vrot.slane %v7240_v18, 4  ;;  %v7247_v61 = vsel %vm3104_vm2, %v9810_v3, 0.0  ;;  %v14764_v59 = vmax.f32 %v3959_v50, %v3960_v27 }
 0x6eb   :  { %v9814_v39 = vpop.eup %9813  ;;  %v7237_v14 = vadd.f32 %v7236_v48, %v7235_v60  ;;  %v7248_v11 = vrot.slane %v7247_v61, 4  ;;  %v7254_v45 = vsel %vm3104_vm2, %v9812_v36, 0.0  ;;  %v3948_v52 = vrot.slane %v3947_v15, 2 }
 0x6ec   :  { %v9816_v2 = vpop.eup %9815  ;;  %v7242_v49 = vadd.f32 %v7241_v34, %v7240_v18  ;;  %v7255_v9 = vrot.slane %v7254_v45, 4  ;;  %v7261_v38 = vsel %vm3104_vm2, %v9814_v39, 0.0  ;;  %v3954_v10 = vmax.f32 %v3952_v25, %v3953_v57 }
 0x6ed   :  { %v9818_v62 = vpop.eup %9817  ;;  %v7238_v0 = vrot.slane %v7237_v14, 1  ;;  %v7249_v32 = vadd.f32 %v7248_v11, %v7247_v61  ;;  %v7262_v13 = vrot.slane %v7261_v38, 4  ;;  %v7268_v50 = vsel %vm3104_vm2, %v9816_v2, 0.0 }
 0x6ee   :  { %v9820_v41 = vpop.eup %9819  ;;  %v7243_v27 = vrot.slane %v7242_v49, 2  ;;  %v7256_v3 = vadd.f32 %v7255_v9, %v7254_v45  ;;  %v7269_v60 = vrot.slane %v7268_v50, 4  ;;  %v7275_v48 = vsel %vm3104_vm2, %v9818_v62, 0.0 }
 0x6ef   :  { %v7239_v36 = vadd.f32 %v7238_v0, %v7237_v14  ;;  %v7250_v8 = vrot.slane %v7249_v32, 2  ;;  %v7263_v28 = vadd.f32 %v7262_v13, %v7261_v38  ;;  %v7276_v18 = vrot.slane %v7275_v48, 4 }
 0x6f0   :  { %v7244_v34 = vadd.f32 %v7243_v27, %v7242_v49  ;;  %v7257_v24 = vrot.slane %v7256_v3, 2  ;;  %v7270_v39 = vadd.f32 %v7269_v60, %v7268_v50  ;;  %v7282_v25 = vsel %vm3104_vm2, %v9820_v41, 0.0 }
 0x6f1   :  { %v7251_v57 = vadd.f32 %v7250_v8, %v7249_v32  ;;  %v7264_v61 = vrot.slane %v7263_v28, 2  ;;  %v7277_v11 = vadd.f32 %v7276_v18, %v7275_v48  ;;  %v7283_v35 = vrot.slane %v7282_v25, 4 }
 0x6f2   :  { %v7245_v2 = vrot.slane %v7244_v34, 1  ;;  %v7258_v16 = vadd.f32 %v7257_v24, %v7256_v3  ;;  %v7271_v23 = vrot.slane %v7270_v39, 2  ;;  %9821 = vlog2.f32 %v7239_v36 }
 0x6f3   :  { %v7252_v45 = vrot.slane %v7251_v57, 1  ;;  %v7265_v9 = vadd.f32 %v7264_v61, %v7263_v28  ;;  %v7278_v62 = vrot.slane %v7277_v11, 2  ;;  %v7284_v14 = vadd.f32 %v7283_v35, %v7282_v25 }
 0x6f4   :  { %v7246_v0 = vadd.f32 %v7245_v2, %v7244_v34  ;;  %v7259_v38 = vrot.slane %v7258_v16, 1  ;;  %v7272_v13 = vadd.f32 %v7271_v23, %v7270_v39  ;;  %v3949_v49 = vmax.f32 %v3947_v15, %v3948_v52 }
 0x6f5   :  { %v7253_v27 = vadd.f32 %v7252_v45, %v7251_v57  ;;  %v7266_v50 = vrot.slane %v7265_v9, 1  ;;  %v7279_v60 = vadd.f32 %v7278_v62, %v7277_v11  ;;  %v7285_v41 = vrot.slane %v7284_v14, 2 }
 0x6f6   :  { %v7260_v8 = vadd.f32 %v7259_v38, %v7258_v16  ;;  %v7273_v32 = vrot.slane %v7272_v13, 1  ;;  %9823 = vlog2.f32 %v7246_v0  ;;  %v3950_v48 = vrot.slane %v3949_v49, 1 }
 0x6f7   :  { %v7267_v18 = vadd.f32 %v7266_v50, %v7265_v9  ;;  %v7280_v24 = vrot.slane %v7279_v60, 1  ;;  %v7286_v3 = vadd.f32 %v7285_v41, %v7284_v14  ;;  %9825 = vlog2.f32 %v7253_v27 }
 0x6f8   :  { %v7274_v36 = vadd.f32 %v7273_v32, %v7272_v13  ;;  %9827 = vlog2.f32 %v7260_v8  ;;  %v14772_v28 = vmax.f32 %v3949_v49, %v3950_v48  ;;  %v3955_v35 = vrot.slane %v3954_v10, 2 }
 0x6f9   :  { %v7281_v34 = vadd.f32 %v7280_v24, %v7279_v60  ;;  %v7287_v23 = vrot.slane %v7286_v3, 1  ;;  %9829 = vlog2.f32 %v7267_v18  ;;  %v3962_v15 = vrot.slane %v14764_v59, 2 }
 0x6fa   :  { %9831 = vlog2.f32 %v7274_v36  ;;  %v3956_v52 = vmax.f32 %v3954_v10, %v3955_v35  ;;  %v15488_v16 = vrot.slane %v14756_v26, 4  ;;  %v3974_v25 = vrot.slane %v14760_v12, 4 }
 0x6fb   :  { %v7288_v57 = vadd.f32 %v7287_v23, %v7286_v3  ;;  %9833 = vlog2.f32 %v7281_v34  ;;  %v3963_v61 = vmax.f32 %v14764_v59, %v3962_v15  ;;  %v3980_v11 = vsel %vm3104_vm2, %v14742_v43, -inf }
 0x6fc   :  { %v3968_v39 = vmax.f32 %v14756_v26, %v15488_v16  ;;  %v3957_v2 = vrot.slane %v3956_v52, 1  ;;  %v3975_v9 = vmax.f32 %v14760_v12, %v3974_v25  ;;  %v3981_v62 = vrot.slane %v3980_v11, 4 }
 0x6fd   :  { %9835 = vlog2.f32 %v7288_v57  ;;  %v3964_v10 = vrot.slane %v3963_v61, 1  ;;  %v3987_v14 = vsel %vm3104_vm2, %v14724_v5, -inf  ;;  %v3994_v26 = vsel %vm3104_vm2, %v14748_v54, -inf }
 0x6fe   :  { %v3969_v45 = vrot.slane %v3968_v39, 2  ;;  %v14787_v0 = vmax.f32 %v3956_v52, %v3957_v2  ;;  %v3976_v59 = vrot.slane %v3975_v9, 2  ;;  %v3982_v13 = vmax.f32 %v3980_v11, %v3981_v62 }
 0x6ff   :  { %v9822_v49 = vpop.eup %9821  ;;  %v14789_v27 = vmax.f32 %v3963_v61, %v3964_v10  ;;  %v3988_v50 = vrot.slane %v3987_v14, 4  ;;  %v3995_v60 = vrot.slane %v3994_v26, 4  ;;  %v5017_v12 = vsub.f32 %v14715_v56, %v14772_v28 }
 0x700   :  { %v3970_v38 = vmax.f32 %v3968_v39, %v3969_v45  ;;  %v7906_v41 = vmul.f32 0.6931472, %v9822_v49  ;;  %v3977_v32 = vmax.f32 %v3975_v9, %v3976_v59  ;;  %v3983_v48 = vrot.slane %v3982_v13, 2 }
 0x701   :  { %v3989_v18 = vmax.f32 %v3987_v14, %v3988_v50  ;;  %v3996_v24 = vmax.f32 %v3994_v26, %v3995_v60  ;;  %v5018_v3 = vsub.f32 %v14734_v33, %v14787_v0  ;;  %v5019_v36 = vsub.f32 %v14718_v30, %v14789_v27 }
 0x702   :  { %v3971_v8 = vrot.slane %v3970_v38, 1  ;;  %v8193_v35 = vadd.f32 %v7906_v41, %v14601_v29  ;;  %v3978_v23 = vrot.slane %v3977_v32, 1  ;;  %v3984_v15 = vmax.f32 %v3982_v13, %v3983_v48 }
 0x703   :  { %v9824_v52 = vpop.eup %9823  ;;  %v3990_v56 = vrot.slane %v3989_v18, 2  ;;  %v3997_v16 = vrot.slane %v3996_v24, 2  ;;  %v5393_v39 = vmul.f32 1.442695, %v5017_v12  ;;  %v5395_v25 = vmul.f32 1.442695, %v5018_v3 }
 0x704   :  { %v14798_v34 = vmax.f32 %v3970_v38, %v3971_v8  ;;  %v9826_v57 = vpop.eup %9825  ;;  %v7908_v61 = vmul.f32 0.6931472, %v9824_v52  ;;  %v14800_v11 = vmax.f32 %v3977_v32, %v3978_v23  ;;  %v3985_v2 = vrot.slane %v3984_v15, 1 }
 0x705   :  { %v9828_v30 = vpop.eup %9827  ;;  %v7910_v45 = vmul.f32 0.6931472, %v9826_v57  ;;  %v3991_v29 = vmax.f32 %v3989_v18, %v3990_v56  ;;  %v3998_v9 = vmax.f32 %v3996_v24, %v3997_v16  ;;  %9837 = vpow2.f32 %v5393_v39 }
 0x706   :  { %v5020_v33 = vsub.f32 %v14738_v31, %v14798_v34  ;;  %v9830_v62 = vpop.eup %9829  ;;  %v7912_v10 = vmul.f32 0.6931472, %v9828_v30  ;;  %v8194_v14 = vadd.f32 %v7908_v61, %v14612_v22  ;;  %v14805_v26 = vmax.f32 %v3984_v15, %v3985_v2 }
 0x707   :  { %v5021_v38 = vsub.f32 %v14721_v51, %v14800_v11  ;;  %v9832_v59 = vpop.eup %9831  ;;  %v7914_v13 = vmul.f32 0.6931472, %v9830_v62  ;;  %v8195_v49 = vadd.f32 %v7910_v45, %v14619_v37  ;;  %v3992_v50 = vrot.slane %v3991_v29, 1 }
 0x708   :  { %v3999_v31 = vrot.slane %v3998_v9, 1  ;;  %v9834_v60 = vpop.eup %9833  ;;  %v7916_v12 = vmul.f32 0.6931472, %v9832_v59  ;;  %v8196_v41 = vadd.f32 %v7912_v10, %v14621_v55  ;;  %v8684_v8 = vsel %vm8481_vm3, %v8194_v14, %v8193_v35 }
 0x709   :  { %v5022_v22 = vsub.f32 %v14742_v43, %v14805_v26  ;;  %v7918_v32 = vmul.f32 0.6931472, %v9834_v60  ;;  %v8197_v48 = vadd.f32 %v7914_v13, %v14628_v40  ;;  %v8685_v51 = vsel %vm8483_vm4, %v8195_v49, %v8684_v8 }
 0x70a   :  { %v14816_v18 = vmax.f32 %v3991_v29, %v3992_v50  ;;  %v9836_v24 = vpop.eup %9835  ;;  %v8198_v37 = vadd.f32 %v7916_v12, %v14637_v21  ;;  %v8686_v3 = vsel %vm8485_vm5, %v8196_v41, %v8685_v51  ;;  %v14820_v23 = vmax.f32 %v3998_v9, %v3999_v31 }
 0x70b   :  { %9839 = vpow2.f32 %v5395_v25  ;;  %v7920_v55 = vmul.f32 0.6931472, %v9836_v24  ;;  %v8199_v35 = vadd.f32 %v7918_v32, %v14639_v19  ;;  %v8687_v43 = vsel %vm8487_vm6, %v8197_v48, %v8686_v3 }
 0x70c   :  { %v5023_v40 = vsub.f32 %v14724_v5, %v14816_v18  ;;  %v8688_v15 = vsel %vm8489_vm7, %v8198_v37, %v8687_v43  ;;  %v5024_v52 = vsub.f32 %v14748_v54, %v14820_v23  ;;  %v5397_v56 = vmul.f32 1.442695, %v5019_v36 }
 0x70d   :  { %v5399_v21 = vmul.f32 1.442695, %v5020_v33  ;;  %v8200_v16 = vadd.f32 %v7920_v55, %v14650_v20  ;;  %v8689_v39 = vsel %vm8491_vm8, %v8199_v35, %v8688_v15  ;;  %v5401_v25 = vmul.f32 1.442695, %v5021_v38 }
 0x70e   :  { %v5403_v57 = vmul.f32 1.442695, %v5022_v22  ;;  %9841 = vpow2.f32 %v5397_v56  ;;  %v5405_v19 = vmul.f32 1.442695, %v5023_v40  ;;  %v5407_v61 = vmul.f32 1.442695, %v5024_v52 }
 0x70f   :  { %v1928_v2 = vcombine.low %v14675_v42, %v14708_v46  ;;  %v8690_v5 = vsel %vm8493_vm9, %v8200_v16, %v8689_v39  ;;  %9843 = vpow2.f32 %v5399_v21  ;;  %v1929_v54 = vcombine.high %v14675_v42, %v14708_v46 }
 0x710   :  { %v14838_v36 = vcombine.high %v14727_v1, %v15487_v7  ;;  %8773 = vst.msk [vmem:[%s15233_s3 + $0xe0] sm:$0xff] %vm8744_vm10, %v8690_v5  ;;  %9845 = vpow2.f32 %v5401_v25  ;;  %v14849_v33 = vcombine.high %v14730_v44, %v15487_v7  ;;  %v3889_v42 = vsel %vm3104_vm2, %v14727_v1, -inf }
 0x711   :  { %v14845_v20 = vrot.slane %v1928_v2, %v15486_v47  ;;  %9847 = vpow2.f32 %v5403_v57  ;;  %v14854_v46 = vrot.slane %v1929_v54, %v15486_v47  ;;  %v3890_v30 = vrot.slane %v3889_v42, 4 }
 0x712   :  { %v3896_v45 = vsel %vm3104_vm2, %v14838_v36, -inf  ;;  %v9838_v29 = vpop.eup %9837  ;;  %9849 = vpow2.f32 %v5405_v19  ;;  %v3903_v10 = vsel %vm3104_vm2, %v14730_v44, -inf  ;;  %v3910_v31 = vsel %vm3104_vm2, %v14849_v33, -inf }
 0x713   :  { %v14860_v9 = vcombine.high %v14845_v20, %v15487_v7  ;;  %v3897_v62 = vrot.slane %v3896_v45, 4  ;;  %9851 = vpow2.f32 %v5407_v61  ;;  %v6505_v14 = vsel %vm3104_vm2, %v9838_v29, 0.0 }
 0x714   :  { %v14867_v38 = vcombine.high %v14854_v46, %v15487_v7  ;;  %v3891_v59 = vmax.f32 %v3889_v42, %v3890_v30  ;;  %v6506_v13 = vrot.slane %v6505_v14, 4  ;;  %v3904_v50 = vrot.slane %v3903_v10, 4 }
 0x715   :  { %v3898_v49 = vmax.f32 %v3896_v45, %v3897_v62  ;;  %v3911_v12 = vrot.slane %v3910_v31, 4  ;;  %v3917_v41 = vsel %vm3104_vm2, %v14845_v20, -inf  ;;  %v3924_v8 = vsel %vm3104_vm2, %v14860_v9, -inf }
 0x716   :  { %v3892_v60 = vrot.slane %v3891_v59, 2  ;;  %v6507_v22 = vadd.f32 %v6506_v13, %v6505_v14  ;;  %v3905_v48 = vmax.f32 %v3903_v10, %v3904_v50  ;;  %v3918_v51 = vrot.slane %v3917_v41, 4 }
 0x717   :  { %v3899_v32 = vrot.slane %v3898_v49, 2  ;;  %v3912_v3 = vmax.f32 %v3910_v31, %v3911_v12  ;;  %v3925_v55 = vrot.slane %v3924_v8, 4  ;;  %v14877_v35 = vsel %vm3104_vm2, %v14854_v46, -inf }
 0x718   :  { %v9840_v24 = vpop.eup %9839  ;;  %v3893_v37 = vmax.f32 %v3891_v59, %v3892_v60  ;;  %v6508_v43 = vrot.slane %v6507_v22, 2  ;;  %v3906_v52 = vrot.slane %v3905_v48, 2  ;;  %v3919_v39 = vmax.f32 %v3917_v41, %v3918_v51 }
 0x719   :  { %v6512_v40 = vsel %vm3104_vm2, %v9840_v24, 0.0  ;;  %v3900_v15 = vmax.f32 %v3898_v49, %v3899_v32  ;;  %v3913_v16 = vrot.slane %v3912_v3, 2  ;;  %v14880_v61 = vmax.f32 %v3924_v8, %v3925_v55 }
 0x71a   :  { %v6513_v56 = vrot.slane %v6512_v40, 4  ;;  %v3894_v21 = vrot.slane %v3893_v37, 1  ;;  %v6509_v25 = vadd.f32 %v6508_v43, %v6507_v22  ;;  %v3907_v19 = vmax.f32 %v3905_v48, %v3906_v52 }
 0x71b   :  { %v3901_v57 = vrot.slane %v3900_v15, 1  ;;  %v9842_v2 = vpop.eup %9841  ;;  %v3914_v42 = vmax.f32 %v3912_v3, %v3913_v16  ;;  %v3920_v30 = vrot.slane %v3919_v39, 2 }
 0x71c   :  { %v6514_v5 = vadd.f32 %v6513_v56, %v6512_v40  ;;  %v14882_v54 = vmax.f32 %v3893_v37, %v3894_v21  ;;  %v9844_v45 = vpop.eup %9843  ;;  %v6510_v29 = vrot.slane %v6509_v25, 1  ;;  %v6519_v62 = vsel %vm3104_vm2, %v9842_v2, 0.0 }
 0x71d   :  { %v14885_v10 = vmax.f32 %v3900_v15, %v3901_v57  ;;  %v3908_v14 = vrot.slane %v3907_v19, 1  ;;  %v9846_v59 = vpop.eup %9845  ;;  %v6520_v49 = vrot.slane %v6519_v62, 4  ;;  %v6526_v50 = vsel %vm3104_vm2, %v9844_v45, 0.0 }
 0x71e   :  { %v6515_v13 = vrot.slane %v6514_v5, 2  ;;  %v3915_v31 = vrot.slane %v3914_v42, 1  ;;  %v9848_v60 = vpop.eup %9847  ;;  %v6511_v12 = vadd.f32 %v6510_v29, %v6509_v25  ;;  %v6527_v41 = vrot.slane %v6526_v50, 4 }
 0x71f   :  { %v6533_v8 = vsel %vm3104_vm2, %v9846_v59, 0.0  ;;  %v14889_v22 = vmax.f32 %v3907_v19, %v3908_v14  ;;  %v9850_v32 = vpop.eup %9849  ;;  %v6521_v51 = vadd.f32 %v6520_v49, %v6519_v62  ;;  %v6540_v37 = vsel %vm3104_vm2, %v9848_v60, 0.0 }
 0x720   :  { %v6516_v48 = vadd.f32 %v6515_v13, %v6514_v5  ;;  %v6534_v24 = vrot.slane %v6533_v8, 4  ;;  %v9852_v3 = vpop.eup %9851  ;;  %v6528_v55 = vadd.f32 %v6527_v41, %v6526_v50  ;;  %v6541_v43 = vrot.slane %v6540_v37, 4 }
 0x721   :  { %v6547_v40 = vsel %vm3104_vm2, %v9850_v32, 0.0  ;;  %9853 = vlog2.f32 %v6511_v12  ;;  %v6522_v52 = vrot.slane %v6521_v51, 2  ;;  %v6554_v57 = vsel %vm3104_vm2, %v9852_v3, 0.0 }
 0x722   :  { %v6517_v15 = vrot.slane %v6516_v48, 1  ;;  %v6535_v56 = vadd.f32 %v6534_v24, %v6533_v8  ;;  %v6548_v21 = vrot.slane %v6547_v40, 4  ;;  %v6529_v16 = vrot.slane %v6528_v55, 2 }
 0x723   :  { %v6542_v25 = vadd.f32 %v6541_v43, %v6540_v37  ;;  %v14894_v19 = vmax.f32 %v3914_v42, %v3915_v31  ;;  %v6523_v5 = vadd.f32 %v6522_v52, %v6521_v51  ;;  %v6555_v59 = vrot.slane %v6554_v57, 4 }
 0x724   :  { %v6518_v2 = vadd.f32 %v6517_v15, %v6516_v48  ;;  %v6536_v45 = vrot.slane %v6535_v56, 2  ;;  %v6549_v29 = vadd.f32 %v6548_v21, %v6547_v40  ;;  %v6530_v62 = vadd.f32 %v6529_v16, %v6528_v55 }
 0x725   :  { %v6543_v14 = vrot.slane %v6542_v25, 2  ;;  %v3921_v13 = vmax.f32 %v3919_v39, %v3920_v30  ;;  %v6524_v49 = vrot.slane %v6523_v5, 1  ;;  %v6556_v8 = vadd.f32 %v6555_v59, %v6554_v57 }
 0x726   :  { %v6537_v50 = vadd.f32 %v6536_v45, %v6535_v56  ;;  %v6550_v60 = vrot.slane %v6549_v29, 2  ;;  %9855 = vlog2.f32 %v6518_v2  ;;  %v6531_v12 = vrot.slane %v6530_v62, 1 }
 0x727   :  { %v6544_v41 = vadd.f32 %v6543_v14, %v6542_v25  ;;  %v3922_v32 = vrot.slane %v3921_v13, 1  ;;  %v6525_v24 = vadd.f32 %v6524_v49, %v6523_v5  ;;  %v3927_v31 = vrot.slane %v14880_v61, 2 }
 0x728   :  { %v6538_v37 = vrot.slane %v6537_v50, 1  ;;  %v6551_v42 = vadd.f32 %v6550_v60, %v6549_v29  ;;  %v6532_v48 = vadd.f32 %v6531_v12, %v6530_v62  ;;  %v6557_v3 = vrot.slane %v6556_v8, 2 }
 0x729   :  { %v6545_v51 = vrot.slane %v6544_v41, 1  ;;  %v14897_v55 = vmax.f32 %v3921_v13, %v3922_v32  ;;  %9857 = vlog2.f32 %v6525_v24  ;;  %v3928_v30 = vmax.f32 %v14880_v61, %v3927_v31 }
 0x72a   :  { %v6539_v43 = vadd.f32 %v6538_v37, %v6537_v50  ;;  %v6552_v39 = vrot.slane %v6551_v42, 1  ;;  %v6558_v15 = vadd.f32 %v6557_v3, %v6556_v8  ;;  %9859 = vlog2.f32 %v6532_v48 }
 0x72b   :  { %v6546_v40 = vadd.f32 %v6545_v51, %v6544_v41  ;;  %v3932_v52 = vrot.slane %v14877_v35, 4  ;;  %v3929_v21 = vrot.slane %v3928_v30, 1  ;;  %v3938_v16 = vsel %vm3104_vm2, %v14867_v38, -inf }
 0x72c   :  { %v6553_v56 = vadd.f32 %v6552_v39, %v6551_v42  ;;  %9861 = vlog2.f32 %v6539_v43  ;;  %v6559_v25 = vrot.slane %v6558_v15, 1  ;;  %v3939_v2 = vrot.slane %v3938_v16, 4 }
 0x72d   :  { %9863 = vlog2.f32 %v6546_v40  ;;  %v3933_v57 = vmax.f32 %v14877_v35, %v3932_v52  ;;  %v14904_v45 = vmax.f32 %v3928_v30, %v3929_v21  ;;  %v5009_v61 = vsub.f32 %v14727_v1, %v14882_v54 }
 0x72e   :  { %v9854_v5 = vpop.eup %9853  ;;  %9865 = vlog2.f32 %v6553_v56  ;;  %v5010_v29 = vsub.f32 %v14838_v36, %v14885_v10  ;;  %v6560_v62 = vadd.f32 %v6559_v25, %v6558_v15  ;;  %v3940_v13 = vmax.f32 %v3938_v16, %v3939_v2 }
 0x72f   :  { %v7698_v14 = vmul.f32 0.6931472, %v9854_v5  ;;  %v3934_v59 = vrot.slane %v3933_v57, 2  ;;  %v5011_v49 = vsub.f32 %v14730_v44, %v14889_v22  ;;  %v5012_v35 = vsub.f32 %v14849_v33, %v14894_v19 }
 0x730   :  { %v5013_v50 = vsub.f32 %v14845_v20, %v14897_v55  ;;  %v5014_v60 = vsub.f32 %v14860_v9, %v14904_v45  ;;  %9867 = vlog2.f32 %v6560_v62  ;;  %v3941_v12 = vrot.slane %v3940_v13, 2 }
 0x731   :  { %v8089_v1 = vadd.f32 %v7698_v14, %v14772_v28  ;;  %v3935_v36 = vmax.f32 %v3933_v57, %v3934_v59  ;;  %v5377_v41 = vmul.f32 1.442695, %v5009_v61  ;;  %v5379_v8 = vmul.f32 1.442695, %v5010_v29 }
 0x732   :  { %v5381_v32 = vmul.f32 1.442695, %v5011_v49  ;;  %v15489_v44 = vcombine.high %v14491_v4, %v14687_v53  ;;  %v3942_v42 = vmax.f32 %v3940_v13, %v3941_v12  ;;  %v5383_v20 = vmul.f32 1.442695, %v5012_v35 }
 0x733   :  { %v9856_v33 = vpop.eup %9855  ;;  %v3936_v37 = vrot.slane %v3935_v36, 1  ;;  %v5385_v31 = vmul.f32 1.442695, %v5013_v50  ;;  %9869 = vpow2.f32 %v5377_v41  ;;  %v5387_v9 = vmul.f32 1.442695, %v5014_v60 }
 0x734   :  { %v3067_v24 = vrot.slane %v15489_v44, %v10581_v63  ;;  %v7700_v48 = vmul.f32 0.6931472, %v9856_v33  ;;  %v3068_v28 = vcombine.low %v14681_v17, %v14711_v58  ;;  %v3943_v3 = vrot.slane %v3942_v42, 1 }
 0x735   :  { %v14925_v51 = vmax.f32 %v3935_v36, %v3936_v37  ;;  %9871 = vpow2.f32 %v5379_v8  ;;  %v3069_v43 = vcombine.high %v14681_v17, %v14711_v58 }
 0x736   :  { %v8090_v4 = vadd.f32 %v7700_v48, %v14787_v0  ;;  %9873 = vpow2.f32 %v5381_v32  ;;  %v14931_v53 = vrot.slane %v3068_v28, %v15486_v47  ;;  %v3084_v39 = vcombine.low %v14690_v6, %v3067_v24  ;;  %v9858_v30 = vpop.eup %9857 }
 0x737   :  { %v14934_v40 = vmax.f32 %v3942_v42, %v3943_v3  ;;  %v5015_v15 = vsub.f32 %v14854_v46, %v14925_v51  ;;  %9875 = vpow2.f32 %v5383_v20  ;;  %v14939_v52 = vrot.slane %v3069_v43, %v15486_v47  ;;  %v9860_v56 = vpop.eup %9859 }
 0x738   :  { %v7702_v17 = vmul.f32 0.6931472, %v9858_v30  ;;  %v8593_v58 = vsel %vm8481_vm3, %v8090_v4, %v8089_v1  ;;  %9877 = vpow2.f32 %v5385_v31  ;;  %v3085_v0 = vcombine.high %v14690_v6, %v3067_v24 }
 0x739   :  { %v9862_v21 = vpop.eup %9861  ;;  %v7704_v16 = vmul.f32 0.6931472, %v9860_v56  ;;  %v5016_v25 = vsub.f32 %v14867_v38, %v14934_v40  ;;  %9879 = vpow2.f32 %v5387_v9  ;;  %v5389_v57 = vmul.f32 1.442695, %v5015_v15 }
 0x73a   :  { %v9864_v2 = vpop.eup %9863  ;;  %v7706_v46 = vmul.f32 0.6931472, %v9862_v21  ;;  %v8091_v5 = vadd.f32 %v7702_v17, %v14789_v27  ;;  %v14947_v61 = vrot.slane %v3084_v39, %v15486_v47  ;;  %v14950_v29 = vrot.slane %v3085_v0, %v15486_v47 }
 0x73b   :  { %v9866_v62 = vpop.eup %9865  ;;  %v7708_v14 = vmul.f32 0.6931472, %v9864_v2  ;;  %v8092_v6 = vadd.f32 %v7704_v16, %v14798_v34  ;;  %9881 = vpow2.f32 %v5389_v57  ;;  %v5391_v59 = vmul.f32 1.442695, %v5016_v25 }
 0x73c   :  { %v7710_v13 = vmul.f32 0.6931472, %v9866_v62  ;;  %v8093_v38 = vadd.f32 %v7706_v46, %v14800_v11  ;;  %v8594_v49 = vsel %vm8483_vm4, %v8091_v5, %v8593_v58  ;;  %v14957_v27 = vcombine.high %v14931_v53, %v15487_v7 }
 0x73d   :  { %v8094_v35 = vadd.f32 %v7708_v14, %v14805_v26  ;;  %v8595_v50 = vsel %vm8485_vm5, %v8092_v6, %v8594_v49  ;;  %9883 = vpow2.f32 %v5391_v59  ;;  %v14963_v60 = vcombine.high %v14939_v52, %v15487_v7  ;;  %v9868_v34 = vpop.eup %9867 }
 0x73e   :  { %v8095_v1 = vadd.f32 %v7710_v13, %v14816_v18  ;;  %v8596_v11 = vsel %vm8487_vm6, %v8093_v38, %v8595_v50  ;;  %v14969_v36 = vcombine.high %v14947_v61, %v15487_v7  ;;  %v14973_v12 = vcombine.high %v14950_v29, %v15487_v7 }
 0x73f   :  { %v7712_v26 = vmul.f32 0.6931472, %v9868_v34  ;;  %v8597_v41 = vsel %vm8489_vm7, %v8094_v35, %v8596_v11  ;;  %v4841_v8 = vsel %vm3104_vm2, %v14931_v53, -inf  ;;  %v4848_v32 = vsel %vm3104_vm2, %v14957_v27, -inf }
 0x740   :  { %v8598_v18 = vsel %vm8491_vm8, %v8095_v1, %v8597_v41  ;;  %v4842_v44 = vrot.slane %v4841_v8, 4  ;;  %v4849_v24 = vrot.slane %v4848_v32, 4  ;;  %v4855_v33 = vsel %vm3104_vm2, %v14939_v52, -inf  ;;  %v9870_v37 = vpop.eup %9869 }
 0x741   :  { %v8096_v42 = vadd.f32 %v7712_v26, %v14820_v23  ;;  %v4856_v20 = vrot.slane %v4855_v33, 4  ;;  %v14986_v31 = vsel %vm3104_vm2, %v14963_v60, -inf  ;;  %v14990_v48 = vsel %vm3104_vm2, %v14947_v61, -inf }
 0x742   :  { %v9872_v9 = vpop.eup %9871  ;;  %v6449_v28 = vsel %vm3104_vm2, %v9870_v37, 0.0  ;;  %v4843_v3 = vmax.f32 %v4841_v8, %v4842_v44  ;;  %v14993_v43 = vmax.f32 %v4848_v32, %v4849_v24  ;;  %v4863_v4 = vrot.slane %v14986_v31, 4 }
 0x743   :  { %v9874_v39 = vpop.eup %9873  ;;  %v8599_v23 = vsel %vm8493_vm9, %v8096_v42, %v8598_v18  ;;  %v6450_v30 = vrot.slane %v6449_v28, 4  ;;  %v6456_v15 = vsel %vm3104_vm2, %v9872_v9, 0.0  ;;  %v14998_v56 = vmax.f32 %v4855_v33, %v4856_v20 }
 0x744   :  { %v9876_v17 = vpop.eup %9875  ;;  %8760 = vst.msk [vmem:[%s15233_s3 + $0x78] sm:$0xff] %vm8744_vm10, %v8599_v23  ;;  %v6457_v58 = vrot.slane %v6456_v15, 4  ;;  %v6463_v0 = vsel %vm3104_vm2, %v9874_v39, 0.0  ;;  %v4844_v21 = vrot.slane %v4843_v3, 2  ;;  %v4851_v16 = vrot.slane %v14993_v43, 2 }
 0x745   :  { %v9878_v25 = vpop.eup %9877  ;;  %v6451_v57 = vadd.f32 %v6450_v30, %v6449_v28  ;;  %v6464_v2 = vrot.slane %v6463_v0, 4  ;;  %v6470_v46 = vsel %vm3104_vm2, %v9876_v17, 0.0  ;;  %v4858_v5 = vrot.slane %v14998_v56, 2 }
 0x746   :  { %v9880_v62 = vpop.eup %9879  ;;  %v6458_v14 = vadd.f32 %v6457_v58, %v6456_v15  ;;  %v6471_v6 = vrot.slane %v6470_v46, 4  ;;  %v6477_v59 = vsel %vm3104_vm2, %v9878_v25, 0.0  ;;  %v4845_v13 = vmax.f32 %v4843_v3, %v4844_v21 }
 0x747   :  { %v6452_v38 = vrot.slane %v6451_v57, 2  ;;  %v6465_v49 = vadd.f32 %v6464_v2, %v6463_v0  ;;  %v6478_v35 = vrot.slane %v6477_v59, 4  ;;  %v6484_v50 = vsel %vm3104_vm2, %v9880_v62, 0.0 }
 0x748   :  { %v9882_v34 = vpop.eup %9881  ;;  %v6459_v1 = vrot.slane %v6458_v14, 2  ;;  %v6472_v11 = vadd.f32 %v6471_v6, %v6470_v46  ;;  %v6485_v26 = vrot.slane %v6484_v50, 4  ;;  %v4846_v41 = vrot.slane %v4845_v13, 1 }
 0x749   :  { %v6453_v8 = vadd.f32 %v6452_v38, %v6451_v57  ;;  %v6466_v32 = vrot.slane %v6465_v49, 2  ;;  %v6479_v18 = vadd.f32 %v6478_v35, %v6477_v59  ;;  %v6491_v44 = vsel %vm3104_vm2, %v9882_v34, 0.0 }
 0x74a   :  { %v9884_v24 = vpop.eup %9883  ;;  %v6460_v33 = vadd.f32 %v6459_v1, %v6458_v14  ;;  %v6473_v37 = vrot.slane %v6472_v11, 2  ;;  %v6486_v42 = vadd.f32 %v6485_v26, %v6484_v50  ;;  %v6492_v20 = vrot.slane %v6491_v44, 4 }
 0x74b   :  { %v6454_v9 = vrot.slane %v6453_v8, 1  ;;  %v6467_v28 = vadd.f32 %v6466_v32, %v6465_v49  ;;  %v6480_v3 = vrot.slane %v6479_v18, 2  ;;  %v6498_v39 = vsel %vm3104_vm2, %v9884_v24, 0.0 }
 0x74c   :  { %v6461_v23 = vrot.slane %v6460_v33, 1  ;;  %v6474_v30 = vadd.f32 %v6473_v37, %v6472_v11  ;;  %v6487_v15 = vrot.slane %v6486_v42, 2  ;;  %v6493_v17 = vadd.f32 %v6492_v20, %v6491_v44 }
 0x74d   :  { %v6455_v58 = vadd.f32 %v6454_v9, %v6453_v8  ;;  %v6468_v0 = vrot.slane %v6467_v28, 1  ;;  %v6481_v21 = vadd.f32 %v6480_v3, %v6479_v18  ;;  %v6499_v25 = vrot.slane %v6498_v39, 4 }
 0x74e   :  { %v6462_v57 = vadd.f32 %v6461_v23, %v6460_v33  ;;  %v6475_v2 = vrot.slane %v6474_v30, 1  ;;  %v6488_v46 = vadd.f32 %v6487_v15, %v6486_v42  ;;  %v6494_v62 = vrot.slane %v6493_v17, 2 }
 0x74f   :  { %v6469_v14 = vadd.f32 %v6468_v0, %v6467_v28  ;;  %v6482_v6 = vrot.slane %v6481_v21, 1  ;;  %v6500_v59 = vadd.f32 %v6499_v25, %v6498_v39  ;;  %9885 = vlog2.f32 %v6455_v58 }
 0x750   :  { %v6476_v38 = vadd.f32 %v6475_v2, %v6474_v30  ;;  %v6489_v49 = vrot.slane %v6488_v46, 1  ;;  %v6495_v35 = vadd.f32 %v6494_v62, %v6493_v17  ;;  %9887 = vlog2.f32 %v6462_v57 }
 0x751   :  { %v6483_v50 = vadd.f32 %v6482_v6, %v6481_v21  ;;  %v6501_v34 = vrot.slane %v6500_v59, 2  ;;  %9889 = vlog2.f32 %v6469_v14  ;;  %v15012_v1 = vmax.f32 %v4845_v13, %v4846_v41 }
 0x752   :  { %v6490_v11 = vadd.f32 %v6489_v49, %v6488_v46  ;;  %v6496_v26 = vrot.slane %v6495_v35, 1  ;;  %9891 = vlog2.f32 %v6476_v38  ;;  %v4852_v8 = vmax.f32 %v14993_v43, %v4851_v16 }
 0x753   :  { %v6502_v32 = vadd.f32 %v6501_v34, %v6500_v59  ;;  %9893 = vlog2.f32 %v6483_v50  ;;  %v4859_v18 = vmax.f32 %v14998_v56, %v4858_v5  ;;  %v4864_v44 = vmax.f32 %v14986_v31, %v4863_v4 }
 0x754   :  { %v6497_v24 = vadd.f32 %v6496_v26, %v6495_v35  ;;  %9895 = vlog2.f32 %v6490_v11  ;;  %v4853_v33 = vrot.slane %v4852_v8, 1  ;;  %v4870_v37 = vrot.slane %v14990_v48, 4 }
 0x755   :  { %v6503_v13 = vrot.slane %v6502_v32, 1  ;;  %v4860_v41 = vrot.slane %v4859_v18, 1  ;;  %v4865_v42 = vrot.slane %v4864_v44, 2  ;;  %v4876_v20 = vsel %vm3104_vm2, %v14969_v36, -inf }
 0x756   :  { %9897 = vlog2.f32 %v6497_v24  ;;  %v15022_v43 = vmax.f32 %v4852_v8, %v4853_v33  ;;  %v4871_v56 = vmax.f32 %v14990_v48, %v4870_v37  ;;  %v4877_v16 = vrot.slane %v4876_v20, 4 }
 0x757   :  { %v6504_v5 = vadd.f32 %v6503_v13, %v6502_v32  ;;  %v15025_v9 = vmax.f32 %v4859_v18, %v4860_v41  ;;  %v4866_v31 = vmax.f32 %v4864_v44, %v4865_v42  ;;  %v4883_v4 = vsel %vm3104_vm2, %v14950_v29, -inf }
 0x758   :  { %v4872_v28 = vrot.slane %v4871_v56, 2  ;;  %v4878_v3 = vmax.f32 %v4876_v20, %v4877_v16  ;;  %v4884_v39 = vrot.slane %v4883_v4, 4  ;;  %v4890_v23 = vsel %vm3104_vm2, %v14973_v12, -inf }
 0x759   :  { %9899 = vlog2.f32 %v6504_v5  ;;  %v4867_v30 = vrot.slane %v4866_v31, 1  ;;  %v4891_v15 = vrot.slane %v4890_v23, 4  ;;  %v5145_v48 = vsub.f32 %v14931_v53, %v15012_v1 }
 0x75a   :  { %v4873_v17 = vmax.f32 %v4871_v56, %v4872_v28  ;;  %v4879_v58 = vrot.slane %v4878_v3, 2  ;;  %v4885_v0 = vmax.f32 %v4883_v4, %v4884_v39  ;;  %v5146_v21 = vsub.f32 %v14957_v27, %v15022_v43 }
 0x75b   :  { %v15035_v25 = vmax.f32 %v4866_v31, %v4867_v30  ;;  %v4892_v57 = vmax.f32 %v4890_v23, %v4891_v15  ;;  %v5147_v2 = vsub.f32 %v14939_v52, %v15025_v9  ;;  %v5649_v46 = vmul.f32 1.442695, %v5145_v48 }
 0x75c   :  { %v9886_v62 = vpop.eup %9885  ;;  %v4874_v14 = vrot.slane %v4873_v17, 1  ;;  %v4880_v6 = vmax.f32 %v4878_v3, %v4879_v58  ;;  %v4886_v59 = vrot.slane %v4885_v0, 2  ;;  %v5651_v38 = vmul.f32 1.442695, %v5146_v21  ;;  %v893_v58 = vpop.permute.xlu0 %892 }
 0x75d   :  { %v9888_v49 = vpop.eup %9887  ;;  %v7682_v53 = vmul.f32 0.6931472, %v9886_v62  ;;  %v4893_v35 = vrot.slane %v4892_v57, 2  ;;  %v5148_v50 = vsub.f32 %v14963_v60, %v15035_v25  ;;  %9901 = vpow2.f32 %v5649_v46 }
 0x75e   :  { %v9890_v27 = vpop.eup %9889  ;;  %v7684_v34 = vmul.f32 0.6931472, %v9888_v49  ;;  %v15041_v11 = vmax.f32 %v4873_v17, %v4874_v14  ;;  %v4881_v26 = vrot.slane %v4880_v6, 1  ;;  %v4887_v8 = vmax.f32 %v4885_v0, %v4886_v59  ;;  %v15492_v49 = vld [vmem:[#allocation26_spill] sm:$0xff] }
 0x75f   :  { %v9892_v52 = vpop.eup %9891  ;;  %v7686_v32 = vmul.f32 0.6931472, %v9890_v27  ;;  %v8081_v18 = vadd.f32 %v7682_v53, %v14882_v54  ;;  %v4894_v44 = vmax.f32 %v4892_v57, %v4893_v35  ;;  %9903 = vpow2.f32 %v5651_v38 }
 0x760   :  { %v9894_v24 = vpop.eup %9893  ;;  %v7688_v33 = vmul.f32 0.6931472, %v9892_v52  ;;  %v8082_v37 = vadd.f32 %v7684_v34, %v14885_v10  ;;  %v15045_v13 = vmax.f32 %v4880_v6, %v4881_v26  ;;  %v4888_v60 = vrot.slane %v4887_v8, 1  ;;  %v15490_v6 = vld [vmem:[#allocation8_spill] sm:$0xff] }
 0x761   :  { %v9896_v41 = vpop.eup %9895  ;;  %v7690_v42 = vmul.f32 0.6931472, %v9894_v24  ;;  %v8083_v20 = vadd.f32 %v7686_v32, %v14889_v22  ;;  %v4895_v56 = vrot.slane %v4894_v44, 1  ;;  %v5149_v16 = vsub.f32 %v14947_v61, %v15041_v11 }
 0x762   :  { %v7692_v5 = vmul.f32 0.6931472, %v9896_v41  ;;  %v8084_v54 = vadd.f32 %v7688_v33, %v14894_v19  ;;  %v8586_v31 = vsel %vm8481_vm3, %v8082_v37, %v8081_v18  ;;  %v15052_v4 = vmax.f32 %v4887_v8, %v4888_v60 }
 0x763   :  { %v9898_v28 = vpop.eup %9897  ;;  %v8085_v10 = vadd.f32 %v7690_v42, %v14897_v55  ;;  %v8587_v3 = vsel %vm8483_vm4, %v8083_v20, %v8586_v31  ;;  %v15056_v39 = vmax.f32 %v4894_v44, %v4895_v56  ;;  %v5150_v22 = vsub.f32 %v14969_v36, %v15045_v13 }
 0x764   :  { %v7694_v23 = vmul.f32 0.6931472, %v9898_v28  ;;  %v8086_v61 = vadd.f32 %v7692_v5, %v14904_v45  ;;  %v8588_v30 = vsel %vm8485_vm5, %v8084_v54, %v8587_v3  ;;  %v5151_v19 = vsub.f32 %v14950_v29, %v15052_v4 }
 0x765   :  { %v8589_v15 = vsel %vm8487_vm6, %v8085_v10, %v8588_v30  ;;  %v5152_v55 = vsub.f32 %v14973_v12, %v15056_v39  ;;  %v5653_v48 = vmul.f32 1.442695, %v5147_v2  ;;  %v5655_v17 = vmul.f32 1.442695, %v5148_v50 }
 0x766   :  { %v9900_v0 = vpop.eup %9899  ;;  %v8087_v21 = vadd.f32 %v7694_v23, %v14925_v51  ;;  %v8590_v36 = vsel %vm8489_vm7, %v8086_v61, %v8589_v15  ;;  %v5657_v57 = vmul.f32 1.442695, %v5149_v16  ;;  %v5659_v45 = vmul.f32 1.442695, %v5150_v22  ;;  %v15491_v51 = vld [vmem:[#allocation4_spill] sm:$0xff] }
 0x767   :  { %v7696_v46 = vmul.f32 0.6931472, %v9900_v0  ;;  %9905 = vpow2.f32 %v5653_v48  ;;  %v5661_v62 = vmul.f32 1.442695, %v5151_v19  ;;  %v5663_v14 = vmul.f32 1.442695, %v5152_v55 }
 0x768   :  { %v8591_v29 = vsel %vm8491_vm8, %v8087_v21, %v8590_v36  ;;  %9907 = vpow2.f32 %v5655_v17  ;;  %v2984_v59 = vcombine.low %v15490_v6, %v893_v58  ;;  %v2985_v12 = vcombine.high %v15490_v6, %v893_v58 }
 0x769   :  { %v8088_v2 = vadd.f32 %v7696_v46, %v14934_v40  ;;  %9909 = vpow2.f32 %v5657_v57  ;;  %v15493_v53 = vcombine.low %v15491_v51, %v15492_v49  ;;  %v15494_v34 = vcombine.high %v15491_v51, %v15492_v49 }
 0x76a   :  { %v9902_v38 = vpop.eup %9901  ;;  %9911 = vpow2.f32 %v5659_v45  ;;  %v2992_v50 = vrot.slane %v2984_v59, %v10581_v63  ;;  %v2999_v27 = vrot.slane %v2985_v12, %v10581_v63 }
 0x76b   :  { %v2976_v35 = vrot.slane %v15493_v53, %v10581_v63  ;;  %v2983_v26 = vrot.slane %v15494_v34, %v10581_v63  ;;  %v8592_v8 = vsel %vm8493_vm9, %v8088_v2, %v8591_v29  ;;  %9913 = vpow2.f32 %v5661_v62 }
 0x76c   :  { %v7401_v40 = vsel %vm3104_vm2, %v9902_v38, 0.0  ;;  %v9904_v52 = vpop.eup %9903  ;;  %8759 = vst.msk [vmem:[%s15233_s3 + $0x70] sm:$0xff] %vm8744_vm10, %v8592_v8  ;;  %9915 = vpow2.f32 %v5663_v14 }
 0x76d   :  { %v7402_v32 = vrot.slane %v7401_v40, 4  ;;  %v3000_v18 = vcombine.low %v2976_v35, %v2992_v50  ;;  %v3001_v44 = vcombine.high %v2976_v35, %v2992_v50  ;;  %v7408_v24 = vsel %vm3104_vm2, %v9904_v52, 0.0 }
 0x76e   :  { %v3016_v33 = vcombine.low %v2983_v26, %v2999_v27  ;;  %v3017_v37 = vcombine.high %v2983_v26, %v2999_v27  ;;  %v7409_v60 = vrot.slane %v7408_v24, 4 }
 0x76f   :  { %v7403_v63 = vadd.f32 %v7402_v32, %v7401_v40  ;;  %v15091_v41 = vrot.slane %v3000_v18, %v15486_v47  ;;  %v15094_v42 = vrot.slane %v3001_v44, %v15486_v47 }
 0x770   :  { %v15097_v20 = vrot.slane %v3016_v33, %v15486_v47  ;;  %v15100_v56 = vrot.slane %v3017_v37, %v15486_v47  ;;  %v7410_v5 = vadd.f32 %v7409_v60, %v7408_v24 }
 0x771   :  { %v7404_v16 = vrot.slane %v7403_v63, 2  ;;  %v15104_v54 = vcombine.high %v15091_v41, %v15487_v7  ;;  %v15108_v31 = vcombine.high %v15094_v42, %v15487_v7  ;;  %v4785_v10 = vsel %vm3104_vm2, %v15091_v41, -inf }
 0x772   :  { %v15112_v28 = vcombine.high %v15097_v20, %v15487_v7  ;;  %v4799_v47 = vsel %vm3104_vm2, %v15094_v42, -inf  ;;  %v7411_v22 = vrot.slane %v7410_v5, 2  ;;  %v4786_v23 = vrot.slane %v4785_v10, 4 }
 0x773   :  { %v7405_v3 = vadd.f32 %v7404_v16, %v7403_v63  ;;  %v4792_v61 = vsel %vm3104_vm2, %v15104_v54, -inf  ;;  %v15122_v30 = vcombine.high %v15100_v56, %v15487_v7  ;;  %v4800_v15 = vrot.slane %v4799_v47, 4 }
 0x774   :  { %v4793_v19 = vrot.slane %v4792_v61, 4  ;;  %v15126_v55 = vsel %vm3104_vm2, %v15108_v31, -inf  ;;  %v9906_v48 = vpop.eup %9905  ;;  %v7412_v58 = vadd.f32 %v7411_v22, %v7410_v5  ;;  %v4787_v0 = vmax.f32 %v4785_v10, %v4786_v23 }
 0x775   :  { %v7406_v17 = vrot.slane %v7405_v3, 1  ;;  %v15130_v21 = vsel %vm3104_vm2, %v15097_v20, -inf  ;;  %v9908_v36 = vpop.eup %9907  ;;  %v7415_v57 = vsel %vm3104_vm2, %v9906_v48, 0.0  ;;  %v15133_v7 = vmax.f32 %v4799_v47, %v4800_v15 }
 0x776   :  { %v4794_v45 = vmax.f32 %v4792_v61, %v4793_v19  ;;  %v4807_v46 = vrot.slane %v15126_v55, 4  ;;  %v9910_v62 = vpop.eup %9909  ;;  %v7413_v29 = vrot.slane %v7412_v58, 1  ;;  %v7416_v6 = vrot.slane %v7415_v57, 4 }
 0x777   :  { %v7407_v14 = vadd.f32 %v7406_v17, %v7405_v3  ;;  %v7422_v59 = vsel %vm3104_vm2, %v9908_v36, 0.0  ;;  %v9912_v12 = vpop.eup %9911  ;;  %v7429_v38 = vsel %vm3104_vm2, %v9910_v62, 0.0  ;;  %v4788_v51 = vrot.slane %v4787_v0, 2 }
 0x778   :  { %v7423_v2 = vrot.slane %v7422_v59, 4  ;;  %v4795_v49 = vrot.slane %v4794_v45, 2  ;;  %v9914_v53 = vpop.eup %9913  ;;  %v7414_v35 = vadd.f32 %v7413_v29, %v7412_v58  ;;  %v7417_v50 = vadd.f32 %v7416_v6, %v7415_v57 }
 0x779   :  { %v7430_v27 = vrot.slane %v7429_v38, 4  ;;  %v7436_v34 = vsel %vm3104_vm2, %v9912_v12, 0.0  ;;  %v9916_v26 = vpop.eup %9915  ;;  %v7443_v52 = vsel %vm3104_vm2, %v9914_v53, 0.0  ;;  %9917 = vlog2.f32 %v7407_v14 }
 0x77a   :  { %v7424_v8 = vadd.f32 %v7423_v2, %v7422_v59  ;;  %v7437_v40 = vrot.slane %v7436_v34, 4  ;;  %v7418_v32 = vrot.slane %v7417_v50, 2  ;;  %v7444_v44 = vrot.slane %v7443_v52, 4 }
 0x77b   :  { %v7431_v18 = vadd.f32 %v7430_v27, %v7429_v38  ;;  %v7450_v24 = vsel %vm3104_vm2, %v9916_v26, 0.0  ;;  %9919 = vlog2.f32 %v7414_v35  ;;  %v4789_v10 = vmax.f32 %v4787_v0, %v4788_v51 }
 0x77c   :  { %v7425_v33 = vrot.slane %v7424_v8, 2  ;;  %v7438_v37 = vadd.f32 %v7437_v40, %v7436_v34  ;;  %v7451_v63 = vrot.slane %v7450_v24, 4  ;;  %v7419_v60 = vadd.f32 %v7418_v32, %v7417_v50 }
 0x77d   :  { %v7432_v16 = vrot.slane %v7431_v18, 2  ;;  %v7445_v5 = vadd.f32 %v7444_v44, %v7443_v52  ;;  %v4796_v23 = vmax.f32 %v4794_v45, %v4795_v49  ;;  %v4790_v48 = vrot.slane %v4789_v10, 1 }
 0x77e   :  { %v7426_v47 = vadd.f32 %v7425_v33, %v7424_v8  ;;  %v7439_v3 = vrot.slane %v7438_v37, 2  ;;  %v7452_v22 = vadd.f32 %v7451_v63, %v7450_v24  ;;  %v7420_v61 = vrot.slane %v7419_v60, 1 }
 0x77f   :  { %v7433_v19 = vadd.f32 %v7432_v16, %v7431_v18  ;;  %v7446_v15 = vrot.slane %v7445_v5, 2  ;;  %v4814_v57 = vrot.slane %v15130_v21, 4  ;;  %v4797_v6 = vrot.slane %v4796_v23, 1 }
 0x780   :  { %v7427_v17 = vrot.slane %v7426_v47, 1  ;;  %v7440_v58 = vadd.f32 %v7439_v3, %v7438_v37  ;;  %v7453_v36 = vrot.slane %v7452_v22, 2  ;;  %v7421_v62 = vadd.f32 %v7420_v61, %v7419_v60 }
 0x781   :  { %v7434_v14 = vrot.slane %v7433_v19, 1  ;;  %v7447_v29 = vadd.f32 %v7446_v15, %v7445_v5  ;;  %v15142_v2 = vmax.f32 %v4789_v10, %v4790_v48  ;;  %v4802_v51 = vrot.slane %v15133_v7, 2 }
 0x782   :  { %v7428_v59 = vadd.f32 %v7427_v17, %v7426_v47  ;;  %v7441_v12 = vrot.slane %v7440_v58, 1  ;;  %v7454_v0 = vadd.f32 %v7453_v36, %v7452_v22  ;;  %9921 = vlog2.f32 %v7421_v62 }
 0x783   :  { %v7435_v38 = vadd.f32 %v7434_v14, %v7433_v19  ;;  %v7448_v45 = vrot.slane %v7447_v29, 1  ;;  %v4808_v35 = vmax.f32 %v15126_v55, %v4807_v46  ;;  %v4803_v27 = vmax.f32 %v15133_v7, %v4802_v51 }
 0x784   :  { %v7442_v49 = vadd.f32 %v7441_v12, %v7440_v58  ;;  %v7455_v53 = vrot.slane %v7454_v0, 1  ;;  %9923 = vlog2.f32 %v7428_v59  ;;  %v4815_v34 = vmax.f32 %v15130_v21, %v4814_v57 }
 0x785   :  { %v7449_v50 = vadd.f32 %v7448_v45, %v7447_v29  ;;  %9925 = vlog2.f32 %v7435_v38  ;;  %v4809_v8 = vrot.slane %v4808_v35, 2  ;;  %v4820_v40 = vsel %vm3104_vm2, %v15112_v28, -inf }
 0x786   :  { %v7456_v26 = vadd.f32 %v7455_v53, %v7454_v0  ;;  %9927 = vlog2.f32 %v7442_v49  ;;  %v9918_v52 = vpop.eup %9917  ;;  %v4804_v32 = vrot.slane %v4803_v27, 1  ;;  %v4816_v18 = vrot.slane %v4815_v34, 2 }
 0x787   :  { %9929 = vlog2.f32 %v7449_v50  ;;  %v4821_v44 = vrot.slane %v4820_v40, 4  ;;  %v15150_v24 = vmax.f32 %v4796_v23, %v4797_v6  ;;  %v4810_v55 = vmax.f32 %v4808_v35, %v4809_v8 }
 0x788   :  { %9931 = vlog2.f32 %v7456_v26  ;;  %v4827_v7 = vsel %vm3104_vm2, %v15100_v56, -inf  ;;  %v9920_v46 = vpop.eup %9919  ;;  %v7954_v21 = vmul.f32 0.6931472, %v9918_v52  ;;  %v4817_v33 = vmax.f32 %v4815_v34, %v4816_v18 }
 0x789   :  { %v4822_v37 = vmax.f32 %v4820_v40, %v4821_v44  ;;  %v4828_v63 = vrot.slane %v4827_v7, 4  ;;  %v7956_v60 = vmul.f32 0.6931472, %v9920_v46  ;;  %v15154_v16 = vmax.f32 %v4803_v27, %v4804_v32 }
 0x78a   :  { %v4811_v5 = vrot.slane %v4810_v55, 1  ;;  %v4834_v10 = vsel %vm3104_vm2, %v15122_v30, -inf  ;;  %v4818_v47 = vrot.slane %v4817_v33, 1  ;;  %v5137_v15 = vsub.f32 %v15091_v41, %v15142_v2 }
 0x78b   :  { %v4823_v3 = vrot.slane %v4822_v37, 2  ;;  %v4829_v22 = vmax.f32 %v4827_v7, %v4828_v63  ;;  %v4835_v23 = vrot.slane %v4834_v10, 4  ;;  %v8218_v61 = vadd.f32 %v7956_v60, %v15022_v43 }
 0x78c   :  { %v15159_v19 = vmax.f32 %v4810_v55, %v4811_v5  ;;  %v5138_v48 = vsub.f32 %v15104_v54, %v15150_v24  ;;  %v15165_v17 = vmax.f32 %v4817_v33, %v4818_v47  ;;  %v8217_v62 = vadd.f32 %v7954_v21, %v15012_v1 }
 0x78d   :  { %v4824_v58 = vmax.f32 %v4822_v37, %v4823_v3  ;;  %v4830_v36 = vrot.slane %v4829_v22, 2  ;;  %v4836_v57 = vmax.f32 %v4834_v10, %v4835_v23  ;;  %v5139_v14 = vsub.f32 %v15094_v42, %v15154_v16 }
 0x78e   :  { %v5140_v43 = vsub.f32 %v15108_v31, %v15159_v19  ;;  %v5633_v29 = vmul.f32 1.442695, %v5137_v15  ;;  %v5141_v54 = vsub.f32 %v15097_v20, %v15165_v17  ;;  %v8705_v0 = vsel %vm8481_vm3, %v8218_v61, %v8217_v62 }
 0x78f   :  { %v4825_v6 = vrot.slane %v4824_v58, 1  ;;  %v4831_v59 = vmax.f32 %v4829_v22, %v4830_v36  ;;  %v4837_v41 = vrot.slane %v4836_v57, 2  ;;  %v9922_v12 = vpop.eup %9921  ;;  %v5635_v38 = vmul.f32 1.442695, %v5138_v48 }
 0x790   :  { %9933 = vpow2.f32 %v5633_v29  ;;  %v5637_v45 = vmul.f32 1.442695, %v5139_v14  ;;  %v7958_v51 = vmul.f32 0.6931472, %v9922_v12  ;;  %v5639_v50 = vmul.f32 1.442695, %v5140_v43 }
 0x791   :  { %v9924_v1 = vpop.eup %9923  ;;  %v15175_v49 = vmax.f32 %v4824_v58, %v4825_v6  ;;  %v4832_v42 = vrot.slane %v4831_v59, 1  ;;  %v4838_v53 = vmax.f32 %v4836_v57, %v4837_v41  ;;  %9935 = vpow2.f32 %v5635_v38 }
 0x792   :  { %v9926_v31 = vpop.eup %9925  ;;  %v7960_v35 = vmul.f32 0.6931472, %v9924_v1  ;;  %v5641_v27 = vmul.f32 1.442695, %v5141_v54  ;;  %v8219_v20 = vadd.f32 %v7958_v51, %v15025_v9  ;;  %9937 = vpow2.f32 %v5637_v45 }
 0x793   :  { %v9928_v34 = vpop.eup %9927  ;;  %v7962_v26 = vmul.f32 0.6931472, %v9926_v31  ;;  %v15178_v8 = vmax.f32 %v4831_v59, %v4832_v42  ;;  %v4839_v40 = vrot.slane %v4838_v53, 1  ;;  %v5142_v44 = vsub.f32 %v15112_v28, %v15175_v49 }
 0x794   :  { %v9930_v52 = vpop.eup %9929  ;;  %v7964_v32 = vmul.f32 0.6931472, %v9928_v34  ;;  %v8220_v18 = vadd.f32 %v7960_v35, %v15035_v25  ;;  %v8706_v21 = vsel %vm8483_vm4, %v8219_v20, %v8705_v0  ;;  %9939 = vpow2.f32 %v5639_v50 }
 0x795   :  { %v9932_v55 = vpop.eup %9931  ;;  %v7966_v7 = vmul.f32 0.6931472, %v9930_v52  ;;  %v8221_v46 = vadd.f32 %v7962_v26, %v15041_v11  ;;  %v15185_v33 = vmax.f32 %v4838_v53, %v4839_v40  ;;  %v5143_v25 = vsub.f32 %v15100_v56, %v15178_v8 }
 0x796   :  { %v7968_v9 = vmul.f32 0.6931472, %v9932_v55  ;;  %v8222_v37 = vadd.f32 %v7964_v32, %v15045_v13  ;;  %v8707_v63 = vsel %vm8485_vm5, %v8220_v18, %v8706_v21  ;;  %9941 = vpow2.f32 %v5641_v27 }
 0x797   :  { %v8223_v60 = vadd.f32 %v7966_v7, %v15052_v4  ;;  %v8708_v28 = vsel %vm8487_vm6, %v8221_v46, %v8707_v63  ;;  %v5144_v5 = vsub.f32 %v15122_v30, %v15185_v33  ;;  %v5643_v47 = vmul.f32 1.442695, %v5142_v44 }
 0x798   :  { %v8224_v11 = vadd.f32 %v7968_v9, %v15056_v39  ;;  %v8709_v10 = vsel %vm8489_vm7, %v8222_v37, %v8708_v28  ;;  %v5645_v3 = vmul.f32 1.442695, %v5143_v25 }
 0x799   :  { %v8710_v13 = vsel %vm8491_vm8, %v8223_v60, %v8709_v10  ;;  %v5647_v22 = vmul.f32 1.442695, %v5144_v5  ;;  %9943 = vpow2.f32 %v5643_v47 }
 0x79a   :  { %v8711_v56 = vsel %vm8493_vm9, %v8224_v11, %v8710_v13  ;;  %9945 = vpow2.f32 %v5645_v3 }
 0x79b   :  { %8776 = vst.msk [vmem:[%s15233_s3 + $0xf8] sm:$0xff] %vm8744_vm10, %v8711_v56  ;;  %9947 = vpow2.f32 %v5647_v22 }
 0x79d   :  { %v9934_v4 = vpop.eup %9933 }
 0x79e   :  { %v7345_v39 = vsel %vm3104_vm2, %v9934_v4, 0.0  ;;  %v9936_v30 = vpop.eup %9935 }
 0x79f   :  { %v7346_v23 = vrot.slane %v7345_v39, 4  ;;  %v7352_v61 = vsel %vm3104_vm2, %v9936_v30, 0.0  ;;  %v9938_v15 = vpop.eup %9937 }
 0x7a0   :  { %v7353_v58 = vrot.slane %v7352_v61, 4  ;;  %v7359_v36 = vsel %vm3104_vm2, %v9938_v15, 0.0 }
 0x7a1   :  { %v7347_v48 = vadd.f32 %v7346_v23, %v7345_v39  ;;  %v7360_v14 = vrot.slane %v7359_v36, 4  ;;  %v9940_v43 = vpop.eup %9939 }
 0x7a2   :  { %v7354_v62 = vadd.f32 %v7353_v58, %v7352_v61  ;;  %v7366_v54 = vsel %vm3104_vm2, %v9940_v43, 0.0 }
 0x7a3   :  { %v7348_v57 = vrot.slane %v7347_v48, 2  ;;  %v9942_v29 = vpop.eup %9941  ;;  %v7361_v41 = vadd.f32 %v7360_v14, %v7359_v36  ;;  %v7367_v12 = vrot.slane %v7366_v54, 4 }
 0x7a4   :  { %v7355_v59 = vrot.slane %v7354_v62, 2  ;;  %v7373_v0 = vsel %vm3104_vm2, %v9942_v29, 0.0 }
 0x7a5   :  { %v7349_v6 = vadd.f32 %v7348_v57, %v7347_v48  ;;  %v7362_v51 = vrot.slane %v7361_v41, 2  ;;  %v7374_v42 = vrot.slane %v7373_v0, 4  ;;  %v7368_v31 = vadd.f32 %v7367_v12, %v7366_v54 }
 0x7a6   :  { %v9944_v38 = vpop.eup %9943  ;;  %v7356_v1 = vadd.f32 %v7355_v59, %v7354_v62 }
 0x7a7   :  { %v7350_v45 = vrot.slane %v7349_v6, 1  ;;  %v9946_v53 = vpop.eup %9945  ;;  %v7380_v35 = vsel %vm3104_vm2, %v9944_v38, 0.0  ;;  %v7363_v26 = vadd.f32 %v7362_v51, %v7361_v41  ;;  %v7375_v20 = vadd.f32 %v7374_v42, %v7373_v0 }
 0x7a8   :  { %v9948_v50 = vpop.eup %9947  ;;  %v7357_v34 = vrot.slane %v7356_v1, 1  ;;  %v7369_v40 = vrot.slane %v7368_v31, 2  ;;  %v7381_v52 = vrot.slane %v7380_v35, 4  ;;  %v7387_v32 = vsel %vm3104_vm2, %v9946_v53, 0.0 }
 0x7a9   :  { %v7351_v27 = vadd.f32 %v7350_v45, %v7349_v6  ;;  %v7394_v18 = vsel %vm3104_vm2, %v9948_v50, 0.0  ;;  %v7364_v55 = vrot.slane %v7363_v26, 1  ;;  %v7376_v7 = vrot.slane %v7375_v20, 2 }
 0x7aa   :  { %v7358_v44 = vadd.f32 %v7357_v34, %v7356_v1  ;;  %v7388_v46 = vrot.slane %v7387_v32, 4  ;;  %v7370_v21 = vadd.f32 %v7369_v40, %v7368_v31  ;;  %v7382_v9 = vadd.f32 %v7381_v52, %v7380_v35 }
 0x7ab   :  { %v7395_v37 = vrot.slane %v7394_v18, 4  ;;  %9949 = vlog2.f32 %v7351_v27  ;;  %v7365_v63 = vadd.f32 %v7364_v55, %v7363_v26  ;;  %v7377_v25 = vadd.f32 %v7376_v7, %v7375_v20 }
 0x7ac   :  { %v7389_v60 = vadd.f32 %v7388_v46, %v7387_v32  ;;  %9951 = vlog2.f32 %v7358_v44  ;;  %v7371_v28 = vrot.slane %v7370_v21, 1  ;;  %v7383_v5 = vrot.slane %v7382_v9, 2 }
 0x7ad   :  { %v7396_v11 = vadd.f32 %v7395_v37, %v7394_v18  ;;  %v7378_v10 = vrot.slane %v7377_v25, 1  ;;  %9953 = vlog2.f32 %v7365_v63 }
 0x7ae   :  { %v7390_v47 = vrot.slane %v7389_v60, 2  ;;  %v7372_v13 = vadd.f32 %v7371_v28, %v7370_v21  ;;  %v7384_v3 = vadd.f32 %v7383_v5, %v7382_v9 }
 0x7af   :  { %v7397_v22 = vrot.slane %v7396_v11, 2  ;;  %v7379_v56 = vadd.f32 %v7378_v10, %v7377_v25 }
 0x7b0   :  { %v7391_v4 = vadd.f32 %v7390_v47, %v7389_v60  ;;  %v7385_v39 = vrot.slane %v7384_v3, 1  ;;  %9955 = vlog2.f32 %v7372_v13 }
 0x7b1   :  { %v7398_v30 = vadd.f32 %v7397_v22, %v7396_v11  ;;  %9957 = vlog2.f32 %v7379_v56 }
 0x7b2   :  { %v7392_v23 = vrot.slane %v7391_v4, 1  ;;  %v7386_v61 = vadd.f32 %v7385_v39, %v7384_v3 }
 0x7b3   :  { %v7399_v15 = vrot.slane %v7398_v30, 1 }
 0x7b4   :  { %v7393_v48 = vadd.f32 %v7392_v23, %v7391_v4  ;;  %9959 = vlog2.f32 %v7386_v61 }
 0x7b5   :  { %v7400_v58 = vadd.f32 %v7399_v15, %v7398_v30 }
 0x7b6   :  { %9961 = vlog2.f32 %v7393_v48 }
 0x7b7   :  { %9963 = vlog2.f32 %v7400_v58 }
 0x7b8   :  { %v9950_v36 = vpop.eup %9949 }
 0x7b9   :  { %v9952_v57 = vpop.eup %9951  ;;  %v7938_v62 = vmul.f32 0.6931472, %v9950_v36 }
 0x7ba   :  { %v7940_v14 = vmul.f32 0.6931472, %v9952_v57  ;;  %v9954_v43 = vpop.eup %9953 }
 0x7bb   :  { %v7942_v29 = vmul.f32 0.6931472, %v9954_v43  ;;  %v8209_v6 = vadd.f32 %v7938_v62, %v15142_v2 }
 0x7bc   :  { %v8210_v59 = vadd.f32 %v7940_v14, %v15150_v24 }
 0x7bd   :  { %v9956_v41 = vpop.eup %9955  ;;  %v8211_v54 = vadd.f32 %v7942_v29, %v15154_v16 }
 0x7be   :  { %v8698_v12 = vsel %vm8481_vm3, %v8210_v59, %v8209_v6  ;;  %v9958_v0 = vpop.eup %9957  ;;  %v7944_v38 = vmul.f32 0.6931472, %v9956_v41 }
 0x7bf   :  { %v7946_v45 = vmul.f32 0.6931472, %v9958_v0  ;;  %v8699_v1 = vsel %vm8483_vm4, %v8211_v54, %v8698_v12 }
 0x7c0   :  { %v8212_v51 = vadd.f32 %v7944_v38, %v15159_v19 }
 0x7c1   :  { %v9960_v42 = vpop.eup %9959  ;;  %v8213_v53 = vadd.f32 %v7946_v45, %v15165_v17 }
 0x7c2   :  { %v7948_v35 = vmul.f32 0.6931472, %v9960_v42  ;;  %v8700_v2 = vsel %vm8485_vm5, %v8212_v51, %v8699_v1 }
 0x7c3   :  { %v9962_v31 = vpop.eup %9961  ;;  %v8701_v16 = vsel %vm8487_vm6, %v8213_v53, %v8700_v2 }
 0x7c4   :  { %v9964_v24 = vpop.eup %9963  ;;  %v7950_v50 = vmul.f32 0.6931472, %v9962_v31  ;;  %v8214_v34 = vadd.f32 %v7948_v35, %v15175_v49 }
 0x7c5   :  { %v7952_v27 = vmul.f32 0.6931472, %v9964_v24 }
 0x7c6   :  { %v8215_v26 = vadd.f32 %v7950_v50, %v15178_v8  ;;  %v8702_v19 = vsel %vm8489_vm7, %v8214_v34, %v8701_v16 }
 0x7c7   :  { %v8216_v20 = vadd.f32 %v7952_v27, %v15185_v33 }
 0x7c8   :  { %v8703_v40 = vsel %vm8491_vm8, %v8215_v26, %v8702_v19 }
 0x7c9   :  { %v8704_v17 = vsel %vm8493_vm9, %v8216_v20, %v8703_v40 }
 0x7ca   :  { %8775 = vst.msk [vmem:[%s15233_s3 + $0xf0] sm:$0xff] %vm8744_vm10, %v8704_v17 }

</bundles_post_ra>
